<compile_context>
chip_gen: v7x
topology: tpu7x:2x2x1
jax: 0.10.0
libtpu: 0.0.40
codegen_flags: <defaults>
</compile_context>

<pallas_src>
import jax
import jax.numpy as jnp
from jax.experimental import pallas as pl
from jax.experimental.pallas import tpu as pltpu


def _round_up(x, m):
    return (x + m - 1) // m * m


# --------------------------------------------------------------------------
# Kernel
# --------------------------------------------------------------------------
def _head_kernel(ert_ref, sen_ref, w1e_ref, w1s_ref, b1_ref,
                 w2_ref, b2_ref, w3_ref, b3_ref, w4_ref, b4_ref,
                 out_ref):
    """One batch tile of the classification head (eval mode)."""
    # Linear-1, split into the small (e1|r|e2) part and the big sentence part
    # so the concatenated z never materializes in HBM.
    h = (jnp.dot(ert_ref[...], w1e_ref[...], preferred_element_type=jnp.float32)
         + jnp.dot(sen_ref[...], w1s_ref[...], preferred_element_type=jnp.float32)
         + b1_ref[...])

    # Linear-2 (Dropout = identity in eval; see TODO(synk) above).
    h = jnp.dot(h.astype(jnp.bfloat16), w2_ref[...],
                preferred_element_type=jnp.float32) + b2_ref[...]

    # Linear-3 with eval-mode BatchNorm1d folded in, then ReLU.
    h = jnp.dot(h.astype(jnp.bfloat16), w3_ref[...],
                preferred_element_type=jnp.float32) + b3_ref[...]
    h = jnp.maximum(h, 0.0)

    # Final Linear -> sigmoid (exp runs on the EUP slot; divide cost is tiny).
    logit = jnp.dot(h.astype(jnp.bfloat16), w4_ref[...],
                    preferred_element_type=jnp.float32) + b4_ref[...]
    out_ref[...] = 1.0 / (1.0 + jnp.exp(-logit))


# --------------------------------------------------------------------------
# Wrappers
# --------------------------------------------------------------------------
def _resident(arr):
    # Constant block index => DMA'd once, stays resident in VMEM across all
    # batch tiles of the grid.
    return pl.BlockSpec(arr.shape, lambda i: (0,) * arr.ndim)


def hybrid_classification(ert, sen, kp, *, tile_b=256):
    """Fused MLP + folded-BN + ReLU + sigmoid head, gridded over the batch."""
    B = ert.shape[0]
    Bp = _round_up(B, tile_b)
    if Bp != B:
        ert = jnp.pad(ert, ((0, Bp - B), (0, 0)))
        sen = jnp.pad(sen, ((0, Bp - B), (0, 0)))

    out = pl.pallas_call(
        _head_kernel,
        out_shape=jax.ShapeDtypeStruct((Bp, 1), jnp.float32),
        grid=(Bp // tile_b,),
        in_specs=[
            pl.BlockSpec((tile_b, ert.shape[1]), lambda i: (i, 0)),
            pl.BlockSpec((tile_b, sen.shape[1]), lambda i: (i, 0)),
            _resident(kp["w1e"]),
            _resident(kp["w1s"]),
            _resident(kp["b1"]),
            _resident(kp["w2"]),
            _resident(kp["b2"]),
            _resident(kp["w3"]),
            _resident(kp["b3"]),
            _resident(kp["w4"]),
            _resident(kp["b4"]),
        ],
        out_specs=pl.BlockSpec((tile_b, 1), lambda i: (i, 0)),
        compiler_params=pltpu.CompilerParams(
            dimension_semantics=("parallel",)),  # both TCs on v7x; no-op v5e/v6e
    )(ert, sen, kp["w1e"], kp["w1s"], kp["b1"], kp["w2"], kp["b2"],
      kp["w3"], kp["b3"], kp["w4"], kp["b4"])
    return out[:B]


def hybrid_forward(e1_idx, rel_idx, e2_idx, sen_idx,
                   ent_emb, rel_emb, sen_emb, kparams):
    """Embedding gathers are cheap XLA glue; the MLP hot path runs in Pallas.
    Only the tiny (B, 3*D) slab is concatenated; the big sentence slab goes to
    the kernel directly, in bf16, avoiding an HBM round-trip of z."""
    h = jnp.take(ent_emb, e1_idx, axis=0)
    r = jnp.take(rel_emb, rel_idx, axis=0)
    t = jnp.take(ent_emb, e2_idx, axis=0)
    s = jnp.take(sen_emb, sen_idx, axis=0)           # type='training' path
    ert = jnp.concatenate([h, r, t], axis=1).astype(jnp.bfloat16)
    sen = s.astype(jnp.bfloat16)
    return hybrid_classification(ert, sen, kparams)


def prepare_params(p, embedding_dim):
    """Fold eval-mode BN into Linear-3, zero-pad feature dims to lane
    multiples, split w1 into (e1|r|e2) / sentence parts, cast weights to bf16.
    Biases stay f32 (elementwise path)."""
    eps = 1e-5
    scale = p["gamma"] * jax.lax.rsqrt(p["var"] + eps)          # (1, W1)
    w3f = p["w3"] * scale                                       # fold BN
    b3f = (p["b3"] - p["mean"]) * scale + p["beta"]

    def pad2(x, rows, cols):
        return jnp.pad(x, ((0, rows - x.shape[0]), (0, cols - x.shape[1])))

    d3 = 3 * embedding_dim
    W1 = p["w1"].shape[1]
    W2 = p["w2"].shape[1]
    W1p = _round_up(W1, 128)
    W2p = _round_up(W2, 128)
    sen_rows = p["w1"].shape[0] - d3

    return dict(
        w1e=pad2(p["w1"][:d3], d3, W1p).astype(jnp.bfloat16),
        w1s=pad2(p["w1"][d3:], sen_rows, W1p).astype(jnp.bfloat16),
        b1=pad2(p["b1"], 1, W1p),
        w2=pad2(p["w2"], W1p, W2p).astype(jnp.bfloat16),
        b2=pad2(p["b2"], 1, W2p),
        w3=pad2(w3f, W2p, W1p).astype(jnp.bfloat16),
        b3=pad2(b3f, 1, W1p),
        w4=pad2(p["w4"], W1p, 1).astype(jnp.bfloat16),
        b4=p["b4"],
    )


# --------------------------------------------------------------------------
# References
# --------------------------------------------------------------------------
def _reference_matching(e1_idx, rel_idx, e2_idx, sen_idx,
                        ent_emb, rel_emb, sen_emb, kp):
    """Same bf16 weights / folded BN as the kernel -> tight comparison."""
    h = jnp.take(ent_emb, e1_idx, axis=0)
    r = jnp.take(rel_emb, rel_idx, axis=0)
    t = jnp.take(ent_emb, e2_idx, axis=0)
    s = jnp.take(sen_emb, sen_idx, axis=0)
    ert = jnp.concatenate([h, r, t], axis=1).astype(jnp.bfloat16)
    sen = s.astype(jnp.bfloat16)
    x = (jnp.dot(ert, kp["w1e"], preferred_element_type=jnp.float32)
         + jnp.dot(sen, kp["w1s"], preferred_element_type=jnp.float32)
         + kp["b1"])
    x = jnp.dot(x.astype(jnp.bfloat16), kp["w2"],
                preferred_element_type=jnp.float32) + kp["b2"]
    x = jnp.dot(x.astype(jnp.bfloat16), kp["w3"],
                preferred_element_type=jnp.float32) + kp["b3"]
    x = jnp.maximum(x, 0.0)
    logit = jnp.dot(x.astype(jnp.bfloat16), kp["w4"],
                    preferred_element_type=jnp.float32) + kp["b4"]
    return 1.0 / (1.0 + jnp.exp(-logit))


def _reference_f32(e1_idx, rel_idx, e2_idx, sen_idx,
                   ent_emb, rel_emb, sen_emb, p):
    """Original module semantics, full f32 (loose sanity check vs bf16)."""
    h = jnp.take(ent_emb, e1_idx, axis=0)
    r = jnp.take(rel_emb, rel_idx, axis=0)
    t = jnp.take(ent_emb, e2_idx, axis=0)
    s = jnp.take(sen_emb, sen_idx, axis=0)
    z = jnp.concatenate([h, r, t, s], axis=1)
    x = z @ p["w1"] + p["b1"]
    x = x @ p["w2"] + p["b2"]
    x = x @ p["w3"] + p["b3"]
    x = (x - p["mean"]) / jnp.sqrt(p["var"] + 1e-5) * p["gamma"] + p["beta"]
    x = jnp.maximum(x, 0.0)
    x = x @ p["w4"] + p["b4"]
    return jax.nn.sigmoid(x)


# --------------------------------------------------------------------------
# Test harness
# --------------------------------------------------------------------------
if __name__ == "__main__":
    key = jax.random.PRNGKey(0)

    # Module-consistent shapes (small tables, batch large enough to exercise
    # the batch grid: 512 rows = 2 tiles of 256).
    D = 16                              # embedding_dim
    num_entities = 50
    num_relations = 10
    num_sentences = 64                  # len(emb_sentences_train)
    sentence_dim = 768 * 3              # 2304 (fixed by the module)
    B = 512                             # batch (2 grid tiles of 256)
    W1 = int(25.6 * D)                  # shallom_width  = 409
    W2 = int(12.8 * D)                  # shallom_width2 = 204
    in_dim = 3 * D + sentence_dim       # 2352

    keys = jax.random.split(key, 20)

    def uni(k, shape, fan_in):
        bound = 1.0 / float(fan_in) ** 0.5
        return jax.random.uniform(k, shape, jnp.float32, -bound, bound)

    # Frozen embedding tables (deterministic stand-ins for dataset embeddings).
    ent_emb = jax.random.normal(keys[0], (num_entities, D), jnp.float32)
    rel_emb = jax.random.normal(keys[1], (num_relations, D), jnp.float32)
    sen_emb = jax.random.normal(keys[2], (num_sentences, sentence_dim), jnp.float32)

    # Raw classification-head parameters (Linear weights stored as (in, out)).
    params = dict(
        w1=uni(keys[3], (in_dim, W1), in_dim),
        b1=uni(keys[4], (1, W1), in_dim),
        w2=uni(keys[5], (W1, W2), W1),
        b2=uni(keys[6], (1, W2), W1),
        w3=uni(keys[7], (W2, W1), W2),
        b3=uni(keys[8], (1, W1), W2),
        gamma=jax.random.uniform(keys[9], (1, W1), jnp.float32, 0.5, 1.5),
        beta=jax.random.uniform(keys[10], (1, W1), jnp.float32, -0.5, 0.5),
        mean=0.1 * jax.random.normal(keys[11], (1, W1), jnp.float32),
        var=jax.random.uniform(keys[12], (1, W1), jnp.float32, 0.5, 1.5),
        w4=uni(keys[13], (W1, 1), W1),
        b4=uni(keys[14], (1, 1), W1),
    )

    # Kernel-ready params: BN folded, lane-padded, bf16 weights.
    kparams = prepare_params(params, D)

    # Deterministic index inputs (e1, rel, e2, sentence).
    e1_idx = jax.random.randint(keys[15], (B,), 0, num_entities, jnp.int32)
    rel_idx = jax.random.randint(keys[16], (B,), 0, num_relations, jnp.int32)
    e2_idx = jax.random.randint(keys[17], (B,), 0, num_entities, jnp.int32)
    sen_idx = jax.random.randint(keys[18], (B,), 0, num_sentences, jnp.int32)

    fwd = jax.jit(hybrid_forward)
    out = fwd(e1_idx, rel_idx, e2_idx, sen_idx,
              ent_emb, rel_emb, sen_emb, kparams)
    out = jax.block_until_ready(out)

    ref = _reference_matching(e1_idx, rel_idx, e2_idx, sen_idx,
                              ent_emb, rel_emb, sen_emb, kparams)
    ref = jax.block_until_ready(ref)
    ref_f32 = _reference_f32(e1_idx, rel_idx, e2_idx, sen_idx,
                             ent_emb, rel_emb, sen_emb, params)
    ref_f32 = jax.block_until_ready(ref_f32)

    assert out.shape == (B, 1), out.shape
    # Tight check vs a reference using the exact same bf16/folded parameters.
    assert jnp.allclose(out, ref, atol=5e-4, rtol=1e-3), \
        float(jnp.max(jnp.abs(out - ref)))
    # Loose sanity check vs the full-precision original-semantics reference
    # (bf16 weights make an exact f32 match impossible).
    assert jnp.allclose(out, ref_f32, atol=5e-2), \
        float(jnp.max(jnp.abs(out - ref_f32)))
    print("KERNEL_OK")
</pallas_src>

<mosaic_0001>
module attributes {stable_mosaic.version = 11 : i64} {
  func.func @_head_kernel(%arg0: i32, %arg1: memref<256x48xbf16, #tpu.memory_space<vmem>>, %arg2: memref<256x2304xbf16, #tpu.memory_space<vmem>>, %arg3: memref<48x512xbf16, #tpu.memory_space<vmem>>, %arg4: memref<2304x512xbf16, #tpu.memory_space<vmem>>, %arg5: memref<1x512xf32, #tpu.memory_space<vmem>>, %arg6: memref<512x256xbf16, #tpu.memory_space<vmem>>, %arg7: memref<1x256xf32, #tpu.memory_space<vmem>>, %arg8: memref<256x512xbf16, #tpu.memory_space<vmem>>, %arg9: memref<1x512xf32, #tpu.memory_space<vmem>>, %arg10: memref<512x1xbf16, #tpu.memory_space<vmem>>, %arg11: memref<1x1xf32, #tpu.memory_space<vmem>>, %arg12: memref<256x1xf32, #tpu.memory_space<vmem>>) attributes {dimension_semantics = [#tpu.dimension_semantics<parallel>], iteration_bounds = array<i64: 2>, scalar_prefetch = 0 : i64, scratch_operands = 0 : i64, tpu.core_type = #tpu.core_type<tc>, window_params = [{transform_indices = @transform_0, window_bounds = array<i64: 256, 48>}, {transform_indices = @transform_1, window_bounds = array<i64: 256, 2304>}, {pipeline_mode = #tpu.pipeline_mode<synchronous>, transform_indices = @transform_2, window_bounds = array<i64: 48, 512>}, {pipeline_mode = #tpu.pipeline_mode<synchronous>, transform_indices = @transform_3, window_bounds = array<i64: 2304, 512>}, {pipeline_mode = #tpu.pipeline_mode<synchronous>, transform_indices = @transform_4, window_bounds = array<i64: 1, 512>}, {pipeline_mode = #tpu.pipeline_mode<synchronous>, transform_indices = @transform_5, window_bounds = array<i64: 512, 256>}, {pipeline_mode = #tpu.pipeline_mode<synchronous>, transform_indices = @transform_6, window_bounds = array<i64: 1, 256>}, {pipeline_mode = #tpu.pipeline_mode<synchronous>, transform_indices = @transform_7, window_bounds = array<i64: 256, 512>}, {pipeline_mode = #tpu.pipeline_mode<synchronous>, transform_indices = @transform_8, window_bounds = array<i64: 1, 512>}, {pipeline_mode = #tpu.pipeline_mode<synchronous>, transform_indices = @transform_9, window_bounds = array<i64: 512, 1>}, {pipeline_mode = #tpu.pipeline_mode<synchronous>, transform_indices = @transform_10, window_bounds = array<i64: 1, 1>}, {transform_indices = @transform_11, window_bounds = array<i64: 256, 1>}]} {
    %c0 = arith.constant 0 : index
    %c0_0 = arith.constant 0 : index
    %0 = vector.load %arg1[%c0, %c0_0] : memref<256x48xbf16, #tpu.memory_space<vmem>>, vector<256x48xbf16>
    %c0_1 = arith.constant 0 : index
    %c0_2 = arith.constant 0 : index
    %1 = vector.load %arg3[%c0_1, %c0_2] : memref<48x512xbf16, #tpu.memory_space<vmem>>, vector<48x512xbf16>
    %cst = arith.constant dense<0.000000e+00> : vector<256x512xf32>
    %2 = tpu.matmul %0, %1, %cst {dimension_numbers = #tpu.dot_dimension_numbers<[1], [0], [0], [1], [0, 0, 1, 1], [], []>} : vector<256x48xbf16>, vector<48x512xbf16>, vector<256x512xf32> -> vector<256x512xf32>
    %c0_3 = arith.constant 0 : index
    %c0_4 = arith.constant 0 : index
    %3 = vector.load %arg2[%c0_3, %c0_4] : memref<256x2304xbf16, #tpu.memory_space<vmem>>, vector<256x2304xbf16>
    %c0_5 = arith.constant 0 : index
    %c0_6 = arith.constant 0 : index
    %4 = vector.load %arg4[%c0_5, %c0_6] : memref<2304x512xbf16, #tpu.memory_space<vmem>>, vector<2304x512xbf16>
    %cst_7 = arith.constant dense<0.000000e+00> : vector<256x512xf32>
    %5 = tpu.matmul %3, %4, %cst_7 {dimension_numbers = #tpu.dot_dimension_numbers<[1], [0], [0], [1], [0, 0, 1, 1], [], []>} : vector<256x2304xbf16>, vector<2304x512xbf16>, vector<256x512xf32> -> vector<256x512xf32>
    %6 = arith.addf %2, %5 : vector<256x512xf32>
    %c0_8 = arith.constant 0 : index
    %c0_9 = arith.constant 0 : index
    %7 = vector.load %arg5[%c0_8, %c0_9] : memref<1x512xf32, #tpu.memory_space<vmem>>, vector<1x512xf32>
    %8 = vector.broadcast %7 : vector<1x512xf32> to vector<256x512xf32>
    %9 = arith.addf %6, %8 : vector<256x512xf32>
    %10 = arith.truncf %9 : vector<256x512xf32> to vector<256x512xbf16>
    %c0_10 = arith.constant 0 : index
    %c0_11 = arith.constant 0 : index
    %11 = vector.load %arg6[%c0_10, %c0_11] : memref<512x256xbf16, #tpu.memory_space<vmem>>, vector<512x256xbf16>
    %cst_12 = arith.constant dense<0.000000e+00> : vector<256x256xf32>
    %12 = tpu.matmul %10, %11, %cst_12 {dimension_numbers = #tpu.dot_dimension_numbers<[1], [0], [0], [1], [0, 0, 1, 1], [], []>} : vector<256x512xbf16>, vector<512x256xbf16>, vector<256x256xf32> -> vector<256x256xf32>
    %c0_13 = arith.constant 0 : index
    %c0_14 = arith.constant 0 : index
    %13 = vector.load %arg7[%c0_13, %c0_14] : memref<1x256xf32, #tpu.memory_space<vmem>>, vector<1x256xf32>
    %14 = vector.broadcast %13 : vector<1x256xf32> to vector<256x256xf32>
    %15 = arith.addf %12, %14 : vector<256x256xf32>
    %16 = arith.truncf %15 : vector<256x256xf32> to vector<256x256xbf16>
    %c0_15 = arith.constant 0 : index
    %c0_16 = arith.constant 0 : index
    %17 = vector.load %arg8[%c0_15, %c0_16] : memref<256x512xbf16, #tpu.memory_space<vmem>>, vector<256x512xbf16>
    %cst_17 = arith.constant dense<0.000000e+00> : vector<256x512xf32>
    %18 = tpu.matmul %16, %17, %cst_17 {dimension_numbers = #tpu.dot_dimension_numbers<[1], [0], [0], [1], [0, 0, 1, 1], [], []>} : vector<256x256xbf16>, vector<256x512xbf16>, vector<256x512xf32> -> vector<256x512xf32>
    %c0_18 = arith.constant 0 : index
    %c0_19 = arith.constant 0 : index
    %19 = vector.load %arg9[%c0_18, %c0_19] : memref<1x512xf32, #tpu.memory_space<vmem>>, vector<1x512xf32>
    %20 = vector.broadcast %19 : vector<1x512xf32> to vector<256x512xf32>
    %21 = arith.addf %18, %20 : vector<256x512xf32>
    %cst_20 = arith.constant 0.000000e+00 : f32
    %22 = vector.broadcast %cst_20 : f32 to vector<256x512xf32>
    %23 = arith.maximumf %21, %22 : vector<256x512xf32>
    %24 = arith.truncf %23 : vector<256x512xf32> to vector<256x512xbf16>
    %c0_21 = arith.constant 0 : index
    %c0_22 = arith.constant 0 : index
    %25 = vector.load %arg10[%c0_21, %c0_22] : memref<512x1xbf16, #tpu.memory_space<vmem>>, vector<512x1xbf16>
    %cst_23 = arith.constant dense<0.000000e+00> : vector<256x1xf32>
    %26 = tpu.matmul %24, %25, %cst_23 {dimension_numbers = #tpu.dot_dimension_numbers<[1], [0], [0], [1], [0, 0, 1, 1], [], []>} : vector<256x512xbf16>, vector<512x1xbf16>, vector<256x1xf32> -> vector<256x1xf32>
    %c0_24 = arith.constant 0 : index
    %c0_25 = arith.constant 0 : index
    %27 = vector.load %arg11[%c0_24, %c0_25] : memref<1x1xf32, #tpu.memory_space<vmem>>, vector<1x1xf32>
    %28 = vector.broadcast %27 : vector<1x1xf32> to vector<256x1xf32>
    %29 = arith.addf %26, %28 : vector<256x1xf32>
    %cst_26 = arith.constant 0.000000e+00 : f32
    %30 = vector.broadcast %cst_26 : f32 to vector<256x1xf32>
    %31 = arith.subf %30, %29 : vector<256x1xf32>
    %32 = math.exp %31 : vector<256x1xf32>
    %cst_27 = arith.constant 1.000000e+00 : f32
    %33 = vector.broadcast %cst_27 : f32 to vector<256x1xf32>
    %34 = arith.addf %33, %32 : vector<256x1xf32>
    %cst_28 = arith.constant 1.000000e+00 : f32
    %35 = vector.broadcast %cst_28 : f32 to vector<256x1xf32>
    %36 = arith.divf %35, %34 : vector<256x1xf32>
    %c0_29 = arith.constant 0 : index
    %c0_30 = arith.constant 0 : index
    %37 = vector.load %arg12[%c0_29, %c0_30] : memref<256x1xf32, #tpu.memory_space<vmem>>, vector<256x1xf32>
    tpu.vector_store %arg12[%c0_29, %c0_30], %36 {strides = array<i32>} : memref<256x1xf32, #tpu.memory_space<vmem>>, vector<256x1xf32>,
    return
  }
  func.func @transform_0(%arg0: i32) -> (i32, i32) {
    %c0_i32 = arith.constant 0 : i32
    %c0_i32_0 = arith.constant 0 : i32
    return %arg0, %c0_i32 : i32, i32
  }
  func.func @transform_1(%arg0: i32) -> (i32, i32) {
    %c0_i32 = arith.constant 0 : i32
    %c0_i32_0 = arith.constant 0 : i32
    return %arg0, %c0_i32 : i32, i32
  }
  func.func @transform_2(%arg0: i32) -> (i32, i32) {
    %c0_i32 = arith.constant 0 : i32
    %c0_i32_0 = arith.constant 0 : i32
    %c0_i32_1 = arith.constant 0 : i32
    return %c0_i32, %c0_i32_0 : i32, i32
  }
  func.func @transform_3(%arg0: i32) -> (i32, i32) {
    %c0_i32 = arith.constant 0 : i32
    %c0_i32_0 = arith.constant 0 : i32
    %c0_i32_1 = arith.constant 0 : i32
    return %c0_i32, %c0_i32_0 : i32, i32
  }
  func.func @transform_4(%arg0: i32) -> (i32, i32) {
    %c0_i32 = arith.constant 0 : i32
    %c0_i32_0 = arith.constant 0 : i32
    %c0_i32_1 = arith.constant 0 : i32
    return %c0_i32, %c0_i32_0 : i32, i32
  }
  func.func @transform_5(%arg0: i32) -> (i32, i32) {
    %c0_i32 = arith.constant 0 : i32
    %c0_i32_0 = arith.constant 0 : i32
    %c0_i32_1 = arith.constant 0 : i32
    return %c0_i32, %c0_i32_0 : i32, i32
  }
  func.func @transform_6(%arg0: i32) -> (i32, i32) {
    %c0_i32 = arith.constant 0 : i32
    %c0_i32_0 = arith.constant 0 : i32
    %c0_i32_1 = arith.constant 0 : i32
    return %c0_i32, %c0_i32_0 : i32, i32
  }
  func.func @transform_7(%arg0: i32) -> (i32, i32) {
    %c0_i32 = arith.constant 0 : i32
    %c0_i32_0 = arith.constant 0 : i32
    %c0_i32_1 = arith.constant 0 : i32
    return %c0_i32, %c0_i32_0 : i32, i32
  }
  func.func @transform_8(%arg0: i32) -> (i32, i32) {
    %c0_i32 = arith.constant 0 : i32
    %c0_i32_0 = arith.constant 0 : i32
    %c0_i32_1 = arith.constant 0 : i32
    return %c0_i32, %c0_i32_0 : i32, i32
  }
  func.func @transform_9(%arg0: i32) -> (i32, i32) {
    %c0_i32 = arith.constant 0 : i32
    %c0_i32_0 = arith.constant 0 : i32
    %c0_i32_1 = arith.constant 0 : i32
    return %c0_i32, %c0_i32_0 : i32, i32
  }
  func.func @transform_10(%arg0: i32) -> (i32, i32) {
    %c0_i32 = arith.constant 0 : i32
    %c0_i32_0 = arith.constant 0 : i32
    %c0_i32_1 = arith.constant 0 : i32
    return %c0_i32, %c0_i32_0 : i32, i32
  }
  func.func @transform_11(%arg0: i32) -> (i32, i32) {
    %c0_i32 = arith.constant 0 : i32
    %c0_i32_0 = arith.constant 0 : i32
    return %arg0, %c0_i32 : i32, i32
  }
}

</mosaic_0001>

<bundles_post_ra>
// kernel: hybrid_forward.1
= control target key start
LH: loop header
LB: loop body
LE: loop exit
PB: predicated region body
PF: predicated region fallthrough
CT: control target
= control target key end

     0   :  { %s16951_s19 = smov 0   ;;  %s20585_s0 = inlined_call_operand.vmem [shape: bf16[512,48], index: 0, kind: input, shape index: {}]   ;;  %s20586_s1 = inlined_call_operand.vmem [shape: bf16[512,2304], index: 1, kind: input, shape index: {}]   ;;  %s20587_s2 = inlined_call_operand.vmem [shape: bf16[48,512], index: 2, kind: input, shape index: {}]   ;;  %s20588_s3 = inlined_call_operand.vmem [shape: bf16[2304,512], index: 3, kind: input, shape index: {}]   ;;  %s20589_s4 = inlined_call_operand.vmem [shape: f32[1,512], index: 4, kind: input, shape index: {}]   ;;  %s20590_s5 = inlined_call_operand.vmem [shape: bf16[512,256], index: 5, kind: input, shape index: {}]   ;;  %s20591_s6 = inlined_call_operand.vmem [shape: f32[1,256], index: 6, kind: input, shape index: {}]   ;;  %s20592_s7 = inlined_call_operand.vmem [shape: bf16[256,512], index: 7, kind: input, shape index: {}]   ;;  %s20593_s8 = inlined_call_operand.vmem [shape: f32[1,512], index: 8, kind: input, shape index: {}]   ;;  %s20594_s9 = inlined_call_operand.vmem [shape: bf16[512,1], index: 9, kind: input, shape index: {}]   ;;  %s20595_s10 = inlined_call_operand.<no memory space> [shape: f32[1,1], index: 10, kind: input, shape index: {}]   ;;  %s20596_s11 = inlined_call_operand.vmem [shape: f32[512,1], index: 11, kind: output, shape index: {}]  }
   0x1   :  { %v16_v0 = vstv %s20595_s10 }
   0x2   :  { %17 = vst [vmem:[#allocation2] sm:$0x1] %v16_v0 }
   0x3 LB: > { %s12585_s20 = sadd.s32 4294967295, %s16885_s19   ;;  %p12589_p0 = scmp.ge.s32.totalorder %s16885_s19, 1  ;;  %s16885_s19 = sphi %s16951_s19, %s23_s19  }
   0x4   : > { %p352_p1 = scmp.lt.s32.totalorder %s16885_s19, 3 }
   0x6   : > { %p353_p2 = pnand %p12589_p0, %p352_p1 }
   0x8   : > { %356 = sbr.rel (%p353_p2) target bundleno = 2518 (0x9d6), region = 64 }
   0xf   : > { %v15197_v1 = vld [vmem:[%s20588_s3 + $0x4] ss:$16 sps:$4 sm:$0xff]   ;;  %v15199_v2 = vld [vmem:[%s20588_s3 + $0xc] ss:$16 sps:$4 sm:$0xff]   ;;  %v15201_v3 = vld [vmem:[%s20588_s3] ss:$16 sps:$4 sm:$0xff]  }
  0x10   : > { %5646 = vmatprep.subr.bf16.mxu0 %v15197_v1  ;;  %v15202_v4 = vld [vmem:[%s20588_s3 + $0x8] ss:$16 sps:$4 sm:$0xff]   ;;  %7383 = vmatprep.subr.bf16.mxu1 %v15199_v2  ;;  %v15203_v5 = vld [vmem:[%s20588_s3 + $0x24] ss:$16 sps:$4 sm:$0xff]   ;;  %v15205_v6 = vld [vmem:[%s20588_s3 + $0x2c] ss:$16 sps:$4 sm:$0xff]  }
  0x11   : > { %5647 = vmatpush1.bf16.msra.mxu0 %v15201_v3  ;;  %7384 = vmatpush1.bf16.msra.mxu1 %v15202_v4  ;;  %v15207_v7 = vld [vmem:[%s20588_s3 + $0x20] ss:$16 sps:$4 sm:$0xff]   ;;  %v15208_v8 = vld [vmem:[%s20588_s3 + $0x28] ss:$16 sps:$4 sm:$0xff]   ;;  %v15209_v9 = vld [vmem:[%s20588_s3 + $0x44] ss:$16 sps:$4 sm:$0xff]  }
  0x12   : > { %5648 = vmatprep.subr.bf16.mxu0 %v15203_v5  ;;  %7385 = vmatprep.subr.bf16.mxu1 %v15205_v6  ;;  %v15211_v10 = vld [vmem:[%s20588_s3 + $0x4c] ss:$16 sps:$4 sm:$0xff]   ;;  %v15213_v11 = vld [vmem:[%s20588_s3 + $0x40] ss:$16 sps:$4 sm:$0xff]   ;;  %v15214_v12 = vld [vmem:[%s20588_s3 + $0x48] ss:$16 sps:$4 sm:$0xff]  }
  0x13   : > { %v15215_v13 = vld [vmem:[%s20588_s3 + $0x64] ss:$16 sps:$4 sm:$0xff]   ;;  %v15217_v14 = vld [vmem:[%s20588_s3 + $0x6c] ss:$16 sps:$4 sm:$0xff]   ;;  %v15219_v15 = vld [vmem:[%s20588_s3 + $0x60] ss:$16 sps:$4 sm:$0xff]  }
  0x14   : > { %v15220_v16 = vld [vmem:[%s20588_s3 + $0x68] ss:$16 sps:$4 sm:$0xff]   ;;  %v15221_v17 = vld [vmem:[%s20588_s3 + $0x84] ss:$16 sps:$4 sm:$0xff]   ;;  %v15223_v18 = vld [vmem:[%s20588_s3 + $0x8c] ss:$16 sps:$4 sm:$0xff]  }
  0x15   : > { %5649 = vmatpush1.bf16.msra.mxu0 %v15207_v7  ;;  %7386 = vmatpush1.bf16.msra.mxu1 %v15208_v8  ;;  %v15225_v19 = vld [vmem:[%s20588_s3 + $0x80] ss:$16 sps:$4 sm:$0xff]   ;;  %v15226_v20 = vld [vmem:[%s20588_s3 + $0x88] ss:$16 sps:$4 sm:$0xff]   ;;  %v15227_v21 = vld [vmem:[%s20588_s3 + $0xa4] ss:$16 sps:$4 sm:$0xff]  }
  0x16   : > { %5650 = vmatprep.subr.bf16.mxu0 %v15209_v9  ;;  %7387 = vmatprep.subr.bf16.mxu1 %v15211_v10  ;;  %v15229_v22 = vld [vmem:[%s20588_s3 + $0xac] ss:$16 sps:$4 sm:$0xff]   ;;  %v15231_v23 = vld [vmem:[%s20588_s3 + $0xa0] ss:$16 sps:$4 sm:$0xff]   ;;  %v15232_v24 = vld [vmem:[%s20588_s3 + $0xa8] ss:$16 sps:$4 sm:$0xff]  }
  0x17   : > { %v15233_v25 = vld [vmem:[%s20588_s3 + $0xc4] ss:$16 sps:$4 sm:$0xff]   ;;  %v15235_v26 = vld [vmem:[%s20588_s3 + $0xcc] ss:$16 sps:$4 sm:$0xff]   ;;  %v15237_v27 = vld [vmem:[%s20588_s3 + $0xc0] ss:$16 sps:$4 sm:$0xff]  }
  0x18   : > { %v15238_v28 = vld [vmem:[%s20588_s3 + $0xc8] ss:$16 sps:$4 sm:$0xff]   ;;  %v15239_v29 = vld [vmem:[%s20588_s3 + $0xe4] ss:$16 sps:$4 sm:$0xff]   ;;  %v15241_v30 = vld [vmem:[%s20588_s3 + $0xec] ss:$16 sps:$4 sm:$0xff]  }
  0x19   : > { %5651 = vmatpush1.bf16.msra.mxu0 %v15213_v11  ;;  %7388 = vmatpush1.bf16.msra.mxu1 %v15214_v12  ;;  %s12590_s26 = sshll.u32 %s12585_s20, 5  ;;  %v15243_v31 = vld [vmem:[%s20588_s3 + $0xe0] ss:$16 sps:$4 sm:$0xff]   ;;  %v15244_v32 = vld [vmem:[%s20588_s3 + $0xe8] ss:$16 sps:$4 sm:$0xff]   ;;  %vm9260_vm0 = vcmask 392192  }
  0x1a   : > { %5652 = vmatprep.subr.bf16.mxu0 %v15215_v13  ;;  %7389 = vmatprep.subr.bf16.mxu1 %v15217_v14  ;;  %v15245_v33 = vld [vmem:[%s20588_s3 + $0x104] ss:$16 sps:$4 sm:$0xff]   ;;  %p399_p3 = scmp.lt.s32.totalorder %s12590_s26, 63  ;;  %v15247_v34 = vld [vmem:[%s20588_s3 + $0x10c] ss:$16 sps:$4 sm:$0xff]   ;;  %vm12484_vm1 = vcmask 7168  }
  0x1b   : > { %v15249_v35 = vld [vmem:[%s20588_s3 + $0x100] ss:$16 sps:$4 sm:$0xff]   ;;  %v15250_v36 = vld [vmem:[%s20588_s3 + $0x108] ss:$16 sps:$4 sm:$0xff]   ;;  %v15251_v37 = vld [vmem:[%s20588_s3 + $0x124] ss:$16 sps:$4 sm:$0xff]  }
  0x1c   : > { %s20698_s26 = smov (!%p399_p3, %s12590_s26), 63  ;;  %v15253_v38 = vld [vmem:[%s20588_s3 + $0x12c] ss:$16 sps:$4 sm:$0xff]   ;;  %v15255_v39 = vld [vmem:[%s20588_s3 + $0x120] ss:$16 sps:$4 sm:$0xff]  }
  0x1d   : > { %5653 = vmatpush1.bf16.msra.mxu0 %v15219_v15  ;;  %7390 = vmatpush1.bf16.msra.mxu1 %v15220_v16  ;;  %v15256_v40 = vld [vmem:[%s20588_s3 + $0x128] ss:$16 sps:$4 sm:$0xff]   ;;  %v15257_v41 = vld [vmem:[%s20588_s3 + $0x144] ss:$16 sps:$4 sm:$0xff]   ;;  %s15187_s12 = smul.u32 72, %s20698_s26  ;;  %s12591_s17 = sshll.u32 %s20698_s26, 2 }
  0x1e   : > { %5654 = vmatprep.subr.bf16.mxu0 %v15221_v17  ;;  %7391 = vmatprep.subr.bf16.mxu1 %v15223_v18  ;;  %v15259_v42 = vld [vmem:[%s20588_s3 + $0x14c] ss:$16 sps:$4 sm:$0xff]   ;;  %v15261_v43 = vld [vmem:[%s20588_s3 + $0x140] ss:$16 sps:$4 sm:$0xff]   ;;  %v15262_v44 = vld [vmem:[%s20588_s3 + $0x148] ss:$16 sps:$4 sm:$0xff]   ;;  %s18965_s22 = scalar_lea.vmem %s20585_s0, %s12591_s17 }
  0x1f   : > { %v15263_v45 = vld [vmem:[%s20588_s3 + $0x164] ss:$16 sps:$4 sm:$0xff]   ;;  %s17102_s23 = scalar_lea.vmem %s20586_s1, %s15187_s12  ;;  %v15265_v46 = vld [vmem:[%s20588_s3 + $0x16c] ss:$16 sps:$4 sm:$0xff]   ;;  %v15267_v47 = vld [vmem:[%s20588_s3 + $0x160] ss:$16 sps:$4 sm:$0xff]  }
  0x20   : > { %v15268_v48 = vld [vmem:[%s20588_s3 + $0x168] ss:$16 sps:$4 sm:$0xff]   ;;  %v15295_v49 = vld [vmem:[%s17102_s23 + $0x4] ss:$72 sps:$4 sm:$0xff]   ;;  %v15273_v52 = vld [vmem:[%s20588_s3 + $0x180] ss:$16 sps:$4 sm:$0xff]  }
  0x21   : > { %5655 = vmatpush1.bf16.msra.mxu0 %v15225_v19  ;;  %7392 = vmatpush1.bf16.msra.mxu1 %v15226_v20  ;;  %v15269_v50 = vld [vmem:[%s20588_s3 + $0x184] ss:$16 sps:$4 sm:$0xff]   ;;  %v15271_v51 = vld [vmem:[%s20588_s3 + $0x18c] ss:$16 sps:$4 sm:$0xff]   ;;  %v15274_v53 = vld [vmem:[%s20588_s3 + $0x188] ss:$16 sps:$4 sm:$0xff]  }
  0x22   : > { %5656 = vmatprep.subr.bf16.mxu0 %v15227_v21  ;;  %7393 = vmatprep.subr.bf16.mxu1 %v15229_v22  ;;  %v15275_v54 = vld [vmem:[%s20588_s3 + $0x1a4] ss:$16 sps:$4 sm:$0xff]   ;;  %v15277_v55 = vld [vmem:[%s20588_s3 + $0x1ac] ss:$16 sps:$4 sm:$0xff]   ;;  %v15279_v56 = vld [vmem:[%s20588_s3 + $0x1a0] ss:$16 sps:$4 sm:$0xff]  }
  0x23   : > { %5678 = vmatprep.mubr.bf16.mxu0 %v15295_v49  ;;  %7415 = vmatprep.mubr.bf16.mxu1 %v15295_v49  ;;  %v15280_v57 = vld [vmem:[%s20588_s3 + $0x1a8] ss:$16 sps:$4 sm:$0xff]   ;;  %v15281_v58 = vld [vmem:[%s20588_s3 + $0x1c4] ss:$16 sps:$4 sm:$0xff]   ;;  %v15283_v59 = vld [vmem:[%s20588_s3 + $0x1cc] ss:$16 sps:$4 sm:$0xff]  }
  0x24   : > { %v15285_v60 = vld [vmem:[%s20588_s3 + $0x1c0] ss:$16 sps:$4 sm:$0xff]   ;;  %v15286_v61 = vld [vmem:[%s20588_s3 + $0x1c8] ss:$16 sps:$4 sm:$0xff]   ;;  %v15287_v62 = vld [vmem:[%s20588_s3 + $0x1e4] ss:$16 sps:$4 sm:$0xff]  }
  0x25   : > { %5657 = vmatpush1.bf16.msra.mxu0 %v15231_v23  ;;  %7394 = vmatpush1.bf16.msra.mxu1 %v15232_v24  ;;  %v15289_v63 = vld [vmem:[%s20588_s3 + $0x1ec] ss:$16 sps:$4 sm:$0xff]   ;;  %v15291_v0 = vld [vmem:[%s20588_s3 + $0x1e0] ss:$16 sps:$4 sm:$0xff]   ;;  %v15292_v1 = vld [vmem:[%s20588_s3 + $0x1e8] ss:$16 sps:$4 sm:$0xff]  }
  0x26   : > { %5658 = vmatprep.subr.bf16.mxu0 %v15233_v25  ;;  %7395 = vmatprep.subr.bf16.mxu1 %v15235_v26  ;;  %v15298_v2 = vld [vmem:[%s20588_s3 + $0x204] ss:$16 sps:$4 sm:$0xff]   ;;  %v15293_v3 = vld [vmem:[%s17102_s23] ss:$72 sps:$4 sm:$0xff]   ;;  %v15349_v9 = vld [vmem:[%s20588_s3 + $0x20c] ss:$16 sps:$4 sm:$0xff]  }
  0x27   : > { %v15296_v4 = vld [vmem:[%s20588_s3 + $0x200] ss:$16 sps:$4 sm:$0xff]   ;;  %v15299_v5 = vld [vmem:[%s17102_s23 + $0x94] ss:$72 sps:$4 sm:$0xff]   ;;  %v15347_v8 = vld [vmem:[%s20588_s3 + $0x208] ss:$16 sps:$4 sm:$0xff]  }
  0x28   : > { %v15304_v6 = vld [vmem:[%s20588_s3 + $0x224] ss:$16 sps:$4 sm:$0xff]   ;;  %v15302_v7 = vld [vmem:[%s20588_s3 + $0x220] ss:$16 sps:$4 sm:$0xff]   ;;  %v15352_v11 = vld [vmem:[%s20588_s3 + $0x22c] ss:$16 sps:$4 sm:$0xff]  }
  0x29   : > { %5659 = vmatpush1.bf16.msra.mxu0 %v15237_v27  ;;  %7396 = vmatpush1.bf16.msra.mxu1 %v15238_v28  ;;  %v15310_v10 = vld [vmem:[%s20588_s3 + $0x244] ss:$16 sps:$4 sm:$0xff]   ;;  %v15301_v12 = vld [vmem:[%s17102_s23 + $0x90] ss:$72 sps:$4 sm:$0xff]   ;;  %v15361_v17 = vld [vmem:[%s20588_s3 + $0x24c] ss:$16 sps:$4 sm:$0xff]  }
  0x2a   : > { %5660 = vmatprep.subr.bf16.mxu0 %v15239_v29  ;;  %7397 = vmatprep.subr.bf16.mxu1 %v15241_v30  ;;  %v15305_v13 = vld [vmem:[%s17102_s23 + $0x124] ss:$72 sps:$4 sm:$0xff]   ;;  %v15308_v14 = vld [vmem:[%s20588_s3 + $0x240] ss:$16 sps:$4 sm:$0xff]   ;;  %v15350_v15 = vld [vmem:[%s20588_s3 + $0x228] ss:$16 sps:$4 sm:$0xff]  }
  0x2b   : > { %v15316_v16 = vld [vmem:[%s20588_s3 + $0x264] ss:$16 sps:$4 sm:$0xff]   ;;  %v15314_v18 = vld [vmem:[%s20588_s3 + $0x260] ss:$16 sps:$4 sm:$0xff]   ;;  %v15359_v19 = vld [vmem:[%s20588_s3 + $0x248] ss:$16 sps:$4 sm:$0xff]  }
  0x2c   : > { %v15322_v20 = vld [vmem:[%s20588_s3 + $0x284] ss:$16 sps:$4 sm:$0xff]   ;;  %v15364_v21 = vld [vmem:[%s20588_s3 + $0x26c] ss:$16 sps:$4 sm:$0xff]   ;;  %v15307_v22 = vld [vmem:[%s17102_s23 + $0x120] ss:$72 sps:$4 sm:$0xff]  }
  0x2d   : > { %5661 = vmatpush1.bf16.msra.mxu0 %v15243_v31  ;;  %7398 = vmatpush1.bf16.msra.mxu1 %v15244_v32  ;;  %v15311_v23 = vld [vmem:[%s17102_s23 + $0x1b4] ss:$72 sps:$4 sm:$0xff]   ;;  %v15320_v24 = vld [vmem:[%s20588_s3 + $0x280] ss:$16 sps:$4 sm:$0xff]   ;;  %v15362_v25 = vld [vmem:[%s20588_s3 + $0x268] ss:$16 sps:$4 sm:$0xff]  }
  0x2e   : > { %5662 = vmatprep.subr.bf16.mxu0 %v15245_v33  ;;  %7399 = vmatprep.subr.bf16.mxu1 %v15247_v34  ;;  %v15328_v26 = vld [vmem:[%s20588_s3 + $0x2a4] ss:$16 sps:$4 sm:$0xff]   ;;  %v15373_v27 = vld [vmem:[%s20588_s3 + $0x28c] ss:$16 sps:$4 sm:$0xff]   ;;  %v15326_v28 = vld [vmem:[%s20588_s3 + $0x2a0] ss:$16 sps:$4 sm:$0xff]  }
  0x2f   : > { %v15371_v29 = vld [vmem:[%s20588_s3 + $0x288] ss:$16 sps:$4 sm:$0xff]   ;;  %v15334_v30 = vld [vmem:[%s20588_s3 + $0x2c4] ss:$16 sps:$4 sm:$0xff]   ;;  %v15376_v31 = vld [vmem:[%s20588_s3 + $0x2ac] ss:$16 sps:$4 sm:$0xff]  }
  0x30   : > { %v15313_v32 = vld [vmem:[%s17102_s23 + $0x1b0] ss:$72 sps:$4 sm:$0xff]   ;;  %v15317_v33 = vld [vmem:[%s17102_s23 + $0x244] ss:$72 sps:$4 sm:$0xff]   ;;  %s12595_s14 = sshll.u32 %s20698_s26, 3 }
  0x31   : > { %5663 = vmatpush1.bf16.msra.mxu0 %v15249_v35  ;;  %7400 = vmatpush1.bf16.msra.mxu1 %v15250_v36  ;;  %v15332_v34 = vld [vmem:[%s20588_s3 + $0x2c0] ss:$16 sps:$4 sm:$0xff]   ;;  %v15374_v35 = vld [vmem:[%s20588_s3 + $0x2a8] ss:$16 sps:$4 sm:$0xff]   ;;  %v15340_v36 = vld [vmem:[%s20588_s3 + $0x2e4] ss:$16 sps:$4 sm:$0xff]   ;;  %s20468_s20 = scalar_lea.vmem %s20596_s11, %s12595_s14 }
  0x32   : > { %5664 = vmatprep.subr.bf16.mxu0 %v15251_v37  ;;  %7401 = vmatprep.subr.bf16.mxu1 %v15253_v38  ;;  %v15385_v37 = vld [vmem:[%s20588_s3 + $0x2cc] ss:$16 sps:$4 sm:$0xff]   ;;  %v15338_v38 = vld [vmem:[%s20588_s3 + $0x2e0] ss:$16 sps:$4 sm:$0xff]   ;;  %v15395_v49 = vld [vmem:[%s20588_s3 + $0x308] ss:$16 sps:$4 sm:$0xff]  }
  0x35   : > { %5665 = vmatpush1.bf16.msra.mxu0 %v15255_v39  ;;  %7402 = vmatpush1.bf16.msra.mxu1 %v15256_v40  ;;  %v15383_v39 = vld [vmem:[%s20588_s3 + $0x2c8] ss:$16 sps:$4 sm:$0xff]   ;;  %v15346_v40 = vld [vmem:[%s20588_s3 + $0x304] ss:$16 sps:$4 sm:$0xff]  }
  0x36   : > { %5666 = vmatprep.subr.bf16.mxu0 %v15257_v41  ;;  %7403 = vmatprep.subr.bf16.mxu1 %v15259_v42  ;;  %v15388_v41 = vld [vmem:[%s20588_s3 + $0x2ec] ss:$16 sps:$4 sm:$0xff]   ;;  %v15319_v42 = vld [vmem:[%s17102_s23 + $0x240] ss:$72 sps:$4 sm:$0xff]  }
  0x39   : > { %5667 = vmatpush1.bf16.msra.mxu0 %v15261_v43  ;;  %7404 = vmatpush1.bf16.msra.mxu1 %v15262_v44  ;;  %v15323_v43 = vld [vmem:[%s17102_s23 + $0x2d4] ss:$72 sps:$4 sm:$0xff]   ;;  %v15344_v44 = vld [vmem:[%s20588_s3 + $0x300] ss:$16 sps:$4 sm:$0xff]  }
  0x3a   : > { %5668 = vmatprep.subr.bf16.mxu0 %v15263_v45  ;;  %7405 = vmatprep.subr.bf16.mxu1 %v15265_v46  ;;  %v15386_v45 = vld [vmem:[%s20588_s3 + $0x2e8] ss:$16 sps:$4 sm:$0xff]   ;;  %v15358_v46 = vld [vmem:[%s20588_s3 + $0x324] ss:$16 sps:$4 sm:$0xff]  }
  0x3d   : > { %5669 = vmatpush1.bf16.msra.mxu0 %v15267_v47  ;;  %7406 = vmatpush1.bf16.msra.mxu1 %v15268_v48  ;;  %v15397_v47 = vld [vmem:[%s20588_s3 + $0x30c] ss:$16 sps:$4 sm:$0xff]   ;;  %v15356_v48 = vld [vmem:[%s20588_s3 + $0x320] ss:$16 sps:$4 sm:$0xff]  }
  0x3e   : > { %5670 = vmatprep.subr.bf16.mxu0 %v15269_v50  ;;  %7407 = vmatprep.subr.bf16.mxu1 %v15271_v51  ;;  %v15370_v50 = vld [vmem:[%s20588_s3 + $0x344] ss:$16 sps:$4 sm:$0xff]   ;;  %v15400_v51 = vld [vmem:[%s20588_s3 + $0x32c] ss:$16 sps:$4 sm:$0xff]  }
  0x41   : > { %5671 = vmatpush1.bf16.msra.mxu0 %v15273_v52  ;;  %7408 = vmatpush1.bf16.msra.mxu1 %v15274_v53  ;;  %v15325_v52 = vld [vmem:[%s17102_s23 + $0x2d0] ss:$72 sps:$4 sm:$0xff]   ;;  %v15329_v53 = vld [vmem:[%s17102_s23 + $0x364] ss:$72 sps:$4 sm:$0xff]  }
  0x42   : > { %5672 = vmatprep.subr.bf16.mxu0 %v15275_v54  ;;  %7409 = vmatprep.subr.bf16.mxu1 %v15277_v55  ;;  %v15368_v54 = vld [vmem:[%s20588_s3 + $0x340] ss:$16 sps:$4 sm:$0xff]   ;;  %v15398_v55 = vld [vmem:[%s20588_s3 + $0x328] ss:$16 sps:$4 sm:$0xff]  }
  0x45   : > { %5673 = vmatpush1.bf16.msra.mxu0 %v15279_v56  ;;  %7410 = vmatpush1.bf16.msra.mxu1 %v15280_v57  ;;  %v15382_v56 = vld [vmem:[%s20588_s3 + $0x364] ss:$16 sps:$4 sm:$0xff]   ;;  %v15409_v57 = vld [vmem:[%s20588_s3 + $0x34c] ss:$16 sps:$4 sm:$0xff]  }
  0x46   : > { %5674 = vmatprep.subr.bf16.mxu0 %v15281_v58  ;;  %7411 = vmatprep.subr.bf16.mxu1 %v15283_v59  ;;  %v15380_v58 = vld [vmem:[%s20588_s3 + $0x360] ss:$16 sps:$4 sm:$0xff]   ;;  %v15407_v59 = vld [vmem:[%s20588_s3 + $0x348] ss:$16 sps:$4 sm:$0xff]  }
  0x49   : > { %5675 = vmatpush1.bf16.msra.mxu0 %v15285_v60  ;;  %7412 = vmatpush1.bf16.msra.mxu1 %v15286_v61  ;;  %v15394_v60 = vld [vmem:[%s20588_s3 + $0x384] ss:$16 sps:$4 sm:$0xff]   ;;  %v15412_v61 = vld [vmem:[%s20588_s3 + $0x36c] ss:$16 sps:$4 sm:$0xff]  }
  0x4a   : > { %5676 = vmatprep.subr.bf16.mxu0 %v15287_v62  ;;  %7413 = vmatprep.subr.bf16.mxu1 %v15289_v63  ;;  %v15331_v62 = vld [vmem:[%s17102_s23 + $0x360] ss:$72 sps:$4 sm:$0xff]   ;;  %v15335_v63 = vld [vmem:[%s17102_s23 + $0x3f4] ss:$72 sps:$4 sm:$0xff]  }
  0x4d   : > { %5677 = vmatpush1.bf16.msra.mxu0 %v15291_v0  ;;  %7414 = vmatpush1.bf16.msra.mxu1 %v15292_v1  ;;  %v15392_v0 = vld [vmem:[%s20588_s3 + $0x380] ss:$16 sps:$4 sm:$0xff]   ;;  %v15410_v1 = vld [vmem:[%s20588_s3 + $0x368] ss:$16 sps:$4 sm:$0xff]  }
  0x4e   : > { %5839 = vmatprep.subr.bf16.mxu0 %v15298_v2  ;;  %7576 = vmatprep.subr.bf16.mxu1 %v15349_v9  ;;  %v15406_v2 = vld [vmem:[%s20588_s3 + $0x3a4] ss:$16 sps:$4 sm:$0xff]  }
  0x4f   : > { %v15341_v9 = vld [vmem:[%s17102_s23 + $0x484] ss:$72 sps:$4 sm:$0xff]  }
  0x50   : > { %5679 = vmatmul.mubr.bf16.vlgmr.msra.gmra.mrb[0].mxu0 %v15293_v3  ;;  %7416 = vmatmul.mubr.bf16.vlgmr.msra.gmra.mrb[0].mxu1 %v15293_v3  ;;  %v15421_v3 = vld [vmem:[%s20588_s3 + $0x38c] ss:$16 sps:$4 sm:$0xff]  }
  0x51   : > { %5840 = vmatpush1.bf16.msra.mxu0 %v15296_v4  ;;  %5688 = vmatprep.mubr.bf16.mxu0 %v15299_v5  ;;  %v15404_v4 = vld [vmem:[%s20588_s3 + $0x3a0] ss:$16 sps:$4 sm:$0xff]  }
  0x52   : > { %7425 = vmatprep.mubr.bf16.mxu1 %v15299_v5  ;;  %5841 = vmatprep.subr.bf16.mxu0 %v15304_v6  ;;  %v15419_v5 = vld [vmem:[%s20588_s3 + $0x388] ss:$16 sps:$4 sm:$0xff]   ;;  %v15418_v6 = vld [vmem:[%s20588_s3 + $0x3c4] ss:$16 sps:$4 sm:$0xff]  }
  0x53   : > { %7577 = vmatpush1.bf16.msra.mxu1 %v15347_v8  ;;  %v15337_v8 = vld [vmem:[%s17102_s23 + $0x3f0] ss:$72 sps:$4 sm:$0xff]  }
  0x54   : > { %7578 = vmatprep.subr.bf16.mxu1 %v15352_v11  ;;  %v15422_v11 = vld [vmem:[%s20588_s3 + $0x3a8] ss:$16 sps:$4 sm:$0xff]  }
  0x55   : > { %5842 = vmatpush1.bf16.msra.mxu0 %v15302_v7  ;;  %v15424_v7 = vld [vmem:[%s20588_s3 + $0x3ac] ss:$16 sps:$4 sm:$0xff]  }
  0x56   : > { %5843 = vmatprep.subr.bf16.mxu0 %v15310_v10  ;;  %v15416_v10 = vld [vmem:[%s20588_s3 + $0x3c0] ss:$16 sps:$4 sm:$0xff]  }
  0x57   : > { %7579 = vmatpush1.bf16.msra.mxu1 %v15350_v15  ;;  %v15431_v15 = vld [vmem:[%s20588_s3 + $0x3c8] ss:$16 sps:$4 sm:$0xff]  }
  0x58   : > { %5689 = vmatmul.mubr.bf16.gmra.mrb[4].mxu0 %v15301_v12  ;;  %7426 = vmatmul.mubr.bf16.gmra.mrb[4].mxu1 %v15301_v12  ;;  %v15430_v12 = vld [vmem:[%s20588_s3 + $0x3e4] ss:$16 sps:$4 sm:$0xff]  }
  0x59   : > { %5698 = vmatprep.mubr.bf16.mxu0 %v15305_v13  ;;  %7435 = vmatprep.mubr.bf16.mxu1 %v15305_v13  ;;  %v15433_v13 = vld [vmem:[%s20588_s3 + $0x3cc] ss:$16 sps:$4 sm:$0xff]  }
  0x5a   : > { %5844 = vmatpush1.bf16.msra.mxu0 %v15308_v14  ;;  %7580 = vmatprep.subr.bf16.mxu1 %v15361_v17  ;;  %v15428_v14 = vld [vmem:[%s20588_s3 + $0x3e0] ss:$16 sps:$4 sm:$0xff]   ;;  %v15442_v17 = vld [vmem:[%s20588_s3 + $0x404] ss:$16 sps:$4 sm:$0xff]  }
  0x5b   : > { %5845 = vmatprep.subr.bf16.mxu0 %v15316_v16  ;;  %7581 = vmatpush1.bf16.msra.mxu1 %v15359_v19  ;;  %v15436_v16 = vld [vmem:[%s20588_s3 + $0x3ec] ss:$16 sps:$4 sm:$0xff]  }
  0x5c   : > { %7582 = vmatprep.subr.bf16.mxu1 %v15364_v21  ;;  %v15353_v19 = vld [vmem:[%s17102_s23 + $0x514] ss:$72 sps:$4 sm:$0xff]  }
  0x5d   : > { %v15493_v21 = vld [vmem:[%s20588_s3 + $0x40c] ss:$16 sps:$4 sm:$0xff]  }
  0x5e   : > { %5846 = vmatpush1.bf16.msra.mxu0 %v15314_v18  ;;  %v15343_v18 = vld [vmem:[%s17102_s23 + $0x480] ss:$72 sps:$4 sm:$0xff]  }
  0x5f   : > { %5847 = vmatprep.subr.bf16.mxu0 %v15322_v20  ;;  %7583 = vmatpush1.bf16.msra.mxu1 %v15362_v25  ;;  %v15434_v20 = vld [vmem:[%s20588_s3 + $0x3e8] ss:$16 sps:$4 sm:$0xff]   ;;  %v15377_v25 = vld [vmem:[%s17102_s23 + $0x634] ss:$72 sps:$4 sm:$0xff]  }
  0x60   : > { %5699 = vmatmul.mubr.bf16.gmra.mrb[8].mxu0 %v15307_v22  ;;  %7436 = vmatmul.mubr.bf16.gmra.mrb[8].mxu1 %v15307_v22  ;;  %v15355_v22 = vld [vmem:[%s17102_s23 + $0x510] ss:$72 sps:$4 sm:$0xff]  }
  0x61   : > { %5708 = vmatprep.mubr.bf16.mxu0 %v15311_v23  ;;  %7445 = vmatprep.mubr.bf16.mxu1 %v15311_v23  ;;  %v15365_v23 = vld [vmem:[%s17102_s23 + $0x5a4] ss:$72 sps:$4 sm:$0xff]  }
  0x62   : > { %5848 = vmatpush1.bf16.msra.mxu0 %v15320_v24  ;;  %7584 = vmatprep.subr.bf16.mxu1 %v15373_v27  ;;  %v15367_v24 = vld [vmem:[%s17102_s23 + $0x5a0] ss:$72 sps:$4 sm:$0xff]   ;;  %v15389_v27 = vld [vmem:[%s17102_s23 + $0x6c4] ss:$72 sps:$4 sm:$0xff]  }
  0x63   : > { %5849 = vmatprep.subr.bf16.mxu0 %v15328_v26  ;;  %7585 = vmatpush1.bf16.msra.mxu1 %v15371_v29  ;;  %v15379_v26 = vld [vmem:[%s17102_s23 + $0x630] ss:$72 sps:$4 sm:$0xff]   ;;  %v15401_v29 = vld [vmem:[%s17102_s23 + $0x754] ss:$72 sps:$4 sm:$0xff]  }
  0x64   : > { %7586 = vmatprep.subr.bf16.mxu1 %v15376_v31  ;;  %v15413_v31 = vld [vmem:[%s17102_s23 + $0x7e4] ss:$72 sps:$4 sm:$0xff]  }
  0x66   : > { %5850 = vmatpush1.bf16.msra.mxu0 %v15326_v28  ;;  %v15391_v28 = vld [vmem:[%s17102_s23 + $0x6c0] ss:$72 sps:$4 sm:$0xff]  }
  0x67   : > { %5851 = vmatprep.subr.bf16.mxu0 %v15334_v30  ;;  %7587 = vmatpush1.bf16.msra.mxu1 %v15374_v35  ;;  %v15403_v30 = vld [vmem:[%s17102_s23 + $0x750] ss:$72 sps:$4 sm:$0xff]   ;;  %v15439_v35 = vld [vmem:[%s17102_s23 + $0xc] ss:$72 sps:$4 sm:$0xff]  }
  0x68   : > { %5709 = vmatmul.mubr.bf16.gmra.mrb[12].mxu0 %v15313_v32  ;;  %7446 = vmatmul.mubr.bf16.gmra.mrb[12].mxu1 %v15313_v32  ;;  %v15415_v32 = vld [vmem:[%s17102_s23 + $0x7e0] ss:$72 sps:$4 sm:$0xff]  }
  0x69   : > { %5718 = vmatprep.mubr.bf16.mxu0 %v15317_v33  ;;  %7455 = vmatprep.mubr.bf16.mxu1 %v15317_v33  ;;  %v15425_v33 = vld [vmem:[%s17102_s23 + $0x874] ss:$72 sps:$4 sm:$0xff]  }
  0x6a   : > { %5852 = vmatpush1.bf16.msra.mxu0 %v15332_v34  ;;  %7588 = vmatprep.subr.bf16.mxu1 %v15385_v37  ;;  %v15427_v34 = vld [vmem:[%s17102_s23 + $0x870] ss:$72 sps:$4 sm:$0xff]  }
  0x6b   : > { %5853 = vmatprep.subr.bf16.mxu0 %v15340_v36  ;;  %7589 = vmatpush1.bf16.msra.mxu1 %v15383_v39  ;;  %v15437_v36 = vld [vmem:[%s17102_s23 + $0x8] ss:$72 sps:$4 sm:$0xff]   ;;  %v15448_v39 = vld [vmem:[%s20588_s3 + $0x424] ss:$16 sps:$4 sm:$0xff]  }
  0x6c   : > { %7590 = vmatprep.subr.bf16.mxu1 %v15388_v41  ;;  %v15440_v37 = vld [vmem:[%s20588_s3 + $0x400] ss:$16 sps:$4 sm:$0xff]  }
  0x6d   : > { %v15446_v41 = vld [vmem:[%s20588_s3 + $0x420] ss:$16 sps:$4 sm:$0xff]  }
  0x6e   : > { %5854 = vmatpush1.bf16.msra.mxu0 %v15338_v38  ;;  %v15443_v38 = vld [vmem:[%s17102_s23 + $0x9c] ss:$72 sps:$4 sm:$0xff]  }
  0x6f   : > { %5855 = vmatprep.subr.bf16.mxu0 %v15346_v40  ;;  %7591 = vmatpush1.bf16.msra.mxu1 %v15386_v45  ;;  %v15491_v40 = vld [vmem:[%s20588_s3 + $0x408] ss:$16 sps:$4 sm:$0xff]  }
  0x70   : > { %5719 = vmatmul.mubr.bf16.gmra.mrb[16].mxu0 %v15319_v42  ;;  %7456 = vmatmul.mubr.bf16.gmra.mrb[16].mxu1 %v15319_v42  ;;  %v15496_v42 = vld [vmem:[%s20588_s3 + $0x42c] ss:$16 sps:$4 sm:$0xff]   ;;  %v15494_v45 = vld [vmem:[%s20588_s3 + $0x428] ss:$16 sps:$4 sm:$0xff]  }
  0x71   : > { %5728 = vmatprep.mubr.bf16.mxu0 %v15323_v43  ;;  %7465 = vmatprep.mubr.bf16.mxu1 %v15323_v43  ;;  %v15454_v43 = vld [vmem:[%s20588_s3 + $0x444] ss:$16 sps:$4 sm:$0xff]  }
  0x72   : > { %5856 = vmatpush1.bf16.msra.mxu0 %v15344_v44  ;;  %7592 = vmatprep.subr.bf16.mxu1 %v15397_v47  ;;  %v15445_v44 = vld [vmem:[%s17102_s23 + $0x98] ss:$72 sps:$4 sm:$0xff]  }
  0x73   : > { %5857 = vmatprep.subr.bf16.mxu0 %v15358_v46  ;;  %7593 = vmatpush1.bf16.msra.mxu1 %v15395_v49  ;;  %v15449_v46 = vld [vmem:[%s17102_s23 + $0x12c] ss:$72 sps:$4 sm:$0xff]   ;;  %v15452_v47 = vld [vmem:[%s20588_s3 + $0x440] ss:$16 sps:$4 sm:$0xff]  }
  0x74   : > { %7594 = vmatprep.subr.bf16.mxu1 %v15400_v51  ;;  %v15460_v49 = vld [vmem:[%s20588_s3 + $0x464] ss:$16 sps:$4 sm:$0xff]   ;;  %v15458_v51 = vld [vmem:[%s20588_s3 + $0x460] ss:$16 sps:$4 sm:$0xff]  }
  0x76   : > { %5858 = vmatpush1.bf16.msra.mxu0 %v15356_v48  ;;  %v15505_v48 = vld [vmem:[%s20588_s3 + $0x44c] ss:$16 sps:$4 sm:$0xff]  }
  0x77   : > { %5859 = vmatprep.subr.bf16.mxu0 %v15370_v50  ;;  %7595 = vmatpush1.bf16.msra.mxu1 %v15398_v55  ;;  %v15503_v50 = vld [vmem:[%s20588_s3 + $0x448] ss:$16 sps:$4 sm:$0xff]  }
  0x78   : > { %5729 = vmatmul.mubr.bf16.gmra.mrb[20].mxu0 %v15325_v52  ;;  %7466 = vmatmul.mubr.bf16.gmra.mrb[20].mxu1 %v15325_v52  ;;  %v15508_v52 = vld [vmem:[%s20588_s3 + $0x46c] ss:$16 sps:$4 sm:$0xff]   ;;  %v15451_v55 = vld [vmem:[%s17102_s23 + $0x128] ss:$72 sps:$4 sm:$0xff]  }
  0x79   : > { %5738 = vmatprep.mubr.bf16.mxu0 %v15329_v53  ;;  %7475 = vmatprep.mubr.bf16.mxu1 %v15329_v53  ;;  %v15466_v53 = vld [vmem:[%s20588_s3 + $0x484] ss:$16 sps:$4 sm:$0xff]  }
  0x7a   : > { %5860 = vmatpush1.bf16.msra.mxu0 %v15368_v54  ;;  %7596 = vmatprep.subr.bf16.mxu1 %v15409_v57  ;;  %v15506_v54 = vld [vmem:[%s20588_s3 + $0x468] ss:$16 sps:$4 sm:$0xff]   ;;  %v15464_v57 = vld [vmem:[%s20588_s3 + $0x480] ss:$16 sps:$4 sm:$0xff]  }
  0x7b   : > { %5861 = vmatprep.subr.bf16.mxu0 %v15382_v56  ;;  %7597 = vmatpush1.bf16.msra.mxu1 %v15407_v59  ;;  %v15455_v56 = vld [vmem:[%s17102_s23 + $0x1bc] ss:$72 sps:$4 sm:$0xff]  }
  0x7c   : > { %7598 = vmatprep.subr.bf16.mxu1 %v15412_v61  ;;  %v15472_v59 = vld [vmem:[%s20588_s3 + $0x4a4] ss:$16 sps:$4 sm:$0xff]   ;;  %v15470_v61 = vld [vmem:[%s20588_s3 + $0x4a0] ss:$16 sps:$4 sm:$0xff]  }
  0x7e   : > { %5862 = vmatpush1.bf16.msra.mxu0 %v15380_v58  ;;  %v15517_v58 = vld [vmem:[%s20588_s3 + $0x48c] ss:$16 sps:$4 sm:$0xff]  }
  0x7f   : > { %5863 = vmatprep.subr.bf16.mxu0 %v15394_v60  ;;  %7599 = vmatpush1.bf16.msra.mxu1 %v15410_v1  ;;  %v15515_v60 = vld [vmem:[%s20588_s3 + $0x488] ss:$16 sps:$4 sm:$0xff]  }
  0x80   : > { %5739 = vmatmul.mubr.bf16.gmra.mrb[24].mxu0 %v15331_v62  ;;  %7476 = vmatmul.mubr.bf16.gmra.mrb[24].mxu1 %v15331_v62  ;;  %v15520_v62 = vld [vmem:[%s20588_s3 + $0x4ac] ss:$16 sps:$4 sm:$0xff]   ;;  %v15457_v1 = vld [vmem:[%s17102_s23 + $0x1b8] ss:$72 sps:$4 sm:$0xff]  }
  0x81   : > { %5748 = vmatprep.mubr.bf16.mxu0 %v15335_v63  ;;  %7485 = vmatprep.mubr.bf16.mxu1 %v15335_v63  ;;  %v15478_v63 = vld [vmem:[%s20588_s3 + $0x4c4] ss:$16 sps:$4 sm:$0xff]  }
  0x82   : > { %5864 = vmatpush1.bf16.msra.mxu0 %v15392_v0  ;;  %7600 = vmatprep.subr.bf16.mxu1 %v15421_v3  ;;  %v15518_v0 = vld [vmem:[%s20588_s3 + $0x4a8] ss:$16 sps:$4 sm:$0xff]   ;;  %v15476_v3 = vld [vmem:[%s20588_s3 + $0x4c0] ss:$16 sps:$4 sm:$0xff]  }
  0x83   : > { %5865 = vmatprep.subr.bf16.mxu0 %v15406_v2  ;;  %7601 = vmatpush1.bf16.msra.mxu1 %v15419_v5  ;;  %v15461_v2 = vld [vmem:[%s17102_s23 + $0x24c] ss:$72 sps:$4 sm:$0xff]  }
  0x84   : > { %7602 = vmatprep.subr.bf16.mxu1 %v15424_v7  ;;  %v15484_v5 = vld [vmem:[%s20588_s3 + $0x4e4] ss:$16 sps:$4 sm:$0xff]   ;;  %v15482_v7 = vld [vmem:[%s20588_s3 + $0x4e0] ss:$16 sps:$4 sm:$0xff]  }
  0x86   : > { %5866 = vmatpush1.bf16.msra.mxu0 %v15404_v4  ;;  %v15529_v4 = vld [vmem:[%s20588_s3 + $0x4cc] ss:$16 sps:$4 sm:$0xff]  }
  0x87   : > { %5867 = vmatprep.subr.bf16.mxu0 %v15418_v6  ;;  %7603 = vmatpush1.bf16.msra.mxu1 %v15422_v11  ;;  %v15527_v6 = vld [vmem:[%s20588_s3 + $0x4c8] ss:$16 sps:$4 sm:$0xff]  }
  0x88   : > { %5749 = vmatmul.mubr.bf16.gmra.mrb[28].mxu0 %v15337_v8  ;;  %7486 = vmatmul.mubr.bf16.gmra.mrb[28].mxu1 %v15337_v8  ;;  %v15532_v8 = vld [vmem:[%s20588_s3 + $0x4ec] ss:$16 sps:$4 sm:$0xff]   ;;  %v15463_v11 = vld [vmem:[%s17102_s23 + $0x248] ss:$72 sps:$4 sm:$0xff]  }
  0x89   : > { %5758 = vmatprep.mubr.bf16.mxu0 %v15341_v9  ;;  %7495 = vmatprep.mubr.bf16.mxu1 %v15341_v9  ;;  %v15490_v9 = vld [vmem:[%s20588_s3 + $0x504] ss:$16 sps:$4 sm:$0xff]  }
  0x8a   : > { %5868 = vmatpush1.bf16.msra.mxu0 %v15416_v10  ;;  %7604 = vmatprep.subr.bf16.mxu1 %v15433_v13  ;;  %v15530_v10 = vld [vmem:[%s20588_s3 + $0x4e8] ss:$16 sps:$4 sm:$0xff]   ;;  %v15488_v13 = vld [vmem:[%s20588_s3 + $0x500] ss:$16 sps:$4 sm:$0xff]  }
  0x8b   : > { %5869 = vmatprep.subr.bf16.mxu0 %v15430_v12  ;;  %7605 = vmatpush1.bf16.msra.mxu1 %v15431_v15  ;;  %v15467_v12 = vld [vmem:[%s17102_s23 + $0x2dc] ss:$72 sps:$4 sm:$0xff]  }
  0x8c   : > { %7606 = vmatprep.subr.bf16.mxu1 %v15436_v16  ;;  %v15502_v15 = vld [vmem:[%s20588_s3 + $0x524] ss:$16 sps:$4 sm:$0xff]   ;;  %v15539_v16 = vld [vmem:[%s20588_s3 + $0x508] ss:$16 sps:$4 sm:$0xff]  }
  0x8e   : > { %5870 = vmatpush1.bf16.msra.mxu0 %v15428_v14  ;;  %v15541_v14 = vld [vmem:[%s20588_s3 + $0x50c] ss:$16 sps:$4 sm:$0xff]  }
  0x8f   : > { %6032 = vmatprep.subr.bf16.mxu0 %v15442_v17  ;;  %7607 = vmatpush1.bf16.msra.mxu1 %v15434_v20  ;;  %v15500_v17 = vld [vmem:[%s20588_s3 + $0x520] ss:$16 sps:$4 sm:$0xff]   ;;  %v15542_v20 = vld [vmem:[%s20588_s3 + $0x528] ss:$16 sps:$4 sm:$0xff]  }
  0x90   : > { %5759 = vmatmul.mubr.bf16.gmra.mrb[32].mxu0 %v15343_v18  ;;  %7496 = vmatmul.mubr.bf16.gmra.mrb[32].mxu1 %v15343_v18  ;;  %v15544_v18 = vld [vmem:[%s20588_s3 + $0x52c] ss:$16 sps:$4 sm:$0xff]  }
  0x91   : > { %5768 = vmatprep.mubr.bf16.mxu0 %v15353_v19  ;;  %7505 = vmatprep.mubr.bf16.mxu1 %v15353_v19  ;;  %v15514_v19 = vld [vmem:[%s20588_s3 + $0x544] ss:$16 sps:$4 sm:$0xff]  }
  0x92   : > { %7769 = vmatprep.subr.bf16.mxu1 %v15493_v21  ;;  %v15469_v21 = vld [vmem:[%s17102_s23 + $0x2d8] ss:$72 sps:$4 sm:$0xff]  }
  0x98   : > { %5769 = vmatmul.mubr.bf16.gmra.mrb[36].mxu0 %v15355_v22  ;;  %7506 = vmatmul.mubr.bf16.gmra.mrb[36].mxu1 %v15355_v22  ;;  %v15473_v22 = vld [vmem:[%s17102_s23 + $0x36c] ss:$72 sps:$4 sm:$0xff]  }
  0x99   : > { %5778 = vmatprep.mubr.bf16.mxu0 %v15365_v23  ;;  %7515 = vmatprep.mubr.bf16.mxu1 %v15365_v23  ;;  %v15512_v23 = vld [vmem:[%s20588_s3 + $0x540] ss:$16 sps:$4 sm:$0xff]  }
  0xa0   : > { %5779 = vmatmul.mubr.bf16.gmra.mrb[40].mxu0 %v15367_v24  ;;  %7516 = vmatmul.mubr.bf16.gmra.mrb[40].mxu1 %v15367_v24  ;;  %v15553_v24 = vld [vmem:[%s20588_s3 + $0x54c] ss:$16 sps:$4 sm:$0xff]  }
  0xa1   : > { %5788 = vmatprep.mubr.bf16.mxu0 %v15377_v25  ;;  %7525 = vmatprep.mubr.bf16.mxu1 %v15377_v25  ;;  %v15526_v25 = vld [vmem:[%s20588_s3 + $0x564] ss:$16 sps:$4 sm:$0xff]  }
  0xa8   : > { %5789 = vmatmul.mubr.bf16.gmra.mrb[44].mxu0 %v15379_v26  ;;  %7526 = vmatmul.mubr.bf16.gmra.mrb[44].mxu1 %v15379_v26  ;;  %v15551_v26 = vld [vmem:[%s20588_s3 + $0x548] ss:$16 sps:$4 sm:$0xff]  }
  0xa9   : > { %5798 = vmatprep.mubr.bf16.mxu0 %v15389_v27  ;;  %7535 = vmatprep.mubr.bf16.mxu1 %v15389_v27  ;;  %v15524_v27 = vld [vmem:[%s20588_s3 + $0x560] ss:$16 sps:$4 sm:$0xff]  }
  0xb0   : > { %5799 = vmatmul.mubr.bf16.gmra.mrb[48].mxu0 %v15391_v28  ;;  %7536 = vmatmul.mubr.bf16.gmra.mrb[48].mxu1 %v15391_v28  ;;  %v15556_v28 = vld [vmem:[%s20588_s3 + $0x56c] ss:$16 sps:$4 sm:$0xff]  }
  0xb1   : > { %5808 = vmatprep.mubr.bf16.mxu0 %v15401_v29  ;;  %7545 = vmatprep.mubr.bf16.mxu1 %v15401_v29  ;;  %v15538_v29 = vld [vmem:[%s20588_s3 + $0x584] ss:$16 sps:$4 sm:$0xff]  }
  0xb8   : > { %5809 = vmatmul.mubr.bf16.gmra.mrb[52].mxu0 %v15403_v30  ;;  %7546 = vmatmul.mubr.bf16.gmra.mrb[52].mxu1 %v15403_v30  ;;  %v15554_v30 = vld [vmem:[%s20588_s3 + $0x568] ss:$16 sps:$4 sm:$0xff]  }
  0xb9   : > { %5818 = vmatprep.mubr.bf16.mxu0 %v15413_v31  ;;  %7555 = vmatprep.mubr.bf16.mxu1 %v15413_v31  ;;  %v15475_v31 = vld [vmem:[%s17102_s23 + $0x368] ss:$72 sps:$4 sm:$0xff]  }
  0xc0   : > { %5819 = vmatmul.mubr.bf16.gmra.mrb[56].mxu0 %v15415_v32  ;;  %7556 = vmatmul.mubr.bf16.gmra.mrb[56].mxu1 %v15415_v32  ;;  %v15479_v32 = vld [vmem:[%s17102_s23 + $0x3fc] ss:$72 sps:$4 sm:$0xff]  }
  0xc1   : > { %5828 = vmatprep.mubr.bf16.mxu0 %v15425_v33  ;;  %7565 = vmatprep.mubr.bf16.mxu1 %v15425_v33  ;;  %v15536_v33 = vld [vmem:[%s20588_s3 + $0x580] ss:$16 sps:$4 sm:$0xff]  }
  0xc8   : > { %5829 = vmatmul.mubr.bf16.gmra.mrb[60].mxu0 %v15427_v34  ;;  %7566 = vmatmul.mubr.bf16.gmra.mrb[60].mxu1 %v15427_v34  ;;  %v15565_v34 = vld [vmem:[%s20588_s3 + $0x58c] ss:$16 sps:$4 sm:$0xff]  }
  0xc9   : > { %5871 = vmatprep.mubr.bf16.mxu0 %v15439_v35  ;;  %7608 = vmatprep.mubr.bf16.mxu1 %v15439_v35  ;;  %v15550_v35 = vld [vmem:[%s20588_s3 + $0x5a4] ss:$16 sps:$4 sm:$0xff]  }
  0xd0   : > { %5872 = vmatmul.mubr.bf16.vlgmr.msra.gmra.mrb[0].mxu0 %v15437_v36  ;;  %7609 = vmatmul.mubr.bf16.vlgmr.msra.gmra.mrb[0].mxu1 %v15437_v36  ;;  %v15563_v36 = vld [vmem:[%s20588_s3 + $0x588] ss:$16 sps:$4 sm:$0xff]  }
  0xd1   : > { %6033 = vmatpush1.bf16.msra.mxu0 %v15440_v37  ;;  %5881 = vmatprep.mubr.bf16.mxu0 %v15443_v38  ;;  %v15548_v37 = vld [vmem:[%s20588_s3 + $0x5a0] ss:$16 sps:$4 sm:$0xff]  }
  0xd2   : > { %7618 = vmatprep.mubr.bf16.mxu1 %v15443_v38  ;;  %6034 = vmatprep.subr.bf16.mxu0 %v15448_v39  ;;  %v15568_v38 = vld [vmem:[%s20588_s3 + $0x5ac] ss:$16 sps:$4 sm:$0xff]   ;;  %v15562_v39 = vld [vmem:[%s20588_s3 + $0x5c4] ss:$16 sps:$4 sm:$0xff]  }
  0xd3   : > { %7770 = vmatpush1.bf16.msra.mxu1 %v15491_v40  ;;  %v15566_v40 = vld [vmem:[%s20588_s3 + $0x5a8] ss:$16 sps:$4 sm:$0xff]  }
  0xd4   : > { %7771 = vmatprep.subr.bf16.mxu1 %v15496_v42  ;;  %v15485_v42 = vld [vmem:[%s17102_s23 + $0x48c] ss:$72 sps:$4 sm:$0xff]  }
  0xd5   : > { %6035 = vmatpush1.bf16.msra.mxu0 %v15446_v41  ;;  %v15481_v41 = vld [vmem:[%s17102_s23 + $0x3f8] ss:$72 sps:$4 sm:$0xff]  }
  0xd6   : > { %6036 = vmatprep.subr.bf16.mxu0 %v15454_v43  ;;  %v15560_v43 = vld [vmem:[%s20588_s3 + $0x5c0] ss:$16 sps:$4 sm:$0xff]  }
  0xd7   : > { %7772 = vmatpush1.bf16.msra.mxu1 %v15494_v45  ;;  %v15574_v45 = vld [vmem:[%s20588_s3 + $0x5e4] ss:$16 sps:$4 sm:$0xff]  }
  0xd8   : > { %5882 = vmatmul.mubr.bf16.gmra.mrb[4].mxu0 %v15445_v44  ;;  %7619 = vmatmul.mubr.bf16.gmra.mrb[4].mxu1 %v15445_v44  ;;  %v15577_v44 = vld [vmem:[%s20588_s3 + $0x5cc] ss:$16 sps:$4 sm:$0xff]  }
  0xd9   : > { %5891 = vmatprep.mubr.bf16.mxu0 %v15449_v46  ;;  %7628 = vmatprep.mubr.bf16.mxu1 %v15449_v46  ;;  %v15575_v46 = vld [vmem:[%s20588_s3 + $0x5c8] ss:$16 sps:$4 sm:$0xff]  }
  0xda   : > { %6037 = vmatpush1.bf16.msra.mxu0 %v15452_v47  ;;  %7773 = vmatprep.subr.bf16.mxu1 %v15505_v48  ;;  %v15572_v47 = vld [vmem:[%s20588_s3 + $0x5e0] ss:$16 sps:$4 sm:$0xff]   ;;  %v15580_v48 = vld [vmem:[%s20588_s3 + $0x5ec] ss:$16 sps:$4 sm:$0xff]  }
  0xdb   : > { %6038 = vmatprep.subr.bf16.mxu0 %v15460_v49  ;;  %7774 = vmatpush1.bf16.msra.mxu1 %v15503_v50  ;;  %v15578_v49 = vld [vmem:[%s20588_s3 + $0x5e8] ss:$16 sps:$4 sm:$0xff]   ;;  %v15586_v50 = vld [vmem:[%s20588_s3 + $0x604] ss:$16 sps:$4 sm:$0xff]  }
  0xdc   : > { %7775 = vmatprep.subr.bf16.mxu1 %v15508_v52  ;;  %v15497_v52 = vld [vmem:[%s17102_s23 + $0x51c] ss:$72 sps:$4 sm:$0xff]  }
  0xde   : > { %6039 = vmatpush1.bf16.msra.mxu0 %v15458_v51  ;;  %v15487_v51 = vld [vmem:[%s17102_s23 + $0x488] ss:$72 sps:$4 sm:$0xff]  }
  0xdf   : > { %6040 = vmatprep.subr.bf16.mxu0 %v15466_v53  ;;  %7776 = vmatpush1.bf16.msra.mxu1 %v15506_v54  ;;  %v15637_v53 = vld [vmem:[%s20588_s3 + $0x60c] ss:$16 sps:$4 sm:$0xff]   ;;  %v15499_v54 = vld [vmem:[%s17102_s23 + $0x518] ss:$72 sps:$4 sm:$0xff]  }
  0xe0   : > { %5892 = vmatmul.mubr.bf16.gmra.mrb[8].mxu0 %v15451_v55  ;;  %7629 = vmatmul.mubr.bf16.gmra.mrb[8].mxu1 %v15451_v55  ;;  %v15509_v55 = vld [vmem:[%s17102_s23 + $0x5ac] ss:$72 sps:$4 sm:$0xff]  }
  0xe1   : > { %5901 = vmatprep.mubr.bf16.mxu0 %v15455_v56  ;;  %7638 = vmatprep.mubr.bf16.mxu1 %v15455_v56  ;;  %v15511_v56 = vld [vmem:[%s17102_s23 + $0x5a8] ss:$72 sps:$4 sm:$0xff]  }
  0xe2   : > { %6041 = vmatpush1.bf16.msra.mxu0 %v15464_v57  ;;  %7777 = vmatprep.subr.bf16.mxu1 %v15517_v58  ;;  %v15521_v57 = vld [vmem:[%s17102_s23 + $0x63c] ss:$72 sps:$4 sm:$0xff]   ;;  %v15523_v58 = vld [vmem:[%s17102_s23 + $0x638] ss:$72 sps:$4 sm:$0xff]  }
  0xe3   : > { %6042 = vmatprep.subr.bf16.mxu0 %v15472_v59  ;;  %7778 = vmatpush1.bf16.msra.mxu1 %v15515_v60  ;;  %v15533_v59 = vld [vmem:[%s17102_s23 + $0x6cc] ss:$72 sps:$4 sm:$0xff]   ;;  %v15535_v60 = vld [vmem:[%s17102_s23 + $0x6c8] ss:$72 sps:$4 sm:$0xff]  }
  0xe4   : > { %7779 = vmatprep.subr.bf16.mxu1 %v15520_v62  ;;  %v15547_v62 = vld [vmem:[%s17102_s23 + $0x758] ss:$72 sps:$4 sm:$0xff]  }
  0xe6   : > { %6043 = vmatpush1.bf16.msra.mxu0 %v15470_v61  ;;  %v15545_v61 = vld [vmem:[%s17102_s23 + $0x75c] ss:$72 sps:$4 sm:$0xff]  }
  0xe7   : > { %6044 = vmatprep.subr.bf16.mxu0 %v15478_v63  ;;  %7780 = vmatpush1.bf16.msra.mxu1 %v15518_v0  ;;  %v15557_v63 = vld [vmem:[%s17102_s23 + $0x7ec] ss:$72 sps:$4 sm:$0xff]   ;;  %v15559_v0 = vld [vmem:[%s17102_s23 + $0x7e8] ss:$72 sps:$4 sm:$0xff]  }
  0xe8   : > { %5902 = vmatmul.mubr.bf16.gmra.mrb[12].mxu0 %v15457_v1  ;;  %7639 = vmatmul.mubr.bf16.gmra.mrb[12].mxu1 %v15457_v1  ;;  %v15569_v1 = vld [vmem:[%s17102_s23 + $0x87c] ss:$72 sps:$4 sm:$0xff]  }
  0xe9   : > { %5911 = vmatprep.mubr.bf16.mxu0 %v15461_v2  ;;  %7648 = vmatprep.mubr.bf16.mxu1 %v15461_v2  ;;  %v15571_v2 = vld [vmem:[%s17102_s23 + $0x878] ss:$72 sps:$4 sm:$0xff]  }
  0xea   : > { %6045 = vmatpush1.bf16.msra.mxu0 %v15476_v3  ;;  %7781 = vmatprep.subr.bf16.mxu1 %v15529_v4  ;;  %v15583_v3 = vld [vmem:[%s17102_s23 + $0x14] ss:$72 sps:$4 sm:$0xff]   ;;  %v15581_v4 = vld [vmem:[%s17102_s23 + $0x10] ss:$72 sps:$4 sm:$0xff]  }
  0xeb   : > { %6046 = vmatprep.subr.bf16.mxu0 %v15484_v5  ;;  %7782 = vmatpush1.bf16.msra.mxu1 %v15527_v6  ;;  %v15584_v5 = vld [vmem:[%s20588_s3 + $0x600] ss:$16 sps:$4 sm:$0xff]   ;;  %v15587_v6 = vld [vmem:[%s17102_s23 + $0xa4] ss:$72 sps:$4 sm:$0xff]  }
  0xec   : > { %7783 = vmatprep.subr.bf16.mxu1 %v15532_v8  ;;  %v15635_v8 = vld [vmem:[%s20588_s3 + $0x608] ss:$16 sps:$4 sm:$0xff]  }
  0xee   : > { %6047 = vmatpush1.bf16.msra.mxu0 %v15482_v7  ;;  %v15592_v7 = vld [vmem:[%s20588_s3 + $0x624] ss:$16 sps:$4 sm:$0xff]  }
  0xef   : > { %6048 = vmatprep.subr.bf16.mxu0 %v15490_v9  ;;  %7784 = vmatpush1.bf16.msra.mxu1 %v15530_v10  ;;  %v15590_v9 = vld [vmem:[%s20588_s3 + $0x620] ss:$16 sps:$4 sm:$0xff]   ;;  %v15640_v10 = vld [vmem:[%s20588_s3 + $0x62c] ss:$16 sps:$4 sm:$0xff]  }
  0xf0   : > { %5912 = vmatmul.mubr.bf16.gmra.mrb[16].mxu0 %v15463_v11  ;;  %7649 = vmatmul.mubr.bf16.gmra.mrb[16].mxu1 %v15463_v11  ;;  %v15598_v11 = vld [vmem:[%s20588_s3 + $0x644] ss:$16 sps:$4 sm:$0xff]  }
  0xf1   : > { %5921 = vmatprep.mubr.bf16.mxu0 %v15467_v12  ;;  %7658 = vmatprep.mubr.bf16.mxu1 %v15467_v12  ;;  %v15589_v12 = vld [vmem:[%s17102_s23 + $0xa0] ss:$72 sps:$4 sm:$0xff]  }
  0xf2   : > { %6049 = vmatpush1.bf16.msra.mxu0 %v15488_v13  ;;  %7785 = vmatprep.subr.bf16.mxu1 %v15541_v14  ;;  %v15638_v13 = vld [vmem:[%s20588_s3 + $0x628] ss:$16 sps:$4 sm:$0xff]   ;;  %v15593_v14 = vld [vmem:[%s17102_s23 + $0x134] ss:$72 sps:$4 sm:$0xff]  }
  0xf3   : > { %6050 = vmatprep.subr.bf16.mxu0 %v15502_v15  ;;  %7786 = vmatpush1.bf16.msra.mxu1 %v15539_v16  ;;  %v15596_v15 = vld [vmem:[%s20588_s3 + $0x640] ss:$16 sps:$4 sm:$0xff]   ;;  %v15649_v16 = vld [vmem:[%s20588_s3 + $0x64c] ss:$16 sps:$4 sm:$0xff]  }
  0xf4   : > { %7787 = vmatprep.subr.bf16.mxu1 %v15544_v18  ;;  %v15647_v18 = vld [vmem:[%s20588_s3 + $0x648] ss:$16 sps:$4 sm:$0xff]  }
  0xf6   : > { %6051 = vmatpush1.bf16.msra.mxu0 %v15500_v17  ;;  %v15604_v17 = vld [vmem:[%s20588_s3 + $0x664] ss:$16 sps:$4 sm:$0xff]  }
  0xf7   : > { %6052 = vmatprep.subr.bf16.mxu0 %v15514_v19  ;;  %7788 = vmatpush1.bf16.msra.mxu1 %v15542_v20  ;;  %v15602_v19 = vld [vmem:[%s20588_s3 + $0x660] ss:$16 sps:$4 sm:$0xff]   ;;  %v15652_v20 = vld [vmem:[%s20588_s3 + $0x66c] ss:$16 sps:$4 sm:$0xff]  }
  0xf8   : > { %5922 = vmatmul.mubr.bf16.gmra.mrb[20].mxu0 %v15469_v21  ;;  %7659 = vmatmul.mubr.bf16.gmra.mrb[20].mxu1 %v15469_v21  ;;  %v15610_v21 = vld [vmem:[%s20588_s3 + $0x684] ss:$16 sps:$4 sm:$0xff]  }
  0xf9   : > { %5931 = vmatprep.mubr.bf16.mxu0 %v15473_v22  ;;  %7668 = vmatprep.mubr.bf16.mxu1 %v15473_v22  ;;  %v15650_v22 = vld [vmem:[%s20588_s3 + $0x668] ss:$16 sps:$4 sm:$0xff]  }
  0xfa   : > { %6053 = vmatpush1.bf16.msra.mxu0 %v15512_v23  ;;  %7789 = vmatprep.subr.bf16.mxu1 %v15553_v24  ;;  %v15595_v23 = vld [vmem:[%s17102_s23 + $0x130] ss:$72 sps:$4 sm:$0xff]   ;;  %v15599_v24 = vld [vmem:[%s17102_s23 + $0x1c4] ss:$72 sps:$4 sm:$0xff]  }
  0xfb   : > { %6054 = vmatprep.subr.bf16.mxu0 %v15526_v25  ;;  %7790 = vmatpush1.bf16.msra.mxu1 %v15551_v26  ;;  %v15608_v25 = vld [vmem:[%s20588_s3 + $0x680] ss:$16 sps:$4 sm:$0xff]   ;;  %v15661_v26 = vld [vmem:[%s20588_s3 + $0x68c] ss:$16 sps:$4 sm:$0xff]  }
  0xfc   : > { %7791 = vmatprep.subr.bf16.mxu1 %v15556_v28  ;;  %v15659_v28 = vld [vmem:[%s20588_s3 + $0x688] ss:$16 sps:$4 sm:$0xff]  }
  0xfe   : > { %6055 = vmatpush1.bf16.msra.mxu0 %v15524_v27  ;;  %v15616_v27 = vld [vmem:[%s20588_s3 + $0x6a4] ss:$16 sps:$4 sm:$0xff]  }
  0xff   : > { %6056 = vmatprep.subr.bf16.mxu0 %v15538_v29  ;;  %7792 = vmatpush1.bf16.msra.mxu1 %v15554_v30  ;;  %v15614_v29 = vld [vmem:[%s20588_s3 + $0x6a0] ss:$16 sps:$4 sm:$0xff]   ;;  %v15664_v30 = vld [vmem:[%s20588_s3 + $0x6ac] ss:$16 sps:$4 sm:$0xff]  }
 0x100   : > { %5932 = vmatmul.mubr.bf16.gmra.mrb[24].mxu0 %v15475_v31  ;;  %7669 = vmatmul.mubr.bf16.gmra.mrb[24].mxu1 %v15475_v31  ;;  %v15622_v31 = vld [vmem:[%s20588_s3 + $0x6c4] ss:$16 sps:$4 sm:$0xff]  }
 0x101   : > { %5941 = vmatprep.mubr.bf16.mxu0 %v15479_v32  ;;  %7678 = vmatprep.mubr.bf16.mxu1 %v15479_v32  ;;  %v15662_v32 = vld [vmem:[%s20588_s3 + $0x6a8] ss:$16 sps:$4 sm:$0xff]  }
 0x102   : > { %6057 = vmatpush1.bf16.msra.mxu0 %v15536_v33  ;;  %7793 = vmatprep.subr.bf16.mxu1 %v15565_v34  ;;  %v15601_v33 = vld [vmem:[%s17102_s23 + $0x1c0] ss:$72 sps:$4 sm:$0xff]   ;;  %v15605_v34 = vld [vmem:[%s17102_s23 + $0x254] ss:$72 sps:$4 sm:$0xff]  }
 0x103   : > { %6058 = vmatprep.subr.bf16.mxu0 %v15550_v35  ;;  %7794 = vmatpush1.bf16.msra.mxu1 %v15563_v36  ;;  %v15620_v35 = vld [vmem:[%s20588_s3 + $0x6c0] ss:$16 sps:$4 sm:$0xff]   ;;  %v15673_v36 = vld [vmem:[%s20588_s3 + $0x6cc] ss:$16 sps:$4 sm:$0xff]  }
 0x104   : > { %7795 = vmatprep.subr.bf16.mxu1 %v15568_v38  ;;  %v15671_v38 = vld [vmem:[%s20588_s3 + $0x6c8] ss:$16 sps:$4 sm:$0xff]  }
 0x106   : > { %6059 = vmatpush1.bf16.msra.mxu0 %v15548_v37  ;;  %v15628_v37 = vld [vmem:[%s20588_s3 + $0x6e4] ss:$16 sps:$4 sm:$0xff]  }
 0x107   : > { %6060 = vmatprep.subr.bf16.mxu0 %v15562_v39  ;;  %7796 = vmatpush1.bf16.msra.mxu1 %v15566_v40  ;;  %v15626_v39 = vld [vmem:[%s20588_s3 + $0x6e0] ss:$16 sps:$4 sm:$0xff]   ;;  %v15676_v40 = vld [vmem:[%s20588_s3 + $0x6ec] ss:$16 sps:$4 sm:$0xff]  }
 0x108   : > { %5942 = vmatmul.mubr.bf16.gmra.mrb[28].mxu0 %v15481_v41  ;;  %7679 = vmatmul.mubr.bf16.gmra.mrb[28].mxu1 %v15481_v41  ;;  %v15634_v41 = vld [vmem:[%s20588_s3 + $0x704] ss:$16 sps:$4 sm:$0xff]  }
 0x109   : > { %5951 = vmatprep.mubr.bf16.mxu0 %v15485_v42  ;;  %7688 = vmatprep.mubr.bf16.mxu1 %v15485_v42  ;;  %v15674_v42 = vld [vmem:[%s20588_s3 + $0x6e8] ss:$16 sps:$4 sm:$0xff]  }
 0x10a   : > { %6061 = vmatpush1.bf16.msra.mxu0 %v15560_v43  ;;  %7797 = vmatprep.subr.bf16.mxu1 %v15577_v44  ;;  %v15607_v43 = vld [vmem:[%s17102_s23 + $0x250] ss:$72 sps:$4 sm:$0xff]   ;;  %v15611_v44 = vld [vmem:[%s17102_s23 + $0x2e4] ss:$72 sps:$4 sm:$0xff]  }
 0x10b   : > { %6062 = vmatprep.subr.bf16.mxu0 %v15574_v45  ;;  %7798 = vmatpush1.bf16.msra.mxu1 %v15575_v46  ;;  %v15632_v45 = vld [vmem:[%s20588_s3 + $0x700] ss:$16 sps:$4 sm:$0xff]   ;;  %v15685_v46 = vld [vmem:[%s20588_s3 + $0x70c] ss:$16 sps:$4 sm:$0xff]  }
 0x10c   : > { %7799 = vmatprep.subr.bf16.mxu1 %v15580_v48  ;;  %v15683_v48 = vld [vmem:[%s20588_s3 + $0x708] ss:$16 sps:$4 sm:$0xff]  }
 0x10e   : > { %6063 = vmatpush1.bf16.msra.mxu0 %v15572_v47  ;;  %v15646_v47 = vld [vmem:[%s20588_s3 + $0x724] ss:$16 sps:$4 sm:$0xff]  }
 0x10f   : > { %7800 = vmatpush1.bf16.msra.mxu1 %v15578_v49  ;;  %6225 = vmatprep.subr.bf16.mxu0 %v15586_v50  ;;  %v15644_v49 = vld [vmem:[%s20588_s3 + $0x720] ss:$16 sps:$4 sm:$0xff]   ;;  %v15688_v50 = vld [vmem:[%s20588_s3 + $0x72c] ss:$16 sps:$4 sm:$0xff]  }
 0x110   : > { %5952 = vmatmul.mubr.bf16.gmra.mrb[32].mxu0 %v15487_v51  ;;  %7689 = vmatmul.mubr.bf16.gmra.mrb[32].mxu1 %v15487_v51  ;;  %v15658_v51 = vld [vmem:[%s20588_s3 + $0x744] ss:$16 sps:$4 sm:$0xff]  }
 0x111   : > { %5961 = vmatprep.mubr.bf16.mxu0 %v15497_v52  ;;  %7698 = vmatprep.mubr.bf16.mxu1 %v15497_v52  ;;  %v15686_v52 = vld [vmem:[%s20588_s3 + $0x728] ss:$16 sps:$4 sm:$0xff]  }
 0x112   : > { %7962 = vmatprep.subr.bf16.mxu1 %v15637_v53  ;;  %v15613_v53 = vld [vmem:[%s17102_s23 + $0x2e0] ss:$72 sps:$4 sm:$0xff]  }
 0x118   : > { %5962 = vmatmul.mubr.bf16.gmra.mrb[36].mxu0 %v15499_v54  ;;  %7699 = vmatmul.mubr.bf16.gmra.mrb[36].mxu1 %v15499_v54  ;;  %v15617_v54 = vld [vmem:[%s17102_s23 + $0x374] ss:$72 sps:$4 sm:$0xff]  }
 0x119   : > { %5971 = vmatprep.mubr.bf16.mxu0 %v15509_v55  ;;  %7708 = vmatprep.mubr.bf16.mxu1 %v15509_v55  ;;  %v15656_v55 = vld [vmem:[%s20588_s3 + $0x740] ss:$16 sps:$4 sm:$0xff]  }
 0x120   : > { %5972 = vmatmul.mubr.bf16.gmra.mrb[40].mxu0 %v15511_v56  ;;  %7709 = vmatmul.mubr.bf16.gmra.mrb[40].mxu1 %v15511_v56  ;;  %v15697_v56 = vld [vmem:[%s20588_s3 + $0x74c] ss:$16 sps:$4 sm:$0xff]  }
 0x121   : > { %5981 = vmatprep.mubr.bf16.mxu0 %v15521_v57  ;;  %7718 = vmatprep.mubr.bf16.mxu1 %v15521_v57  ;;  %v15670_v57 = vld [vmem:[%s20588_s3 + $0x764] ss:$16 sps:$4 sm:$0xff]  }
 0x128   : > { %5982 = vmatmul.mubr.bf16.gmra.mrb[44].mxu0 %v15523_v58  ;;  %7719 = vmatmul.mubr.bf16.gmra.mrb[44].mxu1 %v15523_v58  ;;  %v15695_v58 = vld [vmem:[%s20588_s3 + $0x748] ss:$16 sps:$4 sm:$0xff]  }
 0x129   : > { %5991 = vmatprep.mubr.bf16.mxu0 %v15533_v59  ;;  %7728 = vmatprep.mubr.bf16.mxu1 %v15533_v59  ;;  %v15668_v59 = vld [vmem:[%s20588_s3 + $0x760] ss:$16 sps:$4 sm:$0xff]  }
 0x130   : > { %5992 = vmatmul.mubr.bf16.gmra.mrb[48].mxu0 %v15535_v60  ;;  %7729 = vmatmul.mubr.bf16.gmra.mrb[48].mxu1 %v15535_v60  ;;  %v15700_v60 = vld [vmem:[%s20588_s3 + $0x76c] ss:$16 sps:$4 sm:$0xff]  }
 0x131   : > { %6001 = vmatprep.mubr.bf16.mxu0 %v15545_v61  ;;  %7738 = vmatprep.mubr.bf16.mxu1 %v15545_v61  ;;  %v15682_v61 = vld [vmem:[%s20588_s3 + $0x784] ss:$16 sps:$4 sm:$0xff]  }
 0x138   : > { %6002 = vmatmul.mubr.bf16.gmra.mrb[52].mxu0 %v15547_v62  ;;  %7739 = vmatmul.mubr.bf16.gmra.mrb[52].mxu1 %v15547_v62  ;;  %v15698_v62 = vld [vmem:[%s20588_s3 + $0x768] ss:$16 sps:$4 sm:$0xff]  }
 0x139   : > { %6011 = vmatprep.mubr.bf16.mxu0 %v15557_v63  ;;  %7748 = vmatprep.mubr.bf16.mxu1 %v15557_v63  ;;  %v15619_v63 = vld [vmem:[%s17102_s23 + $0x370] ss:$72 sps:$4 sm:$0xff]  }
 0x140   : > { %6012 = vmatmul.mubr.bf16.gmra.mrb[56].mxu0 %v15559_v0  ;;  %7749 = vmatmul.mubr.bf16.gmra.mrb[56].mxu1 %v15559_v0  ;;  %v15623_v0 = vld [vmem:[%s17102_s23 + $0x404] ss:$72 sps:$4 sm:$0xff]  }
 0x141   : > { %6021 = vmatprep.mubr.bf16.mxu0 %v15569_v1  ;;  %7758 = vmatprep.mubr.bf16.mxu1 %v15569_v1  ;;  %v15680_v1 = vld [vmem:[%s20588_s3 + $0x780] ss:$16 sps:$4 sm:$0xff]  }
 0x148   : > { %6022 = vmatmul.mubr.bf16.gmra.mrb[60].mxu0 %v15571_v2  ;;  %7759 = vmatmul.mubr.bf16.gmra.mrb[60].mxu1 %v15571_v2  ;;  %v15709_v2 = vld [vmem:[%s20588_s3 + $0x78c] ss:$16 sps:$4 sm:$0xff]  }
 0x149   : > { %6064 = vmatprep.mubr.bf16.mxu0 %v15583_v3  ;;  %7801 = vmatprep.mubr.bf16.mxu1 %v15583_v3  ;;  %v15694_v3 = vld [vmem:[%s20588_s3 + $0x7a4] ss:$16 sps:$4 sm:$0xff]  }
 0x150   : > { %6065 = vmatmul.mubr.bf16.vlgmr.msra.gmra.mrb[0].mxu0 %v15581_v4  ;;  %7802 = vmatmul.mubr.bf16.vlgmr.msra.gmra.mrb[0].mxu1 %v15581_v4  ;;  %v15707_v4 = vld [vmem:[%s20588_s3 + $0x788] ss:$16 sps:$4 sm:$0xff]  }
 0x151   : > { %6226 = vmatpush1.bf16.msra.mxu0 %v15584_v5  ;;  %6074 = vmatprep.mubr.bf16.mxu0 %v15587_v6  ;;  %v15692_v5 = vld [vmem:[%s20588_s3 + $0x7a0] ss:$16 sps:$4 sm:$0xff]  }
 0x152   : > { %7811 = vmatprep.mubr.bf16.mxu1 %v15587_v6  ;;  %6227 = vmatprep.subr.bf16.mxu0 %v15592_v7  ;;  %v15712_v6 = vld [vmem:[%s20588_s3 + $0x7ac] ss:$16 sps:$4 sm:$0xff]   ;;  %v15706_v7 = vld [vmem:[%s20588_s3 + $0x7c4] ss:$16 sps:$4 sm:$0xff]  }
 0x153   : > { %7963 = vmatpush1.bf16.msra.mxu1 %v15635_v8  ;;  %v15710_v8 = vld [vmem:[%s20588_s3 + $0x7a8] ss:$16 sps:$4 sm:$0xff]  }
 0x154   : > { %7964 = vmatprep.subr.bf16.mxu1 %v15640_v10  ;;  %v15629_v10 = vld [vmem:[%s17102_s23 + $0x494] ss:$72 sps:$4 sm:$0xff]  }
 0x155   : > { %6228 = vmatpush1.bf16.msra.mxu0 %v15590_v9  ;;  %v15625_v9 = vld [vmem:[%s17102_s23 + $0x400] ss:$72 sps:$4 sm:$0xff]  }
 0x156   : > { %6229 = vmatprep.subr.bf16.mxu0 %v15598_v11  ;;  %v15704_v11 = vld [vmem:[%s20588_s3 + $0x7c0] ss:$16 sps:$4 sm:$0xff]  }
 0x157   : > { %7965 = vmatpush1.bf16.msra.mxu1 %v15638_v13  ;;  %v15718_v13 = vld [vmem:[%s20588_s3 + $0x7e4] ss:$16 sps:$4 sm:$0xff]  }
 0x158   : > { %6075 = vmatmul.mubr.bf16.gmra.mrb[4].mxu0 %v15589_v12  ;;  %7812 = vmatmul.mubr.bf16.gmra.mrb[4].mxu1 %v15589_v12  ;;  %v15721_v12 = vld [vmem:[%s20588_s3 + $0x7cc] ss:$16 sps:$4 sm:$0xff]  }
 0x159   : > { %6084 = vmatprep.mubr.bf16.mxu0 %v15593_v14  ;;  %7821 = vmatprep.mubr.bf16.mxu1 %v15593_v14  ;;  %v15719_v14 = vld [vmem:[%s20588_s3 + $0x7c8] ss:$16 sps:$4 sm:$0xff]  }
 0x15a   : > { %6230 = vmatpush1.bf16.msra.mxu0 %v15596_v15  ;;  %7966 = vmatprep.subr.bf16.mxu1 %v15649_v16  ;;  %v15716_v15 = vld [vmem:[%s20588_s3 + $0x7e0] ss:$16 sps:$4 sm:$0xff]   ;;  %v15724_v16 = vld [vmem:[%s20588_s3 + $0x7ec] ss:$16 sps:$4 sm:$0xff]  }
 0x15b   : > { %6231 = vmatprep.subr.bf16.mxu0 %v15604_v17  ;;  %7967 = vmatpush1.bf16.msra.mxu1 %v15647_v18  ;;  %v15722_v17 = vld [vmem:[%s20588_s3 + $0x7e8] ss:$16 sps:$4 sm:$0xff]   ;;  %v15730_v18 = vld [vmem:[%s20588_s3 + $0x804] ss:$16 sps:$4 sm:$0xff]  }
 0x15c   : > { %7968 = vmatprep.subr.bf16.mxu1 %v15652_v20  ;;  %v15641_v20 = vld [vmem:[%s17102_s23 + $0x524] ss:$72 sps:$4 sm:$0xff]  }
 0x15e   : > { %6232 = vmatpush1.bf16.msra.mxu0 %v15602_v19  ;;  %v15631_v19 = vld [vmem:[%s17102_s23 + $0x490] ss:$72 sps:$4 sm:$0xff]  }
 0x15f   : > { %6233 = vmatprep.subr.bf16.mxu0 %v15610_v21  ;;  %7969 = vmatpush1.bf16.msra.mxu1 %v15650_v22  ;;  %v15781_v21 = vld [vmem:[%s20588_s3 + $0x80c] ss:$16 sps:$4 sm:$0xff]   ;;  %v15643_v22 = vld [vmem:[%s17102_s23 + $0x520] ss:$72 sps:$4 sm:$0xff]  }
 0x160   : > { %6085 = vmatmul.mubr.bf16.gmra.mrb[8].mxu0 %v15595_v23  ;;  %7822 = vmatmul.mubr.bf16.gmra.mrb[8].mxu1 %v15595_v23  ;;  %v15653_v23 = vld [vmem:[%s17102_s23 + $0x5b4] ss:$72 sps:$4 sm:$0xff]  }
 0x161   : > { %6094 = vmatprep.mubr.bf16.mxu0 %v15599_v24  ;;  %7831 = vmatprep.mubr.bf16.mxu1 %v15599_v24  ;;  %v15655_v24 = vld [vmem:[%s17102_s23 + $0x5b0] ss:$72 sps:$4 sm:$0xff]  }
 0x162   : > { %6234 = vmatpush1.bf16.msra.mxu0 %v15608_v25  ;;  %7970 = vmatprep.subr.bf16.mxu1 %v15661_v26  ;;  %v15665_v25 = vld [vmem:[%s17102_s23 + $0x644] ss:$72 sps:$4 sm:$0xff]   ;;  %v15667_v26 = vld [vmem:[%s17102_s23 + $0x640] ss:$72 sps:$4 sm:$0xff]  }
 0x163   : > { %6235 = vmatprep.subr.bf16.mxu0 %v15616_v27  ;;  %7971 = vmatpush1.bf16.msra.mxu1 %v15659_v28  ;;  %v15677_v27 = vld [vmem:[%s17102_s23 + $0x6d4] ss:$72 sps:$4 sm:$0xff]   ;;  %v15679_v28 = vld [vmem:[%s17102_s23 + $0x6d0] ss:$72 sps:$4 sm:$0xff]  }
 0x164   : > { %7972 = vmatprep.subr.bf16.mxu1 %v15664_v30  ;;  %v15691_v30 = vld [vmem:[%s17102_s23 + $0x760] ss:$72 sps:$4 sm:$0xff]  }
 0x166   : > { %6236 = vmatpush1.bf16.msra.mxu0 %v15614_v29  ;;  %v15689_v29 = vld [vmem:[%s17102_s23 + $0x764] ss:$72 sps:$4 sm:$0xff]  }
 0x167   : > { %6237 = vmatprep.subr.bf16.mxu0 %v15622_v31  ;;  %7973 = vmatpush1.bf16.msra.mxu1 %v15662_v32  ;;  %v15701_v31 = vld [vmem:[%s17102_s23 + $0x7f4] ss:$72 sps:$4 sm:$0xff]   ;;  %v15703_v32 = vld [vmem:[%s17102_s23 + $0x7f0] ss:$72 sps:$4 sm:$0xff]  }
 0x168   : > { %6095 = vmatmul.mubr.bf16.gmra.mrb[12].mxu0 %v15601_v33  ;;  %7832 = vmatmul.mubr.bf16.gmra.mrb[12].mxu1 %v15601_v33  ;;  %v15713_v33 = vld [vmem:[%s17102_s23 + $0x884] ss:$72 sps:$4 sm:$0xff]  }
 0x169   : > { %6104 = vmatprep.mubr.bf16.mxu0 %v15605_v34  ;;  %7841 = vmatprep.mubr.bf16.mxu1 %v15605_v34  ;;  %v15715_v34 = vld [vmem:[%s17102_s23 + $0x880] ss:$72 sps:$4 sm:$0xff]  }
 0x16a   : > { %6238 = vmatpush1.bf16.msra.mxu0 %v15620_v35  ;;  %7974 = vmatprep.subr.bf16.mxu1 %v15673_v36  ;;  %v15727_v35 = vld [vmem:[%s17102_s23 + $0x1c] ss:$72 sps:$4 sm:$0xff]   ;;  %v15725_v36 = vld [vmem:[%s17102_s23 + $0x18] ss:$72 sps:$4 sm:$0xff]  }
 0x16b   : > { %6239 = vmatprep.subr.bf16.mxu0 %v15628_v37  ;;  %7975 = vmatpush1.bf16.msra.mxu1 %v15671_v38  ;;  %v15728_v37 = vld [vmem:[%s20588_s3 + $0x800] ss:$16 sps:$4 sm:$0xff]   ;;  %v15731_v38 = vld [vmem:[%s17102_s23 + $0xac] ss:$72 sps:$4 sm:$0xff]  }
 0x16c   : > { %7976 = vmatprep.subr.bf16.mxu1 %v15676_v40  ;;  %v15779_v40 = vld [vmem:[%s20588_s3 + $0x808] ss:$16 sps:$4 sm:$0xff]  }
 0x16e   : > { %6240 = vmatpush1.bf16.msra.mxu0 %v15626_v39  ;;  %v15736_v39 = vld [vmem:[%s20588_s3 + $0x824] ss:$16 sps:$4 sm:$0xff]  }
 0x16f   : > { %6241 = vmatprep.subr.bf16.mxu0 %v15634_v41  ;;  %7977 = vmatpush1.bf16.msra.mxu1 %v15674_v42  ;;  %v15734_v41 = vld [vmem:[%s20588_s3 + $0x820] ss:$16 sps:$4 sm:$0xff]   ;;  %v15784_v42 = vld [vmem:[%s20588_s3 + $0x82c] ss:$16 sps:$4 sm:$0xff]  }
 0x170   : > { %6105 = vmatmul.mubr.bf16.gmra.mrb[16].mxu0 %v15607_v43  ;;  %7842 = vmatmul.mubr.bf16.gmra.mrb[16].mxu1 %v15607_v43  ;;  %v15742_v43 = vld [vmem:[%s20588_s3 + $0x844] ss:$16 sps:$4 sm:$0xff]  }
 0x171   : > { %6114 = vmatprep.mubr.bf16.mxu0 %v15611_v44  ;;  %7851 = vmatprep.mubr.bf16.mxu1 %v15611_v44  ;;  %v15733_v44 = vld [vmem:[%s17102_s23 + $0xa8] ss:$72 sps:$4 sm:$0xff]  }
 0x172   : > { %6242 = vmatpush1.bf16.msra.mxu0 %v15632_v45  ;;  %7978 = vmatprep.subr.bf16.mxu1 %v15685_v46  ;;  %v15782_v45 = vld [vmem:[%s20588_s3 + $0x828] ss:$16 sps:$4 sm:$0xff]   ;;  %v15737_v46 = vld [vmem:[%s17102_s23 + $0x13c] ss:$72 sps:$4 sm:$0xff]  }
 0x173   : > { %6243 = vmatprep.subr.bf16.mxu0 %v15646_v47  ;;  %7979 = vmatpush1.bf16.msra.mxu1 %v15683_v48  ;;  %v15740_v47 = vld [vmem:[%s20588_s3 + $0x840] ss:$16 sps:$4 sm:$0xff]   ;;  %v15793_v48 = vld [vmem:[%s20588_s3 + $0x84c] ss:$16 sps:$4 sm:$0xff]  }
 0x174   : > { %7980 = vmatprep.subr.bf16.mxu1 %v15688_v50  ;;  %v15791_v50 = vld [vmem:[%s20588_s3 + $0x848] ss:$16 sps:$4 sm:$0xff]  }
 0x176   : > { %6244 = vmatpush1.bf16.msra.mxu0 %v15644_v49  ;;  %v15748_v49 = vld [vmem:[%s20588_s3 + $0x864] ss:$16 sps:$4 sm:$0xff]  }
 0x177   : > { %6245 = vmatprep.subr.bf16.mxu0 %v15658_v51  ;;  %7981 = vmatpush1.bf16.msra.mxu1 %v15686_v52  ;;  %v15746_v51 = vld [vmem:[%s20588_s3 + $0x860] ss:$16 sps:$4 sm:$0xff]   ;;  %v15796_v52 = vld [vmem:[%s20588_s3 + $0x86c] ss:$16 sps:$4 sm:$0xff]  }
 0x178   : > { %6115 = vmatmul.mubr.bf16.gmra.mrb[20].mxu0 %v15613_v53  ;;  %7852 = vmatmul.mubr.bf16.gmra.mrb[20].mxu1 %v15613_v53  ;;  %v15754_v53 = vld [vmem:[%s20588_s3 + $0x884] ss:$16 sps:$4 sm:$0xff]  }
 0x179   : > { %6124 = vmatprep.mubr.bf16.mxu0 %v15617_v54  ;;  %7861 = vmatprep.mubr.bf16.mxu1 %v15617_v54  ;;  %v15794_v54 = vld [vmem:[%s20588_s3 + $0x868] ss:$16 sps:$4 sm:$0xff]  }
 0x17a   : > { %6246 = vmatpush1.bf16.msra.mxu0 %v15656_v55  ;;  %7982 = vmatprep.subr.bf16.mxu1 %v15697_v56  ;;  %v15739_v55 = vld [vmem:[%s17102_s23 + $0x138] ss:$72 sps:$4 sm:$0xff]   ;;  %v15743_v56 = vld [vmem:[%s17102_s23 + $0x1cc] ss:$72 sps:$4 sm:$0xff]  }
 0x17b   : > { %6247 = vmatprep.subr.bf16.mxu0 %v15670_v57  ;;  %7983 = vmatpush1.bf16.msra.mxu1 %v15695_v58  ;;  %v15752_v57 = vld [vmem:[%s20588_s3 + $0x880] ss:$16 sps:$4 sm:$0xff]   ;;  %v15805_v58 = vld [vmem:[%s20588_s3 + $0x88c] ss:$16 sps:$4 sm:$0xff]  }
 0x17c   : > { %7984 = vmatprep.subr.bf16.mxu1 %v15700_v60  ;;  %v15803_v60 = vld [vmem:[%s20588_s3 + $0x888] ss:$16 sps:$4 sm:$0xff]  }
 0x17e   : > { %6248 = vmatpush1.bf16.msra.mxu0 %v15668_v59  ;;  %v15760_v59 = vld [vmem:[%s20588_s3 + $0x8a4] ss:$16 sps:$4 sm:$0xff]  }
 0x17f   : > { %6249 = vmatprep.subr.bf16.mxu0 %v15682_v61  ;;  %7985 = vmatpush1.bf16.msra.mxu1 %v15698_v62  ;;  %v15758_v61 = vld [vmem:[%s20588_s3 + $0x8a0] ss:$16 sps:$4 sm:$0xff]   ;;  %v15808_v62 = vld [vmem:[%s20588_s3 + $0x8ac] ss:$16 sps:$4 sm:$0xff]  }
 0x180   : > { %6125 = vmatmul.mubr.bf16.gmra.mrb[24].mxu0 %v15619_v63  ;;  %7862 = vmatmul.mubr.bf16.gmra.mrb[24].mxu1 %v15619_v63  ;;  %v15766_v63 = vld [vmem:[%s20588_s3 + $0x8c4] ss:$16 sps:$4 sm:$0xff]  }
 0x181   : > { %6134 = vmatprep.mubr.bf16.mxu0 %v15623_v0  ;;  %7871 = vmatprep.mubr.bf16.mxu1 %v15623_v0  ;;  %v15806_v0 = vld [vmem:[%s20588_s3 + $0x8a8] ss:$16 sps:$4 sm:$0xff]  }
 0x182   : > { %6250 = vmatpush1.bf16.msra.mxu0 %v15680_v1  ;;  %7986 = vmatprep.subr.bf16.mxu1 %v15709_v2  ;;  %v15745_v1 = vld [vmem:[%s17102_s23 + $0x1c8] ss:$72 sps:$4 sm:$0xff]   ;;  %v15749_v2 = vld [vmem:[%s17102_s23 + $0x25c] ss:$72 sps:$4 sm:$0xff]  }
 0x183   : > { %6251 = vmatprep.subr.bf16.mxu0 %v15694_v3  ;;  %7987 = vmatpush1.bf16.msra.mxu1 %v15707_v4  ;;  %v15764_v3 = vld [vmem:[%s20588_s3 + $0x8c0] ss:$16 sps:$4 sm:$0xff]   ;;  %v15817_v4 = vld [vmem:[%s20588_s3 + $0x8cc] ss:$16 sps:$4 sm:$0xff]  }
 0x184   : > { %7988 = vmatprep.subr.bf16.mxu1 %v15712_v6  ;;  %v15815_v6 = vld [vmem:[%s20588_s3 + $0x8c8] ss:$16 sps:$4 sm:$0xff]  }
 0x186   : > { %6252 = vmatpush1.bf16.msra.mxu0 %v15692_v5  ;;  %v15772_v5 = vld [vmem:[%s20588_s3 + $0x8e4] ss:$16 sps:$4 sm:$0xff]  }
 0x187   : > { %6253 = vmatprep.subr.bf16.mxu0 %v15706_v7  ;;  %7989 = vmatpush1.bf16.msra.mxu1 %v15710_v8  ;;  %v15770_v7 = vld [vmem:[%s20588_s3 + $0x8e0] ss:$16 sps:$4 sm:$0xff]   ;;  %v15820_v8 = vld [vmem:[%s20588_s3 + $0x8ec] ss:$16 sps:$4 sm:$0xff]  }
 0x188   : > { %6135 = vmatmul.mubr.bf16.gmra.mrb[28].mxu0 %v15625_v9  ;;  %7872 = vmatmul.mubr.bf16.gmra.mrb[28].mxu1 %v15625_v9  ;;  %v15778_v9 = vld [vmem:[%s20588_s3 + $0x904] ss:$16 sps:$4 sm:$0xff]  }
 0x189   : > { %6144 = vmatprep.mubr.bf16.mxu0 %v15629_v10  ;;  %7881 = vmatprep.mubr.bf16.mxu1 %v15629_v10  ;;  %v15818_v10 = vld [vmem:[%s20588_s3 + $0x8e8] ss:$16 sps:$4 sm:$0xff]  }
 0x18a   : > { %6254 = vmatpush1.bf16.msra.mxu0 %v15704_v11  ;;  %7990 = vmatprep.subr.bf16.mxu1 %v15721_v12  ;;  %v15751_v11 = vld [vmem:[%s17102_s23 + $0x258] ss:$72 sps:$4 sm:$0xff]   ;;  %v15755_v12 = vld [vmem:[%s17102_s23 + $0x2ec] ss:$72 sps:$4 sm:$0xff]  }
 0x18b   : > { %6255 = vmatprep.subr.bf16.mxu0 %v15718_v13  ;;  %7991 = vmatpush1.bf16.msra.mxu1 %v15719_v14  ;;  %v15776_v13 = vld [vmem:[%s20588_s3 + $0x900] ss:$16 sps:$4 sm:$0xff]   ;;  %v15829_v14 = vld [vmem:[%s20588_s3 + $0x90c] ss:$16 sps:$4 sm:$0xff]  }
 0x18c   : > { %7992 = vmatprep.subr.bf16.mxu1 %v15724_v16  ;;  %v15827_v16 = vld [vmem:[%s20588_s3 + $0x908] ss:$16 sps:$4 sm:$0xff]  }
 0x18e   : > { %6256 = vmatpush1.bf16.msra.mxu0 %v15716_v15  ;;  %v15790_v15 = vld [vmem:[%s20588_s3 + $0x924] ss:$16 sps:$4 sm:$0xff]  }
 0x18f   : > { %7993 = vmatpush1.bf16.msra.mxu1 %v15722_v17  ;;  %6418 = vmatprep.subr.bf16.mxu0 %v15730_v18  ;;  %v15788_v17 = vld [vmem:[%s20588_s3 + $0x920] ss:$16 sps:$4 sm:$0xff]   ;;  %v15832_v18 = vld [vmem:[%s20588_s3 + $0x92c] ss:$16 sps:$4 sm:$0xff]  }
 0x190   : > { %6145 = vmatmul.mubr.bf16.gmra.mrb[32].mxu0 %v15631_v19  ;;  %7882 = vmatmul.mubr.bf16.gmra.mrb[32].mxu1 %v15631_v19  ;;  %v15802_v19 = vld [vmem:[%s20588_s3 + $0x944] ss:$16 sps:$4 sm:$0xff]  }
 0x191   : > { %6154 = vmatprep.mubr.bf16.mxu0 %v15641_v20  ;;  %7891 = vmatprep.mubr.bf16.mxu1 %v15641_v20  ;;  %v15830_v20 = vld [vmem:[%s20588_s3 + $0x928] ss:$16 sps:$4 sm:$0xff]  }
 0x192   : > { %8155 = vmatprep.subr.bf16.mxu1 %v15781_v21  ;;  %v15757_v21 = vld [vmem:[%s17102_s23 + $0x2e8] ss:$72 sps:$4 sm:$0xff]  }
 0x198   : > { %6155 = vmatmul.mubr.bf16.gmra.mrb[36].mxu0 %v15643_v22  ;;  %7892 = vmatmul.mubr.bf16.gmra.mrb[36].mxu1 %v15643_v22  ;;  %v15761_v22 = vld [vmem:[%s17102_s23 + $0x37c] ss:$72 sps:$4 sm:$0xff]  }
 0x199   : > { %6164 = vmatprep.mubr.bf16.mxu0 %v15653_v23  ;;  %7901 = vmatprep.mubr.bf16.mxu1 %v15653_v23  ;;  %v15800_v23 = vld [vmem:[%s20588_s3 + $0x940] ss:$16 sps:$4 sm:$0xff]  }
 0x1a0   : > { %6165 = vmatmul.mubr.bf16.gmra.mrb[40].mxu0 %v15655_v24  ;;  %7902 = vmatmul.mubr.bf16.gmra.mrb[40].mxu1 %v15655_v24  ;;  %v15841_v24 = vld [vmem:[%s20588_s3 + $0x94c] ss:$16 sps:$4 sm:$0xff]  }
 0x1a1   : > { %6174 = vmatprep.mubr.bf16.mxu0 %v15665_v25  ;;  %7911 = vmatprep.mubr.bf16.mxu1 %v15665_v25  ;;  %v15814_v25 = vld [vmem:[%s20588_s3 + $0x964] ss:$16 sps:$4 sm:$0xff]  }
 0x1a8   : > { %6175 = vmatmul.mubr.bf16.gmra.mrb[44].mxu0 %v15667_v26  ;;  %7912 = vmatmul.mubr.bf16.gmra.mrb[44].mxu1 %v15667_v26  ;;  %v15839_v26 = vld [vmem:[%s20588_s3 + $0x948] ss:$16 sps:$4 sm:$0xff]  }
 0x1a9   : > { %6184 = vmatprep.mubr.bf16.mxu0 %v15677_v27  ;;  %7921 = vmatprep.mubr.bf16.mxu1 %v15677_v27  ;;  %v15812_v27 = vld [vmem:[%s20588_s3 + $0x960] ss:$16 sps:$4 sm:$0xff]  }
 0x1b0   : > { %6185 = vmatmul.mubr.bf16.gmra.mrb[48].mxu0 %v15679_v28  ;;  %7922 = vmatmul.mubr.bf16.gmra.mrb[48].mxu1 %v15679_v28  ;;  %v15844_v28 = vld [vmem:[%s20588_s3 + $0x96c] ss:$16 sps:$4 sm:$0xff]  }
 0x1b1   : > { %6194 = vmatprep.mubr.bf16.mxu0 %v15689_v29  ;;  %7931 = vmatprep.mubr.bf16.mxu1 %v15689_v29  ;;  %v15826_v29 = vld [vmem:[%s20588_s3 + $0x984] ss:$16 sps:$4 sm:$0xff]  }
 0x1b8   : > { %6195 = vmatmul.mubr.bf16.gmra.mrb[52].mxu0 %v15691_v30  ;;  %7932 = vmatmul.mubr.bf16.gmra.mrb[52].mxu1 %v15691_v30  ;;  %v15842_v30 = vld [vmem:[%s20588_s3 + $0x968] ss:$16 sps:$4 sm:$0xff]  }
 0x1b9   : > { %6204 = vmatprep.mubr.bf16.mxu0 %v15701_v31  ;;  %7941 = vmatprep.mubr.bf16.mxu1 %v15701_v31  ;;  %v15763_v31 = vld [vmem:[%s17102_s23 + $0x378] ss:$72 sps:$4 sm:$0xff]  }
 0x1c0   : > { %6205 = vmatmul.mubr.bf16.gmra.mrb[56].mxu0 %v15703_v32  ;;  %7942 = vmatmul.mubr.bf16.gmra.mrb[56].mxu1 %v15703_v32  ;;  %v15767_v32 = vld [vmem:[%s17102_s23 + $0x40c] ss:$72 sps:$4 sm:$0xff]  }
 0x1c1   : > { %6214 = vmatprep.mubr.bf16.mxu0 %v15713_v33  ;;  %7951 = vmatprep.mubr.bf16.mxu1 %v15713_v33  ;;  %v15824_v33 = vld [vmem:[%s20588_s3 + $0x980] ss:$16 sps:$4 sm:$0xff]  }
 0x1c8   : > { %6215 = vmatmul.mubr.bf16.gmra.mrb[60].mxu0 %v15715_v34  ;;  %7952 = vmatmul.mubr.bf16.gmra.mrb[60].mxu1 %v15715_v34  ;;  %v15853_v34 = vld [vmem:[%s20588_s3 + $0x98c] ss:$16 sps:$4 sm:$0xff]  }
 0x1c9   : > { %6257 = vmatprep.mubr.bf16.mxu0 %v15727_v35  ;;  %7994 = vmatprep.mubr.bf16.mxu1 %v15727_v35  ;;  %v15838_v35 = vld [vmem:[%s20588_s3 + $0x9a4] ss:$16 sps:$4 sm:$0xff]  }
 0x1d0   : > { %6258 = vmatmul.mubr.bf16.vlgmr.msra.gmra.mrb[0].mxu0 %v15725_v36  ;;  %7995 = vmatmul.mubr.bf16.vlgmr.msra.gmra.mrb[0].mxu1 %v15725_v36  ;;  %v15851_v36 = vld [vmem:[%s20588_s3 + $0x988] ss:$16 sps:$4 sm:$0xff]  }
 0x1d1   : > { %6419 = vmatpush1.bf16.msra.mxu0 %v15728_v37  ;;  %6267 = vmatprep.mubr.bf16.mxu0 %v15731_v38  ;;  %v15836_v37 = vld [vmem:[%s20588_s3 + $0x9a0] ss:$16 sps:$4 sm:$0xff]  }
 0x1d2   : > { %8004 = vmatprep.mubr.bf16.mxu1 %v15731_v38  ;;  %6420 = vmatprep.subr.bf16.mxu0 %v15736_v39  ;;  %v15856_v38 = vld [vmem:[%s20588_s3 + $0x9ac] ss:$16 sps:$4 sm:$0xff]   ;;  %v15850_v39 = vld [vmem:[%s20588_s3 + $0x9c4] ss:$16 sps:$4 sm:$0xff]  }
 0x1d3   : > { %8156 = vmatpush1.bf16.msra.mxu1 %v15779_v40  ;;  %v15854_v40 = vld [vmem:[%s20588_s3 + $0x9a8] ss:$16 sps:$4 sm:$0xff]  }
 0x1d4   : > { %8157 = vmatprep.subr.bf16.mxu1 %v15784_v42  ;;  %v15773_v42 = vld [vmem:[%s17102_s23 + $0x49c] ss:$72 sps:$4 sm:$0xff]  }
 0x1d5   : > { %6421 = vmatpush1.bf16.msra.mxu0 %v15734_v41  ;;  %v15769_v41 = vld [vmem:[%s17102_s23 + $0x408] ss:$72 sps:$4 sm:$0xff]  }
 0x1d6   : > { %6422 = vmatprep.subr.bf16.mxu0 %v15742_v43  ;;  %v15848_v43 = vld [vmem:[%s20588_s3 + $0x9c0] ss:$16 sps:$4 sm:$0xff]  }
 0x1d7   : > { %8158 = vmatpush1.bf16.msra.mxu1 %v15782_v45  ;;  %v15862_v45 = vld [vmem:[%s20588_s3 + $0x9e4] ss:$16 sps:$4 sm:$0xff]  }
 0x1d8   : > { %6268 = vmatmul.mubr.bf16.gmra.mrb[4].mxu0 %v15733_v44  ;;  %8005 = vmatmul.mubr.bf16.gmra.mrb[4].mxu1 %v15733_v44  ;;  %v15865_v44 = vld [vmem:[%s20588_s3 + $0x9cc] ss:$16 sps:$4 sm:$0xff]  }
 0x1d9   : > { %6277 = vmatprep.mubr.bf16.mxu0 %v15737_v46  ;;  %8014 = vmatprep.mubr.bf16.mxu1 %v15737_v46  ;;  %v15863_v46 = vld [vmem:[%s20588_s3 + $0x9c8] ss:$16 sps:$4 sm:$0xff]  }
 0x1da   : > { %6423 = vmatpush1.bf16.msra.mxu0 %v15740_v47  ;;  %8159 = vmatprep.subr.bf16.mxu1 %v15793_v48  ;;  %v15860_v47 = vld [vmem:[%s20588_s3 + $0x9e0] ss:$16 sps:$4 sm:$0xff]   ;;  %v15868_v48 = vld [vmem:[%s20588_s3 + $0x9ec] ss:$16 sps:$4 sm:$0xff]  }
 0x1db   : > { %6424 = vmatprep.subr.bf16.mxu0 %v15748_v49  ;;  %8160 = vmatpush1.bf16.msra.mxu1 %v15791_v50  ;;  %v15866_v49 = vld [vmem:[%s20588_s3 + $0x9e8] ss:$16 sps:$4 sm:$0xff]   ;;  %v15874_v50 = vld [vmem:[%s20588_s3 + $0xa04] ss:$16 sps:$4 sm:$0xff]  }
 0x1dc   : > { %8161 = vmatprep.subr.bf16.mxu1 %v15796_v52  ;;  %v15785_v52 = vld [vmem:[%s17102_s23 + $0x52c] ss:$72 sps:$4 sm:$0xff]  }
 0x1de   : > { %6425 = vmatpush1.bf16.msra.mxu0 %v15746_v51  ;;  %v15775_v51 = vld [vmem:[%s17102_s23 + $0x498] ss:$72 sps:$4 sm:$0xff]  }
 0x1df   : > { %6426 = vmatprep.subr.bf16.mxu0 %v15754_v53  ;;  %8162 = vmatpush1.bf16.msra.mxu1 %v15794_v54  ;;  %v15925_v53 = vld [vmem:[%s20588_s3 + $0xa0c] ss:$16 sps:$4 sm:$0xff]   ;;  %v15787_v54 = vld [vmem:[%s17102_s23 + $0x528] ss:$72 sps:$4 sm:$0xff]  }
 0x1e0   : > { %6278 = vmatmul.mubr.bf16.gmra.mrb[8].mxu0 %v15739_v55  ;;  %8015 = vmatmul.mubr.bf16.gmra.mrb[8].mxu1 %v15739_v55  ;;  %v15797_v55 = vld [vmem:[%s17102_s23 + $0x5bc] ss:$72 sps:$4 sm:$0xff]  }
 0x1e1   : > { %6287 = vmatprep.mubr.bf16.mxu0 %v15743_v56  ;;  %8024 = vmatprep.mubr.bf16.mxu1 %v15743_v56  ;;  %v15799_v56 = vld [vmem:[%s17102_s23 + $0x5b8] ss:$72 sps:$4 sm:$0xff]  }
 0x1e2   : > { %6427 = vmatpush1.bf16.msra.mxu0 %v15752_v57  ;;  %8163 = vmatprep.subr.bf16.mxu1 %v15805_v58  ;;  %v15809_v57 = vld [vmem:[%s17102_s23 + $0x64c] ss:$72 sps:$4 sm:$0xff]   ;;  %v15811_v58 = vld [vmem:[%s17102_s23 + $0x648] ss:$72 sps:$4 sm:$0xff]  }
 0x1e3   : > { %6428 = vmatprep.subr.bf16.mxu0 %v15760_v59  ;;  %8164 = vmatpush1.bf16.msra.mxu1 %v15803_v60  ;;  %v15821_v59 = vld [vmem:[%s17102_s23 + $0x6dc] ss:$72 sps:$4 sm:$0xff]   ;;  %v15823_v60 = vld [vmem:[%s17102_s23 + $0x6d8] ss:$72 sps:$4 sm:$0xff]  }
 0x1e4   : > { %8165 = vmatprep.subr.bf16.mxu1 %v15808_v62  ;;  %v15835_v62 = vld [vmem:[%s17102_s23 + $0x768] ss:$72 sps:$4 sm:$0xff]  }
 0x1e6   : > { %6429 = vmatpush1.bf16.msra.mxu0 %v15758_v61  ;;  %v15833_v61 = vld [vmem:[%s17102_s23 + $0x76c] ss:$72 sps:$4 sm:$0xff]  }
 0x1e7   : > { %6430 = vmatprep.subr.bf16.mxu0 %v15766_v63  ;;  %8166 = vmatpush1.bf16.msra.mxu1 %v15806_v0  ;;  %v15845_v63 = vld [vmem:[%s17102_s23 + $0x7fc] ss:$72 sps:$4 sm:$0xff]   ;;  %v15847_v0 = vld [vmem:[%s17102_s23 + $0x7f8] ss:$72 sps:$4 sm:$0xff]  }
 0x1e8   : > { %6288 = vmatmul.mubr.bf16.gmra.mrb[12].mxu0 %v15745_v1  ;;  %8025 = vmatmul.mubr.bf16.gmra.mrb[12].mxu1 %v15745_v1  ;;  %v15857_v1 = vld [vmem:[%s17102_s23 + $0x88c] ss:$72 sps:$4 sm:$0xff]  }
 0x1e9   : > { %6297 = vmatprep.mubr.bf16.mxu0 %v15749_v2  ;;  %8034 = vmatprep.mubr.bf16.mxu1 %v15749_v2  ;;  %v15859_v2 = vld [vmem:[%s17102_s23 + $0x888] ss:$72 sps:$4 sm:$0xff]  }
 0x1ea   : > { %6431 = vmatpush1.bf16.msra.mxu0 %v15764_v3  ;;  %8167 = vmatprep.subr.bf16.mxu1 %v15817_v4  ;;  %v15871_v3 = vld [vmem:[%s17102_s23 + $0x24] ss:$72 sps:$4 sm:$0xff]   ;;  %v15869_v4 = vld [vmem:[%s17102_s23 + $0x20] ss:$72 sps:$4 sm:$0xff]  }
 0x1eb   : > { %6432 = vmatprep.subr.bf16.mxu0 %v15772_v5  ;;  %8168 = vmatpush1.bf16.msra.mxu1 %v15815_v6  ;;  %v15872_v5 = vld [vmem:[%s20588_s3 + $0xa00] ss:$16 sps:$4 sm:$0xff]   ;;  %v15875_v6 = vld [vmem:[%s17102_s23 + $0xb4] ss:$72 sps:$4 sm:$0xff]  }
 0x1ec   : > { %8169 = vmatprep.subr.bf16.mxu1 %v15820_v8  ;;  %v15923_v8 = vld [vmem:[%s20588_s3 + $0xa08] ss:$16 sps:$4 sm:$0xff]  }
 0x1ee   : > { %6433 = vmatpush1.bf16.msra.mxu0 %v15770_v7  ;;  %v15880_v7 = vld [vmem:[%s20588_s3 + $0xa24] ss:$16 sps:$4 sm:$0xff]  }
 0x1ef   : > { %6434 = vmatprep.subr.bf16.mxu0 %v15778_v9  ;;  %8170 = vmatpush1.bf16.msra.mxu1 %v15818_v10  ;;  %v15928_v9 = vld [vmem:[%s20588_s3 + $0xa2c] ss:$16 sps:$4 sm:$0xff]   ;;  %v15878_v10 = vld [vmem:[%s20588_s3 + $0xa20] ss:$16 sps:$4 sm:$0xff]  }
 0x1f0   : > { %6298 = vmatmul.mubr.bf16.gmra.mrb[16].mxu0 %v15751_v11  ;;  %8035 = vmatmul.mubr.bf16.gmra.mrb[16].mxu1 %v15751_v11  ;;  %v15886_v11 = vld [vmem:[%s20588_s3 + $0xa44] ss:$16 sps:$4 sm:$0xff]  }
 0x1f1   : > { %6307 = vmatprep.mubr.bf16.mxu0 %v15755_v12  ;;  %8044 = vmatprep.mubr.bf16.mxu1 %v15755_v12  ;;  %v15926_v12 = vld [vmem:[%s20588_s3 + $0xa28] ss:$16 sps:$4 sm:$0xff]  }
 0x1f2   : > { %6435 = vmatpush1.bf16.msra.mxu0 %v15776_v13  ;;  %8171 = vmatprep.subr.bf16.mxu1 %v15829_v14  ;;  %v15877_v13 = vld [vmem:[%s17102_s23 + $0xb0] ss:$72 sps:$4 sm:$0xff]   ;;  %v15881_v14 = vld [vmem:[%s17102_s23 + $0x144] ss:$72 sps:$4 sm:$0xff]  }
 0x1f3   : > { %6436 = vmatprep.subr.bf16.mxu0 %v15790_v15  ;;  %8172 = vmatpush1.bf16.msra.mxu1 %v15827_v16  ;;  %v15884_v15 = vld [vmem:[%s20588_s3 + $0xa40] ss:$16 sps:$4 sm:$0xff]   ;;  %v15937_v16 = vld [vmem:[%s20588_s3 + $0xa4c] ss:$16 sps:$4 sm:$0xff]  }
 0x1f4   : > { %8173 = vmatprep.subr.bf16.mxu1 %v15832_v18  ;;  %v15935_v18 = vld [vmem:[%s20588_s3 + $0xa48] ss:$16 sps:$4 sm:$0xff]  }
 0x1f6   : > { %6437 = vmatpush1.bf16.msra.mxu0 %v15788_v17  ;;  %v15892_v17 = vld [vmem:[%s20588_s3 + $0xa64] ss:$16 sps:$4 sm:$0xff]  }
 0x1f7   : > { %6438 = vmatprep.subr.bf16.mxu0 %v15802_v19  ;;  %8174 = vmatpush1.bf16.msra.mxu1 %v15830_v20  ;;  %v15940_v19 = vld [vmem:[%s20588_s3 + $0xa6c] ss:$16 sps:$4 sm:$0xff]   ;;  %v15890_v20 = vld [vmem:[%s20588_s3 + $0xa60] ss:$16 sps:$4 sm:$0xff]  }
 0x1f8   : > { %6308 = vmatmul.mubr.bf16.gmra.mrb[20].mxu0 %v15757_v21  ;;  %8045 = vmatmul.mubr.bf16.gmra.mrb[20].mxu1 %v15757_v21  ;;  %v15898_v21 = vld [vmem:[%s20588_s3 + $0xa84] ss:$16 sps:$4 sm:$0xff]  }
 0x1f9   : > { %6317 = vmatprep.mubr.bf16.mxu0 %v15761_v22  ;;  %8054 = vmatprep.mubr.bf16.mxu1 %v15761_v22  ;;  %v15938_v22 = vld [vmem:[%s20588_s3 + $0xa68] ss:$16 sps:$4 sm:$0xff]  }
 0x1fa   : > { %6439 = vmatpush1.bf16.msra.mxu0 %v15800_v23  ;;  %8175 = vmatprep.subr.bf16.mxu1 %v15841_v24  ;;  %v15883_v23 = vld [vmem:[%s17102_s23 + $0x140] ss:$72 sps:$4 sm:$0xff]   ;;  %v15887_v24 = vld [vmem:[%s17102_s23 + $0x1d4] ss:$72 sps:$4 sm:$0xff]  }
 0x1fb   : > { %6440 = vmatprep.subr.bf16.mxu0 %v15814_v25  ;;  %8176 = vmatpush1.bf16.msra.mxu1 %v15839_v26  ;;  %v15896_v25 = vld [vmem:[%s20588_s3 + $0xa80] ss:$16 sps:$4 sm:$0xff]   ;;  %v15949_v26 = vld [vmem:[%s20588_s3 + $0xa8c] ss:$16 sps:$4 sm:$0xff]  }
 0x1fc   : > { %8177 = vmatprep.subr.bf16.mxu1 %v15844_v28  ;;  %v15947_v28 = vld [vmem:[%s20588_s3 + $0xa88] ss:$16 sps:$4 sm:$0xff]  }
 0x1fe   : > { %6441 = vmatpush1.bf16.msra.mxu0 %v15812_v27  ;;  %v15904_v27 = vld [vmem:[%s20588_s3 + $0xaa4] ss:$16 sps:$4 sm:$0xff]  }
 0x1ff   : > { %6442 = vmatprep.subr.bf16.mxu0 %v15826_v29  ;;  %8178 = vmatpush1.bf16.msra.mxu1 %v15842_v30  ;;  %v15952_v29 = vld [vmem:[%s20588_s3 + $0xaac] ss:$16 sps:$4 sm:$0xff]   ;;  %v15902_v30 = vld [vmem:[%s20588_s3 + $0xaa0] ss:$16 sps:$4 sm:$0xff]  }
 0x200   : > { %6318 = vmatmul.mubr.bf16.gmra.mrb[24].mxu0 %v15763_v31  ;;  %8055 = vmatmul.mubr.bf16.gmra.mrb[24].mxu1 %v15763_v31  ;;  %v15910_v31 = vld [vmem:[%s20588_s3 + $0xac4] ss:$16 sps:$4 sm:$0xff]  }
 0x201   : > { %6327 = vmatprep.mubr.bf16.mxu0 %v15767_v32  ;;  %8064 = vmatprep.mubr.bf16.mxu1 %v15767_v32  ;;  %v15950_v32 = vld [vmem:[%s20588_s3 + $0xaa8] ss:$16 sps:$4 sm:$0xff]  }
 0x202   : > { %6443 = vmatpush1.bf16.msra.mxu0 %v15824_v33  ;;  %8179 = vmatprep.subr.bf16.mxu1 %v15853_v34  ;;  %v15889_v33 = vld [vmem:[%s17102_s23 + $0x1d0] ss:$72 sps:$4 sm:$0xff]   ;;  %v15893_v34 = vld [vmem:[%s17102_s23 + $0x264] ss:$72 sps:$4 sm:$0xff]  }
 0x203   : > { %6444 = vmatprep.subr.bf16.mxu0 %v15838_v35  ;;  %8180 = vmatpush1.bf16.msra.mxu1 %v15851_v36  ;;  %v15908_v35 = vld [vmem:[%s20588_s3 + $0xac0] ss:$16 sps:$4 sm:$0xff]   ;;  %v15961_v36 = vld [vmem:[%s20588_s3 + $0xacc] ss:$16 sps:$4 sm:$0xff]  }
 0x204   : > { %8181 = vmatprep.subr.bf16.mxu1 %v15856_v38  ;;  %v15959_v38 = vld [vmem:[%s20588_s3 + $0xac8] ss:$16 sps:$4 sm:$0xff]  }
 0x206   : > { %6445 = vmatpush1.bf16.msra.mxu0 %v15836_v37  ;;  %v15916_v37 = vld [vmem:[%s20588_s3 + $0xae4] ss:$16 sps:$4 sm:$0xff]  }
 0x207   : > { %6446 = vmatprep.subr.bf16.mxu0 %v15850_v39  ;;  %8182 = vmatpush1.bf16.msra.mxu1 %v15854_v40  ;;  %v15964_v39 = vld [vmem:[%s20588_s3 + $0xaec] ss:$16 sps:$4 sm:$0xff]   ;;  %v15914_v40 = vld [vmem:[%s20588_s3 + $0xae0] ss:$16 sps:$4 sm:$0xff]  }
 0x208   : > { %6328 = vmatmul.mubr.bf16.gmra.mrb[28].mxu0 %v15769_v41  ;;  %8065 = vmatmul.mubr.bf16.gmra.mrb[28].mxu1 %v15769_v41  ;;  %v15922_v41 = vld [vmem:[%s20588_s3 + $0xb04] ss:$16 sps:$4 sm:$0xff]  }
 0x209   : > { %6337 = vmatprep.mubr.bf16.mxu0 %v15773_v42  ;;  %8074 = vmatprep.mubr.bf16.mxu1 %v15773_v42  ;;  %v15962_v42 = vld [vmem:[%s20588_s3 + $0xae8] ss:$16 sps:$4 sm:$0xff]  }
 0x20a   : > { %6447 = vmatpush1.bf16.msra.mxu0 %v15848_v43  ;;  %8183 = vmatprep.subr.bf16.mxu1 %v15865_v44  ;;  %v15895_v43 = vld [vmem:[%s17102_s23 + $0x260] ss:$72 sps:$4 sm:$0xff]   ;;  %v15899_v44 = vld [vmem:[%s17102_s23 + $0x2f4] ss:$72 sps:$4 sm:$0xff]  }
 0x20b   : > { %6448 = vmatprep.subr.bf16.mxu0 %v15862_v45  ;;  %8184 = vmatpush1.bf16.msra.mxu1 %v15863_v46  ;;  %v15920_v45 = vld [vmem:[%s20588_s3 + $0xb00] ss:$16 sps:$4 sm:$0xff]   ;;  %v15973_v46 = vld [vmem:[%s20588_s3 + $0xb0c] ss:$16 sps:$4 sm:$0xff]  }
 0x20c   : > { %8185 = vmatprep.subr.bf16.mxu1 %v15868_v48  ;;  %v15971_v48 = vld [vmem:[%s20588_s3 + $0xb08] ss:$16 sps:$4 sm:$0xff]  }
 0x20e   : > { %6449 = vmatpush1.bf16.msra.mxu0 %v15860_v47  ;;  %v15934_v47 = vld [vmem:[%s20588_s3 + $0xb24] ss:$16 sps:$4 sm:$0xff]  }
 0x20f   : > { %8186 = vmatpush1.bf16.msra.mxu1 %v15866_v49  ;;  %6611 = vmatprep.subr.bf16.mxu0 %v15874_v50  ;;  %v15976_v49 = vld [vmem:[%s20588_s3 + $0xb2c] ss:$16 sps:$4 sm:$0xff]   ;;  %v15932_v50 = vld [vmem:[%s20588_s3 + $0xb20] ss:$16 sps:$4 sm:$0xff]  }
 0x210   : > { %6338 = vmatmul.mubr.bf16.gmra.mrb[32].mxu0 %v15775_v51  ;;  %8075 = vmatmul.mubr.bf16.gmra.mrb[32].mxu1 %v15775_v51  ;;  %v15946_v51 = vld [vmem:[%s20588_s3 + $0xb44] ss:$16 sps:$4 sm:$0xff]  }
 0x211   : > { %6347 = vmatprep.mubr.bf16.mxu0 %v15785_v52  ;;  %8084 = vmatprep.mubr.bf16.mxu1 %v15785_v52  ;;  %v15974_v52 = vld [vmem:[%s20588_s3 + $0xb28] ss:$16 sps:$4 sm:$0xff]  }
 0x212   : > { %8348 = vmatprep.subr.bf16.mxu1 %v15925_v53  ;;  %v15901_v53 = vld [vmem:[%s17102_s23 + $0x2f0] ss:$72 sps:$4 sm:$0xff]  }
 0x218   : > { %6348 = vmatmul.mubr.bf16.gmra.mrb[36].mxu0 %v15787_v54  ;;  %8085 = vmatmul.mubr.bf16.gmra.mrb[36].mxu1 %v15787_v54  ;;  %v15905_v54 = vld [vmem:[%s17102_s23 + $0x384] ss:$72 sps:$4 sm:$0xff]  }
 0x219   : > { %6357 = vmatprep.mubr.bf16.mxu0 %v15797_v55  ;;  %8094 = vmatprep.mubr.bf16.mxu1 %v15797_v55  ;;  %v15944_v55 = vld [vmem:[%s20588_s3 + $0xb40] ss:$16 sps:$4 sm:$0xff]  }
 0x220   : > { %6358 = vmatmul.mubr.bf16.gmra.mrb[40].mxu0 %v15799_v56  ;;  %8095 = vmatmul.mubr.bf16.gmra.mrb[40].mxu1 %v15799_v56  ;;  %v15985_v56 = vld [vmem:[%s20588_s3 + $0xb4c] ss:$16 sps:$4 sm:$0xff]  }
 0x221   : > { %6367 = vmatprep.mubr.bf16.mxu0 %v15809_v57  ;;  %8104 = vmatprep.mubr.bf16.mxu1 %v15809_v57  ;;  %v15958_v57 = vld [vmem:[%s20588_s3 + $0xb64] ss:$16 sps:$4 sm:$0xff]  }
 0x228   : > { %6368 = vmatmul.mubr.bf16.gmra.mrb[44].mxu0 %v15811_v58  ;;  %8105 = vmatmul.mubr.bf16.gmra.mrb[44].mxu1 %v15811_v58  ;;  %v15983_v58 = vld [vmem:[%s20588_s3 + $0xb48] ss:$16 sps:$4 sm:$0xff]  }
 0x229   : > { %6377 = vmatprep.mubr.bf16.mxu0 %v15821_v59  ;;  %8114 = vmatprep.mubr.bf16.mxu1 %v15821_v59  ;;  %v15988_v59 = vld [vmem:[%s20588_s3 + $0xb6c] ss:$16 sps:$4 sm:$0xff]  }
 0x230   : > { %6378 = vmatmul.mubr.bf16.gmra.mrb[48].mxu0 %v15823_v60  ;;  %8115 = vmatmul.mubr.bf16.gmra.mrb[48].mxu1 %v15823_v60  ;;  %v15956_v60 = vld [vmem:[%s20588_s3 + $0xb60] ss:$16 sps:$4 sm:$0xff]  }
 0x231   : > { %6387 = vmatprep.mubr.bf16.mxu0 %v15833_v61  ;;  %8124 = vmatprep.mubr.bf16.mxu1 %v15833_v61  ;;  %v15970_v61 = vld [vmem:[%s20588_s3 + $0xb84] ss:$16 sps:$4 sm:$0xff]  }
 0x238   : > { %6388 = vmatmul.mubr.bf16.gmra.mrb[52].mxu0 %v15835_v62  ;;  %8125 = vmatmul.mubr.bf16.gmra.mrb[52].mxu1 %v15835_v62  ;;  %v15986_v62 = vld [vmem:[%s20588_s3 + $0xb68] ss:$16 sps:$4 sm:$0xff]  }
 0x239   : > { %6397 = vmatprep.mubr.bf16.mxu0 %v15845_v63  ;;  %8134 = vmatprep.mubr.bf16.mxu1 %v15845_v63  ;;  %v15907_v63 = vld [vmem:[%s17102_s23 + $0x380] ss:$72 sps:$4 sm:$0xff]  }
 0x240   : > { %6398 = vmatmul.mubr.bf16.gmra.mrb[56].mxu0 %v15847_v0  ;;  %8135 = vmatmul.mubr.bf16.gmra.mrb[56].mxu1 %v15847_v0  ;;  %v15911_v0 = vld [vmem:[%s17102_s23 + $0x414] ss:$72 sps:$4 sm:$0xff]  }
 0x241   : > { %6407 = vmatprep.mubr.bf16.mxu0 %v15857_v1  ;;  %8144 = vmatprep.mubr.bf16.mxu1 %v15857_v1  ;;  %v15968_v1 = vld [vmem:[%s20588_s3 + $0xb80] ss:$16 sps:$4 sm:$0xff]  }
 0x248   : > { %6408 = vmatmul.mubr.bf16.gmra.mrb[60].mxu0 %v15859_v2  ;;  %8145 = vmatmul.mubr.bf16.gmra.mrb[60].mxu1 %v15859_v2  ;;  %v15997_v2 = vld [vmem:[%s20588_s3 + $0xb8c] ss:$16 sps:$4 sm:$0xff]  }
 0x249   : > { %6450 = vmatprep.mubr.bf16.mxu0 %v15871_v3  ;;  %8187 = vmatprep.mubr.bf16.mxu1 %v15871_v3  ;;  %v15982_v3 = vld [vmem:[%s20588_s3 + $0xba4] ss:$16 sps:$4 sm:$0xff]  }
 0x250   : > { %6451 = vmatmul.mubr.bf16.vlgmr.msra.gmra.mrb[0].mxu0 %v15869_v4  ;;  %8188 = vmatmul.mubr.bf16.vlgmr.msra.gmra.mrb[0].mxu1 %v15869_v4  ;;  %v15995_v4 = vld [vmem:[%s20588_s3 + $0xb88] ss:$16 sps:$4 sm:$0xff]  }
 0x251   : > { %6612 = vmatpush1.bf16.msra.mxu0 %v15872_v5  ;;  %6460 = vmatprep.mubr.bf16.mxu0 %v15875_v6  ;;  %v16000_v5 = vld [vmem:[%s20588_s3 + $0xbac] ss:$16 sps:$4 sm:$0xff]  }
 0x252   : > { %8197 = vmatprep.mubr.bf16.mxu1 %v15875_v6  ;;  %6613 = vmatprep.subr.bf16.mxu0 %v15880_v7  ;;  %v15980_v6 = vld [vmem:[%s20588_s3 + $0xba0] ss:$16 sps:$4 sm:$0xff]   ;;  %v15994_v7 = vld [vmem:[%s20588_s3 + $0xbc4] ss:$16 sps:$4 sm:$0xff]  }
 0x253   : > { %8349 = vmatpush1.bf16.msra.mxu1 %v15923_v8  ;;  %v15998_v8 = vld [vmem:[%s20588_s3 + $0xba8] ss:$16 sps:$4 sm:$0xff]  }
 0x254   : > { %8350 = vmatprep.subr.bf16.mxu1 %v15928_v9  ;;  %v15913_v9 = vld [vmem:[%s17102_s23 + $0x410] ss:$72 sps:$4 sm:$0xff]  }
 0x255   : > { %6614 = vmatpush1.bf16.msra.mxu0 %v15878_v10  ;;  %v15917_v10 = vld [vmem:[%s17102_s23 + $0x4a4] ss:$72 sps:$4 sm:$0xff]  }
 0x256   : > { %6615 = vmatprep.subr.bf16.mxu0 %v15886_v11  ;;  %v15992_v11 = vld [vmem:[%s20588_s3 + $0xbc0] ss:$16 sps:$4 sm:$0xff]  }
 0x257   : > { %8351 = vmatpush1.bf16.msra.mxu1 %v15926_v12  ;;  %v16009_v12 = vld [vmem:[%s20588_s3 + $0xbcc] ss:$16 sps:$4 sm:$0xff]  }
 0x258   : > { %6461 = vmatmul.mubr.bf16.gmra.mrb[4].mxu0 %v15877_v13  ;;  %8198 = vmatmul.mubr.bf16.gmra.mrb[4].mxu1 %v15877_v13  ;;  %v16006_v13 = vld [vmem:[%s20588_s3 + $0xbe4] ss:$16 sps:$4 sm:$0xff]  }
 0x259   : > { %6470 = vmatprep.mubr.bf16.mxu0 %v15881_v14  ;;  %8207 = vmatprep.mubr.bf16.mxu1 %v15881_v14  ;;  %v16007_v14 = vld [vmem:[%s20588_s3 + $0xbc8] ss:$16 sps:$4 sm:$0xff]  }
 0x25a   : > { %6616 = vmatpush1.bf16.msra.mxu0 %v15884_v15  ;;  %8352 = vmatprep.subr.bf16.mxu1 %v15937_v16  ;;  %v16012_v15 = vld [vmem:[%s20588_s3 + $0xbec] ss:$16 sps:$4 sm:$0xff]   ;;  %v16004_v16 = vld [vmem:[%s20588_s3 + $0xbe0] ss:$16 sps:$4 sm:$0xff]  }
 0x25b   : > { %6617 = vmatprep.subr.bf16.mxu0 %v15892_v17  ;;  %8353 = vmatpush1.bf16.msra.mxu1 %v15935_v18  ;;  %v16010_v17 = vld [vmem:[%s20588_s3 + $0xbe8] ss:$16 sps:$4 sm:$0xff]   ;;  %v16018_v18 = vld [vmem:[%s20588_s3 + $0xc04] ss:$16 sps:$4 sm:$0xff]  }
 0x25c   : > { %8354 = vmatprep.subr.bf16.mxu1 %v15940_v19  ;;  %v15919_v19 = vld [vmem:[%s17102_s23 + $0x4a0] ss:$72 sps:$4 sm:$0xff]  }
 0x25e   : > { %6618 = vmatpush1.bf16.msra.mxu0 %v15890_v20  ;;  %v15929_v20 = vld [vmem:[%s17102_s23 + $0x534] ss:$72 sps:$4 sm:$0xff]  }
 0x25f   : > { %6619 = vmatprep.subr.bf16.mxu0 %v15898_v21  ;;  %8355 = vmatpush1.bf16.msra.mxu1 %v15938_v22  ;;  %v16069_v21 = vld [vmem:[%s20588_s3 + $0xc0c] ss:$16 sps:$4 sm:$0xff]   ;;  %v15931_v22 = vld [vmem:[%s17102_s23 + $0x530] ss:$72 sps:$4 sm:$0xff]  }
 0x260   : > { %6471 = vmatmul.mubr.bf16.gmra.mrb[8].mxu0 %v15883_v23  ;;  %8208 = vmatmul.mubr.bf16.gmra.mrb[8].mxu1 %v15883_v23  ;;  %v15941_v23 = vld [vmem:[%s17102_s23 + $0x5c4] ss:$72 sps:$4 sm:$0xff]  }
 0x261   : > { %6480 = vmatprep.mubr.bf16.mxu0 %v15887_v24  ;;  %8217 = vmatprep.mubr.bf16.mxu1 %v15887_v24  ;;  %v15943_v24 = vld [vmem:[%s17102_s23 + $0x5c0] ss:$72 sps:$4 sm:$0xff]  }
 0x262   : > { %6620 = vmatpush1.bf16.msra.mxu0 %v15896_v25  ;;  %8356 = vmatprep.subr.bf16.mxu1 %v15949_v26  ;;  %v15953_v25 = vld [vmem:[%s17102_s23 + $0x654] ss:$72 sps:$4 sm:$0xff]   ;;  %v15955_v26 = vld [vmem:[%s17102_s23 + $0x650] ss:$72 sps:$4 sm:$0xff]  }
 0x263   : > { %6621 = vmatprep.subr.bf16.mxu0 %v15904_v27  ;;  %8357 = vmatpush1.bf16.msra.mxu1 %v15947_v28  ;;  %v15965_v27 = vld [vmem:[%s17102_s23 + $0x6e4] ss:$72 sps:$4 sm:$0xff]   ;;  %v15967_v28 = vld [vmem:[%s17102_s23 + $0x6e0] ss:$72 sps:$4 sm:$0xff]  }
 0x264   : > { %8358 = vmatprep.subr.bf16.mxu1 %v15952_v29  ;;  %v15977_v29 = vld [vmem:[%s17102_s23 + $0x774] ss:$72 sps:$4 sm:$0xff]  }
 0x266   : > { %6622 = vmatpush1.bf16.msra.mxu0 %v15902_v30  ;;  %v15979_v30 = vld [vmem:[%s17102_s23 + $0x770] ss:$72 sps:$4 sm:$0xff]  }
 0x267   : > { %6623 = vmatprep.subr.bf16.mxu0 %v15910_v31  ;;  %8359 = vmatpush1.bf16.msra.mxu1 %v15950_v32  ;;  %v15989_v31 = vld [vmem:[%s17102_s23 + $0x804] ss:$72 sps:$4 sm:$0xff]   ;;  %v15991_v32 = vld [vmem:[%s17102_s23 + $0x800] ss:$72 sps:$4 sm:$0xff]  }
 0x268   : > { %6481 = vmatmul.mubr.bf16.gmra.mrb[12].mxu0 %v15889_v33  ;;  %8218 = vmatmul.mubr.bf16.gmra.mrb[12].mxu1 %v15889_v33  ;;  %v16001_v33 = vld [vmem:[%s17102_s23 + $0x894] ss:$72 sps:$4 sm:$0xff]  }
 0x269   : > { %6490 = vmatprep.mubr.bf16.mxu0 %v15893_v34  ;;  %8227 = vmatprep.mubr.bf16.mxu1 %v15893_v34  ;;  %v16003_v34 = vld [vmem:[%s17102_s23 + $0x890] ss:$72 sps:$4 sm:$0xff]  }
 0x26a   : > { %6624 = vmatpush1.bf16.msra.mxu0 %v15908_v35  ;;  %8360 = vmatprep.subr.bf16.mxu1 %v15961_v36  ;;  %v16015_v35 = vld [vmem:[%s17102_s23 + $0x2c] ss:$72 sps:$4 sm:$0xff]   ;;  %v16013_v36 = vld [vmem:[%s17102_s23 + $0x28] ss:$72 sps:$4 sm:$0xff]  }
 0x26b   : > { %6625 = vmatprep.subr.bf16.mxu0 %v15916_v37  ;;  %8361 = vmatpush1.bf16.msra.mxu1 %v15959_v38  ;;  %v16016_v37 = vld [vmem:[%s20588_s3 + $0xc00] ss:$16 sps:$4 sm:$0xff]   ;;  %v16019_v38 = vld [vmem:[%s17102_s23 + $0xbc] ss:$72 sps:$4 sm:$0xff]  }
 0x26c   : > { %8362 = vmatprep.subr.bf16.mxu1 %v15964_v39  ;;  %v16024_v39 = vld [vmem:[%s20588_s3 + $0xc24] ss:$16 sps:$4 sm:$0xff]  }
 0x26e   : > { %6626 = vmatpush1.bf16.msra.mxu0 %v15914_v40  ;;  %v16067_v40 = vld [vmem:[%s20588_s3 + $0xc08] ss:$16 sps:$4 sm:$0xff]  }
 0x26f   : > { %6627 = vmatprep.subr.bf16.mxu0 %v15922_v41  ;;  %8363 = vmatpush1.bf16.msra.mxu1 %v15962_v42  ;;  %v16072_v41 = vld [vmem:[%s20588_s3 + $0xc2c] ss:$16 sps:$4 sm:$0xff]   ;;  %v16022_v42 = vld [vmem:[%s20588_s3 + $0xc20] ss:$16 sps:$4 sm:$0xff]  }
 0x270   : > { %6491 = vmatmul.mubr.bf16.gmra.mrb[16].mxu0 %v15895_v43  ;;  %8228 = vmatmul.mubr.bf16.gmra.mrb[16].mxu1 %v15895_v43  ;;  %v16030_v43 = vld [vmem:[%s20588_s3 + $0xc44] ss:$16 sps:$4 sm:$0xff]  }
 0x271   : > { %6500 = vmatprep.mubr.bf16.mxu0 %v15899_v44  ;;  %8237 = vmatprep.mubr.bf16.mxu1 %v15899_v44  ;;  %v16070_v44 = vld [vmem:[%s20588_s3 + $0xc28] ss:$16 sps:$4 sm:$0xff]  }
 0x272   : > { %6628 = vmatpush1.bf16.msra.mxu0 %v15920_v45  ;;  %8364 = vmatprep.subr.bf16.mxu1 %v15973_v46  ;;  %v16021_v45 = vld [vmem:[%s17102_s23 + $0xb8] ss:$72 sps:$4 sm:$0xff]   ;;  %v16025_v46 = vld [vmem:[%s17102_s23 + $0x14c] ss:$72 sps:$4 sm:$0xff]  }
 0x273   : > { %6629 = vmatprep.subr.bf16.mxu0 %v15934_v47  ;;  %8365 = vmatpush1.bf16.msra.mxu1 %v15971_v48  ;;  %v16028_v47 = vld [vmem:[%s20588_s3 + $0xc40] ss:$16 sps:$4 sm:$0xff]   ;;  %v16081_v48 = vld [vmem:[%s20588_s3 + $0xc4c] ss:$16 sps:$4 sm:$0xff]  }
 0x274   : > { %8366 = vmatprep.subr.bf16.mxu1 %v15976_v49  ;;  %v16036_v49 = vld [vmem:[%s20588_s3 + $0xc64] ss:$16 sps:$4 sm:$0xff]  }
 0x276   : > { %6630 = vmatpush1.bf16.msra.mxu0 %v15932_v50  ;;  %v16079_v50 = vld [vmem:[%s20588_s3 + $0xc48] ss:$16 sps:$4 sm:$0xff]  }
 0x277   : > { %6631 = vmatprep.subr.bf16.mxu0 %v15946_v51  ;;  %8367 = vmatpush1.bf16.msra.mxu1 %v15974_v52  ;;  %v16084_v51 = vld [vmem:[%s20588_s3 + $0xc6c] ss:$16 sps:$4 sm:$0xff]   ;;  %v16034_v52 = vld [vmem:[%s20588_s3 + $0xc60] ss:$16 sps:$4 sm:$0xff]  }
 0x278   : > { %6501 = vmatmul.mubr.bf16.gmra.mrb[20].mxu0 %v15901_v53  ;;  %8238 = vmatmul.mubr.bf16.gmra.mrb[20].mxu1 %v15901_v53  ;;  %v16042_v53 = vld [vmem:[%s20588_s3 + $0xc84] ss:$16 sps:$4 sm:$0xff]  }
 0x279   : > { %6510 = vmatprep.mubr.bf16.mxu0 %v15905_v54  ;;  %8247 = vmatprep.mubr.bf16.mxu1 %v15905_v54  ;;  %v16082_v54 = vld [vmem:[%s20588_s3 + $0xc68] ss:$16 sps:$4 sm:$0xff]  }
 0x27a   : > { %6632 = vmatpush1.bf16.msra.mxu0 %v15944_v55  ;;  %8368 = vmatprep.subr.bf16.mxu1 %v15985_v56  ;;  %v16027_v55 = vld [vmem:[%s17102_s23 + $0x148] ss:$72 sps:$4 sm:$0xff]   ;;  %v16031_v56 = vld [vmem:[%s17102_s23 + $0x1dc] ss:$72 sps:$4 sm:$0xff]  }
 0x27b   : > { %6633 = vmatprep.subr.bf16.mxu0 %v15958_v57  ;;  %8369 = vmatpush1.bf16.msra.mxu1 %v15983_v58  ;;  %v16040_v57 = vld [vmem:[%s20588_s3 + $0xc80] ss:$16 sps:$4 sm:$0xff]   ;;  %v16093_v58 = vld [vmem:[%s20588_s3 + $0xc8c] ss:$16 sps:$4 sm:$0xff]  }
 0x27c   : > { %8370 = vmatprep.subr.bf16.mxu1 %v15988_v59  ;;  %v16048_v59 = vld [vmem:[%s20588_s3 + $0xca4] ss:$16 sps:$4 sm:$0xff]  }
 0x27e   : > { %6634 = vmatpush1.bf16.msra.mxu0 %v15956_v60  ;;  %v16091_v60 = vld [vmem:[%s20588_s3 + $0xc88] ss:$16 sps:$4 sm:$0xff]  }
 0x27f   : > { %6635 = vmatprep.subr.bf16.mxu0 %v15970_v61  ;;  %8371 = vmatpush1.bf16.msra.mxu1 %v15986_v62  ;;  %v16096_v61 = vld [vmem:[%s20588_s3 + $0xcac] ss:$16 sps:$4 sm:$0xff]   ;;  %v16046_v62 = vld [vmem:[%s20588_s3 + $0xca0] ss:$16 sps:$4 sm:$0xff]  }
 0x280   : > { %6511 = vmatmul.mubr.bf16.gmra.mrb[24].mxu0 %v15907_v63  ;;  %8248 = vmatmul.mubr.bf16.gmra.mrb[24].mxu1 %v15907_v63  ;;  %v16054_v63 = vld [vmem:[%s20588_s3 + $0xcc4] ss:$16 sps:$4 sm:$0xff]  }
 0x281   : > { %6520 = vmatprep.mubr.bf16.mxu0 %v15911_v0  ;;  %8257 = vmatprep.mubr.bf16.mxu1 %v15911_v0  ;;  %v16094_v0 = vld [vmem:[%s20588_s3 + $0xca8] ss:$16 sps:$4 sm:$0xff]  }
 0x282   : > { %6636 = vmatpush1.bf16.msra.mxu0 %v15968_v1  ;;  %8372 = vmatprep.subr.bf16.mxu1 %v15997_v2  ;;  %v16033_v1 = vld [vmem:[%s17102_s23 + $0x1d8] ss:$72 sps:$4 sm:$0xff]   ;;  %v16037_v2 = vld [vmem:[%s17102_s23 + $0x26c] ss:$72 sps:$4 sm:$0xff]  }
 0x283   : > { %6637 = vmatprep.subr.bf16.mxu0 %v15982_v3  ;;  %8373 = vmatpush1.bf16.msra.mxu1 %v15995_v4  ;;  %v16052_v3 = vld [vmem:[%s20588_s3 + $0xcc0] ss:$16 sps:$4 sm:$0xff]   ;;  %v16105_v4 = vld [vmem:[%s20588_s3 + $0xccc] ss:$16 sps:$4 sm:$0xff]  }
 0x284   : > { %8374 = vmatprep.subr.bf16.mxu1 %v16000_v5  ;;  %v16060_v5 = vld [vmem:[%s20588_s3 + $0xce4] ss:$16 sps:$4 sm:$0xff]  }
 0x286   : > { %6638 = vmatpush1.bf16.msra.mxu0 %v15980_v6  ;;  %v16103_v6 = vld [vmem:[%s20588_s3 + $0xcc8] ss:$16 sps:$4 sm:$0xff]  }
 0x287   : > { %6639 = vmatprep.subr.bf16.mxu0 %v15994_v7  ;;  %8375 = vmatpush1.bf16.msra.mxu1 %v15998_v8  ;;  %v16108_v7 = vld [vmem:[%s20588_s3 + $0xcec] ss:$16 sps:$4 sm:$0xff]   ;;  %v16058_v8 = vld [vmem:[%s20588_s3 + $0xce0] ss:$16 sps:$4 sm:$0xff]  }
 0x288   : > { %6521 = vmatmul.mubr.bf16.gmra.mrb[28].mxu0 %v15913_v9  ;;  %8258 = vmatmul.mubr.bf16.gmra.mrb[28].mxu1 %v15913_v9  ;;  %v16066_v9 = vld [vmem:[%s20588_s3 + $0xd04] ss:$16 sps:$4 sm:$0xff]  }
 0x289   : > { %6530 = vmatprep.mubr.bf16.mxu0 %v15917_v10  ;;  %8267 = vmatprep.mubr.bf16.mxu1 %v15917_v10  ;;  %v16106_v10 = vld [vmem:[%s20588_s3 + $0xce8] ss:$16 sps:$4 sm:$0xff]  }
 0x28a   : > { %6640 = vmatpush1.bf16.msra.mxu0 %v15992_v11  ;;  %8376 = vmatprep.subr.bf16.mxu1 %v16009_v12  ;;  %v16039_v11 = vld [vmem:[%s17102_s23 + $0x268] ss:$72 sps:$4 sm:$0xff]   ;;  %v16043_v12 = vld [vmem:[%s17102_s23 + $0x2fc] ss:$72 sps:$4 sm:$0xff]  }
 0x28b   : > { %6641 = vmatprep.subr.bf16.mxu0 %v16006_v13  ;;  %8377 = vmatpush1.bf16.msra.mxu1 %v16007_v14  ;;  %v16064_v13 = vld [vmem:[%s20588_s3 + $0xd00] ss:$16 sps:$4 sm:$0xff]   ;;  %v16117_v14 = vld [vmem:[%s20588_s3 + $0xd0c] ss:$16 sps:$4 sm:$0xff]  }
 0x28c   : > { %8378 = vmatprep.subr.bf16.mxu1 %v16012_v15  ;;  %v16078_v15 = vld [vmem:[%s20588_s3 + $0xd24] ss:$16 sps:$4 sm:$0xff]  }
 0x28e   : > { %6642 = vmatpush1.bf16.msra.mxu0 %v16004_v16  ;;  %v16115_v16 = vld [vmem:[%s20588_s3 + $0xd08] ss:$16 sps:$4 sm:$0xff]  }
 0x28f   : > { %8379 = vmatpush1.bf16.msra.mxu1 %v16010_v17  ;;  %6804 = vmatprep.subr.bf16.mxu0 %v16018_v18  ;;  %v16120_v17 = vld [vmem:[%s20588_s3 + $0xd2c] ss:$16 sps:$4 sm:$0xff]   ;;  %v16076_v18 = vld [vmem:[%s20588_s3 + $0xd20] ss:$16 sps:$4 sm:$0xff]  }
 0x290   : > { %6531 = vmatmul.mubr.bf16.gmra.mrb[32].mxu0 %v15919_v19  ;;  %8268 = vmatmul.mubr.bf16.gmra.mrb[32].mxu1 %v15919_v19  ;;  %v16090_v19 = vld [vmem:[%s20588_s3 + $0xd44] ss:$16 sps:$4 sm:$0xff]  }
 0x291   : > { %6540 = vmatprep.mubr.bf16.mxu0 %v15929_v20  ;;  %8277 = vmatprep.mubr.bf16.mxu1 %v15929_v20  ;;  %v16118_v20 = vld [vmem:[%s20588_s3 + $0xd28] ss:$16 sps:$4 sm:$0xff]  }
 0x292   : > { %8541 = vmatprep.subr.bf16.mxu1 %v16069_v21  ;;  %v16045_v21 = vld [vmem:[%s17102_s23 + $0x2f8] ss:$72 sps:$4 sm:$0xff]  }
 0x298   : > { %6541 = vmatmul.mubr.bf16.gmra.mrb[36].mxu0 %v15931_v22  ;;  %8278 = vmatmul.mubr.bf16.gmra.mrb[36].mxu1 %v15931_v22  ;;  %v16049_v22 = vld [vmem:[%s17102_s23 + $0x38c] ss:$72 sps:$4 sm:$0xff]  }
 0x299   : > { %6550 = vmatprep.mubr.bf16.mxu0 %v15941_v23  ;;  %8287 = vmatprep.mubr.bf16.mxu1 %v15941_v23  ;;  %v16088_v23 = vld [vmem:[%s20588_s3 + $0xd40] ss:$16 sps:$4 sm:$0xff]  }
 0x2a0   : > { %6551 = vmatmul.mubr.bf16.gmra.mrb[40].mxu0 %v15943_v24  ;;  %8288 = vmatmul.mubr.bf16.gmra.mrb[40].mxu1 %v15943_v24  ;;  %v16129_v24 = vld [vmem:[%s20588_s3 + $0xd4c] ss:$16 sps:$4 sm:$0xff]  }
 0x2a1   : > { %6560 = vmatprep.mubr.bf16.mxu0 %v15953_v25  ;;  %8297 = vmatprep.mubr.bf16.mxu1 %v15953_v25  ;;  %v16102_v25 = vld [vmem:[%s20588_s3 + $0xd64] ss:$16 sps:$4 sm:$0xff]  }
 0x2a8   : > { %6561 = vmatmul.mubr.bf16.gmra.mrb[44].mxu0 %v15955_v26  ;;  %8298 = vmatmul.mubr.bf16.gmra.mrb[44].mxu1 %v15955_v26  ;;  %v16127_v26 = vld [vmem:[%s20588_s3 + $0xd48] ss:$16 sps:$4 sm:$0xff]  }
 0x2a9   : > { %6570 = vmatprep.mubr.bf16.mxu0 %v15965_v27  ;;  %8307 = vmatprep.mubr.bf16.mxu1 %v15965_v27  ;;  %v16132_v27 = vld [vmem:[%s20588_s3 + $0xd6c] ss:$16 sps:$4 sm:$0xff]  }
 0x2b0   : > { %6571 = vmatmul.mubr.bf16.gmra.mrb[48].mxu0 %v15967_v28  ;;  %8308 = vmatmul.mubr.bf16.gmra.mrb[48].mxu1 %v15967_v28  ;;  %v16100_v28 = vld [vmem:[%s20588_s3 + $0xd60] ss:$16 sps:$4 sm:$0xff]  }
 0x2b1   : > { %6580 = vmatprep.mubr.bf16.mxu0 %v15977_v29  ;;  %8317 = vmatprep.mubr.bf16.mxu1 %v15977_v29  ;;  %v16114_v29 = vld [vmem:[%s20588_s3 + $0xd84] ss:$16 sps:$4 sm:$0xff]  }
 0x2b8   : > { %6581 = vmatmul.mubr.bf16.gmra.mrb[52].mxu0 %v15979_v30  ;;  %8318 = vmatmul.mubr.bf16.gmra.mrb[52].mxu1 %v15979_v30  ;;  %v16130_v30 = vld [vmem:[%s20588_s3 + $0xd68] ss:$16 sps:$4 sm:$0xff]  }
 0x2b9   : > { %6590 = vmatprep.mubr.bf16.mxu0 %v15989_v31  ;;  %8327 = vmatprep.mubr.bf16.mxu1 %v15989_v31  ;;  %v16051_v31 = vld [vmem:[%s17102_s23 + $0x388] ss:$72 sps:$4 sm:$0xff]  }
 0x2c0   : > { %6591 = vmatmul.mubr.bf16.gmra.mrb[56].mxu0 %v15991_v32  ;;  %8328 = vmatmul.mubr.bf16.gmra.mrb[56].mxu1 %v15991_v32  ;;  %v16055_v32 = vld [vmem:[%s17102_s23 + $0x41c] ss:$72 sps:$4 sm:$0xff]  }
 0x2c1   : > { %6600 = vmatprep.mubr.bf16.mxu0 %v16001_v33  ;;  %8337 = vmatprep.mubr.bf16.mxu1 %v16001_v33  ;;  %v16112_v33 = vld [vmem:[%s20588_s3 + $0xd80] ss:$16 sps:$4 sm:$0xff]  }
 0x2c8   : > { %6601 = vmatmul.mubr.bf16.gmra.mrb[60].mxu0 %v16003_v34  ;;  %8338 = vmatmul.mubr.bf16.gmra.mrb[60].mxu1 %v16003_v34  ;;  %v16141_v34 = vld [vmem:[%s20588_s3 + $0xd8c] ss:$16 sps:$4 sm:$0xff]  }
 0x2c9   : > { %6643 = vmatprep.mubr.bf16.mxu0 %v16015_v35  ;;  %8380 = vmatprep.mubr.bf16.mxu1 %v16015_v35  ;;  %v16126_v35 = vld [vmem:[%s20588_s3 + $0xda4] ss:$16 sps:$4 sm:$0xff]  }
 0x2d0   : > { %6644 = vmatmul.mubr.bf16.vlgmr.msra.gmra.mrb[0].mxu0 %v16013_v36  ;;  %8381 = vmatmul.mubr.bf16.vlgmr.msra.gmra.mrb[0].mxu1 %v16013_v36  ;;  %v16139_v36 = vld [vmem:[%s20588_s3 + $0xd88] ss:$16 sps:$4 sm:$0xff]  }
 0x2d1   : > { %6805 = vmatpush1.bf16.msra.mxu0 %v16016_v37  ;;  %6653 = vmatprep.mubr.bf16.mxu0 %v16019_v38  ;;  %v16144_v37 = vld [vmem:[%s20588_s3 + $0xdac] ss:$16 sps:$4 sm:$0xff]  }
 0x2d2   : > { %8390 = vmatprep.mubr.bf16.mxu1 %v16019_v38  ;;  %6806 = vmatprep.subr.bf16.mxu0 %v16024_v39  ;;  %v16124_v38 = vld [vmem:[%s20588_s3 + $0xda0] ss:$16 sps:$4 sm:$0xff]   ;;  %v16138_v39 = vld [vmem:[%s20588_s3 + $0xdc4] ss:$16 sps:$4 sm:$0xff]  }
 0x2d3   : > { %8542 = vmatpush1.bf16.msra.mxu1 %v16067_v40  ;;  %v16142_v40 = vld [vmem:[%s20588_s3 + $0xda8] ss:$16 sps:$4 sm:$0xff]  }
 0x2d4   : > { %8543 = vmatprep.subr.bf16.mxu1 %v16072_v41  ;;  %v16057_v41 = vld [vmem:[%s17102_s23 + $0x418] ss:$72 sps:$4 sm:$0xff]  }
 0x2d5   : > { %6807 = vmatpush1.bf16.msra.mxu0 %v16022_v42  ;;  %v16061_v42 = vld [vmem:[%s17102_s23 + $0x4ac] ss:$72 sps:$4 sm:$0xff]  }
 0x2d6   : > { %6808 = vmatprep.subr.bf16.mxu0 %v16030_v43  ;;  %v16136_v43 = vld [vmem:[%s20588_s3 + $0xdc0] ss:$16 sps:$4 sm:$0xff]  }
 0x2d7   : > { %8544 = vmatpush1.bf16.msra.mxu1 %v16070_v44  ;;  %v16153_v44 = vld [vmem:[%s20588_s3 + $0xdcc] ss:$16 sps:$4 sm:$0xff]  }
 0x2d8   : > { %6654 = vmatmul.mubr.bf16.gmra.mrb[4].mxu0 %v16021_v45  ;;  %8391 = vmatmul.mubr.bf16.gmra.mrb[4].mxu1 %v16021_v45  ;;  %v16150_v45 = vld [vmem:[%s20588_s3 + $0xde4] ss:$16 sps:$4 sm:$0xff]  }
 0x2d9   : > { %6663 = vmatprep.mubr.bf16.mxu0 %v16025_v46  ;;  %8400 = vmatprep.mubr.bf16.mxu1 %v16025_v46  ;;  %v16151_v46 = vld [vmem:[%s20588_s3 + $0xdc8] ss:$16 sps:$4 sm:$0xff]  }
 0x2da   : > { %6809 = vmatpush1.bf16.msra.mxu0 %v16028_v47  ;;  %8545 = vmatprep.subr.bf16.mxu1 %v16081_v48  ;;  %v16156_v47 = vld [vmem:[%s20588_s3 + $0xdec] ss:$16 sps:$4 sm:$0xff]   ;;  %v16148_v48 = vld [vmem:[%s20588_s3 + $0xde0] ss:$16 sps:$4 sm:$0xff]  }
 0x2db   : > { %6810 = vmatprep.subr.bf16.mxu0 %v16036_v49  ;;  %8546 = vmatpush1.bf16.msra.mxu1 %v16079_v50  ;;  %v16154_v49 = vld [vmem:[%s20588_s3 + $0xde8] ss:$16 sps:$4 sm:$0xff]   ;;  %v16162_v50 = vld [vmem:[%s20588_s3 + $0xe04] ss:$16 sps:$4 sm:$0xff]  }
 0x2dc   : > { %8547 = vmatprep.subr.bf16.mxu1 %v16084_v51  ;;  %v16063_v51 = vld [vmem:[%s17102_s23 + $0x4a8] ss:$72 sps:$4 sm:$0xff]  }
 0x2de   : > { %6811 = vmatpush1.bf16.msra.mxu0 %v16034_v52  ;;  %v16073_v52 = vld [vmem:[%s17102_s23 + $0x53c] ss:$72 sps:$4 sm:$0xff]  }
 0x2df   : > { %6812 = vmatprep.subr.bf16.mxu0 %v16042_v53  ;;  %8548 = vmatpush1.bf16.msra.mxu1 %v16082_v54  ;;  %v16213_v53 = vld [vmem:[%s20588_s3 + $0xe0c] ss:$16 sps:$4 sm:$0xff]   ;;  %v16075_v54 = vld [vmem:[%s17102_s23 + $0x538] ss:$72 sps:$4 sm:$0xff]  }
 0x2e0   : > { %6664 = vmatmul.mubr.bf16.gmra.mrb[8].mxu0 %v16027_v55  ;;  %8401 = vmatmul.mubr.bf16.gmra.mrb[8].mxu1 %v16027_v55  ;;  %v16085_v55 = vld [vmem:[%s17102_s23 + $0x5cc] ss:$72 sps:$4 sm:$0xff]  }
 0x2e1   : > { %6673 = vmatprep.mubr.bf16.mxu0 %v16031_v56  ;;  %8410 = vmatprep.mubr.bf16.mxu1 %v16031_v56  ;;  %v16087_v56 = vld [vmem:[%s17102_s23 + $0x5c8] ss:$72 sps:$4 sm:$0xff]  }
 0x2e2   : > { %6813 = vmatpush1.bf16.msra.mxu0 %v16040_v57  ;;  %8549 = vmatprep.subr.bf16.mxu1 %v16093_v58  ;;  %v16097_v57 = vld [vmem:[%s17102_s23 + $0x65c] ss:$72 sps:$4 sm:$0xff]   ;;  %v16099_v58 = vld [vmem:[%s17102_s23 + $0x658] ss:$72 sps:$4 sm:$0xff]  }
 0x2e3   : > { %6814 = vmatprep.subr.bf16.mxu0 %v16048_v59  ;;  %8550 = vmatpush1.bf16.msra.mxu1 %v16091_v60  ;;  %v16109_v59 = vld [vmem:[%s17102_s23 + $0x6ec] ss:$72 sps:$4 sm:$0xff]   ;;  %v16111_v60 = vld [vmem:[%s17102_s23 + $0x6e8] ss:$72 sps:$4 sm:$0xff]  }
 0x2e4   : > { %8551 = vmatprep.subr.bf16.mxu1 %v16096_v61  ;;  %v16121_v61 = vld [vmem:[%s17102_s23 + $0x77c] ss:$72 sps:$4 sm:$0xff]  }
 0x2e6   : > { %6815 = vmatpush1.bf16.msra.mxu0 %v16046_v62  ;;  %v16123_v62 = vld [vmem:[%s17102_s23 + $0x778] ss:$72 sps:$4 sm:$0xff]  }
 0x2e7   : > { %6816 = vmatprep.subr.bf16.mxu0 %v16054_v63  ;;  %8552 = vmatpush1.bf16.msra.mxu1 %v16094_v0  ;;  %v16133_v63 = vld [vmem:[%s17102_s23 + $0x80c] ss:$72 sps:$4 sm:$0xff]   ;;  %v16135_v0 = vld [vmem:[%s17102_s23 + $0x808] ss:$72 sps:$4 sm:$0xff]  }
 0x2e8   : > { %6674 = vmatmul.mubr.bf16.gmra.mrb[12].mxu0 %v16033_v1  ;;  %8411 = vmatmul.mubr.bf16.gmra.mrb[12].mxu1 %v16033_v1  ;;  %v16145_v1 = vld [vmem:[%s17102_s23 + $0x89c] ss:$72 sps:$4 sm:$0xff]  }
 0x2e9   : > { %6683 = vmatprep.mubr.bf16.mxu0 %v16037_v2  ;;  %8420 = vmatprep.mubr.bf16.mxu1 %v16037_v2  ;;  %v16147_v2 = vld [vmem:[%s17102_s23 + $0x898] ss:$72 sps:$4 sm:$0xff]  }
 0x2ea   : > { %6817 = vmatpush1.bf16.msra.mxu0 %v16052_v3  ;;  %8553 = vmatprep.subr.bf16.mxu1 %v16105_v4  ;;  %v16159_v3 = vld [vmem:[%s17102_s23 + $0x34] ss:$72 sps:$4 sm:$0xff]   ;;  %v16157_v4 = vld [vmem:[%s17102_s23 + $0x30] ss:$72 sps:$4 sm:$0xff]  }
 0x2eb   : > { %6818 = vmatprep.subr.bf16.mxu0 %v16060_v5  ;;  %8554 = vmatpush1.bf16.msra.mxu1 %v16103_v6  ;;  %v16160_v5 = vld [vmem:[%s20588_s3 + $0xe00] ss:$16 sps:$4 sm:$0xff]   ;;  %v16163_v6 = vld [vmem:[%s17102_s23 + $0xc4] ss:$72 sps:$4 sm:$0xff]  }
 0x2ec   : > { %8555 = vmatprep.subr.bf16.mxu1 %v16108_v7  ;;  %v16168_v7 = vld [vmem:[%s20588_s3 + $0xe24] ss:$16 sps:$4 sm:$0xff]  }
 0x2ee   : > { %6819 = vmatpush1.bf16.msra.mxu0 %v16058_v8  ;;  %v16211_v8 = vld [vmem:[%s20588_s3 + $0xe08] ss:$16 sps:$4 sm:$0xff]  }
 0x2ef   : > { %6820 = vmatprep.subr.bf16.mxu0 %v16066_v9  ;;  %8556 = vmatpush1.bf16.msra.mxu1 %v16106_v10  ;;  %v16216_v9 = vld [vmem:[%s20588_s3 + $0xe2c] ss:$16 sps:$4 sm:$0xff]   ;;  %v16166_v10 = vld [vmem:[%s20588_s3 + $0xe20] ss:$16 sps:$4 sm:$0xff]  }
 0x2f0   : > { %6684 = vmatmul.mubr.bf16.gmra.mrb[16].mxu0 %v16039_v11  ;;  %8421 = vmatmul.mubr.bf16.gmra.mrb[16].mxu1 %v16039_v11  ;;  %v16174_v11 = vld [vmem:[%s20588_s3 + $0xe44] ss:$16 sps:$4 sm:$0xff]  }
 0x2f1   : > { %6693 = vmatprep.mubr.bf16.mxu0 %v16043_v12  ;;  %8430 = vmatprep.mubr.bf16.mxu1 %v16043_v12  ;;  %v16214_v12 = vld [vmem:[%s20588_s3 + $0xe28] ss:$16 sps:$4 sm:$0xff]  }
 0x2f2   : > { %6821 = vmatpush1.bf16.msra.mxu0 %v16064_v13  ;;  %8557 = vmatprep.subr.bf16.mxu1 %v16117_v14  ;;  %v16165_v13 = vld [vmem:[%s17102_s23 + $0xc0] ss:$72 sps:$4 sm:$0xff]   ;;  %v16169_v14 = vld [vmem:[%s17102_s23 + $0x154] ss:$72 sps:$4 sm:$0xff]  }
 0x2f3   : > { %6822 = vmatprep.subr.bf16.mxu0 %v16078_v15  ;;  %8558 = vmatpush1.bf16.msra.mxu1 %v16115_v16  ;;  %v16172_v15 = vld [vmem:[%s20588_s3 + $0xe40] ss:$16 sps:$4 sm:$0xff]   ;;  %v16225_v16 = vld [vmem:[%s20588_s3 + $0xe4c] ss:$16 sps:$4 sm:$0xff]  }
 0x2f4   : > { %8559 = vmatprep.subr.bf16.mxu1 %v16120_v17  ;;  %v16180_v17 = vld [vmem:[%s20588_s3 + $0xe64] ss:$16 sps:$4 sm:$0xff]  }
 0x2f6   : > { %6823 = vmatpush1.bf16.msra.mxu0 %v16076_v18  ;;  %v16223_v18 = vld [vmem:[%s20588_s3 + $0xe48] ss:$16 sps:$4 sm:$0xff]  }
 0x2f7   : > { %6824 = vmatprep.subr.bf16.mxu0 %v16090_v19  ;;  %8560 = vmatpush1.bf16.msra.mxu1 %v16118_v20  ;;  %v16228_v19 = vld [vmem:[%s20588_s3 + $0xe6c] ss:$16 sps:$4 sm:$0xff]   ;;  %v16178_v20 = vld [vmem:[%s20588_s3 + $0xe60] ss:$16 sps:$4 sm:$0xff]  }
 0x2f8   : > { %6694 = vmatmul.mubr.bf16.gmra.mrb[20].mxu0 %v16045_v21  ;;  %8431 = vmatmul.mubr.bf16.gmra.mrb[20].mxu1 %v16045_v21  ;;  %v16186_v21 = vld [vmem:[%s20588_s3 + $0xe84] ss:$16 sps:$4 sm:$0xff]  }
 0x2f9   : > { %6703 = vmatprep.mubr.bf16.mxu0 %v16049_v22  ;;  %8440 = vmatprep.mubr.bf16.mxu1 %v16049_v22  ;;  %v16226_v22 = vld [vmem:[%s20588_s3 + $0xe68] ss:$16 sps:$4 sm:$0xff]  }
 0x2fa   : > { %6825 = vmatpush1.bf16.msra.mxu0 %v16088_v23  ;;  %8561 = vmatprep.subr.bf16.mxu1 %v16129_v24  ;;  %v16171_v23 = vld [vmem:[%s17102_s23 + $0x150] ss:$72 sps:$4 sm:$0xff]   ;;  %v16175_v24 = vld [vmem:[%s17102_s23 + $0x1e4] ss:$72 sps:$4 sm:$0xff]  }
 0x2fb   : > { %6826 = vmatprep.subr.bf16.mxu0 %v16102_v25  ;;  %8562 = vmatpush1.bf16.msra.mxu1 %v16127_v26  ;;  %v16184_v25 = vld [vmem:[%s20588_s3 + $0xe80] ss:$16 sps:$4 sm:$0xff]   ;;  %v16237_v26 = vld [vmem:[%s20588_s3 + $0xe8c] ss:$16 sps:$4 sm:$0xff]  }
 0x2fc   : > { %8563 = vmatprep.subr.bf16.mxu1 %v16132_v27  ;;  %v16192_v27 = vld [vmem:[%s20588_s3 + $0xea4] ss:$16 sps:$4 sm:$0xff]  }
 0x2fe   : > { %6827 = vmatpush1.bf16.msra.mxu0 %v16100_v28  ;;  %v16235_v28 = vld [vmem:[%s20588_s3 + $0xe88] ss:$16 sps:$4 sm:$0xff]  }
 0x2ff   : > { %6828 = vmatprep.subr.bf16.mxu0 %v16114_v29  ;;  %8564 = vmatpush1.bf16.msra.mxu1 %v16130_v30  ;;  %v16240_v29 = vld [vmem:[%s20588_s3 + $0xeac] ss:$16 sps:$4 sm:$0xff]   ;;  %v16190_v30 = vld [vmem:[%s20588_s3 + $0xea0] ss:$16 sps:$4 sm:$0xff]  }
 0x300   : > { %6704 = vmatmul.mubr.bf16.gmra.mrb[24].mxu0 %v16051_v31  ;;  %8441 = vmatmul.mubr.bf16.gmra.mrb[24].mxu1 %v16051_v31  ;;  %v16198_v31 = vld [vmem:[%s20588_s3 + $0xec4] ss:$16 sps:$4 sm:$0xff]  }
 0x301   : > { %6713 = vmatprep.mubr.bf16.mxu0 %v16055_v32  ;;  %8450 = vmatprep.mubr.bf16.mxu1 %v16055_v32  ;;  %v16238_v32 = vld [vmem:[%s20588_s3 + $0xea8] ss:$16 sps:$4 sm:$0xff]  }
 0x302   : > { %6829 = vmatpush1.bf16.msra.mxu0 %v16112_v33  ;;  %8565 = vmatprep.subr.bf16.mxu1 %v16141_v34  ;;  %v16177_v33 = vld [vmem:[%s17102_s23 + $0x1e0] ss:$72 sps:$4 sm:$0xff]   ;;  %v16181_v34 = vld [vmem:[%s17102_s23 + $0x274] ss:$72 sps:$4 sm:$0xff]  }
 0x303   : > { %6830 = vmatprep.subr.bf16.mxu0 %v16126_v35  ;;  %8566 = vmatpush1.bf16.msra.mxu1 %v16139_v36  ;;  %v16196_v35 = vld [vmem:[%s20588_s3 + $0xec0] ss:$16 sps:$4 sm:$0xff]   ;;  %v16249_v36 = vld [vmem:[%s20588_s3 + $0xecc] ss:$16 sps:$4 sm:$0xff]  }
 0x304   : > { %8567 = vmatprep.subr.bf16.mxu1 %v16144_v37  ;;  %v16204_v37 = vld [vmem:[%s20588_s3 + $0xee4] ss:$16 sps:$4 sm:$0xff]  }
 0x306   : > { %6831 = vmatpush1.bf16.msra.mxu0 %v16124_v38  ;;  %v16247_v38 = vld [vmem:[%s20588_s3 + $0xec8] ss:$16 sps:$4 sm:$0xff]  }
 0x307   : > { %6832 = vmatprep.subr.bf16.mxu0 %v16138_v39  ;;  %8568 = vmatpush1.bf16.msra.mxu1 %v16142_v40  ;;  %v16252_v39 = vld [vmem:[%s20588_s3 + $0xeec] ss:$16 sps:$4 sm:$0xff]   ;;  %v16202_v40 = vld [vmem:[%s20588_s3 + $0xee0] ss:$16 sps:$4 sm:$0xff]  }
 0x308   : > { %6714 = vmatmul.mubr.bf16.gmra.mrb[28].mxu0 %v16057_v41  ;;  %8451 = vmatmul.mubr.bf16.gmra.mrb[28].mxu1 %v16057_v41  ;;  %v16210_v41 = vld [vmem:[%s20588_s3 + $0xf04] ss:$16 sps:$4 sm:$0xff]  }
 0x309   : > { %6723 = vmatprep.mubr.bf16.mxu0 %v16061_v42  ;;  %8460 = vmatprep.mubr.bf16.mxu1 %v16061_v42  ;;  %v16250_v42 = vld [vmem:[%s20588_s3 + $0xee8] ss:$16 sps:$4 sm:$0xff]  }
 0x30a   : > { %6833 = vmatpush1.bf16.msra.mxu0 %v16136_v43  ;;  %8569 = vmatprep.subr.bf16.mxu1 %v16153_v44  ;;  %v16183_v43 = vld [vmem:[%s17102_s23 + $0x270] ss:$72 sps:$4 sm:$0xff]   ;;  %v16187_v44 = vld [vmem:[%s17102_s23 + $0x304] ss:$72 sps:$4 sm:$0xff]  }
 0x30b   : > { %6834 = vmatprep.subr.bf16.mxu0 %v16150_v45  ;;  %8570 = vmatpush1.bf16.msra.mxu1 %v16151_v46  ;;  %v16208_v45 = vld [vmem:[%s20588_s3 + $0xf00] ss:$16 sps:$4 sm:$0xff]   ;;  %v16261_v46 = vld [vmem:[%s20588_s3 + $0xf0c] ss:$16 sps:$4 sm:$0xff]  }
 0x30c   : > { %8571 = vmatprep.subr.bf16.mxu1 %v16156_v47  ;;  %v16222_v47 = vld [vmem:[%s20588_s3 + $0xf24] ss:$16 sps:$4 sm:$0xff]  }
 0x30e   : > { %6835 = vmatpush1.bf16.msra.mxu0 %v16148_v48  ;;  %v16259_v48 = vld [vmem:[%s20588_s3 + $0xf08] ss:$16 sps:$4 sm:$0xff]  }
 0x30f   : > { %8572 = vmatpush1.bf16.msra.mxu1 %v16154_v49  ;;  %6997 = vmatprep.subr.bf16.mxu0 %v16162_v50  ;;  %v16264_v49 = vld [vmem:[%s20588_s3 + $0xf2c] ss:$16 sps:$4 sm:$0xff]   ;;  %v16220_v50 = vld [vmem:[%s20588_s3 + $0xf20] ss:$16 sps:$4 sm:$0xff]  }
 0x310   : > { %6724 = vmatmul.mubr.bf16.gmra.mrb[32].mxu0 %v16063_v51  ;;  %8461 = vmatmul.mubr.bf16.gmra.mrb[32].mxu1 %v16063_v51  ;;  %v16234_v51 = vld [vmem:[%s20588_s3 + $0xf44] ss:$16 sps:$4 sm:$0xff]  }
 0x311   : > { %6733 = vmatprep.mubr.bf16.mxu0 %v16073_v52  ;;  %8470 = vmatprep.mubr.bf16.mxu1 %v16073_v52  ;;  %v16262_v52 = vld [vmem:[%s20588_s3 + $0xf28] ss:$16 sps:$4 sm:$0xff]  }
 0x312   : > { %8734 = vmatprep.subr.bf16.mxu1 %v16213_v53  ;;  %v16189_v53 = vld [vmem:[%s17102_s23 + $0x300] ss:$72 sps:$4 sm:$0xff]  }
 0x318   : > { %6734 = vmatmul.mubr.bf16.gmra.mrb[36].mxu0 %v16075_v54  ;;  %8471 = vmatmul.mubr.bf16.gmra.mrb[36].mxu1 %v16075_v54  ;;  %v16193_v54 = vld [vmem:[%s17102_s23 + $0x394] ss:$72 sps:$4 sm:$0xff]  }
 0x319   : > { %6743 = vmatprep.mubr.bf16.mxu0 %v16085_v55  ;;  %8480 = vmatprep.mubr.bf16.mxu1 %v16085_v55  ;;  %v16232_v55 = vld [vmem:[%s20588_s3 + $0xf40] ss:$16 sps:$4 sm:$0xff]  }
 0x320   : > { %6744 = vmatmul.mubr.bf16.gmra.mrb[40].mxu0 %v16087_v56  ;;  %8481 = vmatmul.mubr.bf16.gmra.mrb[40].mxu1 %v16087_v56  ;;  %v16273_v56 = vld [vmem:[%s20588_s3 + $0xf4c] ss:$16 sps:$4 sm:$0xff]  }
 0x321   : > { %6753 = vmatprep.mubr.bf16.mxu0 %v16097_v57  ;;  %8490 = vmatprep.mubr.bf16.mxu1 %v16097_v57  ;;  %v16246_v57 = vld [vmem:[%s20588_s3 + $0xf64] ss:$16 sps:$4 sm:$0xff]  }
 0x328   : > { %6754 = vmatmul.mubr.bf16.gmra.mrb[44].mxu0 %v16099_v58  ;;  %8491 = vmatmul.mubr.bf16.gmra.mrb[44].mxu1 %v16099_v58  ;;  %v16271_v58 = vld [vmem:[%s20588_s3 + $0xf48] ss:$16 sps:$4 sm:$0xff]  }
 0x329   : > { %6763 = vmatprep.mubr.bf16.mxu0 %v16109_v59  ;;  %8500 = vmatprep.mubr.bf16.mxu1 %v16109_v59  ;;  %v16276_v59 = vld [vmem:[%s20588_s3 + $0xf6c] ss:$16 sps:$4 sm:$0xff]  }
 0x330   : > { %6764 = vmatmul.mubr.bf16.gmra.mrb[48].mxu0 %v16111_v60  ;;  %8501 = vmatmul.mubr.bf16.gmra.mrb[48].mxu1 %v16111_v60  ;;  %v16244_v60 = vld [vmem:[%s20588_s3 + $0xf60] ss:$16 sps:$4 sm:$0xff]  }
 0x331   : > { %6773 = vmatprep.mubr.bf16.mxu0 %v16121_v61  ;;  %8510 = vmatprep.mubr.bf16.mxu1 %v16121_v61  ;;  %v16258_v61 = vld [vmem:[%s20588_s3 + $0xf84] ss:$16 sps:$4 sm:$0xff]  }
 0x338   : > { %6774 = vmatmul.mubr.bf16.gmra.mrb[52].mxu0 %v16123_v62  ;;  %8511 = vmatmul.mubr.bf16.gmra.mrb[52].mxu1 %v16123_v62  ;;  %v16274_v62 = vld [vmem:[%s20588_s3 + $0xf68] ss:$16 sps:$4 sm:$0xff]  }
 0x339   : > { %6783 = vmatprep.mubr.bf16.mxu0 %v16133_v63  ;;  %8520 = vmatprep.mubr.bf16.mxu1 %v16133_v63  ;;  %v16195_v63 = vld [vmem:[%s17102_s23 + $0x390] ss:$72 sps:$4 sm:$0xff]  }
 0x340   : > { %6784 = vmatmul.mubr.bf16.gmra.mrb[56].mxu0 %v16135_v0  ;;  %8521 = vmatmul.mubr.bf16.gmra.mrb[56].mxu1 %v16135_v0  ;;  %v16199_v0 = vld [vmem:[%s17102_s23 + $0x424] ss:$72 sps:$4 sm:$0xff]  }
 0x341   : > { %6793 = vmatprep.mubr.bf16.mxu0 %v16145_v1  ;;  %8530 = vmatprep.mubr.bf16.mxu1 %v16145_v1  ;;  %v16256_v1 = vld [vmem:[%s20588_s3 + $0xf80] ss:$16 sps:$4 sm:$0xff]  }
 0x348   : > { %6794 = vmatmul.mubr.bf16.gmra.mrb[60].mxu0 %v16147_v2  ;;  %8531 = vmatmul.mubr.bf16.gmra.mrb[60].mxu1 %v16147_v2  ;;  %v16285_v2 = vld [vmem:[%s20588_s3 + $0xf8c] ss:$16 sps:$4 sm:$0xff]  }
 0x349   : > { %6836 = vmatprep.mubr.bf16.mxu0 %v16159_v3  ;;  %8573 = vmatprep.mubr.bf16.mxu1 %v16159_v3  ;;  %v16270_v3 = vld [vmem:[%s20588_s3 + $0xfa4] ss:$16 sps:$4 sm:$0xff]  }
 0x350   : > { %6837 = vmatmul.mubr.bf16.vlgmr.msra.gmra.mrb[0].mxu0 %v16157_v4  ;;  %8574 = vmatmul.mubr.bf16.vlgmr.msra.gmra.mrb[0].mxu1 %v16157_v4  ;;  %v16283_v4 = vld [vmem:[%s20588_s3 + $0xf88] ss:$16 sps:$4 sm:$0xff]  }
 0x351   : > { %6998 = vmatpush1.bf16.msra.mxu0 %v16160_v5  ;;  %6846 = vmatprep.mubr.bf16.mxu0 %v16163_v6  ;;  %v16288_v5 = vld [vmem:[%s20588_s3 + $0xfac] ss:$16 sps:$4 sm:$0xff]  }
 0x352   : > { %8583 = vmatprep.mubr.bf16.mxu1 %v16163_v6  ;;  %6999 = vmatprep.subr.bf16.mxu0 %v16168_v7  ;;  %v16268_v6 = vld [vmem:[%s20588_s3 + $0xfa0] ss:$16 sps:$4 sm:$0xff]   ;;  %v16282_v7 = vld [vmem:[%s20588_s3 + $0xfc4] ss:$16 sps:$4 sm:$0xff]  }
 0x353   : > { %8735 = vmatpush1.bf16.msra.mxu1 %v16211_v8  ;;  %v16286_v8 = vld [vmem:[%s20588_s3 + $0xfa8] ss:$16 sps:$4 sm:$0xff]  }
 0x354   : > { %8736 = vmatprep.subr.bf16.mxu1 %v16216_v9  ;;  %v16201_v9 = vld [vmem:[%s17102_s23 + $0x420] ss:$72 sps:$4 sm:$0xff]  }
 0x355   : > { %7000 = vmatpush1.bf16.msra.mxu0 %v16166_v10  ;;  %v16205_v10 = vld [vmem:[%s17102_s23 + $0x4b4] ss:$72 sps:$4 sm:$0xff]  }
 0x356   : > { %7001 = vmatprep.subr.bf16.mxu0 %v16174_v11  ;;  %v16280_v11 = vld [vmem:[%s20588_s3 + $0xfc0] ss:$16 sps:$4 sm:$0xff]  }
 0x357   : > { %8737 = vmatpush1.bf16.msra.mxu1 %v16214_v12  ;;  %v16297_v12 = vld [vmem:[%s20588_s3 + $0xfcc] ss:$16 sps:$4 sm:$0xff]  }
 0x358   : > { %6847 = vmatmul.mubr.bf16.gmra.mrb[4].mxu0 %v16165_v13  ;;  %8584 = vmatmul.mubr.bf16.gmra.mrb[4].mxu1 %v16165_v13  ;;  %v16294_v13 = vld [vmem:[%s20588_s3 + $0xfe4] ss:$16 sps:$4 sm:$0xff]  }
 0x359   : > { %6856 = vmatprep.mubr.bf16.mxu0 %v16169_v14  ;;  %8593 = vmatprep.mubr.bf16.mxu1 %v16169_v14  ;;  %v16295_v14 = vld [vmem:[%s20588_s3 + $0xfc8] ss:$16 sps:$4 sm:$0xff]  }
 0x35a   : > { %7002 = vmatpush1.bf16.msra.mxu0 %v16172_v15  ;;  %8738 = vmatprep.subr.bf16.mxu1 %v16225_v16  ;;  %v16300_v15 = vld [vmem:[%s20588_s3 + $0xfec] ss:$16 sps:$4 sm:$0xff]   ;;  %v16292_v16 = vld [vmem:[%s20588_s3 + $0xfe0] ss:$16 sps:$4 sm:$0xff]  }
 0x35b   : > { %7003 = vmatprep.subr.bf16.mxu0 %v16180_v17  ;;  %8739 = vmatpush1.bf16.msra.mxu1 %v16223_v18  ;;  %v16298_v17 = vld [vmem:[%s20588_s3 + $0xfe8] ss:$16 sps:$4 sm:$0xff]   ;;  %v16306_v18 = vld [vmem:[%s20588_s3 + $0x1004] ss:$16 sps:$4 sm:$0xff]  }
 0x35c   : > { %8740 = vmatprep.subr.bf16.mxu1 %v16228_v19  ;;  %v16207_v19 = vld [vmem:[%s17102_s23 + $0x4b0] ss:$72 sps:$4 sm:$0xff]  }
 0x35e   : > { %7004 = vmatpush1.bf16.msra.mxu0 %v16178_v20  ;;  %v16217_v20 = vld [vmem:[%s17102_s23 + $0x544] ss:$72 sps:$4 sm:$0xff]  }
 0x35f   : > { %7005 = vmatprep.subr.bf16.mxu0 %v16186_v21  ;;  %8741 = vmatpush1.bf16.msra.mxu1 %v16226_v22  ;;  %v16357_v21 = vld [vmem:[%s20588_s3 + $0x100c] ss:$16 sps:$4 sm:$0xff]   ;;  %v16219_v22 = vld [vmem:[%s17102_s23 + $0x540] ss:$72 sps:$4 sm:$0xff]  }
 0x360   : > { %6857 = vmatmul.mubr.bf16.gmra.mrb[8].mxu0 %v16171_v23  ;;  %8594 = vmatmul.mubr.bf16.gmra.mrb[8].mxu1 %v16171_v23  ;;  %v16229_v23 = vld [vmem:[%s17102_s23 + $0x5d4] ss:$72 sps:$4 sm:$0xff]  }
 0x361   : > { %6866 = vmatprep.mubr.bf16.mxu0 %v16175_v24  ;;  %8603 = vmatprep.mubr.bf16.mxu1 %v16175_v24  ;;  %v16231_v24 = vld [vmem:[%s17102_s23 + $0x5d0] ss:$72 sps:$4 sm:$0xff]  }
 0x362   : > { %7006 = vmatpush1.bf16.msra.mxu0 %v16184_v25  ;;  %8742 = vmatprep.subr.bf16.mxu1 %v16237_v26  ;;  %v16241_v25 = vld [vmem:[%s17102_s23 + $0x664] ss:$72 sps:$4 sm:$0xff]   ;;  %v16243_v26 = vld [vmem:[%s17102_s23 + $0x660] ss:$72 sps:$4 sm:$0xff]  }
 0x363   : > { %7007 = vmatprep.subr.bf16.mxu0 %v16192_v27  ;;  %8743 = vmatpush1.bf16.msra.mxu1 %v16235_v28  ;;  %v16253_v27 = vld [vmem:[%s17102_s23 + $0x6f4] ss:$72 sps:$4 sm:$0xff]   ;;  %v16255_v28 = vld [vmem:[%s17102_s23 + $0x6f0] ss:$72 sps:$4 sm:$0xff]  }
 0x364   : > { %8744 = vmatprep.subr.bf16.mxu1 %v16240_v29  ;;  %v16265_v29 = vld [vmem:[%s17102_s23 + $0x784] ss:$72 sps:$4 sm:$0xff]  }
 0x366   : > { %7008 = vmatpush1.bf16.msra.mxu0 %v16190_v30  ;;  %v16267_v30 = vld [vmem:[%s17102_s23 + $0x780] ss:$72 sps:$4 sm:$0xff]  }
 0x367   : > { %7009 = vmatprep.subr.bf16.mxu0 %v16198_v31  ;;  %8745 = vmatpush1.bf16.msra.mxu1 %v16238_v32  ;;  %v16277_v31 = vld [vmem:[%s17102_s23 + $0x814] ss:$72 sps:$4 sm:$0xff]   ;;  %v16279_v32 = vld [vmem:[%s17102_s23 + $0x810] ss:$72 sps:$4 sm:$0xff]  }
 0x368   : > { %6867 = vmatmul.mubr.bf16.gmra.mrb[12].mxu0 %v16177_v33  ;;  %8604 = vmatmul.mubr.bf16.gmra.mrb[12].mxu1 %v16177_v33  ;;  %v16289_v33 = vld [vmem:[%s17102_s23 + $0x8a4] ss:$72 sps:$4 sm:$0xff]  }
 0x369   : > { %6876 = vmatprep.mubr.bf16.mxu0 %v16181_v34  ;;  %8613 = vmatprep.mubr.bf16.mxu1 %v16181_v34  ;;  %v16291_v34 = vld [vmem:[%s17102_s23 + $0x8a0] ss:$72 sps:$4 sm:$0xff]  }
 0x36a   : > { %7010 = vmatpush1.bf16.msra.mxu0 %v16196_v35  ;;  %8746 = vmatprep.subr.bf16.mxu1 %v16249_v36  ;;  %v16303_v35 = vld [vmem:[%s17102_s23 + $0x3c] ss:$72 sps:$4 sm:$0xff]   ;;  %v16301_v36 = vld [vmem:[%s17102_s23 + $0x38] ss:$72 sps:$4 sm:$0xff]  }
 0x36b   : > { %7011 = vmatprep.subr.bf16.mxu0 %v16204_v37  ;;  %8747 = vmatpush1.bf16.msra.mxu1 %v16247_v38  ;;  %v16304_v37 = vld [vmem:[%s20588_s3 + $0x1000] ss:$16 sps:$4 sm:$0xff]   ;;  %v16307_v38 = vld [vmem:[%s17102_s23 + $0xcc] ss:$72 sps:$4 sm:$0xff]  }
 0x36c   : > { %8748 = vmatprep.subr.bf16.mxu1 %v16252_v39  ;;  %v16312_v39 = vld [vmem:[%s20588_s3 + $0x1024] ss:$16 sps:$4 sm:$0xff]  }
 0x36e   : > { %7012 = vmatpush1.bf16.msra.mxu0 %v16202_v40  ;;  %v16355_v40 = vld [vmem:[%s20588_s3 + $0x1008] ss:$16 sps:$4 sm:$0xff]  }
 0x36f   : > { %7013 = vmatprep.subr.bf16.mxu0 %v16210_v41  ;;  %8749 = vmatpush1.bf16.msra.mxu1 %v16250_v42  ;;  %v16360_v41 = vld [vmem:[%s20588_s3 + $0x102c] ss:$16 sps:$4 sm:$0xff]   ;;  %v16310_v42 = vld [vmem:[%s20588_s3 + $0x1020] ss:$16 sps:$4 sm:$0xff]  }
 0x370   : > { %6877 = vmatmul.mubr.bf16.gmra.mrb[16].mxu0 %v16183_v43  ;;  %8614 = vmatmul.mubr.bf16.gmra.mrb[16].mxu1 %v16183_v43  ;;  %v16318_v43 = vld [vmem:[%s20588_s3 + $0x1044] ss:$16 sps:$4 sm:$0xff]  }
 0x371   : > { %6886 = vmatprep.mubr.bf16.mxu0 %v16187_v44  ;;  %8623 = vmatprep.mubr.bf16.mxu1 %v16187_v44  ;;  %v16358_v44 = vld [vmem:[%s20588_s3 + $0x1028] ss:$16 sps:$4 sm:$0xff]  }
 0x372   : > { %7014 = vmatpush1.bf16.msra.mxu0 %v16208_v45  ;;  %8750 = vmatprep.subr.bf16.mxu1 %v16261_v46  ;;  %v16309_v45 = vld [vmem:[%s17102_s23 + $0xc8] ss:$72 sps:$4 sm:$0xff]   ;;  %v16313_v46 = vld [vmem:[%s17102_s23 + $0x15c] ss:$72 sps:$4 sm:$0xff]  }
 0x373   : > { %7015 = vmatprep.subr.bf16.mxu0 %v16222_v47  ;;  %8751 = vmatpush1.bf16.msra.mxu1 %v16259_v48  ;;  %v16316_v47 = vld [vmem:[%s20588_s3 + $0x1040] ss:$16 sps:$4 sm:$0xff]   ;;  %v16369_v48 = vld [vmem:[%s20588_s3 + $0x104c] ss:$16 sps:$4 sm:$0xff]  }
 0x374   : > { %8752 = vmatprep.subr.bf16.mxu1 %v16264_v49  ;;  %v16324_v49 = vld [vmem:[%s20588_s3 + $0x1064] ss:$16 sps:$4 sm:$0xff]  }
 0x376   : > { %7016 = vmatpush1.bf16.msra.mxu0 %v16220_v50  ;;  %v16367_v50 = vld [vmem:[%s20588_s3 + $0x1048] ss:$16 sps:$4 sm:$0xff]  }
 0x377   : > { %7017 = vmatprep.subr.bf16.mxu0 %v16234_v51  ;;  %8753 = vmatpush1.bf16.msra.mxu1 %v16262_v52  ;;  %v16372_v51 = vld [vmem:[%s20588_s3 + $0x106c] ss:$16 sps:$4 sm:$0xff]   ;;  %v16322_v52 = vld [vmem:[%s20588_s3 + $0x1060] ss:$16 sps:$4 sm:$0xff]  }
 0x378   : > { %6887 = vmatmul.mubr.bf16.gmra.mrb[20].mxu0 %v16189_v53  ;;  %8624 = vmatmul.mubr.bf16.gmra.mrb[20].mxu1 %v16189_v53  ;;  %v16330_v53 = vld [vmem:[%s20588_s3 + $0x1084] ss:$16 sps:$4 sm:$0xff]  }
 0x379   : > { %6896 = vmatprep.mubr.bf16.mxu0 %v16193_v54  ;;  %8633 = vmatprep.mubr.bf16.mxu1 %v16193_v54  ;;  %v16370_v54 = vld [vmem:[%s20588_s3 + $0x1068] ss:$16 sps:$4 sm:$0xff]  }
 0x37a   : > { %7018 = vmatpush1.bf16.msra.mxu0 %v16232_v55  ;;  %8754 = vmatprep.subr.bf16.mxu1 %v16273_v56  ;;  %v16315_v55 = vld [vmem:[%s17102_s23 + $0x158] ss:$72 sps:$4 sm:$0xff]   ;;  %v16319_v56 = vld [vmem:[%s17102_s23 + $0x1ec] ss:$72 sps:$4 sm:$0xff]  }
 0x37b   : > { %7019 = vmatprep.subr.bf16.mxu0 %v16246_v57  ;;  %8755 = vmatpush1.bf16.msra.mxu1 %v16271_v58  ;;  %v16328_v57 = vld [vmem:[%s20588_s3 + $0x1080] ss:$16 sps:$4 sm:$0xff]   ;;  %v16381_v58 = vld [vmem:[%s20588_s3 + $0x108c] ss:$16 sps:$4 sm:$0xff]  }
 0x37c   : > { %8756 = vmatprep.subr.bf16.mxu1 %v16276_v59  ;;  %v16336_v59 = vld [vmem:[%s20588_s3 + $0x10a4] ss:$16 sps:$4 sm:$0xff]  }
 0x37e   : > { %7020 = vmatpush1.bf16.msra.mxu0 %v16244_v60  ;;  %v16379_v60 = vld [vmem:[%s20588_s3 + $0x1088] ss:$16 sps:$4 sm:$0xff]  }
 0x37f   : > { %7021 = vmatprep.subr.bf16.mxu0 %v16258_v61  ;;  %8757 = vmatpush1.bf16.msra.mxu1 %v16274_v62  ;;  %v16384_v61 = vld [vmem:[%s20588_s3 + $0x10ac] ss:$16 sps:$4 sm:$0xff]   ;;  %v16334_v62 = vld [vmem:[%s20588_s3 + $0x10a0] ss:$16 sps:$4 sm:$0xff]  }
 0x380   : > { %6897 = vmatmul.mubr.bf16.gmra.mrb[24].mxu0 %v16195_v63  ;;  %8634 = vmatmul.mubr.bf16.gmra.mrb[24].mxu1 %v16195_v63  ;;  %v16342_v63 = vld [vmem:[%s20588_s3 + $0x10c4] ss:$16 sps:$4 sm:$0xff]  }
 0x381   : > { %6906 = vmatprep.mubr.bf16.mxu0 %v16199_v0  ;;  %8643 = vmatprep.mubr.bf16.mxu1 %v16199_v0  ;;  %v16382_v0 = vld [vmem:[%s20588_s3 + $0x10a8] ss:$16 sps:$4 sm:$0xff]  }
 0x382   : > { %7022 = vmatpush1.bf16.msra.mxu0 %v16256_v1  ;;  %8758 = vmatprep.subr.bf16.mxu1 %v16285_v2  ;;  %v16321_v1 = vld [vmem:[%s17102_s23 + $0x1e8] ss:$72 sps:$4 sm:$0xff]   ;;  %v16325_v2 = vld [vmem:[%s17102_s23 + $0x27c] ss:$72 sps:$4 sm:$0xff]  }
 0x383   : > { %7023 = vmatprep.subr.bf16.mxu0 %v16270_v3  ;;  %8759 = vmatpush1.bf16.msra.mxu1 %v16283_v4  ;;  %v16340_v3 = vld [vmem:[%s20588_s3 + $0x10c0] ss:$16 sps:$4 sm:$0xff]   ;;  %v16393_v4 = vld [vmem:[%s20588_s3 + $0x10cc] ss:$16 sps:$4 sm:$0xff]  }
 0x384   : > { %8760 = vmatprep.subr.bf16.mxu1 %v16288_v5  ;;  %v16348_v5 = vld [vmem:[%s20588_s3 + $0x10e4] ss:$16 sps:$4 sm:$0xff]  }
 0x386   : > { %7024 = vmatpush1.bf16.msra.mxu0 %v16268_v6  ;;  %v16391_v6 = vld [vmem:[%s20588_s3 + $0x10c8] ss:$16 sps:$4 sm:$0xff]  }
 0x387   : > { %7025 = vmatprep.subr.bf16.mxu0 %v16282_v7  ;;  %8761 = vmatpush1.bf16.msra.mxu1 %v16286_v8  ;;  %v16396_v7 = vld [vmem:[%s20588_s3 + $0x10ec] ss:$16 sps:$4 sm:$0xff]   ;;  %v16346_v8 = vld [vmem:[%s20588_s3 + $0x10e0] ss:$16 sps:$4 sm:$0xff]  }
 0x388   : > { %6907 = vmatmul.mubr.bf16.gmra.mrb[28].mxu0 %v16201_v9  ;;  %8644 = vmatmul.mubr.bf16.gmra.mrb[28].mxu1 %v16201_v9  ;;  %v16354_v9 = vld [vmem:[%s20588_s3 + $0x1104] ss:$16 sps:$4 sm:$0xff]  }
 0x389   : > { %6916 = vmatprep.mubr.bf16.mxu0 %v16205_v10  ;;  %8653 = vmatprep.mubr.bf16.mxu1 %v16205_v10  ;;  %v16394_v10 = vld [vmem:[%s20588_s3 + $0x10e8] ss:$16 sps:$4 sm:$0xff]  }
 0x38a   : > { %7026 = vmatpush1.bf16.msra.mxu0 %v16280_v11  ;;  %8762 = vmatprep.subr.bf16.mxu1 %v16297_v12  ;;  %v16327_v11 = vld [vmem:[%s17102_s23 + $0x278] ss:$72 sps:$4 sm:$0xff]   ;;  %v16331_v12 = vld [vmem:[%s17102_s23 + $0x30c] ss:$72 sps:$4 sm:$0xff]  }
 0x38b   : > { %7027 = vmatprep.subr.bf16.mxu0 %v16294_v13  ;;  %8763 = vmatpush1.bf16.msra.mxu1 %v16295_v14  ;;  %v16352_v13 = vld [vmem:[%s20588_s3 + $0x1100] ss:$16 sps:$4 sm:$0xff]   ;;  %v16405_v14 = vld [vmem:[%s20588_s3 + $0x110c] ss:$16 sps:$4 sm:$0xff]  }
 0x38c   : > { %8764 = vmatprep.subr.bf16.mxu1 %v16300_v15  ;;  %v16366_v15 = vld [vmem:[%s20588_s3 + $0x1124] ss:$16 sps:$4 sm:$0xff]  }
 0x38e   : > { %7028 = vmatpush1.bf16.msra.mxu0 %v16292_v16  ;;  %v16403_v16 = vld [vmem:[%s20588_s3 + $0x1108] ss:$16 sps:$4 sm:$0xff]  }
 0x38f   : > { %8765 = vmatpush1.bf16.msra.mxu1 %v16298_v17  ;;  %7190 = vmatprep.subr.bf16.mxu0 %v16306_v18  ;;  %v16408_v17 = vld [vmem:[%s20588_s3 + $0x112c] ss:$16 sps:$4 sm:$0xff]   ;;  %v16364_v18 = vld [vmem:[%s20588_s3 + $0x1120] ss:$16 sps:$4 sm:$0xff]  }
 0x390   : > { %6917 = vmatmul.mubr.bf16.gmra.mrb[32].mxu0 %v16207_v19  ;;  %8654 = vmatmul.mubr.bf16.gmra.mrb[32].mxu1 %v16207_v19  ;;  %v16378_v19 = vld [vmem:[%s20588_s3 + $0x1144] ss:$16 sps:$4 sm:$0xff]  }
 0x391   : > { %6926 = vmatprep.mubr.bf16.mxu0 %v16217_v20  ;;  %8663 = vmatprep.mubr.bf16.mxu1 %v16217_v20  ;;  %v16406_v20 = vld [vmem:[%s20588_s3 + $0x1128] ss:$16 sps:$4 sm:$0xff]  }
 0x392   : > { %8927 = vmatprep.subr.bf16.mxu1 %v16357_v21  ;;  %v16333_v21 = vld [vmem:[%s17102_s23 + $0x308] ss:$72 sps:$4 sm:$0xff]  }
 0x398   : > { %6927 = vmatmul.mubr.bf16.gmra.mrb[36].mxu0 %v16219_v22  ;;  %8664 = vmatmul.mubr.bf16.gmra.mrb[36].mxu1 %v16219_v22  ;;  %v16337_v22 = vld [vmem:[%s17102_s23 + $0x39c] ss:$72 sps:$4 sm:$0xff]  }
 0x399   : > { %6936 = vmatprep.mubr.bf16.mxu0 %v16229_v23  ;;  %8673 = vmatprep.mubr.bf16.mxu1 %v16229_v23  ;;  %v16376_v23 = vld [vmem:[%s20588_s3 + $0x1140] ss:$16 sps:$4 sm:$0xff]  }
 0x3a0   : > { %6937 = vmatmul.mubr.bf16.gmra.mrb[40].mxu0 %v16231_v24  ;;  %8674 = vmatmul.mubr.bf16.gmra.mrb[40].mxu1 %v16231_v24  ;;  %v16417_v24 = vld [vmem:[%s20588_s3 + $0x114c] ss:$16 sps:$4 sm:$0xff]  }
 0x3a1   : > { %6946 = vmatprep.mubr.bf16.mxu0 %v16241_v25  ;;  %8683 = vmatprep.mubr.bf16.mxu1 %v16241_v25  ;;  %v16390_v25 = vld [vmem:[%s20588_s3 + $0x1164] ss:$16 sps:$4 sm:$0xff]  }
 0x3a8   : > { %6947 = vmatmul.mubr.bf16.gmra.mrb[44].mxu0 %v16243_v26  ;;  %8684 = vmatmul.mubr.bf16.gmra.mrb[44].mxu1 %v16243_v26  ;;  %v16415_v26 = vld [vmem:[%s20588_s3 + $0x1148] ss:$16 sps:$4 sm:$0xff]  }
 0x3a9   : > { %6956 = vmatprep.mubr.bf16.mxu0 %v16253_v27  ;;  %8693 = vmatprep.mubr.bf16.mxu1 %v16253_v27  ;;  %v16420_v27 = vld [vmem:[%s20588_s3 + $0x116c] ss:$16 sps:$4 sm:$0xff]  }
 0x3b0   : > { %6957 = vmatmul.mubr.bf16.gmra.mrb[48].mxu0 %v16255_v28  ;;  %8694 = vmatmul.mubr.bf16.gmra.mrb[48].mxu1 %v16255_v28  ;;  %v16388_v28 = vld [vmem:[%s20588_s3 + $0x1160] ss:$16 sps:$4 sm:$0xff]  }
 0x3b1   : > { %6966 = vmatprep.mubr.bf16.mxu0 %v16265_v29  ;;  %8703 = vmatprep.mubr.bf16.mxu1 %v16265_v29  ;;  %v16402_v29 = vld [vmem:[%s20588_s3 + $0x1184] ss:$16 sps:$4 sm:$0xff]  }
 0x3b8   : > { %6967 = vmatmul.mubr.bf16.gmra.mrb[52].mxu0 %v16267_v30  ;;  %8704 = vmatmul.mubr.bf16.gmra.mrb[52].mxu1 %v16267_v30  ;;  %v16418_v30 = vld [vmem:[%s20588_s3 + $0x1168] ss:$16 sps:$4 sm:$0xff]  }
 0x3b9   : > { %6976 = vmatprep.mubr.bf16.mxu0 %v16277_v31  ;;  %8713 = vmatprep.mubr.bf16.mxu1 %v16277_v31  ;;  %v16339_v31 = vld [vmem:[%s17102_s23 + $0x398] ss:$72 sps:$4 sm:$0xff]  }
 0x3c0   : > { %6977 = vmatmul.mubr.bf16.gmra.mrb[56].mxu0 %v16279_v32  ;;  %8714 = vmatmul.mubr.bf16.gmra.mrb[56].mxu1 %v16279_v32  ;;  %v16343_v32 = vld [vmem:[%s17102_s23 + $0x42c] ss:$72 sps:$4 sm:$0xff]  }
 0x3c1   : > { %6986 = vmatprep.mubr.bf16.mxu0 %v16289_v33  ;;  %8723 = vmatprep.mubr.bf16.mxu1 %v16289_v33  ;;  %v16400_v33 = vld [vmem:[%s20588_s3 + $0x1180] ss:$16 sps:$4 sm:$0xff]  }
 0x3c8   : > { %6987 = vmatmul.mubr.bf16.gmra.mrb[60].mxu0 %v16291_v34  ;;  %8724 = vmatmul.mubr.bf16.gmra.mrb[60].mxu1 %v16291_v34  ;;  %v16429_v34 = vld [vmem:[%s20588_s3 + $0x118c] ss:$16 sps:$4 sm:$0xff]  }
 0x3c9   : > { %7029 = vmatprep.mubr.bf16.mxu0 %v16303_v35  ;;  %8766 = vmatprep.mubr.bf16.mxu1 %v16303_v35  ;;  %v16414_v35 = vld [vmem:[%s20588_s3 + $0x11a4] ss:$16 sps:$4 sm:$0xff]  }
 0x3d0   : > { %7030 = vmatmul.mubr.bf16.vlgmr.msra.gmra.mrb[0].mxu0 %v16301_v36  ;;  %8767 = vmatmul.mubr.bf16.vlgmr.msra.gmra.mrb[0].mxu1 %v16301_v36  ;;  %v16427_v36 = vld [vmem:[%s20588_s3 + $0x1188] ss:$16 sps:$4 sm:$0xff]  }
 0x3d1   : > { %7191 = vmatpush1.bf16.msra.mxu0 %v16304_v37  ;;  %7039 = vmatprep.mubr.bf16.mxu0 %v16307_v38  ;;  %v16432_v37 = vld [vmem:[%s20588_s3 + $0x11ac] ss:$16 sps:$4 sm:$0xff]  }
 0x3d2   : > { %8776 = vmatprep.mubr.bf16.mxu1 %v16307_v38  ;;  %7192 = vmatprep.subr.bf16.mxu0 %v16312_v39  ;;  %v16412_v38 = vld [vmem:[%s20588_s3 + $0x11a0] ss:$16 sps:$4 sm:$0xff]   ;;  %v16426_v39 = vld [vmem:[%s20588_s3 + $0x11c4] ss:$16 sps:$4 sm:$0xff]  }
 0x3d3   : > { %8928 = vmatpush1.bf16.msra.mxu1 %v16355_v40  ;;  %v16430_v40 = vld [vmem:[%s20588_s3 + $0x11a8] ss:$16 sps:$4 sm:$0xff]  }
 0x3d4   : > { %8929 = vmatprep.subr.bf16.mxu1 %v16360_v41  ;;  %v16345_v41 = vld [vmem:[%s17102_s23 + $0x428] ss:$72 sps:$4 sm:$0xff]  }
 0x3d5   : > { %7193 = vmatpush1.bf16.msra.mxu0 %v16310_v42  ;;  %v16349_v42 = vld [vmem:[%s17102_s23 + $0x4bc] ss:$72 sps:$4 sm:$0xff]  }
 0x3d6   : > { %7194 = vmatprep.subr.bf16.mxu0 %v16318_v43  ;;  %v16424_v43 = vld [vmem:[%s20588_s3 + $0x11c0] ss:$16 sps:$4 sm:$0xff]  }
 0x3d7   : > { %8930 = vmatpush1.bf16.msra.mxu1 %v16358_v44  ;;  %v16441_v44 = vld [vmem:[%s20588_s3 + $0x11cc] ss:$16 sps:$4 sm:$0xff]  }
 0x3d8   : > { %7040 = vmatmul.mubr.bf16.gmra.mrb[4].mxu0 %v16309_v45  ;;  %8777 = vmatmul.mubr.bf16.gmra.mrb[4].mxu1 %v16309_v45  ;;  %v16438_v45 = vld [vmem:[%s20588_s3 + $0x11e4] ss:$16 sps:$4 sm:$0xff]  }
 0x3d9   : > { %7049 = vmatprep.mubr.bf16.mxu0 %v16313_v46  ;;  %8786 = vmatprep.mubr.bf16.mxu1 %v16313_v46  ;;  %v16439_v46 = vld [vmem:[%s20588_s3 + $0x11c8] ss:$16 sps:$4 sm:$0xff]  }
 0x3da   : > { %7195 = vmatpush1.bf16.msra.mxu0 %v16316_v47  ;;  %8931 = vmatprep.subr.bf16.mxu1 %v16369_v48  ;;  %v16444_v47 = vld [vmem:[%s20588_s3 + $0x11ec] ss:$16 sps:$4 sm:$0xff]   ;;  %v16436_v48 = vld [vmem:[%s20588_s3 + $0x11e0] ss:$16 sps:$4 sm:$0xff]  }
 0x3db   : > { %7196 = vmatprep.subr.bf16.mxu0 %v16324_v49  ;;  %8932 = vmatpush1.bf16.msra.mxu1 %v16367_v50  ;;  %v16442_v49 = vld [vmem:[%s20588_s3 + $0x11e8] ss:$16 sps:$4 sm:$0xff]   ;;  %v16450_v50 = vld [vmem:[%s20587_s2 + $0x4] ss:$16 sps:$4 sm:$0xff]  }
 0x3dc   : > { %8933 = vmatprep.subr.bf16.mxu1 %v16372_v51  ;;  %v16351_v51 = vld [vmem:[%s17102_s23 + $0x4b8] ss:$72 sps:$4 sm:$0xff]  }
 0x3de   : > { %7197 = vmatpush1.bf16.msra.mxu0 %v16322_v52  ;;  %v16361_v52 = vld [vmem:[%s17102_s23 + $0x54c] ss:$72 sps:$4 sm:$0xff]  }
 0x3df   : > { %7198 = vmatprep.subr.bf16.mxu0 %v16330_v53  ;;  %8934 = vmatpush1.bf16.msra.mxu1 %v16370_v54  ;;  %v16363_v53 = vld [vmem:[%s17102_s23 + $0x548] ss:$72 sps:$4 sm:$0xff]   ;;  %v16373_v54 = vld [vmem:[%s17102_s23 + $0x5dc] ss:$72 sps:$4 sm:$0xff]  }
 0x3e0   : > { %7050 = vmatmul.mubr.bf16.gmra.mrb[8].mxu0 %v16315_v55  ;;  %8787 = vmatmul.mubr.bf16.gmra.mrb[8].mxu1 %v16315_v55  ;;  %v16375_v55 = vld [vmem:[%s17102_s23 + $0x5d8] ss:$72 sps:$4 sm:$0xff]  }
 0x3e1   : > { %7059 = vmatprep.mubr.bf16.mxu0 %v16319_v56  ;;  %8796 = vmatprep.mubr.bf16.mxu1 %v16319_v56  ;;  %v16385_v56 = vld [vmem:[%s17102_s23 + $0x66c] ss:$72 sps:$4 sm:$0xff]  }
 0x3e2   : > { %7199 = vmatpush1.bf16.msra.mxu0 %v16328_v57  ;;  %8935 = vmatprep.subr.bf16.mxu1 %v16381_v58  ;;  %v16387_v57 = vld [vmem:[%s17102_s23 + $0x668] ss:$72 sps:$4 sm:$0xff]   ;;  %v16397_v58 = vld [vmem:[%s17102_s23 + $0x6fc] ss:$72 sps:$4 sm:$0xff]  }
 0x3e3   : > { %7200 = vmatprep.subr.bf16.mxu0 %v16336_v59  ;;  %8936 = vmatpush1.bf16.msra.mxu1 %v16379_v60  ;;  %v16399_v59 = vld [vmem:[%s17102_s23 + $0x6f8] ss:$72 sps:$4 sm:$0xff]   ;;  %v16409_v60 = vld [vmem:[%s17102_s23 + $0x78c] ss:$72 sps:$4 sm:$0xff]  }
 0x3e4   : > { %8937 = vmatprep.subr.bf16.mxu1 %v16384_v61  ;;  %v16411_v61 = vld [vmem:[%s17102_s23 + $0x788] ss:$72 sps:$4 sm:$0xff]  }
 0x3e6   : > { %7201 = vmatpush1.bf16.msra.mxu0 %v16334_v62  ;;  %v16421_v62 = vld [vmem:[%s17102_s23 + $0x81c] ss:$72 sps:$4 sm:$0xff]  }
 0x3e7   : > { %7202 = vmatprep.subr.bf16.mxu0 %v16342_v63  ;;  %8938 = vmatpush1.bf16.msra.mxu1 %v16382_v0  ;;  %v16423_v63 = vld [vmem:[%s17102_s23 + $0x818] ss:$72 sps:$4 sm:$0xff]   ;;  %v16433_v0 = vld [vmem:[%s17102_s23 + $0x8ac] ss:$72 sps:$4 sm:$0xff]  }
 0x3e8   : > { %7060 = vmatmul.mubr.bf16.gmra.mrb[12].mxu0 %v16321_v1  ;;  %8797 = vmatmul.mubr.bf16.gmra.mrb[12].mxu1 %v16321_v1  ;;  %v16501_v1 = vld [vmem:[%s20587_s2 + $0xc] ss:$16 sps:$4 sm:$0xff]  }
 0x3e9   : > { %7069 = vmatprep.mubr.bf16.mxu0 %v16325_v2  ;;  %8806 = vmatprep.mubr.bf16.mxu1 %v16325_v2  ;;  %v16435_v2 = vld [vmem:[%s17102_s23 + $0x8a8] ss:$72 sps:$4 sm:$0xff]  }
 0x3ea   : > { %7203 = vmatpush1.bf16.msra.mxu0 %v16340_v3  ;;  %8939 = vmatprep.subr.bf16.mxu1 %v16393_v4  ;;  %v16447_v3 = vld [vmem:[%s17102_s23 + $0x44] ss:$72 sps:$4 sm:$0xff]   ;;  %v16445_v4 = vld [vmem:[%s17102_s23 + $0x40] ss:$72 sps:$4 sm:$0xff]  }
 0x3eb   : > { %7204 = vmatprep.subr.bf16.mxu0 %v16348_v5  ;;  %8940 = vmatpush1.bf16.msra.mxu1 %v16391_v6  ;;  %v16448_v5 = vld [vmem:[%s20587_s2] ss:$16 sps:$4 sm:$0xff]   ;;  %v16451_v6 = vld [vmem:[%s17102_s23 + $0xd4] ss:$72 sps:$4 sm:$0xff]  }
 0x3ec   : > { %8941 = vmatprep.subr.bf16.mxu1 %v16396_v7  ;;  %v16468_v7 = vld [vmem:[%s20587_s2 + $0x24] ss:$16 sps:$4 sm:$0xff]  }
 0x3ee   : > { %7205 = vmatpush1.bf16.msra.mxu0 %v16346_v8  ;;  %v16499_v8 = vld [vmem:[%s20587_s2 + $0x8] ss:$16 sps:$4 sm:$0xff]  }
 0x3ef   : > { %7206 = vmatprep.subr.bf16.mxu0 %v16354_v9  ;;  %8942 = vmatpush1.bf16.msra.mxu1 %v16394_v10  ;;  %v16507_v9 = vld [vmem:[%s20587_s2 + $0x2c] ss:$16 sps:$4 sm:$0xff]   ;;  %v16466_v10 = vld [vmem:[%s20587_s2 + $0x20] ss:$16 sps:$4 sm:$0xff]  }
 0x3f0   : > { %7070 = vmatmul.mubr.bf16.gmra.mrb[16].mxu0 %v16327_v11  ;;  %8807 = vmatmul.mubr.bf16.gmra.mrb[16].mxu1 %v16327_v11  ;;  %v16486_v11 = vld [vmem:[%s20587_s2 + $0x44] ss:$16 sps:$4 sm:$0xff]  }
 0x3f1   : > { %7079 = vmatprep.mubr.bf16.mxu0 %v16331_v12  ;;  %8816 = vmatprep.mubr.bf16.mxu1 %v16331_v12  ;;  %v16505_v12 = vld [vmem:[%s20587_s2 + $0x28] ss:$16 sps:$4 sm:$0xff]  }
 0x3f2   : > { %7207 = vmatpush1.bf16.msra.mxu0 %v16352_v13  ;;  %8943 = vmatprep.subr.bf16.mxu1 %v16405_v14  ;;  %v16453_v13 = vld [vmem:[%s17102_s23 + $0xd0] ss:$72 sps:$4 sm:$0xff]   ;;  %v16454_v14 = vld [vmem:[%s17102_s23 + $0x164] ss:$72 sps:$4 sm:$0xff]  }
 0x3f3   : > { %7208 = vmatprep.subr.bf16.mxu0 %v16366_v15  ;;  %8944 = vmatpush1.bf16.msra.mxu1 %v16403_v16  ;;  %v16484_v15 = vld [vmem:[%s20587_s2 + $0x40] ss:$16 sps:$4 sm:$0xff]   ;;  %v16510_v16 = vld [vmem:[%s20587_s2 + $0x4c] ss:$16 sps:$4 sm:$0xff]  }
 0x3f4   : > { %8945 = vmatprep.subr.bf16.mxu1 %v16408_v17  ;;  %v16508_v17 = vld [vmem:[%s20587_s2 + $0x48] ss:$16 sps:$4 sm:$0xff]  }
 0x3f6   : > { %7209 = vmatpush1.bf16.msra.mxu0 %v16364_v18  ;;  %v16456_v18 = vld [vmem:[%s17102_s23 + $0x160] ss:$72 sps:$4 sm:$0xff]  }
 0x3f7   : > { %7210 = vmatprep.subr.bf16.mxu0 %v16378_v19  ;;  %8946 = vmatpush1.bf16.msra.mxu1 %v16406_v20  ;;  %v16457_v19 = vld [vmem:[%s17102_s23 + $0x1f4] ss:$72 sps:$4 sm:$0xff]   ;;  %v16459_v20 = vld [vmem:[%s17102_s23 + $0x1f0] ss:$72 sps:$4 sm:$0xff]  }
 0x3f8   : > { %7080 = vmatmul.mubr.bf16.gmra.mrb[20].mxu0 %v16333_v21  ;;  %8817 = vmatmul.mubr.bf16.gmra.mrb[20].mxu1 %v16333_v21  ;;  %v16460_v21 = vld [vmem:[%s17102_s23 + $0x284] ss:$72 sps:$4 sm:$0xff]  }
 0x3f9   : > { %7089 = vmatprep.mubr.bf16.mxu0 %v16337_v22  ;;  %8826 = vmatprep.mubr.bf16.mxu1 %v16337_v22  ;;  %v16462_v22 = vld [vmem:[%s17102_s23 + $0x280] ss:$72 sps:$4 sm:$0xff]  }
 0x3fa   : > { %7211 = vmatpush1.bf16.msra.mxu0 %v16376_v23  ;;  %8947 = vmatprep.subr.bf16.mxu1 %v16417_v24  ;;  %v16463_v23 = vld [vmem:[%s17102_s23 + $0x314] ss:$72 sps:$4 sm:$0xff]   ;;  %v16465_v24 = vld [vmem:[%s17102_s23 + $0x310] ss:$72 sps:$4 sm:$0xff]  }
 0x3fb   : > { %7212 = vmatprep.subr.bf16.mxu0 %v16390_v25  ;;  %8948 = vmatpush1.bf16.msra.mxu1 %v16415_v26  ;;  %v16469_v25 = vld [vmem:[%s17102_s23 + $0x3a4] ss:$72 sps:$4 sm:$0xff]   ;;  %v16471_v26 = vld [vmem:[%s17102_s23 + $0x3a0] ss:$72 sps:$4 sm:$0xff]  }
 0x3fc   : > { %8949 = vmatprep.subr.bf16.mxu1 %v16420_v27  ;;  %v16472_v27 = vld [vmem:[%s17102_s23 + $0x434] ss:$72 sps:$4 sm:$0xff]  }
 0x3fe   : > { %7213 = vmatpush1.bf16.msra.mxu0 %v16388_v28  ;;  %v16474_v28 = vld [vmem:[%s17102_s23 + $0x430] ss:$72 sps:$4 sm:$0xff]  }
 0x3ff   : > { %7214 = vmatprep.subr.bf16.mxu0 %v16402_v29  ;;  %8950 = vmatpush1.bf16.msra.mxu1 %v16418_v30  ;;  %v16475_v29 = vld [vmem:[%s17102_s23 + $0x4c4] ss:$72 sps:$4 sm:$0xff]   ;;  %v16477_v30 = vld [vmem:[%s17102_s23 + $0x4c0] ss:$72 sps:$4 sm:$0xff]  }
 0x400   : > { %7090 = vmatmul.mubr.bf16.gmra.mrb[24].mxu0 %v16339_v31  ;;  %8827 = vmatmul.mubr.bf16.gmra.mrb[24].mxu1 %v16339_v31  ;;  %v16478_v31 = vld [vmem:[%s17102_s23 + $0x554] ss:$72 sps:$4 sm:$0xff]  }
 0x401   : > { %7099 = vmatprep.mubr.bf16.mxu0 %v16343_v32  ;;  %8836 = vmatprep.mubr.bf16.mxu1 %v16343_v32  ;;  %v16480_v32 = vld [vmem:[%s17102_s23 + $0x550] ss:$72 sps:$4 sm:$0xff]  }
 0x402   : > { %7215 = vmatpush1.bf16.msra.mxu0 %v16400_v33  ;;  %8951 = vmatprep.subr.bf16.mxu1 %v16429_v34  ;;  %v16481_v33 = vld [vmem:[%s17102_s23 + $0x5e4] ss:$72 sps:$4 sm:$0xff]   ;;  %v16483_v34 = vld [vmem:[%s17102_s23 + $0x5e0] ss:$72 sps:$4 sm:$0xff]  }
 0x403   : > { %7216 = vmatprep.subr.bf16.mxu0 %v16414_v35  ;;  %8952 = vmatpush1.bf16.msra.mxu1 %v16427_v36  ;;  %v16487_v35 = vld [vmem:[%s17102_s23 + $0x674] ss:$72 sps:$4 sm:$0xff]   ;;  %v16489_v36 = vld [vmem:[%s17102_s23 + $0x670] ss:$72 sps:$4 sm:$0xff]  }
 0x404   : > { %8953 = vmatprep.subr.bf16.mxu1 %v16432_v37  ;;  %v16490_v37 = vld [vmem:[%s17102_s23 + $0x704] ss:$72 sps:$4 sm:$0xff]  }
 0x406   : > { %7217 = vmatpush1.bf16.msra.mxu0 %v16412_v38  ;;  %v16525_v38 = vld [vmem:[%s20590_s5 + $0x4] ss:$8 sps:$4 sm:$0xff]  }
 0x407   : > { %7218 = vmatprep.subr.bf16.mxu0 %v16426_v39  ;;  %8954 = vmatpush1.bf16.msra.mxu1 %v16430_v40  ;;  %v16492_v39 = vld [vmem:[%s17102_s23 + $0x700] ss:$72 sps:$4 sm:$0xff]   ;;  %v16493_v40 = vld [vmem:[%s17102_s23 + $0x794] ss:$72 sps:$4 sm:$0xff]  }
 0x408   : > { %7100 = vmatmul.mubr.bf16.gmra.mrb[28].mxu0 %v16345_v41  ;;  %8837 = vmatmul.mubr.bf16.gmra.mrb[28].mxu1 %v16345_v41  ;;  %v16495_v41 = vld [vmem:[%s17102_s23 + $0x790] ss:$72 sps:$4 sm:$0xff]  }
 0x409   : > { %7109 = vmatprep.mubr.bf16.mxu0 %v16349_v42  ;;  %8846 = vmatprep.mubr.bf16.mxu1 %v16349_v42  ;;  %v16496_v42 = vld [vmem:[%s17102_s23 + $0x824] ss:$72 sps:$4 sm:$0xff]  }
 0x40a   : > { %7219 = vmatpush1.bf16.msra.mxu0 %v16424_v43  ;;  %8955 = vmatprep.subr.bf16.mxu1 %v16441_v44  ;;  %v16498_v43 = vld [vmem:[%s17102_s23 + $0x820] ss:$72 sps:$4 sm:$0xff]   ;;  %v16502_v44 = vld [vmem:[%s17102_s23 + $0x8b4] ss:$72 sps:$4 sm:$0xff]  }
 0x40b   : > { %7220 = vmatprep.subr.bf16.mxu0 %v16438_v45  ;;  %8956 = vmatpush1.bf16.msra.mxu1 %v16439_v46  ;;  %v16504_v45 = vld [vmem:[%s17102_s23 + $0x8b0] ss:$72 sps:$4 sm:$0xff]   ;;  %v16887_v46 = vmov 0  }
 0x40c   : > { %8957 = vmatprep.subr.bf16.mxu1 %v16444_v47  ;;  %v16511_v47 = vld [vmem:[%s18965_s22] sm:$0xff]  }
 0x40e   : > { %7221 = vmatpush1.bf16.msra.mxu0 %v16436_v48  ;;  %v16523_v48 = vld [vmem:[%s20590_s5] ss:$8 sps:$4 sm:$0xff]  }
 0x40f   : > { %8958 = vmatpush1.bf16.msra.mxu1 %v16442_v49  ;;  %9309 = vmatprep.subr.bf16.mxu0 %v16450_v50  ;;  %v16529_v49 = vld [vmem:[%s20590_s5 + $0x14] ss:$8 sps:$4 sm:$0xff]   ;;  %v16527_v50 = vld [vmem:[%s20590_s5 + $0x10] ss:$8 sps:$4 sm:$0xff]  }
 0x410   : > { %7110 = vmatmul.mubr.bf16.gmra.mrb[32].mxu0 %v16351_v51  ;;  %8847 = vmatmul.mubr.bf16.gmra.mrb[32].mxu1 %v16351_v51  ;;  %v16533_v51 = vld [vmem:[%s20590_s5 + $0x24] ss:$8 sps:$4 sm:$0xff]  }
 0x411   : > { %7119 = vmatprep.mubr.bf16.mxu0 %v16361_v52  ;;  %8856 = vmatprep.mubr.bf16.mxu1 %v16361_v52  ;;  %v16512_v52 = vld [vmem:[%s18965_s22 + $0x8] sm:$0xff]  }
 0x412   : > { %9502 = vmatprep.subr.bf16.mxu1 %v16501_v1  ;;  %v16548_v1 = vld [vmem:[%s20590_s5 + $0x70] ss:$8 sps:$4 sm:$0xff]  }
 0x418   : > { %7120 = vmatmul.mubr.bf16.gmra.mrb[36].mxu0 %v16363_v53  ;;  %8857 = vmatmul.mubr.bf16.gmra.mrb[36].mxu1 %v16363_v53  ;;  %v16531_v53 = vld [vmem:[%s20590_s5 + $0x20] ss:$8 sps:$4 sm:$0xff]  }
 0x419   : > { %7129 = vmatprep.mubr.bf16.mxu0 %v16373_v54  ;;  %8866 = vmatprep.mubr.bf16.mxu1 %v16373_v54  ;;  %v16537_v54 = vld [vmem:[%s20590_s5 + $0x34] ss:$8 sps:$4 sm:$0xff]  }
 0x420   : > { %7130 = vmatmul.mubr.bf16.gmra.mrb[40].mxu0 %v16375_v55  ;;  %8867 = vmatmul.mubr.bf16.gmra.mrb[40].mxu1 %v16375_v55  ;;  %v16535_v55 = vld [vmem:[%s20590_s5 + $0x30] ss:$8 sps:$4 sm:$0xff]  }
 0x421   : > { %7139 = vmatprep.mubr.bf16.mxu0 %v16385_v56  ;;  %8876 = vmatprep.mubr.bf16.mxu1 %v16385_v56  ;;  %v16541_v56 = vld [vmem:[%s20590_s5 + $0x44] ss:$8 sps:$4 sm:$0xff]  }
 0x428   : > { %7140 = vmatmul.mubr.bf16.gmra.mrb[44].mxu0 %v16387_v57  ;;  %8877 = vmatmul.mubr.bf16.gmra.mrb[44].mxu1 %v16387_v57  ;;  %v16513_v57 = vld [vmem:[%s18965_s22 + $0x10] sm:$0xff]  }
 0x429   : > { %7149 = vmatprep.mubr.bf16.mxu0 %v16397_v58  ;;  %8886 = vmatprep.mubr.bf16.mxu1 %v16397_v58  ;;  %v16539_v58 = vld [vmem:[%s20590_s5 + $0x40] ss:$8 sps:$4 sm:$0xff]  }
 0x430   : > { %7150 = vmatmul.mubr.bf16.gmra.mrb[48].mxu0 %v16399_v59  ;;  %8887 = vmatmul.mubr.bf16.gmra.mrb[48].mxu1 %v16399_v59  ;;  %v16544_v59 = vld [vmem:[%s20590_s5 + $0x54] ss:$8 sps:$4 sm:$0xff]  }
 0x431   : > { %7159 = vmatprep.mubr.bf16.mxu0 %v16409_v60  ;;  %8896 = vmatprep.mubr.bf16.mxu1 %v16409_v60  ;;  %v16542_v60 = vld [vmem:[%s20590_s5 + $0x50] ss:$8 sps:$4 sm:$0xff]  }
 0x438   : > { %7160 = vmatmul.mubr.bf16.gmra.mrb[52].mxu0 %v16411_v61  ;;  %8897 = vmatmul.mubr.bf16.gmra.mrb[52].mxu1 %v16411_v61  ;;  %v16547_v61 = vld [vmem:[%s20590_s5 + $0x64] ss:$8 sps:$4 sm:$0xff]  }
 0x439   : > { %7169 = vmatprep.mubr.bf16.mxu0 %v16421_v62  ;;  %8906 = vmatprep.mubr.bf16.mxu1 %v16421_v62  ;;  %v16514_v62 = vld [vmem:[%s18965_s22 + $0x18] sm:$0xff]  }
 0x440   : > { %7170 = vmatmul.mubr.bf16.gmra.mrb[56].mxu0 %v16423_v63  ;;  %8907 = vmatmul.mubr.bf16.gmra.mrb[56].mxu1 %v16423_v63  ;;  %v16545_v63 = vld [vmem:[%s20590_s5 + $0x60] ss:$8 sps:$4 sm:$0xff]  }
 0x441   : > { %7179 = vmatprep.mubr.bf16.mxu0 %v16433_v0  ;;  %8916 = vmatprep.mubr.bf16.mxu1 %v16433_v0  ;;  %v16550_v0 = vld [vmem:[%s20590_s5 + $0x74] ss:$8 sps:$4 sm:$0xff]  }
 0x448   : > { %7180 = vmatmul.mubr.bf16.gmra.mrb[60].mxu0 %v16435_v2  ;;  %8917 = vmatmul.mubr.bf16.gmra.mrb[60].mxu1 %v16435_v2  ;;  %v16553_v2 = vld [vmem:[%s20590_s5 + $0x84] ss:$8 sps:$4 sm:$0xff]  }
 0x449   : > { %7222 = vmatprep.mubr.bf16.mxu0 %v16447_v3  ;;  %8959 = vmatprep.mubr.bf16.mxu1 %v16447_v3  ;;  %v16515_v3 = vld [vmem:[%s18965_s22 + $0x20] sm:$0xff]  }
 0x450   : > { %7223 = vmatmul.mubr.bf16.vlgmr.msra.gmra.mrb[0].mxu0 %v16445_v4  ;;  %8960 = vmatmul.mubr.bf16.vlgmr.msra.gmra.mrb[0].mxu1 %v16445_v4  ;;  %v16551_v4 = vld [vmem:[%s20590_s5 + $0x80] ss:$8 sps:$4 sm:$0xff]  }
 0x451   : > { %9310 = vmatpush1.bf16.msra.mxu0 %v16448_v5  ;;  %7232 = vmatprep.mubr.bf16.mxu0 %v16451_v6  ;;  %v16556_v5 = vld [vmem:[%s20590_s5 + $0x94] ss:$8 sps:$4 sm:$0xff]  }
 0x452   : > { %8969 = vmatprep.mubr.bf16.mxu1 %v16451_v6  ;;  %9311 = vmatprep.subr.bf16.mxu0 %v16468_v7  ;;  %v16554_v6 = vld [vmem:[%s20590_s5 + $0x90] ss:$8 sps:$4 sm:$0xff]   ;;  %v16559_v7 = vld [vmem:[%s20590_s5 + $0xa4] ss:$8 sps:$4 sm:$0xff]  }
 0x453   : > { %9503 = vmatpush1.bf16.msra.mxu1 %v16499_v8  ;;  %v16516_v8 = vld [vmem:[%s18965_s22 + $0x28] sm:$0xff]  }
 0x454   : > { %9504 = vmatprep.subr.bf16.mxu1 %v16507_v9  ;;  %v16557_v9 = vld [vmem:[%s20590_s5 + $0xa0] ss:$8 sps:$4 sm:$0xff]  }
 0x455   : > { %9312 = vmatpush1.bf16.msra.mxu0 %v16466_v10  ;;  %v16562_v10 = vld [vmem:[%s20590_s5 + $0xb4] ss:$8 sps:$4 sm:$0xff]  }
 0x456   : > { %9313 = vmatprep.subr.bf16.mxu0 %v16486_v11  ;;  %v16560_v11 = vld [vmem:[%s20590_s5 + $0xb0] ss:$8 sps:$4 sm:$0xff]  }
 0x457   : > { %9505 = vmatpush1.bf16.msra.mxu1 %v16505_v12  ;;  %v16565_v12 = vld [vmem:[%s20590_s5 + $0xc4] ss:$8 sps:$4 sm:$0xff]  }
 0x458   : > { %7233 = vmatmul.mubr.bf16.gmra.mrb[4].mxu0 %v16453_v13  ;;  %8970 = vmatmul.mubr.bf16.gmra.mrb[4].mxu1 %v16453_v13  ;;  %v16517_v13 = vld [vmem:[%s18965_s22 + $0x30] sm:$0xff]  }
 0x459   : > { %7242 = vmatprep.mubr.bf16.mxu0 %v16454_v14  ;;  %8979 = vmatprep.mubr.bf16.mxu1 %v16454_v14  ;;  %v16563_v14 = vld [vmem:[%s20590_s5 + $0xc0] ss:$8 sps:$4 sm:$0xff]  }
 0x45a   : > { %9314 = vmatpush1.bf16.msra.mxu0 %v16484_v15  ;;  %9506 = vmatprep.subr.bf16.mxu1 %v16510_v16  ;;  %v16568_v15 = vld [vmem:[%s20590_s5 + $0xd4] ss:$8 sps:$4 sm:$0xff]   ;;  %v16566_v16 = vld [vmem:[%s20590_s5 + $0xd0] ss:$8 sps:$4 sm:$0xff]  }
 0x45b   : > { %9507 = vmatpush1.bf16.msra.mxu1 %v16508_v17  ;;  %10305 = vmatprep.subr.bf16.mxu0 %v16525_v38  ;;  %v16571_v17 = vld [vmem:[%s20590_s5 + $0xe4] ss:$8 sps:$4 sm:$0xff]  }
 0x460   : > { %7243 = vmatmul.mubr.bf16.gmra.mrb[8].mxu0 %v16456_v18  ;;  %8980 = vmatmul.mubr.bf16.gmra.mrb[8].mxu1 %v16456_v18  ;;  %v16518_v18 = vld [vmem:[%s18965_s22 + $0x38] sm:$0xff]  }
 0x461   : > { %7252 = vmatprep.mubr.bf16.mxu0 %v16457_v19  ;;  %8989 = vmatprep.mubr.bf16.mxu1 %v16457_v19  ;;  %v16569_v19 = vld [vmem:[%s20590_s5 + $0xe0] ss:$8 sps:$4 sm:$0xff]  }
 0x468   : > { %7253 = vmatmul.mubr.bf16.gmra.mrb[12].mxu0 %v16459_v20  ;;  %8990 = vmatmul.mubr.bf16.gmra.mrb[12].mxu1 %v16459_v20  ;;  %v16519_v20 = vld [vmem:[%s18965_s22 + $0x40] sm:$0xff]  }
 0x469   : > { %7262 = vmatprep.mubr.bf16.mxu0 %v16460_v21  ;;  %8999 = vmatprep.mubr.bf16.mxu1 %v16460_v21  ;;  %v16520_v21 = vld [vmem:[%s18965_s22 + $0x48] sm:$0xff]  }
 0x470   : > { %7263 = vmatmul.mubr.bf16.gmra.mrb[16].mxu0 %v16462_v22  ;;  %9000 = vmatmul.mubr.bf16.gmra.mrb[16].mxu1 %v16462_v22  ;;  %v16521_v22 = vld [vmem:[%s18965_s22 + $0x50] sm:$0xff]  }
 0x471   : > { %7272 = vmatprep.mubr.bf16.mxu0 %v16463_v23  ;;  %9009 = vmatprep.mubr.bf16.mxu1 %v16463_v23  ;;  %v16522_v23 = vld [vmem:[%s18965_s22 + $0x58] sm:$0xff]  }
 0x478   : > { %7273 = vmatmul.mubr.bf16.gmra.mrb[20].mxu0 %v16465_v24  ;;  %9010 = vmatmul.mubr.bf16.gmra.mrb[20].mxu1 %v16465_v24  ;;  %v16574_v24 = vld [vmem:[%s20590_s5 + $0xf4] ss:$8 sps:$4 sm:$0xff]  }
 0x479   : > { %7282 = vmatprep.mubr.bf16.mxu0 %v16469_v25  ;;  %9019 = vmatprep.mubr.bf16.mxu1 %v16469_v25  ;;  %v16572_v25 = vld [vmem:[%s20590_s5 + $0xf0] ss:$8 sps:$4 sm:$0xff]  }
 0x480   : > { %7283 = vmatmul.mubr.bf16.gmra.mrb[24].mxu0 %v16471_v26  ;;  %9020 = vmatmul.mubr.bf16.gmra.mrb[24].mxu1 %v16471_v26  ;;  %v16526_v26 = vld [vmem:[%s18965_s22 + $0x60] sm:$0xff]  }
 0x481   : > { %7292 = vmatprep.mubr.bf16.mxu0 %v16472_v27  ;;  %9029 = vmatprep.mubr.bf16.mxu1 %v16472_v27  ;;  %v16577_v27 = vld [vmem:[%s20590_s5 + $0x104] ss:$8 sps:$4 sm:$0xff]  }
 0x488   : > { %7293 = vmatmul.mubr.bf16.gmra.mrb[28].mxu0 %v16474_v28  ;;  %9030 = vmatmul.mubr.bf16.gmra.mrb[28].mxu1 %v16474_v28  ;;  %v16530_v28 = vld [vmem:[%s18965_s22 + $0x68] sm:$0xff]  }
 0x489   : > { %7302 = vmatprep.mubr.bf16.mxu0 %v16475_v29  ;;  %9039 = vmatprep.mubr.bf16.mxu1 %v16475_v29  ;;  %v16534_v29 = vld [vmem:[%s18965_s22 + $0x70] sm:$0xff]  }
 0x490   : > { %7303 = vmatmul.mubr.bf16.gmra.mrb[32].mxu0 %v16477_v30  ;;  %9040 = vmatmul.mubr.bf16.gmra.mrb[32].mxu1 %v16477_v30  ;;  %v16538_v30 = vld [vmem:[%s18965_s22 + $0x78] sm:$0xff]  }
 0x491   : > { %7312 = vmatprep.mubr.bf16.mxu0 %v16478_v31  ;;  %9049 = vmatprep.mubr.bf16.mxu1 %v16478_v31  ;;  %v9697_v31 = vlaneseq }
 0x498   : > { %7313 = vmatmul.mubr.bf16.gmra.mrb[36].mxu0 %v16480_v32  ;;  %9050 = vmatmul.mubr.bf16.gmra.mrb[36].mxu1 %v16480_v32  ;;  %v19206_v32 = vshrl.u32 %v9697_v31, 7 }
 0x499   : > { %7322 = vmatprep.mubr.bf16.mxu0 %v16481_v33  ;;  %9059 = vmatprep.mubr.bf16.mxu1 %v16481_v33 }
 0x49a   : > { %20623 = vst [vmem:[#allocation3_spill] sm:$0xff] %v19206_v32  ;;  %v19209_v33 = vsub.s32 0, %v19206_v32 }
 0x49c   : > { %20624 = vst [vmem:[#allocation4_spill] sm:$0xff] %v19209_v33 }
 0x4a0   : > { %7323 = vmatmul.mubr.bf16.gmra.mrb[40].mxu0 %v16483_v34  ;;  %9060 = vmatmul.mubr.bf16.gmra.mrb[40].mxu1 %v16483_v34  ;;  %v20598_v34 = vsub.s32 2, %v19206_v32 }
 0x4a1   : > { %7332 = vmatprep.mubr.bf16.mxu0 %v16487_v35  ;;  %9069 = vmatprep.mubr.bf16.mxu1 %v16487_v35  ;;  %v9695_v35 = vld [vmem:[%s20589_s4] sm:$0xf] }
 0x4a2   : > { %v19220_v38 = vrot.slane %v9695_v35, %v19209_v33 }
 0x4a8   : > { %7333 = vmatmul.mubr.bf16.gmra.mrb[44].mxu0 %v16489_v36  ;;  %9070 = vmatmul.mubr.bf16.gmra.mrb[44].mxu1 %v16489_v36  ;;  %v19216_v36 = vsub.s32 1, %v19206_v32 }
 0x4a9   : > { %7342 = vmatprep.mubr.bf16.mxu0 %v16490_v37  ;;  %9079 = vmatprep.mubr.bf16.mxu1 %v16490_v37  ;;  %v20597_v37 = vsub.s32 3, %v19206_v32 }
 0x4aa   : > { %20625 = vst [vmem:[#allocation5_spill] sm:$0xff] %v19216_v36 }
 0x4b0   : > { %7343 = vmatmul.mubr.bf16.gmra.mrb[48].mxu0 %v16492_v39  ;;  %9080 = vmatmul.mubr.bf16.gmra.mrb[48].mxu1 %v16492_v39  ;;  %v19224_v39 = vrot.slane %v9695_v35, %v20598_v34 }
 0x4b1   : > { %7352 = vmatprep.mubr.bf16.mxu0 %v16493_v40  ;;  %9089 = vmatprep.mubr.bf16.mxu1 %v16493_v40 }
 0x4b8   : > { %7353 = vmatmul.mubr.bf16.gmra.mrb[52].mxu0 %v16495_v41  ;;  %9090 = vmatmul.mubr.bf16.gmra.mrb[52].mxu1 %v16495_v41 }
 0x4b9   : > { %7362 = vmatprep.mubr.bf16.mxu0 %v16496_v42  ;;  %9099 = vmatprep.mubr.bf16.mxu1 %v16496_v42  ;;  %v19227_v42 = vrot.slane %v9695_v35, %v19216_v36 }
 0x4c0   : > { %7363 = vmatmul.mubr.bf16.gmra.mrb[56].mxu0 %v16498_v43  ;;  %9100 = vmatmul.mubr.bf16.gmra.mrb[56].mxu1 %v16498_v43  ;;  %v19231_v43 = vrot.slane %v9695_v35, %v20597_v37 }
 0x4c1   : > { %7372 = vmatprep.mubr.bf16.mxu0 %v16502_v44  ;;  %9109 = vmatprep.mubr.bf16.mxu1 %v16502_v44 }
 0x4c8   : > { %7373 = vmatmul.mubr.bf16.gmra.mrb[60].mxu0 %v16504_v45  ;;  %9110 = vmatmul.mubr.bf16.gmra.mrb[60].mxu1 %v16504_v45 }
 0x4c9   : > { %9341 = vmatprep.mubr.bf16.mxu0 %v16887_v46  ;;  %9534 = vmatprep.mubr.bf16.mxu1 %v16887_v46 }
 0x4d0   : > { %13488 = vmatmul.mubr.msk.bf16.vlgmr.msra.gmra.mrb[0].mxu0 %vm9260_vm0, %v16511_v47  ;;  %13504 = vmatmul.mubr.msk.bf16.vlgmr.msra.gmra.mrb[0].mxu1 %vm9260_vm0, %v16511_v47 }
 0x4d1   : > { %9351 = vmatprep.mubr.bf16.mxu0 %v16887_v46  ;;  %9544 = vmatprep.mubr.bf16.mxu1 %v16887_v46 }
 0x4d2   : > { %10306 = vmatpush1.bf16.msra.mxu0 %v16523_v48 }
 0x4d3   : > { %10307 = vmatprep.subr.bf16.mxu0 %v16529_v49 }
 0x4d6   : > { %10308 = vmatpush1.bf16.msra.mxu0 %v16527_v50 }
 0x4d7   : > { %10309 = vmatprep.subr.bf16.mxu0 %v16533_v51 }
 0x4d8   : > { %13489 = vmatmul.mubr.msk.bf16.gmra.mrb[4].mxu0 %vm9260_vm0, %v16512_v52  ;;  %13505 = vmatmul.mubr.msk.bf16.gmra.mrb[4].mxu1 %vm9260_vm0, %v16512_v52 }
 0x4d9   : > { %9361 = vmatprep.mubr.bf16.mxu0 %v16887_v46  ;;  %9554 = vmatprep.mubr.bf16.mxu1 %v16887_v46 }
 0x4da   : > { %10310 = vmatpush1.bf16.msra.mxu0 %v16531_v53 }
 0x4db   : > { %10311 = vmatprep.subr.bf16.mxu0 %v16537_v54 }
 0x4de   : > { %10312 = vmatpush1.bf16.msra.mxu0 %v16535_v55 }
 0x4df   : > { %10313 = vmatprep.subr.bf16.mxu0 %v16541_v56 }
 0x4e0   : > { %13490 = vmatmul.mubr.msk.bf16.gmra.mrb[8].mxu0 %vm9260_vm0, %v16513_v57  ;;  %13506 = vmatmul.mubr.msk.bf16.gmra.mrb[8].mxu1 %vm9260_vm0, %v16513_v57 }
 0x4e1   : > { %9371 = vmatprep.mubr.bf16.mxu0 %v16887_v46  ;;  %9564 = vmatprep.mubr.bf16.mxu1 %v16887_v46 }
 0x4e2   : > { %10314 = vmatpush1.bf16.msra.mxu0 %v16539_v58 }
 0x4e3   : > { %10315 = vmatprep.subr.bf16.mxu0 %v16544_v59 }
 0x4e6   : > { %10316 = vmatpush1.bf16.msra.mxu0 %v16542_v60 }
 0x4e7   : > { %10317 = vmatprep.subr.bf16.mxu0 %v16547_v61 }
 0x4e8   : > { %13491 = vmatmul.mubr.msk.bf16.gmra.mrb[12].mxu0 %vm9260_vm0, %v16514_v62  ;;  %13507 = vmatmul.mubr.msk.bf16.gmra.mrb[12].mxu1 %vm9260_vm0, %v16514_v62  ;;  %v16575_v62 = vld [vmem:[%s20590_s5 + $0x100] ss:$8 sps:$4 sm:$0xff]  }
 0x4e9   : > { %9381 = vmatprep.mubr.bf16.mxu0 %v16887_v46  ;;  %9574 = vmatprep.mubr.bf16.mxu1 %v16887_v46 }
 0x4ea   : > { %10318 = vmatpush1.bf16.msra.mxu0 %v16545_v63  ;;  %v16580_v63 = vld [vmem:[%s20590_s5 + $0x114] ss:$8 sps:$4 sm:$0xff]  }
 0x4eb   : > { %10319 = vmatprep.subr.bf16.mxu0 %v16550_v0 }
 0x4ee   : > { %10320 = vmatpush1.bf16.msra.mxu0 %v16548_v1 }
 0x4ef   : > { %10321 = vmatprep.subr.bf16.mxu0 %v16553_v2 }
 0x4f0   : > { %13492 = vmatmul.mubr.msk.bf16.gmra.mrb[16].mxu0 %vm9260_vm0, %v16515_v3  ;;  %13508 = vmatmul.mubr.msk.bf16.gmra.mrb[16].mxu1 %vm9260_vm0, %v16515_v3 }
 0x4f1   : > { %9391 = vmatprep.mubr.bf16.mxu0 %v16887_v46  ;;  %9584 = vmatprep.mubr.bf16.mxu1 %v16887_v46 }
 0x4f2   : > { %10322 = vmatpush1.bf16.msra.mxu0 %v16551_v4 }
 0x4f3   : > { %10323 = vmatprep.subr.bf16.mxu0 %v16556_v5 }
 0x4f6   : > { %10324 = vmatpush1.bf16.msra.mxu0 %v16554_v6  ;;  %v16578_v6 = vld [vmem:[%s20590_s5 + $0x110] ss:$8 sps:$4 sm:$0xff]  }
 0x4f7   : > { %10325 = vmatprep.subr.bf16.mxu0 %v16559_v7 }
 0x4f8   : > { %13493 = vmatmul.mubr.msk.bf16.gmra.mrb[20].mxu0 %vm9260_vm0, %v16516_v8  ;;  %13509 = vmatmul.mubr.msk.bf16.gmra.mrb[20].mxu1 %vm9260_vm0, %v16516_v8 }
 0x4f9   : > { %9401 = vmatprep.mubr.bf16.mxu0 %v16887_v46  ;;  %9594 = vmatprep.mubr.bf16.mxu1 %v16887_v46 }
 0x4fa   : > { %10326 = vmatpush1.bf16.msra.mxu0 %v16557_v9 }
 0x4fb   : > { %10327 = vmatprep.subr.bf16.mxu0 %v16562_v10 }
 0x4fe   : > { %10328 = vmatpush1.bf16.msra.mxu0 %v16560_v11 }
 0x4ff   : > { %10329 = vmatprep.subr.bf16.mxu0 %v16565_v12 }
 0x500   : > { %13494 = vmatmul.mubr.msk.bf16.gmra.mrb[24].mxu0 %vm9260_vm0, %v16517_v13  ;;  %13510 = vmatmul.mubr.msk.bf16.gmra.mrb[24].mxu1 %vm9260_vm0, %v16517_v13  ;;  %v16583_v13 = vld [vmem:[%s20590_s5 + $0x124] ss:$8 sps:$4 sm:$0xff]  }
 0x501   : > { %9411 = vmatprep.mubr.bf16.mxu0 %v16887_v46  ;;  %9604 = vmatprep.mubr.bf16.mxu1 %v16887_v46 }
 0x502   : > { %10330 = vmatpush1.bf16.msra.mxu0 %v16563_v14 }
 0x503   : > { %10331 = vmatprep.subr.bf16.mxu0 %v16568_v15 }
 0x506   : > { %10332 = vmatpush1.bf16.msra.mxu0 %v16566_v16 }
 0x507   : > { %10333 = vmatprep.subr.bf16.mxu0 %v16571_v17 }
 0x508   : > { %13495 = vmatmul.mubr.msk.bf16.gmra.mrb[28].mxu0 %vm9260_vm0, %v16518_v18  ;;  %13511 = vmatmul.mubr.msk.bf16.gmra.mrb[28].mxu1 %vm9260_vm0, %v16518_v18 }
 0x509   : > { %9421 = vmatprep.mubr.bf16.mxu0 %v16887_v46  ;;  %9614 = vmatprep.mubr.bf16.mxu1 %v16887_v46 }
 0x50a   : > { %10334 = vmatpush1.bf16.msra.mxu0 %v16569_v19 }
 0x50b   : > { %10335 = vmatprep.subr.bf16.mxu0 %v16574_v24 }
 0x50e   : > { %10336 = vmatpush1.bf16.msra.mxu0 %v16572_v25 }
 0x50f   : > { %10498 = vmatprep.subr.bf16.mxu0 %v16577_v27 }
 0x510   : > { %13496 = vmatmul.mubr.msk.bf16.gmra.mrb[32].mxu0 %vm9260_vm0, %v16519_v20  ;;  %13512 = vmatmul.mubr.msk.bf16.gmra.mrb[32].mxu1 %vm9260_vm0, %v16519_v20 }
 0x511   : > { %9431 = vmatprep.mubr.bf16.mxu0 %v16887_v46  ;;  %9624 = vmatprep.mubr.bf16.mxu1 %v16887_v46 }
 0x518   : > { %13497 = vmatmul.mubr.msk.bf16.gmra.mrb[36].mxu0 %vm9260_vm0, %v16520_v21  ;;  %13513 = vmatmul.mubr.msk.bf16.gmra.mrb[36].mxu1 %vm9260_vm0, %v16520_v21 }
 0x519   : > { %9441 = vmatprep.mubr.bf16.mxu0 %v16887_v46  ;;  %9634 = vmatprep.mubr.bf16.mxu1 %v16887_v46 }
 0x520   : > { %13498 = vmatmul.mubr.msk.bf16.gmra.mrb[40].mxu0 %vm9260_vm0, %v16521_v22  ;;  %13514 = vmatmul.mubr.msk.bf16.gmra.mrb[40].mxu1 %vm9260_vm0, %v16521_v22  ;;  %v16581_v22 = vld [vmem:[%s20590_s5 + $0x120] ss:$8 sps:$4 sm:$0xff]  }
 0x521   : > { %9451 = vmatprep.mubr.bf16.mxu0 %v16887_v46  ;;  %9644 = vmatprep.mubr.bf16.mxu1 %v16887_v46 }
 0x528   : > { %13499 = vmatmul.mubr.msk.bf16.gmra.mrb[44].mxu0 %vm9260_vm0, %v16522_v23  ;;  %13515 = vmatmul.mubr.msk.bf16.gmra.mrb[44].mxu1 %vm9260_vm0, %v16522_v23  ;;  %v16586_v23 = vld [vmem:[%s20590_s5 + $0x134] ss:$8 sps:$4 sm:$0xff]  }
 0x529   : > { %9461 = vmatprep.mubr.bf16.mxu0 %v16887_v46  ;;  %9654 = vmatprep.mubr.bf16.mxu1 %v16887_v46 }
 0x530   : > { %13500 = vmatmul.mubr.msk.bf16.gmra.mrb[48].mxu0 %vm9260_vm0, %v16526_v26  ;;  %13516 = vmatmul.mubr.msk.bf16.gmra.mrb[48].mxu1 %vm9260_vm0, %v16526_v26 }
 0x531   : > { %9471 = vmatprep.mubr.bf16.mxu0 %v16887_v46  ;;  %9664 = vmatprep.mubr.bf16.mxu1 %v16887_v46 }
 0x538   : > { %13501 = vmatmul.mubr.msk.bf16.gmra.mrb[52].mxu0 %vm9260_vm0, %v16530_v28  ;;  %13517 = vmatmul.mubr.msk.bf16.gmra.mrb[52].mxu1 %vm9260_vm0, %v16530_v28 }
 0x539   : > { %9481 = vmatprep.mubr.bf16.mxu0 %v16887_v46  ;;  %9674 = vmatprep.mubr.bf16.mxu1 %v16887_v46 }
 0x540   : > { %13502 = vmatmul.mubr.msk.bf16.gmra.mrb[56].mxu0 %vm9260_vm0, %v16534_v29  ;;  %13518 = vmatmul.mubr.msk.bf16.gmra.mrb[56].mxu1 %vm9260_vm0, %v16534_v29 }
 0x541   : > { %9491 = vmatprep.mubr.bf16.mxu0 %v16887_v46  ;;  %9684 = vmatprep.mubr.bf16.mxu1 %v16887_v46 }
 0x548   : > { %13503 = vmatmul.mubr.msk.bf16.gmra.mrb[60].mxu0 %vm9260_vm0, %v16538_v30  ;;  %13519 = vmatmul.mubr.msk.bf16.gmra.mrb[60].mxu1 %vm9260_vm0, %v16538_v30  ;;  %v16584_v30 = vld [vmem:[%s20590_s5 + $0x130] ss:$8 sps:$4 sm:$0xff]  }
 0x5a3   : > { %v9343_v40 = vpop.f32.mrb[0].mxu0  ;;  %v9536_v41 = vpop.f32.mrb[0].mxu1 }
 0x5a4   : > { %v9345_v44 = vpop.f32.mrb[1].mxu0  ;;  %v9538_v45 = vpop.f32.mrb[1].mxu1  ;;  %v9717_v48 = vadd.f32 %v19220_v38, %v9343_v40  ;;  %v19235_v49 = vadd.f32 %v19224_v39, %v9536_v41 }
 0x5a5   : > { %v9347_v46 = vpop.f32.mrb[2].mxu0  ;;  %v9540_v47 = vpop.f32.mrb[2].mxu1  ;;  %v9718_v54 = vadd.f32 %v19227_v42, %v9345_v44  ;;  %v19243_v55 = vadd.f32 %v19231_v43, %v9538_v45 }
 0x5a6   : > { %v9721_v50 = vadd.f32 %v19220_v38, %v9347_v46  ;;  %v19239_v51 = vadd.f32 %v19224_v39, %v9540_v47  ;;  %v9349_v52 = vpop.f32.mrb[3].mxu0  ;;  %v9542_v53 = vpop.f32.mrb[3].mxu1  ;;  %v16589_v46 = vld [vmem:[%s20590_s5 + $0x144] ss:$8 sps:$4 sm:$0xff]  }
 0x5a7   : > { %v9722_v56 = vadd.f32 %v19227_v42, %v9349_v52  ;;  %v19247_v57 = vadd.f32 %v19231_v43, %v9542_v53 }
 0x5a8   : > { %v9845_v58 = vpack.c.bf16 %v9721_v50, %v9717_v48 }
 0x5a9   : > { %v9846_v60 = vpack.c.bf16 %v9722_v56, %v9718_v54 }
 0x5ab   : > { %v9353_v0 = vpop.f32.mrb[4].mxu0  ;;  %v9546_v1 = vpop.f32.mrb[4].mxu1  ;;  %10337 = vmatprep.mubr.bf16.mxu0 %v9846_v60  ;;  %v16587_v60 = vld [vmem:[%s20590_s5 + $0x140] ss:$8 sps:$4 sm:$0xff]  }
 0x5ac   : > { %v9355_v2 = vpop.f32.mrb[5].mxu0  ;;  %v9548_v3 = vpop.f32.mrb[5].mxu1  ;;  %10338 = vmatmul.mubr.bf16.vlgmr.msra.gmra.mrb[64].mxu0 %v9845_v58  ;;  %v9725_v7 = vadd.f32 %v19220_v38, %v9353_v0  ;;  %v19264_v8 = vadd.f32 %v19224_v39, %v9546_v1 }
 0x5ad   : > { %v9357_v4 = vpop.f32.mrb[6].mxu0  ;;  %v9550_v5 = vpop.f32.mrb[6].mxu1  ;;  %10499 = vmatpush1.bf16.msra.mxu0 %v16575_v62  ;;  %v9726_v14 = vadd.f32 %v19227_v42, %v9355_v2  ;;  %v19275_v15 = vadd.f32 %v19231_v43, %v9548_v3  ;;  %v16592_v62 = vld [vmem:[%s20590_s5 + $0x154] ss:$8 sps:$4 sm:$0xff]  }
 0x5ae   : > { %v9729_v9 = vadd.f32 %v19220_v38, %v9357_v4  ;;  %v19268_v10 = vadd.f32 %v19224_v39, %v9550_v5  ;;  %v9359_v11 = vpop.f32.mrb[7].mxu0  ;;  %v9552_v12 = vpop.f32.mrb[7].mxu1  ;;  %10500 = vmatprep.subr.bf16.mxu0 %v16580_v63  ;;  %v16590_v5 = vld [vmem:[%s20590_s5 + $0x150] ss:$8 sps:$4 sm:$0xff]  }
 0x5af   : > { %v9730_v16 = vadd.f32 %v19227_v42, %v9359_v11  ;;  %v19279_v17 = vadd.f32 %v19231_v43, %v9552_v12 }
 0x5b0   : > { %v9849_v18 = vpack.c.bf16 %v9729_v9, %v9725_v7 }
 0x5b1   : > { %v9850_v20 = vpack.c.bf16 %v9730_v16, %v9726_v14  ;;  %10501 = vmatpush1.bf16.msra.mxu0 %v16578_v6  ;;  %v16595_v14 = vld [vmem:[%s20590_s5 + $0x164] ss:$8 sps:$4 sm:$0xff]  }
 0x5b2   : > { %10502 = vmatprep.subr.bf16.mxu0 %v16583_v13 }
 0x5b3   : > { %v9363_v24 = vpop.f32.mrb[8].mxu0  ;;  %v9556_v25 = vpop.f32.mrb[8].mxu1  ;;  %10347 = vmatprep.mubr.bf16.mxu0 %v9850_v20 }
 0x5b4   : > { %v9365_v26 = vpop.f32.mrb[9].mxu0  ;;  %v9558_v27 = vpop.f32.mrb[9].mxu1  ;;  %10348 = vmatmul.mubr.bf16.gmra.mrb[68].mxu0 %v9849_v18  ;;  %v9733_v31 = vadd.f32 %v19220_v38, %v9363_v24  ;;  %v19296_v35 = vadd.f32 %v19224_v39, %v9556_v25 }
 0x5b5   : > { %v9367_v28 = vpop.f32.mrb[10].mxu0  ;;  %v9560_v29 = vpop.f32.mrb[10].mxu1  ;;  %10503 = vmatpush1.bf16.msra.mxu0 %v16581_v22  ;;  %v9734_v47 = vadd.f32 %v19227_v42, %v9365_v26  ;;  %v19307_v48 = vadd.f32 %v19231_v43, %v9558_v27  ;;  %v16593_v27 = vld [vmem:[%s20590_s5 + $0x160] ss:$8 sps:$4 sm:$0xff]  }
 0x5b6   : > { %v9737_v40 = vadd.f32 %v19220_v38, %v9367_v28  ;;  %v19300_v41 = vadd.f32 %v19224_v39, %v9560_v29  ;;  %v9369_v44 = vpop.f32.mrb[11].mxu0  ;;  %v9562_v45 = vpop.f32.mrb[11].mxu1  ;;  %10504 = vmatprep.subr.bf16.mxu0 %v16586_v23  ;;  %v16598_v28 = vld [vmem:[%s20590_s5 + $0x174] ss:$8 sps:$4 sm:$0xff]  }
 0x5b7   : > { %v9738_v50 = vadd.f32 %v19227_v42, %v9369_v44  ;;  %v19311_v52 = vadd.f32 %v19231_v43, %v9562_v45 }
 0x5b8   : > { %v9853_v53 = vpack.c.bf16 %v9737_v40, %v9733_v31 }
 0x5b9   : > { %v9854_v56 = vpack.c.bf16 %v9738_v50, %v9734_v47  ;;  %10505 = vmatpush1.bf16.msra.mxu0 %v16584_v30 }
 0x5ba   : > { %10506 = vmatprep.subr.bf16.mxu0 %v16589_v46  ;;  %v16596_v46 = vld [vmem:[%s20590_s5 + $0x170] ss:$8 sps:$4 sm:$0xff]  }
 0x5bb   : > { %v9373_v63 = vpop.f32.mrb[12].mxu0  ;;  %v9566_v0 = vpop.f32.mrb[12].mxu1  ;;  %10357 = vmatprep.mubr.bf16.mxu0 %v9854_v56 }
 0x5bc   : > { %v9375_v1 = vpop.f32.mrb[13].mxu0  ;;  %v9568_v2 = vpop.f32.mrb[13].mxu1  ;;  %10358 = vmatmul.mubr.bf16.gmra.mrb[72].mxu0 %v9853_v53  ;;  %v9741_v6 = vadd.f32 %v19220_v38, %v9373_v63  ;;  %v19328_v7 = vadd.f32 %v19224_v39, %v9566_v0  ;;  %v16601_v63 = vld [vmem:[%s20590_s5 + $0x184] ss:$8 sps:$4 sm:$0xff]  }
 0x5bd   : > { %v9377_v3 = vpop.f32.mrb[14].mxu0  ;;  %v9570_v4 = vpop.f32.mrb[14].mxu1  ;;  %10507 = vmatpush1.bf16.msra.mxu0 %v16587_v60  ;;  %v9742_v16 = vadd.f32 %v19227_v42, %v9375_v1  ;;  %v19339_v18 = vadd.f32 %v19231_v43, %v9568_v2 }
 0x5be   : > { %v9745_v9 = vadd.f32 %v19220_v38, %v9377_v3  ;;  %v19332_v11 = vadd.f32 %v19224_v39, %v9570_v4  ;;  %v9379_v12 = vpop.f32.mrb[15].mxu0  ;;  %v9572_v13 = vpop.f32.mrb[15].mxu1  ;;  %10508 = vmatprep.subr.bf16.mxu0 %v16592_v62 }
 0x5bf   : > { %v9746_v20 = vadd.f32 %v19227_v42, %v9379_v12  ;;  %v19343_v22 = vadd.f32 %v19231_v43, %v9572_v13  ;;  %v16599_v12 = vld [vmem:[%s20590_s5 + $0x180] ss:$8 sps:$4 sm:$0xff]   ;;  %v16604_v13 = vld [vmem:[%s20590_s5 + $0x194] ss:$8 sps:$4 sm:$0xff]  }
 0x5c0   : > { %v9857_v23 = vpack.c.bf16 %v9745_v9, %v9741_v6 }
 0x5c1   : > { %v9858_v25 = vpack.c.bf16 %v9746_v20, %v9742_v16  ;;  %10509 = vmatpush1.bf16.msra.mxu0 %v16590_v5 }
 0x5c2   : > { %10510 = vmatprep.subr.bf16.mxu0 %v16595_v14 }
 0x5c3   : > { %v9383_v29 = vpop.f32.mrb[16].mxu0  ;;  %v9576_v30 = vpop.f32.mrb[16].mxu1  ;;  %10367 = vmatprep.mubr.bf16.mxu0 %v9858_v25 }
 0x5c4   : > { %v9385_v31 = vpop.f32.mrb[17].mxu0  ;;  %v9578_v40 = vpop.f32.mrb[17].mxu1  ;;  %10368 = vmatmul.mubr.bf16.gmra.mrb[76].mxu0 %v9857_v23  ;;  %v9749_v47 = vadd.f32 %v19220_v38, %v9383_v29  ;;  %v19360_v50 = vadd.f32 %v19224_v39, %v9576_v30 }
 0x5c5   : > { %v9387_v44 = vpop.f32.mrb[18].mxu0  ;;  %v9580_v45 = vpop.f32.mrb[18].mxu1  ;;  %10511 = vmatpush1.bf16.msra.mxu0 %v16593_v27  ;;  %v9750_v0 = vadd.f32 %v19227_v42, %v9385_v31  ;;  %v19371_v1 = vadd.f32 %v19231_v43, %v9578_v40 }
 0x5c6   : > { %v9753_v53 = vadd.f32 %v19220_v38, %v9387_v44  ;;  %v19364_v56 = vadd.f32 %v19224_v39, %v9580_v45  ;;  %v9389_v60 = vpop.f32.mrb[19].mxu0  ;;  %v9582_v62 = vpop.f32.mrb[19].mxu1  ;;  %10512 = vmatprep.subr.bf16.mxu0 %v16598_v28  ;;  %v16602_v28 = vld [vmem:[%s20590_s5 + $0x190] ss:$8 sps:$4 sm:$0xff]  }
 0x5c7   : > { %v9754_v2 = vadd.f32 %v19227_v42, %v9389_v60  ;;  %v19375_v3 = vadd.f32 %v19231_v43, %v9582_v62 }
 0x5c8   : > { %v9861_v4 = vpack.c.bf16 %v9753_v53, %v9749_v47 }
 0x5c9   : > { %v9862_v6 = vpack.c.bf16 %v9754_v2, %v9750_v0  ;;  %10513 = vmatpush1.bf16.msra.mxu0 %v16596_v46  ;;  %v16607_v46 = vld [vmem:[%s20590_s5 + $0x1a4] ss:$8 sps:$4 sm:$0xff]  }
 0x5ca   : > { %10514 = vmatprep.subr.bf16.mxu0 %v16601_v63 }
 0x5cb   : > { %v9393_v14 = vpop.f32.mrb[20].mxu0  ;;  %v9586_v16 = vpop.f32.mrb[20].mxu1  ;;  %10377 = vmatprep.mubr.bf16.mxu0 %v9862_v6  ;;  %v16605_v6 = vld [vmem:[%s20590_s5 + $0x1a0] ss:$8 sps:$4 sm:$0xff]  }
 0x5cc   : > { %v9395_v20 = vpop.f32.mrb[21].mxu0  ;;  %v9588_v23 = vpop.f32.mrb[21].mxu1  ;;  %10378 = vmatmul.mubr.bf16.gmra.mrb[80].mxu0 %v9861_v4  ;;  %v9757_v29 = vadd.f32 %v19220_v38, %v9393_v14  ;;  %v19392_v30 = vadd.f32 %v19224_v39, %v9586_v16 }
 0x5cd   : > { %v9397_v25 = vpop.f32.mrb[22].mxu0  ;;  %v9590_v27 = vpop.f32.mrb[22].mxu1  ;;  %10515 = vmatpush1.bf16.msra.mxu0 %v16599_v12  ;;  %v9758_v47 = vadd.f32 %v19227_v42, %v9395_v20  ;;  %v19403_v53 = vadd.f32 %v19231_v43, %v9588_v23  ;;  %v16610_v12 = vld [vmem:[%s20590_s5 + $0x1b4] ss:$8 sps:$4 sm:$0xff]  }
 0x5ce   : > { %v9761_v31 = vadd.f32 %v19220_v38, %v9397_v25  ;;  %v19396_v40 = vadd.f32 %v19224_v39, %v9590_v27  ;;  %v9399_v44 = vpop.f32.mrb[23].mxu0  ;;  %v9592_v45 = vpop.f32.mrb[23].mxu1  ;;  %10516 = vmatprep.subr.bf16.mxu0 %v16604_v13  ;;  %v16608_v27 = vld [vmem:[%s20590_s5 + $0x1b0] ss:$8 sps:$4 sm:$0xff]  }
 0x5cf   : > { %v9762_v60 = vadd.f32 %v19227_v42, %v9399_v44  ;;  %v19407_v62 = vadd.f32 %v19231_v43, %v9592_v45 }
 0x5d0   : > { %v9865_v63 = vpack.c.bf16 %v9761_v31, %v9757_v29 }
 0x5d1   : > { %v9866_v2 = vpack.c.bf16 %v9762_v60, %v9758_v47  ;;  %10517 = vmatpush1.bf16.msra.mxu0 %v16602_v28  ;;  %v16613_v47 = vld [vmem:[%s20590_s5 + $0x1c4] ss:$8 sps:$4 sm:$0xff]  }
 0x5d2   : > { %10518 = vmatprep.subr.bf16.mxu0 %v16607_v46 }
 0x5d3   : > { %v9403_v13 = vpop.f32.mrb[24].mxu0  ;;  %v9596_v14 = vpop.f32.mrb[24].mxu1  ;;  %10387 = vmatprep.mubr.bf16.mxu0 %v9866_v2 }
 0x5d4   : > { %v9405_v16 = vpop.f32.mrb[25].mxu0  ;;  %v9598_v20 = vpop.f32.mrb[25].mxu1  ;;  %10388 = vmatmul.mubr.bf16.gmra.mrb[84].mxu0 %v9865_v63  ;;  %v9765_v28 = vadd.f32 %v19220_v38, %v9403_v13  ;;  %v19424_v29 = vadd.f32 %v19224_v39, %v9596_v14 }
 0x5d5   : > { %v9407_v23 = vpop.f32.mrb[26].mxu0  ;;  %v9600_v25 = vpop.f32.mrb[26].mxu1  ;;  %10519 = vmatpush1.bf16.msra.mxu0 %v16605_v6  ;;  %v9766_v60 = vadd.f32 %v19227_v42, %v9405_v16  ;;  %v19435_v63 = vadd.f32 %v19231_v43, %v9598_v20  ;;  %v16611_v16 = vld [vmem:[%s20590_s5 + $0x1c0] ss:$8 sps:$4 sm:$0xff]   ;;  %v16616_v20 = vld [vmem:[%s20590_s5 + $0x1d4] ss:$8 sps:$4 sm:$0xff]  }
 0x5d6   : > { %v9769_v31 = vadd.f32 %v19220_v38, %v9407_v23  ;;  %v19428_v44 = vadd.f32 %v19224_v39, %v9600_v25  ;;  %v9409_v45 = vpop.f32.mrb[27].mxu0  ;;  %v9602_v46 = vpop.f32.mrb[27].mxu1  ;;  %10520 = vmatprep.subr.bf16.mxu0 %v16610_v12 }
 0x5d7   : > { %v9770_v2 = vadd.f32 %v19227_v42, %v9409_v45  ;;  %v19439_v6 = vadd.f32 %v19231_v43, %v9602_v46 }
 0x5d8   : > { %v9869_v13 = vpack.c.bf16 %v9769_v31, %v9765_v28 }
 0x5d9   : > { %v9870_v23 = vpack.c.bf16 %v9770_v2, %v9766_v60  ;;  %10521 = vmatpush1.bf16.msra.mxu0 %v16608_v27  ;;  %v16614_v27 = vld [vmem:[%s20590_s5 + $0x1d0] ss:$8 sps:$4 sm:$0xff]  }
 0x5da   : > { %10522 = vmatprep.subr.bf16.mxu0 %v16613_v47 }
 0x5db   : > { %v9413_v25 = vpop.f32.mrb[28].mxu0  ;;  %v9606_v45 = vpop.f32.mrb[28].mxu1  ;;  %10397 = vmatprep.mubr.bf16.mxu0 %v9870_v23 }
 0x5dc   : > { %v9415_v28 = vpop.f32.mrb[29].mxu0  ;;  %v9608_v31 = vpop.f32.mrb[29].mxu1  ;;  %10398 = vmatmul.mubr.bf16.gmra.mrb[88].mxu0 %v9869_v13  ;;  %v9773_v2 = vadd.f32 %v19220_v38, %v9413_v25  ;;  %v19456_v47 = vadd.f32 %v19224_v39, %v9606_v45  ;;  %v16619_v13 = vld [vmem:[%s20590_s5 + $0x1e4] ss:$8 sps:$4 sm:$0xff]  }
 0x5dd   : > { %v9417_v46 = vpop.f32.mrb[30].mxu0  ;;  %v9610_v60 = vpop.f32.mrb[30].mxu1  ;;  %10523 = vmatpush1.bf16.msra.mxu0 %v16611_v16  ;;  %v9774_v16 = vadd.f32 %v19227_v42, %v9415_v28  ;;  %v19467_v12 = vadd.f32 %v19231_v43, %v9608_v31  ;;  %v16617_v28 = vld [vmem:[%s20590_s5 + $0x1e0] ss:$8 sps:$4 sm:$0xff]   ;;  %v16622_v31 = vld [vmem:[%s20590_s5 + $0x1f4] ss:$8 sps:$4 sm:$0xff]  }
 0x5de   : > { %v9777_v37 = vadd.f32 %v19220_v38, %v9417_v46  ;;  %v19460_v34 = vadd.f32 %v19224_v39, %v9610_v60  ;;  %v9419_v23 = vpop.f32.mrb[31].mxu0  ;;  %v9612_v14 = vpop.f32.mrb[31].mxu1  ;;  %10524 = vmatprep.subr.bf16.mxu0 %v16616_v20 }
 0x5df   : > { %v9778_v25 = vadd.f32 %v19227_v42, %v9419_v23  ;;  %v19471_v45 = vadd.f32 %v19231_v43, %v9612_v14 }
 0x5e0   : > { %v9873_v46 = vpack.c.bf16 %v9777_v37, %v9773_v2 }
 0x5e1   : > { %v9874_v0 = vpack.c.bf16 %v9778_v25, %v9774_v16  ;;  %10525 = vmatpush1.bf16.msra.mxu0 %v16614_v27  ;;  %v16620_v27 = vld [vmem:[%s20590_s5 + $0x1f0] ss:$8 sps:$4 sm:$0xff]  }
 0x5e2   : > { %10526 = vmatprep.subr.bf16.mxu0 %v16619_v13 }
 0x5e3   : > { %v9423_v14 = vpop.f32.mrb[32].mxu0  ;;  %v9616_v23 = vpop.f32.mrb[32].mxu1  ;;  %10407 = vmatprep.mubr.bf16.mxu0 %v9874_v0 }
 0x5e4   : > { %v9425_v37 = vpop.f32.mrb[33].mxu0  ;;  %v9618_v2 = vpop.f32.mrb[33].mxu1  ;;  %10408 = vmatmul.mubr.bf16.gmra.mrb[92].mxu0 %v9873_v46  ;;  %v9781_v60 = vadd.f32 %v19220_v38, %v9423_v14  ;;  %v19488_v13 = vadd.f32 %v19224_v39, %v9616_v23 }
 0x5e5   : > { %v9427_v16 = vpop.f32.mrb[34].mxu0  ;;  %v9620_v25 = vpop.f32.mrb[34].mxu1  ;;  %10527 = vmatpush1.bf16.msra.mxu0 %v16617_v28  ;;  %v9782_v46 = vadd.f32 %v19227_v42, %v9425_v37  ;;  %v19496_v28 = vadd.f32 %v19231_v43, %v9618_v2 }
 0x5e6   : > { %v9785_v20 = vadd.f32 %v19220_v38, %v9427_v16  ;;  %v19492_v4 = vadd.f32 %v19224_v39, %v9620_v25  ;;  %v9429_v0 = vpop.f32.mrb[35].mxu0  ;;  %v9622_v5 = vpop.f32.mrb[35].mxu1  ;;  %10528 = vmatprep.subr.bf16.mxu0 %v16622_v31 }
 0x5e7   : > { %v9786_v9 = vadd.f32 %v19227_v42, %v9429_v0  ;;  %v19500_v14 = vadd.f32 %v19231_v43, %v9622_v5 }
 0x5e8   : > { %v9877_v23 = vpack.c.bf16 %v9785_v20, %v9781_v60 }
 0x5e9   : > { %v9878_v24 = vpack.c.bf16 %v9786_v9, %v9782_v46  ;;  %10529 = vmatpush1.bf16.msra.mxu0 %v16620_v27 }
 0x5eb   : > { %v9433_v31 = vpop.f32.mrb[36].mxu0  ;;  %v9626_v26 = vpop.f32.mrb[36].mxu1  ;;  %10417 = vmatprep.mubr.bf16.mxu0 %v9878_v24 }
 0x5ec   : > { %v9435_v37 = vpop.f32.mrb[37].mxu0  ;;  %v9628_v2 = vpop.f32.mrb[37].mxu1  ;;  %10418 = vmatmul.mubr.bf16.gmra.mrb[96].mxu0 %v9877_v23  ;;  %v9789_v5 = vadd.f32 %v19220_v38, %v9433_v31  ;;  %v19508_v60 = vadd.f32 %v19224_v39, %v9626_v26 }
 0x5ed   : > { %v9437_v54 = vpop.f32.mrb[38].mxu0  ;;  %v9630_v0 = vpop.f32.mrb[38].mxu1  ;;  %v9790_v16 = vadd.f32 %v19227_v42, %v9435_v37  ;;  %v19516_v24 = vadd.f32 %v19231_v43, %v9628_v2 }
 0x5ee   : > { %20626 = vst [vmem:[#allocation6_spill] sm:$0xff] %v19508_v60  ;;  %v9793_v20 = vadd.f32 %v19220_v38, %v9437_v54  ;;  %v19512_v9 = vadd.f32 %v19224_v39, %v9630_v0  ;;  %v9439_v46 = vpop.f32.mrb[39].mxu0  ;;  %v9632_v27 = vpop.f32.mrb[39].mxu1 }
 0x5ef   : > { %v9794_v23 = vadd.f32 %v19227_v42, %v9439_v46  ;;  %v19520_v25 = vadd.f32 %v19231_v43, %v9632_v27 }
 0x5f0   : > { %v9881_v31 = vpack.c.bf16 %v9793_v20, %v9789_v5 }
 0x5f1   : > { %v9882_v54 = vpack.c.bf16 %v9794_v23, %v9790_v16 }
 0x5f3   : > { %v9443_v58 = vpop.f32.mrb[40].mxu0  ;;  %v9636_v19 = vpop.f32.mrb[40].mxu1  ;;  %10427 = vmatprep.mubr.bf16.mxu0 %v9882_v54 }
 0x5f4   : > { %v9445_v37 = vpop.f32.mrb[41].mxu0  ;;  %v9638_v21 = vpop.f32.mrb[41].mxu1  ;;  %10428 = vmatmul.mubr.bf16.gmra.mrb[100].mxu0 %v9881_v31  ;;  %v9797_v46 = vadd.f32 %v19220_v38, %v9443_v58  ;;  %v19528_v27 = vadd.f32 %v19224_v39, %v9636_v19 }
 0x5f5   : > { %v9447_v2 = vpop.f32.mrb[42].mxu0  ;;  %v9640_v59 = vpop.f32.mrb[42].mxu1  ;;  %v9798_v26 = vadd.f32 %v19227_v42, %v9445_v37  ;;  %v19536_v54 = vadd.f32 %v19231_v43, %v9638_v21 }
 0x5f6   : > { %20627 = vst [vmem:[#allocation7_spill] sm:$0xff] %v19528_v27  ;;  %v9801_v5 = vadd.f32 %v19220_v38, %v9447_v2  ;;  %v19532_v16 = vadd.f32 %v19224_v39, %v9640_v59  ;;  %v9449_v20 = vpop.f32.mrb[43].mxu0  ;;  %v9642_v23 = vpop.f32.mrb[43].mxu1 }
 0x5f7   : > { %20629 = vst [vmem:[#allocation9_spill] sm:$0xff] %v19536_v54  ;;  %v9802_v31 = vadd.f32 %v19227_v42, %v9449_v20  ;;  %v19540_v0 = vadd.f32 %v19231_v43, %v9642_v23 }
 0x5f8   : > { %20628 = vst [vmem:[#allocation8_spill] sm:$0xff] %v19532_v16  ;;  %v9885_v58 = vpack.c.bf16 %v9801_v5, %v9797_v46 }
 0x5f9   : > { %20630 = vst [vmem:[#allocation10_spill] sm:$0xff] %v19540_v0  ;;  %v9886_v2 = vpack.c.bf16 %v9802_v31, %v9798_v26 }
 0x5fb   : > { %v9453_v61 = vpop.f32.mrb[44].mxu0  ;;  %v9646_v32 = vpop.f32.mrb[44].mxu1  ;;  %10437 = vmatprep.mubr.bf16.mxu0 %v9886_v2 }
 0x5fc   : > { %v9455_v37 = vpop.f32.mrb[45].mxu0  ;;  %v9648_v36 = vpop.f32.mrb[45].mxu1  ;;  %10438 = vmatmul.mubr.bf16.gmra.mrb[104].mxu0 %v9885_v58  ;;  %v9805_v20 = vadd.f32 %v19220_v38, %v9453_v61  ;;  %v19548_v23 = vadd.f32 %v19224_v39, %v9646_v32 }
 0x5fd   : > { %v9457_v21 = vpop.f32.mrb[46].mxu0  ;;  %v9650_v33 = vpop.f32.mrb[46].mxu1  ;;  %v9806_v19 = vadd.f32 %v19227_v42, %v9455_v37  ;;  %v19556_v2 = vadd.f32 %v19231_v43, %v9648_v36 }
 0x5fe   : > { %20631 = vst [vmem:[#allocation11_spill] sm:$0xff] %v19548_v23  ;;  %v9809_v46 = vadd.f32 %v19220_v38, %v9457_v21  ;;  %v19552_v26 = vadd.f32 %v19224_v39, %v9650_v33  ;;  %v9459_v5 = vpop.f32.mrb[47].mxu0  ;;  %v9652_v31 = vpop.f32.mrb[47].mxu1 }
 0x5ff   : > { %20633 = vst [vmem:[#allocation13_spill] sm:$0xff] %v19556_v2  ;;  %v9810_v58 = vadd.f32 %v19227_v42, %v9459_v5  ;;  %v19560_v59 = vadd.f32 %v19231_v43, %v9652_v31  ;;  %v16623_v5 = vld [vmem:[%s20592_s7] ss:$16 sps:$4 sm:$0xff]  }
 0x600   : > { %20632 = vst [vmem:[#allocation12_spill] sm:$0xff] %v19552_v26  ;;  %v9889_v61 = vpack.c.bf16 %v9809_v46, %v9805_v20  ;;  %v16625_v20 = vld [vmem:[%s20592_s7 + $0x4] ss:$16 sps:$4 sm:$0xff]  }
 0x601   : > { %20634 = vst [vmem:[#allocation14_spill] sm:$0xff] %v19560_v59  ;;  %v9890_v21 = vpack.c.bf16 %v9810_v58, %v9806_v19  ;;  %11129 = vmatprep.subr.bf16.mxu1 %v16625_v20  ;;  %v16626_v20 = vld [vmem:[%s20592_s7 + $0x20] ss:$16 sps:$4 sm:$0xff]  }
 0x602   : > { %11130 = vmatpush1.bf16.msra.mxu1 %v16623_v5  ;;  %v16628_v5 = vld [vmem:[%s20592_s7 + $0x24] ss:$16 sps:$4 sm:$0xff]  }
 0x603   : > { %v9463_v27 = vpop.f32.mrb[48].mxu0  ;;  %v9656_v16 = vpop.f32.mrb[48].mxu1  ;;  %10447 = vmatprep.mubr.bf16.mxu0 %v9890_v21  ;;  %11131 = vmatprep.subr.bf16.mxu1 %v16628_v5  ;;  %v16629_v5 = vld [vmem:[%s20592_s7 + $0x40] ss:$16 sps:$4 sm:$0xff]  }
 0x604   : > { %v9465_v37 = vpop.f32.mrb[49].mxu0  ;;  %v9658_v54 = vpop.f32.mrb[49].mxu1  ;;  %10448 = vmatmul.mubr.bf16.gmra.mrb[108].mxu0 %v9889_v61  ;;  %v9813_v19 = vadd.f32 %v19220_v38, %v9463_v27  ;;  %v19574_v46 = vadd.f32 %v19224_v39, %v9656_v16 }
 0x605   : > { %v9467_v36 = vpop.f32.mrb[50].mxu0  ;;  %v9660_v0 = vpop.f32.mrb[50].mxu1  ;;  %v9814_v32 = vadd.f32 %v19227_v42, %v9465_v37  ;;  %v19582_v33 = vadd.f32 %v19231_v43, %v9658_v54 }
 0x606   : > { %20635 = vst [vmem:[#allocation15_spill] sm:$0xff] %v19574_v46  ;;  %v9817_v31 = vadd.f32 %v19220_v38, %v9467_v36  ;;  %v19578_v58 = vadd.f32 %v19224_v39, %v9660_v0  ;;  %v9469_v61 = vpop.f32.mrb[51].mxu0  ;;  %v9662_v21 = vpop.f32.mrb[51].mxu1  ;;  %11132 = vmatpush1.bf16.msra.mxu1 %v16626_v20  ;;  %v16631_v20 = vld [vmem:[%s20592_s7 + $0x44] ss:$16 sps:$4 sm:$0xff]  }
 0x607   : > { %20637 = vst [vmem:[#allocation17_spill] sm:$0xff] %v19582_v33  ;;  %v9818_v23 = vadd.f32 %v19227_v42, %v9469_v61  ;;  %v19586_v26 = vadd.f32 %v19231_v43, %v9662_v21  ;;  %11133 = vmatprep.subr.bf16.mxu1 %v16631_v20  ;;  %v16632_v20 = vld [vmem:[%s20592_s7 + $0x60] ss:$16 sps:$4 sm:$0xff]  }
 0x608   : > { %20636 = vst [vmem:[#allocation16_spill] sm:$0xff] %v19578_v58  ;;  %v9893_v27 = vpack.c.bf16 %v9817_v31, %v9813_v19 }
 0x609   : > { %20638 = vst [vmem:[#allocation18_spill] sm:$0xff] %v19586_v26  ;;  %v9894_v0 = vpack.c.bf16 %v9818_v23, %v9814_v32 }
 0x60a   : > { %11134 = vmatpush1.bf16.msra.mxu1 %v16629_v5  ;;  %v16634_v5 = vld [vmem:[%s20592_s7 + $0x64] ss:$16 sps:$4 sm:$0xff]  }
 0x60b   : > { %v9473_v2 = vpop.f32.mrb[52].mxu0  ;;  %v9666_v37 = vpop.f32.mrb[52].mxu1  ;;  %10457 = vmatprep.mubr.bf16.mxu0 %v9894_v0  ;;  %11135 = vmatprep.subr.bf16.mxu1 %v16634_v5  ;;  %v16644_v5 = vld [vmem:[%s20592_s7 + $0xe0] ss:$16 sps:$4 sm:$0xff]  }
 0x60c   : > { %v9475_v54 = vpop.f32.mrb[53].mxu0  ;;  %v9668_v59 = vpop.f32.mrb[53].mxu1  ;;  %10458 = vmatmul.mubr.bf16.gmra.mrb[112].mxu0 %v9893_v27  ;;  %v9821_v23 = vadd.f32 %v19220_v38, %v9473_v2  ;;  %v19600_v32 = vadd.f32 %v19224_v39, %v9666_v37 }
 0x60d   : > { %v9477_v61 = vpop.f32.mrb[54].mxu0  ;;  %v9670_v60 = vpop.f32.mrb[54].mxu1  ;;  %v9822_v0 = vadd.f32 %v19227_v42, %v9475_v54  ;;  %v19608_v16 = vadd.f32 %v19231_v43, %v9668_v59 }
 0x60e   : > { %20639 = vst [vmem:[#allocation19_spill] sm:$0xff] %v19600_v32  ;;  %v9825_v19 = vadd.f32 %v19220_v38, %v9477_v61  ;;  %v19604_v31 = vadd.f32 %v19224_v39, %v9670_v60  ;;  %v9479_v21 = vpop.f32.mrb[55].mxu0  ;;  %v9672_v27 = vpop.f32.mrb[55].mxu1  ;;  %11136 = vmatpush1.bf16.msra.mxu1 %v16632_v20  ;;  %v20646_v20 = vpack.c.bf16 %v19279_v17, %v19275_v15  ;;  %v16652_v15 = vld [vmem:[%s20592_s7 + $0x124] ss:$16 sps:$4 sm:$0xff]  }
 0x60f   : > { %20641 = vst [vmem:[#allocation21_spill] sm:$0xff] %v19608_v16  ;;  %v9826_v36 = vadd.f32 %v19227_v42, %v9479_v21  ;;  %v19612_v46 = vadd.f32 %v19231_v43, %v9672_v27  ;;  %v20648_v17 = vpack.c.bf16 %v19311_v52, %v19307_v48  ;;  %v16658_v48 = vld [vmem:[%s20592_s7 + $0x164] ss:$16 sps:$4 sm:$0xff]   ;;  %v20650_v52 = vpack.c.bf16 %v19343_v22, %v19339_v18 }
 0x610   : > { %20640 = vst [vmem:[#allocation20_spill] sm:$0xff] %v19604_v31  ;;  %v9897_v2 = vpack.c.bf16 %v9825_v19, %v9821_v23  ;;  %v16664_v18 = vld [vmem:[%s20592_s7 + $0x1a4] ss:$16 sps:$4 sm:$0xff]   ;;  %v20652_v22 = vpack.c.bf16 %v19375_v3, %v19371_v1  ;;  %v20654_v1 = vpack.c.bf16 %v19407_v62, %v19403_v53  ;;  %v20655_v3 = vpack.c.bf16 %v19396_v40, %v19392_v30  ;;  %v20663_v62 = vld [vmem:[#allocation6_spill] sm:$0xff] }
 0x611   : > { %20642 = vst [vmem:[#allocation22_spill] sm:$0xff] %v19612_v46  ;;  %v9898_v60 = vpack.c.bf16 %v9826_v36, %v9822_v0  ;;  %v20660_v30 = vpack.c.bf16 %v19500_v14, %v19496_v28  ;;  %v20661_v40 = vpack.c.bf16 %v19492_v4, %v19488_v13  ;;  %v20662_v53 = vpack.c.bf16 %v19520_v25, %v19516_v24  ;;  %v20672_v28 = vld [vmem:[#allocation13_spill] sm:$0xff]  ;;  %v20674_v25 = vld [vmem:[#allocation12_spill] sm:$0xff] }
 0x612   : > { %v16668_v13 = vld [vmem:[%s20592_s7 + $0x1e0] ss:$16 sps:$4 sm:$0xff]   ;;  %v16670_v14 = vld [vmem:[%s20592_s7 + $0x1e4] ss:$16 sps:$4 sm:$0xff]  }
 0x613   : > { %v9483_v58 = vpop.f32.mrb[56].mxu0  ;;  %v9676_v54 = vpop.f32.mrb[56].mxu1  ;;  %10467 = vmatprep.mubr.bf16.mxu0 %v9898_v60 }
 0x614   : > { %v9485_v59 = vpop.f32.mrb[57].mxu0  ;;  %v9678_v33 = vpop.f32.mrb[57].mxu1  ;;  %10468 = vmatmul.mubr.bf16.gmra.mrb[116].mxu0 %v9897_v2  ;;  %v9829_v36 = vadd.f32 %v19220_v38, %v9483_v58  ;;  %v19626_v23 = vadd.f32 %v19224_v39, %v9676_v54 }
 0x615   : > { %v9487_v21 = vpop.f32.mrb[58].mxu0  ;;  %v9680_v26 = vpop.f32.mrb[58].mxu1  ;;  %v9830_v60 = vadd.f32 %v19227_v42, %v9485_v59  ;;  %v19634_v37 = vadd.f32 %v19231_v43, %v9678_v33 }
 0x616   : > { %20643 = vst [vmem:[#allocation23_spill] sm:$0xff] %v19626_v23  ;;  %v9833_v19 = vadd.f32 %v19220_v38, %v9487_v21  ;;  %v19630_v27 = vadd.f32 %v19224_v39, %v9680_v26  ;;  %v9489_v0 = vpop.f32.mrb[59].mxu0  ;;  %v9682_v2 = vpop.f32.mrb[59].mxu1 }
 0x617   : > { %v9834_v61 = vadd.f32 %v19227_v42, %v9489_v0  ;;  %v19638_v32 = vadd.f32 %v19231_v43, %v9682_v2 }
 0x618   : > { %v9901_v58 = vpack.c.bf16 %v9833_v19, %v9829_v36 }
 0x619   : > { %v9902_v26 = vpack.c.bf16 %v9834_v61, %v9830_v60 }
 0x61b   : > { %v9493_v31 = vpop.f32.mrb[60].mxu0  ;;  %v9686_v59 = vpop.f32.mrb[60].mxu1  ;;  %10477 = vmatprep.mubr.bf16.mxu0 %v9902_v26 }
 0x61c   : > { %v9495_v33 = vpop.f32.mrb[61].mxu0  ;;  %v9688_v16 = vpop.f32.mrb[61].mxu1  ;;  %10478 = vmatmul.mubr.bf16.gmra.mrb[120].mxu0 %v9901_v58  ;;  %v9837_v61 = vadd.f32 %v19220_v38, %v9493_v31  ;;  %v19652_v36 = vadd.f32 %v19224_v39, %v9686_v59  ;;  %v16638_v59 = vld [vmem:[%s20592_s7 + $0xa0] ss:$16 sps:$4 sm:$0xff]  }
 0x61d   : > { %v9497_v0 = vpop.f32.mrb[62].mxu0  ;;  %v9690_v46 = vpop.f32.mrb[62].mxu1  ;;  %v9838_v26 = vadd.f32 %v19227_v42, %v9495_v33  ;;  %v19660_v54 = vadd.f32 %v19231_v43, %v9688_v16  ;;  %v16635_v16 = vld [vmem:[%s20592_s7 + $0x80] ss:$16 sps:$4 sm:$0xff]   ;;  %v16643_v33 = vld [vmem:[%s20592_s7 + $0xc4] ss:$16 sps:$4 sm:$0xff]  }
 0x61e   : > { %v9841_v19 = vadd.f32 %v19220_v38, %v9497_v0  ;;  %v19656_v2 = vadd.f32 %v19224_v39, %v9690_v46  ;;  %v9499_v60 = vpop.f32.mrb[63].mxu0  ;;  %v9692_v58 = vpop.f32.mrb[63].mxu1  ;;  %v16646_v0 = vld [vmem:[%s20592_s7 + $0xe4] ss:$16 sps:$4 sm:$0xff]  }
 0x61f   : > { %v9842_v21 = vadd.f32 %v19227_v42, %v9499_v60  ;;  %v19664_v23 = vadd.f32 %v19231_v43, %v9692_v58  ;;  %v16637_v42 = vld [vmem:[%s20592_s7 + $0x84] ss:$16 sps:$4 sm:$0xff]   ;;  %v20644_v43 = vpack.c.bf16 %v19247_v57, %v19243_v55  ;;  %v16641_v55 = vld [vmem:[%s20592_s7 + $0xc0] ss:$16 sps:$4 sm:$0xff]   ;;  %v20645_v57 = vpack.c.bf16 %v19239_v51, %v19235_v49 }
 0x620   : > { %v9905_v31 = vpack.c.bf16 %v9841_v19, %v9837_v61  ;;  %v9907_v38 = vpack.c.bf16 %v19656_v2, %v19652_v36  ;;  %11137 = vmatprep.subr.bf16.mxu1 %v16637_v42  ;;  %v16649_v49 = vld [vmem:[%s20592_s7 + $0x104] ss:$16 sps:$4 sm:$0xff]   ;;  %v16647_v51 = vld [vmem:[%s20592_s7 + $0x100] ss:$16 sps:$4 sm:$0xff]   ;;  %v20647_v61 = vpack.c.bf16 %v19268_v10, %v19264_v8  ;;  %v20649_v60 = vpack.c.bf16 %v19300_v41, %v19296_v35 }
 0x621   : > { %v9906_v39 = vpack.c.bf16 %v9842_v21, %v9838_v26  ;;  %v9908_v46 = vpack.c.bf16 %v19664_v23, %v19660_v54  ;;  %v16640_v21 = vld [vmem:[%s20592_s7 + $0xa4] ss:$16 sps:$4 sm:$0xff]   ;;  %11138 = vmatpush1.bf16.msra.mxu1 %v16635_v16  ;;  %v16650_v19 = vld [vmem:[%s20592_s7 + $0x120] ss:$16 sps:$4 sm:$0xff]   ;;  %v20651_v26 = vpack.c.bf16 %v19332_v11, %v19328_v7  ;;  %v20656_v16 = vpack.c.bf16 %v19439_v6, %v19435_v63 }
 0x622   : > { %11139 = vmatprep.subr.bf16.mxu1 %v16640_v21  ;;  %v16655_v8 = vld [vmem:[%s20592_s7 + $0x144] ss:$16 sps:$4 sm:$0xff]   ;;  %v16653_v10 = vld [vmem:[%s20592_s7 + $0x140] ss:$16 sps:$4 sm:$0xff]   ;;  %v20657_v42 = vpack.c.bf16 %v19428_v44, %v19424_v29  ;;  %v20664_v29 = vpack.c.bf16 %v19512_v9, %v20663_v62 }
 0x623   : > { %10487 = vmatprep.mubr.bf16.mxu0 %v9906_v39  ;;  %v16656_v58 = vld [vmem:[%s20592_s7 + $0x160] ss:$16 sps:$4 sm:$0xff]   ;;  %v16661_v35 = vld [vmem:[%s20592_s7 + $0x184] ss:$16 sps:$4 sm:$0xff]   ;;  %v20653_v39 = vpack.c.bf16 %v19364_v56, %v19360_v50  ;;  %v20658_v50 = vpack.c.bf16 %v19471_v45, %v19467_v12  ;;  %v20659_v56 = vpack.c.bf16 %v19460_v34, %v19456_v47 }
 0x624   : > { %10488 = vmatmul.mubr.bf16.gmra.mrb[124].mxu0 %v9905_v31  ;;  %v16659_v41 = vld [vmem:[%s20592_s7 + $0x180] ss:$16 sps:$4 sm:$0xff]   ;;  %v16667_v7 = vld [vmem:[%s20592_s7 + $0x1c4] ss:$16 sps:$4 sm:$0xff]  }
 0x625   : > { %10530 = vmatprep.mubr.bf16.mxu0 %v20644_v43  ;;  %11140 = vmatpush1.bf16.msra.mxu1 %v16638_v59  ;;  %v16662_v31 = vld [vmem:[%s20592_s7 + $0x1a0] ss:$16 sps:$4 sm:$0xff]  }
 0x626   : > { %11141 = vmatprep.subr.bf16.mxu1 %v16643_v33  ;;  %v16665_v11 = vld [vmem:[%s20592_s7 + $0x1c0] ss:$16 sps:$4 sm:$0xff]   ;;  %v16673_v33 = vld [vmem:[%s20592_s7 + $0xc] ss:$16 sps:$4 sm:$0xff]  }
 0x627   : > { %v20665_v44 = vld [vmem:[#allocation10_spill] sm:$0xff]  ;;  %v20666_v63 = vld [vmem:[#allocation9_spill] sm:$0xff]  ;;  %v20668_v6 = vld [vmem:[#allocation8_spill] sm:$0xff] }
 0x628   : > { %v20667_v34 = vpack.c.bf16 %v20665_v44, %v20666_v63  ;;  %v20669_v12 = vld [vmem:[#allocation7_spill] sm:$0xff]  ;;  %v20671_v45 = vld [vmem:[#allocation14_spill] sm:$0xff]  ;;  %v20678_v21 = vld [vmem:[#allocation17_spill] sm:$0xff] }
 0x629   : > { %11142 = vmatpush1.bf16.msra.mxu1 %v16641_v55  ;;  %v20670_v47 = vpack.c.bf16 %v20668_v6, %v20669_v12  ;;  %v20673_v4 = vpack.c.bf16 %v20671_v45, %v20672_v28  ;;  %v20675_v9 = vld [vmem:[#allocation11_spill] sm:$0xff]  ;;  %v20677_v43 = vld [vmem:[#allocation18_spill] sm:$0xff]  ;;  %v20680_v55 = vld [vmem:[#allocation16_spill] sm:$0xff] }
 0x62a   : > { %11143 = vmatprep.subr.bf16.mxu1 %v16646_v0  ;;  %v20676_v24 = vpack.c.bf16 %v20674_v25, %v20675_v9  ;;  %v20679_v59 = vpack.c.bf16 %v20677_v43, %v20678_v21  ;;  %v16680_v44 = vld [vmem:[%s20592_s7 + $0x68] ss:$16 sps:$4 sm:$0xff]   ;;  %v16685_v12 = vld [vmem:[%s20592_s7 + $0x8c] ss:$16 sps:$4 sm:$0xff]  }
 0x62b   : > { %v16686_v43 = vld [vmem:[%s20592_s7 + $0xa8] ss:$16 sps:$4 sm:$0xff]  }
 0x62c   : > { %10531 = vmatmul.mubr.bf16.vlgmr.msra.gmra.mrb[64].mxu0 %v20645_v57  ;;  %v20681_v57 = vld [vmem:[#allocation15_spill] sm:$0xff] }
 0x62d   : > { %10540 = vmatprep.mubr.bf16.mxu0 %v20646_v20  ;;  %11144 = vmatpush1.bf16.msra.mxu1 %v16644_v5  ;;  %v20682_v0 = vpack.c.bf16 %v20680_v55, %v20681_v57  ;;  %v20683_v20 = vld [vmem:[#allocation22_spill] sm:$0xff]  ;;  %v20684_v5 = vld [vmem:[#allocation21_spill] sm:$0xff] }
 0x62e   : > { %11145 = vmatprep.subr.bf16.mxu1 %v16649_v49  ;;  %v20685_v49 = vpack.c.bf16 %v20683_v20, %v20684_v5  ;;  %v16691_v55 = vld [vmem:[%s20592_s7 + $0xcc] ss:$16 sps:$4 sm:$0xff]  }
 0x631   : > { %11146 = vmatpush1.bf16.msra.mxu1 %v16647_v51  ;;  %v20686_v51 = vld [vmem:[#allocation20_spill] sm:$0xff] }
 0x632   : > { %11147 = vmatprep.subr.bf16.mxu1 %v16652_v15 }
 0x634   : > { %10541 = vmatmul.mubr.bf16.gmra.mrb[68].mxu0 %v20647_v61  ;;  %v20687_v61 = vld [vmem:[#allocation19_spill] sm:$0xff] }
 0x635   : > { %10550 = vmatprep.mubr.bf16.mxu0 %v20648_v17  ;;  %11148 = vmatpush1.bf16.msra.mxu1 %v16650_v19  ;;  %v20688_v15 = vpack.c.bf16 %v20686_v51, %v20687_v61  ;;  %v20689_v17 = vpack.c.bf16 %v19638_v32, %v19634_v37  ;;  %v20690_v19 = vld [vmem:[#allocation23_spill] sm:$0xff]  ;;  %v20693_v37 = vld [vmem:[#allocation5_spill] sm:$0xff]  ;;  %v16694_v51 = vld [vmem:[%s20592_s7 + $0xec] ss:$16 sps:$4 sm:$0xff]  }
 0x636   : > { %11149 = vmatprep.subr.bf16.mxu1 %v16655_v8  ;;  %v20691_v8 = vpack.c.bf16 %v19630_v27, %v20690_v19  ;;  %v16692_v19 = vld [vmem:[%s20592_s7 + $0xe8] ss:$16 sps:$4 sm:$0xff]  }
 0x639   : > { %11150 = vmatpush1.bf16.msra.mxu1 %v16653_v10  ;;  %v9973_v10 = vld [vmem:[%s20591_s6] sm:$0x3] }
 0x63a   : > { %11151 = vmatprep.subr.bf16.mxu1 %v16658_v48 }
 0x63c   : > { %10551 = vmatmul.mubr.bf16.gmra.mrb[72].mxu0 %v20649_v60  ;;  %v20692_v60 = vld [vmem:[#allocation4_spill] sm:$0xff] }
 0x63d   : > { %10560 = vmatprep.mubr.bf16.mxu0 %v20650_v52  ;;  %11152 = vmatpush1.bf16.msra.mxu1 %v16656_v58  ;;  %v19845_v48 = vrot.slane %v9973_v10, %v20692_v60  ;;  %v19848_v52 = vrot.slane %v9973_v10, %v20693_v37 }
 0x63e   : > { %11153 = vmatprep.subr.bf16.mxu1 %v16661_v35 }
 0x641   : > { %11154 = vmatpush1.bf16.msra.mxu1 %v16659_v41  ;;  %v16671_v41 = vld [vmem:[%s20592_s7 + $0x8] ss:$16 sps:$4 sm:$0xff]  }
 0x642   : > { %11155 = vmatprep.subr.bf16.mxu1 %v16664_v18 }
 0x644   : > { %10561 = vmatmul.mubr.bf16.gmra.mrb[76].mxu0 %v20651_v26  ;;  %v16676_v26 = vld [vmem:[%s20592_s7 + $0x2c] ss:$16 sps:$4 sm:$0xff]  }
 0x645   : > { %10570 = vmatprep.mubr.bf16.mxu0 %v20652_v22  ;;  %11156 = vmatpush1.bf16.msra.mxu1 %v16662_v31 }
 0x646   : > { %11157 = vmatprep.subr.bf16.mxu1 %v16667_v7  ;;  %v16674_v7 = vld [vmem:[%s20592_s7 + $0x28] ss:$16 sps:$4 sm:$0xff]  }
 0x649   : > { %11158 = vmatpush1.bf16.msra.mxu1 %v16665_v11 }
 0x64a   : > { %11159 = vmatprep.subr.bf16.mxu1 %v16670_v14  ;;  %v16688_v14 = vld [vmem:[%s20592_s7 + $0xac] ss:$16 sps:$4 sm:$0xff]  }
 0x64c   : > { %10571 = vmatmul.mubr.bf16.gmra.mrb[80].mxu0 %v20653_v39 }
 0x64d   : > { %10580 = vmatprep.mubr.bf16.mxu0 %v20654_v1  ;;  %11160 = vmatpush1.bf16.msra.mxu1 %v16668_v13  ;;  %v16683_v13 = vld [vmem:[%s20592_s7 + $0x88] ss:$16 sps:$4 sm:$0xff]  }
 0x64e   : > { %11322 = vmatprep.subr.bf16.mxu1 %v16673_v33 }
 0x654   : > { %10581 = vmatmul.mubr.bf16.gmra.mrb[84].mxu0 %v20655_v3  ;;  %v16679_v3 = vld [vmem:[%s20592_s7 + $0x4c] ss:$16 sps:$4 sm:$0xff]  }
 0x655   : > { %10590 = vmatprep.mubr.bf16.mxu0 %v20656_v16 }
 0x65c   : > { %10591 = vmatmul.mubr.bf16.gmra.mrb[88].mxu0 %v20657_v42 }
 0x65d   : > { %10600 = vmatprep.mubr.bf16.mxu0 %v20658_v50 }
 0x664   : > { %10601 = vmatmul.mubr.bf16.gmra.mrb[92].mxu0 %v20659_v56 }
 0x665   : > { %10610 = vmatprep.mubr.bf16.mxu0 %v20660_v30  ;;  %v16677_v30 = vld [vmem:[%s20592_s7 + $0x48] ss:$16 sps:$4 sm:$0xff]  }
 0x66c   : > { %10611 = vmatmul.mubr.bf16.gmra.mrb[96].mxu0 %v20661_v40  ;;  %v16682_v40 = vld [vmem:[%s20592_s7 + $0x6c] ss:$16 sps:$4 sm:$0xff]  }
 0x66d   : > { %10620 = vmatprep.mubr.bf16.mxu0 %v20662_v53 }
 0x674   : > { %10621 = vmatmul.mubr.bf16.gmra.mrb[100].mxu0 %v20664_v29 }
 0x675   : > { %10630 = vmatprep.mubr.bf16.mxu0 %v20667_v34 }
 0x67c   : > { %10631 = vmatmul.mubr.bf16.gmra.mrb[104].mxu0 %v20670_v47 }
 0x67d   : > { %10640 = vmatprep.mubr.bf16.mxu0 %v20673_v4 }
 0x684   : > { %10641 = vmatmul.mubr.bf16.gmra.mrb[108].mxu0 %v20676_v24 }
 0x685   : > { %10650 = vmatprep.mubr.bf16.mxu0 %v20679_v59 }
 0x68c   : > { %10651 = vmatmul.mubr.bf16.gmra.mrb[112].mxu0 %v20682_v0 }
 0x68d   : > { %10660 = vmatprep.mubr.bf16.mxu0 %v20685_v49  ;;  %v16689_v49 = vld [vmem:[%s20592_s7 + $0xc8] ss:$16 sps:$4 sm:$0xff]  }
 0x694   : > { %10661 = vmatmul.mubr.bf16.gmra.mrb[116].mxu0 %v20688_v15 }
 0x695   : > { %10670 = vmatprep.mubr.bf16.mxu0 %v20689_v17 }
 0x69c   : > { %10671 = vmatmul.mubr.bf16.gmra.mrb[120].mxu0 %v20691_v8 }
 0x69d   : > { %10680 = vmatprep.mubr.bf16.mxu0 %v9908_v46 }
 0x6a4   : > { %10681 = vmatmul.mubr.bf16.gmra.mrb[124].mxu0 %v9907_v38 }
 0x6ff   : > { %v10532_v32 = vpop.f32.mrb[64].mxu0 }
 0x700   : > { %v10534_v27 = vpop.f32.mrb[65].mxu0  ;;  %v13907_v23 = vadd.f32 %v10532_v32, %v19845_v48 }
 0x701   : > { %v10536_v58 = vpop.f32.mrb[66].mxu0  ;;  %v13908_v36 = vadd.f32 %v10534_v27, %v19848_v52  ;;  %v16697_v27 = vld [vmem:[%s20592_s7 + $0x10c] ss:$16 sps:$4 sm:$0xff]  }
 0x702   : > { %v13909_v54 = vadd.f32 %v10536_v58, %v19845_v48  ;;  %v10538_v46 = vpop.f32.mrb[67].mxu0 }
 0x703   : > { %v13910_v2 = vadd.f32 %v10538_v46, %v19848_v52 }
 0x704   : > { %v19854_v38 = vpack.c.bf16 %v13909_v54, %v13907_v23 }
 0x705   : > { %v19856_v35 = vpack.c.bf16 %v13910_v2, %v13908_v36  ;;  %v16695_v36 = vld [vmem:[%s20592_s7 + $0x108] ss:$16 sps:$4 sm:$0xff]   ;;  %v16700_v2 = vld [vmem:[%s20592_s7 + $0x12c] ss:$16 sps:$4 sm:$0xff]  }
 0x707   : > { %v10542_v18 = vpop.f32.mrb[68].mxu0  ;;  %11161 = vmatprep.mubr.bf16.mxu1 %v19856_v35 }
 0x708   : > { %v10544_v22 = vpop.f32.mrb[69].mxu0  ;;  %11162 = vmatmul.mubr.bf16.vlgmr.msra.gmra.mrb[64].mxu1 %v19854_v38  ;;  %v13911_v11 = vadd.f32 %v10542_v18, %v19845_v48 }
 0x709   : > { %v10546_v31 = vpop.f32.mrb[70].mxu0  ;;  %11323 = vmatpush1.bf16.msra.mxu1 %v16671_v41  ;;  %v13912_v16 = vadd.f32 %v10544_v22, %v19848_v52  ;;  %v16698_v22 = vld [vmem:[%s20592_s7 + $0x128] ss:$16 sps:$4 sm:$0xff]  }
 0x70a   : > { %v13913_v39 = vadd.f32 %v10546_v31, %v19845_v48  ;;  %v10548_v1 = vpop.f32.mrb[71].mxu0  ;;  %11324 = vmatprep.subr.bf16.mxu1 %v16676_v26 }
 0x70b   : > { %v13914_v42 = vadd.f32 %v10548_v1, %v19848_v52 }
 0x70c   : > { %v19876_v50 = vpack.c.bf16 %v13913_v39, %v13911_v11  ;;  %v16703_v39 = vld [vmem:[%s20592_s7 + $0x14c] ss:$16 sps:$4 sm:$0xff]  }
 0x70d   : > { %v19878_v56 = vpack.c.bf16 %v13914_v42, %v13912_v16  ;;  %11325 = vmatpush1.bf16.msra.mxu1 %v16674_v7 }
 0x70e   : > { %11326 = vmatprep.subr.bf16.mxu1 %v16679_v3 }
 0x70f   : > { %v10552_v53 = vpop.f32.mrb[72].mxu0  ;;  %11171 = vmatprep.mubr.bf16.mxu1 %v19878_v56 }
 0x710   : > { %v10554_v62 = vpop.f32.mrb[73].mxu0  ;;  %11172 = vmatmul.mubr.bf16.gmra.mrb[68].mxu1 %v19876_v50  ;;  %v13915_v63 = vadd.f32 %v10552_v53, %v19845_v48 }
 0x711   : > { %v10556_v29 = vpop.f32.mrb[74].mxu0  ;;  %11327 = vmatpush1.bf16.msra.mxu1 %v16677_v30  ;;  %v13916_v47 = vadd.f32 %v10554_v62, %v19848_v52  ;;  %v16701_v30 = vld [vmem:[%s20592_s7 + $0x148] ss:$16 sps:$4 sm:$0xff]  }
 0x712   : > { %v13917_v34 = vadd.f32 %v10556_v29, %v19845_v48  ;;  %v10558_v6 = vpop.f32.mrb[75].mxu0  ;;  %11328 = vmatprep.subr.bf16.mxu1 %v16682_v40  ;;  %v16706_v40 = vld [vmem:[%s20592_s7 + $0x16c] ss:$16 sps:$4 sm:$0xff]  }
 0x713   : > { %v13918_v45 = vadd.f32 %v10558_v6, %v19848_v52 }
 0x714   : > { %v19898_v28 = vpack.c.bf16 %v13917_v34, %v13915_v63 }
 0x715   : > { %v19900_v4 = vpack.c.bf16 %v13918_v45, %v13916_v47  ;;  %11329 = vmatpush1.bf16.msra.mxu1 %v16680_v44  ;;  %v16704_v44 = vld [vmem:[%s20592_s7 + $0x168] ss:$16 sps:$4 sm:$0xff]  }
 0x716   : > { %11330 = vmatprep.subr.bf16.mxu1 %v16685_v12  ;;  %v16709_v12 = vld [vmem:[%s20592_s7 + $0x18c] ss:$16 sps:$4 sm:$0xff]  }
 0x717   : > { %v10562_v25 = vpop.f32.mrb[76].mxu0  ;;  %11181 = vmatprep.mubr.bf16.mxu1 %v19900_v4 }
 0x718   : > { %v10564_v9 = vpop.f32.mrb[77].mxu0  ;;  %11182 = vmatmul.mubr.bf16.gmra.mrb[72].mxu1 %v19898_v28  ;;  %v13919_v21 = vadd.f32 %v10562_v25, %v19845_v48  ;;  %v16707_v25 = vld [vmem:[%s20592_s7 + $0x188] ss:$16 sps:$4 sm:$0xff]  }
 0x719   : > { %v10566_v24 = vpop.f32.mrb[78].mxu0  ;;  %11331 = vmatpush1.bf16.msra.mxu1 %v16683_v13  ;;  %v13920_v57 = vadd.f32 %v10564_v9, %v19848_v52  ;;  %v16712_v9 = vld [vmem:[%s20592_s7 + $0x1ac] ss:$16 sps:$4 sm:$0xff]  }
 0x71a   : > { %v13921_v59 = vadd.f32 %v10566_v24, %v19845_v48  ;;  %v10568_v33 = vpop.f32.mrb[79].mxu0  ;;  %11332 = vmatprep.subr.bf16.mxu1 %v16688_v14 }
 0x71b   : > { %v13922_v0 = vadd.f32 %v10568_v33, %v19848_v52 }
 0x71c   : > { %v19920_v20 = vpack.c.bf16 %v13921_v59, %v13919_v21  ;;  %v16710_v59 = vld [vmem:[%s20592_s7 + $0x1a8] ss:$16 sps:$4 sm:$0xff]  }
 0x71d   : > { %v19922_v5 = vpack.c.bf16 %v13922_v0, %v13920_v57  ;;  %11333 = vmatpush1.bf16.msra.mxu1 %v16686_v43  ;;  %v16715_v0 = vld [vmem:[%s20592_s7 + $0x1cc] ss:$16 sps:$4 sm:$0xff]  }
 0x71e   : > { %11334 = vmatprep.subr.bf16.mxu1 %v16691_v55 }
 0x71f   : > { %v10572_v61 = vpop.f32.mrb[80].mxu0  ;;  %11191 = vmatprep.mubr.bf16.mxu1 %v19922_v5 }
 0x720   : > { %v10574_v15 = vpop.f32.mrb[81].mxu0  ;;  %11192 = vmatmul.mubr.bf16.gmra.mrb[76].mxu1 %v19920_v20  ;;  %v13923_v8 = vadd.f32 %v10572_v61, %v19845_v48 }
 0x721   : > { %v10576_v17 = vpop.f32.mrb[82].mxu0  ;;  %11335 = vmatpush1.bf16.msra.mxu1 %v16689_v49  ;;  %v13924_v58 = vadd.f32 %v10574_v15, %v19848_v52 }
 0x722   : > { %v13925_v10 = vadd.f32 %v10576_v17, %v19845_v48  ;;  %v10578_v32 = vpop.f32.mrb[83].mxu0  ;;  %11336 = vmatprep.subr.bf16.mxu1 %v16694_v51  ;;  %v16713_v17 = vld [vmem:[%s20592_s7 + $0x1c8] ss:$16 sps:$4 sm:$0xff]  }
 0x723   : > { %v13926_v23 = vadd.f32 %v10578_v32, %v19848_v52 }
 0x724   : > { %v19942_v54 = vpack.c.bf16 %v13925_v10, %v13923_v8 }
 0x725   : > { %v19944_v46 = vpack.c.bf16 %v13926_v23, %v13924_v58  ;;  %11337 = vmatpush1.bf16.msra.mxu1 %v16692_v19  ;;  %v16718_v19 = vld [vmem:[%s20592_s7 + $0x1ec] ss:$16 sps:$4 sm:$0xff]   ;;  %v16719_v58 = vld [vmem:[%s20594_s9 + $0x40] sm:$0xff]  }
 0x726   : > { %11338 = vmatprep.subr.bf16.mxu1 %v16697_v27  ;;  %v16716_v27 = vld [vmem:[%s20592_s7 + $0x1e8] ss:$16 sps:$4 sm:$0xff]   ;;  %v16720_v23 = vld [vmem:[%s20594_s9] sm:$0xff]   ;;  %13683 = vmatprep.subr.bf16.mxu0 %v16719_v58 }
 0x727   : > { %v10582_v41 = vpop.f32.mrb[84].mxu0  ;;  %11201 = vmatprep.mubr.bf16.mxu1 %v19944_v46  ;;  %13684 = vmatpush3.bf16.msra.mxu0 %v16720_v23 }
 0x728   : > { %v10584_v26 = vpop.f32.mrb[85].mxu0  ;;  %11202 = vmatmul.mubr.bf16.gmra.mrb[80].mxu1 %v19942_v54  ;;  %v13927_v31 = vadd.f32 %v10582_v41, %v19845_v48 }
 0x729   : > { %v10586_v18 = vpop.f32.mrb[86].mxu0  ;;  %11339 = vmatpush1.bf16.msra.mxu1 %v16695_v36  ;;  %v13928_v1 = vadd.f32 %v10584_v26, %v19848_v52 }
 0x72a   : > { %v13929_v7 = vadd.f32 %v10586_v18, %v19845_v48  ;;  %v10588_v11 = vpop.f32.mrb[87].mxu0  ;;  %11340 = vmatprep.subr.bf16.mxu1 %v16700_v2 }
 0x72b   : > { %v13930_v3 = vadd.f32 %v10588_v11, %v19848_v52 }
 0x72c   : > { %v19964_v16 = vpack.c.bf16 %v13929_v7, %v13927_v31 }
 0x72d   : > { %v19966_v42 = vpack.c.bf16 %v13930_v3, %v13928_v1  ;;  %11341 = vmatpush1.bf16.msra.mxu1 %v16698_v22  ;;  %v16722_v3 = vld [vmem:[%s20594_s9 + $0x8] sm:$0xff]  }
 0x72e   : > { %11342 = vmatprep.subr.bf16.mxu1 %v16703_v39  ;;  %v16721_v39 = vld [vmem:[%s20594_s9 + $0x48] sm:$0xff]  }
 0x72f   : > { %v10592_v53 = vpop.f32.mrb[88].mxu0  ;;  %11211 = vmatprep.mubr.bf16.mxu1 %v19966_v42  ;;  %13685 = vmatprep.subr.bf16.mxu0 %v16721_v39  ;;  %v16733_v39 = vld [vmem:[%s20594_s9 + $0x78] sm:$0xff]  }
 0x730   : > { %v10594_v62 = vpop.f32.mrb[89].mxu0  ;;  %11212 = vmatmul.mubr.bf16.gmra.mrb[84].mxu1 %v19964_v16  ;;  %v13931_v63 = vadd.f32 %v10592_v53, %v19845_v48  ;;  %13686 = vmatpush3.bf16.msra.mxu0 %v16722_v3  ;;  %v16734_v3 = vld [vmem:[%s20594_s9 + $0x38] sm:$0xff]  }
 0x731   : > { %v10596_v29 = vpop.f32.mrb[90].mxu0  ;;  %11343 = vmatpush1.bf16.msra.mxu1 %v16701_v30  ;;  %v13932_v47 = vadd.f32 %v10594_v62, %v19848_v52  ;;  %v16723_v30 = vld [vmem:[%s20594_s9 + $0x50] sm:$0xff]  }
 0x732   : > { %v13933_v34 = vadd.f32 %v10596_v29, %v19845_v48  ;;  %v10598_v6 = vpop.f32.mrb[91].mxu0  ;;  %11344 = vmatprep.subr.bf16.mxu1 %v16706_v40  ;;  %13687 = vmatprep.subr.bf16.mxu0 %v16723_v30 }
 0x733   : > { %v13934_v45 = vadd.f32 %v10598_v6, %v19848_v52 }
 0x734   : > { %v19986_v13 = vpack.c.bf16 %v13933_v34, %v13931_v63  ;;  %v16724_v63 = vld [vmem:[%s20594_s9 + $0x10] sm:$0xff]  }
 0x735   : > { %v19988_v14 = vpack.c.bf16 %v13934_v45, %v13932_v47  ;;  %11345 = vmatpush1.bf16.msra.mxu1 %v16704_v44  ;;  %13688 = vmatpush3.bf16.msra.mxu0 %v16724_v63  ;;  %v16725_v45 = vld [vmem:[%s20594_s9 + $0x58] sm:$0xff]  }
 0x736   : > { %11346 = vmatprep.subr.bf16.mxu1 %v16709_v12  ;;  %13689 = vmatprep.subr.bf16.mxu0 %v16725_v45 }
 0x737   : > { %v10602_v24 = vpop.f32.mrb[92].mxu0  ;;  %11221 = vmatprep.mubr.bf16.mxu1 %v19988_v14 }
 0x738   : > { %v10604_v43 = vpop.f32.mrb[93].mxu0  ;;  %11222 = vmatmul.mubr.bf16.gmra.mrb[88].mxu1 %v19986_v13  ;;  %v13935_v33 = vadd.f32 %v10602_v24, %v19845_v48  ;;  %v16727_v24 = vld [vmem:[%s20594_s9 + $0x60] sm:$0xff]  }
 0x739   : > { %v10606_v21 = vpop.f32.mrb[94].mxu0  ;;  %11347 = vmatpush1.bf16.msra.mxu1 %v16707_v25  ;;  %v13936_v49 = vadd.f32 %v10604_v43, %v19848_v52 }
 0x73a   : > { %v13937_v55 = vadd.f32 %v10606_v21, %v19845_v48  ;;  %v10608_v57 = vpop.f32.mrb[95].mxu0  ;;  %11348 = vmatprep.subr.bf16.mxu1 %v16712_v9  ;;  %v16726_v9 = vld [vmem:[%s20594_s9 + $0x18] sm:$0xff]  }
 0x73b   : > { %v13938_v51 = vadd.f32 %v10608_v57, %v19848_v52  ;;  %13690 = vmatpush3.bf16.msra.mxu0 %v16726_v9  ;;  %v16728_v57 = vld [vmem:[%s20594_s9 + $0x20] sm:$0xff]  }
 0x73c   : > { %v20008_v61 = vpack.c.bf16 %v13937_v55, %v13935_v33  ;;  %13691 = vmatprep.subr.bf16.mxu0 %v16727_v24 }
 0x73d   : > { %v20010_v15 = vpack.c.bf16 %v13938_v51, %v13936_v49  ;;  %11349 = vmatpush1.bf16.msra.mxu1 %v16710_v59 }
 0x73e   : > { %11350 = vmatprep.subr.bf16.mxu1 %v16715_v0 }
 0x73f   : > { %v10612_v8 = vpop.f32.mrb[96].mxu0  ;;  %11231 = vmatprep.mubr.bf16.mxu1 %v20010_v15  ;;  %13692 = vmatpush3.bf16.msra.mxu0 %v16728_v57 }
 0x740   : > { %v10614_v10 = vpop.f32.mrb[97].mxu0  ;;  %11232 = vmatmul.mubr.bf16.gmra.mrb[92].mxu1 %v20008_v61  ;;  %v13939_v36 = vadd.f32 %v10612_v8, %v19845_v48 }
 0x741   : > { %v10616_v32 = vpop.f32.mrb[98].mxu0  ;;  %11351 = vmatpush1.bf16.msra.mxu1 %v16713_v17  ;;  %v13940_v26 = vadd.f32 %v10614_v10, %v19848_v52  ;;  %v16730_v10 = vld [vmem:[%s20594_s9 + $0x28] sm:$0xff]  }
 0x742   : > { %v13941_v2 = vadd.f32 %v10616_v32, %v19845_v48  ;;  %v10618_v41 = vpop.f32.mrb[99].mxu0  ;;  %11352 = vmatprep.subr.bf16.mxu1 %v16718_v19  ;;  %v16729_v19 = vld [vmem:[%s20594_s9 + $0x68] sm:$0xff]  }
 0x743   : > { %v13942_v18 = vadd.f32 %v10618_v41, %v19848_v52  ;;  %13693 = vmatprep.subr.bf16.mxu0 %v16729_v19  ;;  %v16731_v41 = vld [vmem:[%s20594_s9 + $0x70] sm:$0xff]  }
 0x744   : > { %v20033_v22 = vpack.c.bf16 %v13941_v2, %v13939_v36  ;;  %13694 = vmatpush3.bf16.msra.mxu0 %v16730_v10 }
 0x745   : > { %v20035_v31 = vpack.c.bf16 %v13942_v18, %v13940_v26  ;;  %11353 = vmatpush1.bf16.msra.mxu1 %v16716_v27  ;;  %v16732_v18 = vld [vmem:[%s20594_s9 + $0x30] sm:$0xff]   ;;  %13695 = vmatprep.subr.bf16.mxu0 %v16731_v41 }
 0x747   : > { %v10622_v7 = vpop.f32.mrb[100].mxu0  ;;  %11241 = vmatprep.mubr.bf16.mxu1 %v20035_v31 }
 0x748   : > { %v10624_v11 = vpop.f32.mrb[101].mxu0  ;;  %11242 = vmatmul.mubr.bf16.gmra.mrb[96].mxu1 %v20033_v22  ;;  %v13943_v40 = vadd.f32 %v10622_v7, %v19845_v48  ;;  %13696 = vmatpush3.bf16.msra.mxu0 %v16732_v18 }
 0x749   : > { %v10626_v1 = vpop.f32.mrb[102].mxu0  ;;  %v13944_v29 = vadd.f32 %v10624_v11, %v19848_v52  ;;  %13697 = vmatprep.subr.bf16.mxu0 %v16733_v39 }
 0x74a   : > { %v13945_v53 = vadd.f32 %v10626_v1, %v19845_v48  ;;  %v10628_v62 = vpop.f32.mrb[103].mxu0 }
 0x74b   : > { %v13946_v44 = vadd.f32 %v10628_v62, %v19848_v52 }
 0x74c   : > { %v20055_v34 = vpack.c.bf16 %v13945_v53, %v13943_v40  ;;  %13698 = vmatpush3.bf16.msra.mxu0 %v16734_v3 }
 0x74d   : > { %v20057_v6 = vpack.c.bf16 %v13946_v44, %v13944_v29 }
 0x74f   : > { %v10632_v12 = vpop.f32.mrb[104].mxu0  ;;  %11251 = vmatprep.mubr.bf16.mxu1 %v20057_v6 }
 0x750   : > { %v10634_v47 = vpop.f32.mrb[105].mxu0  ;;  %11252 = vmatmul.mubr.bf16.gmra.mrb[100].mxu1 %v20055_v34  ;;  %v13947_v43 = vadd.f32 %v10632_v12, %v19845_v48 }
 0x751   : > { %v10636_v25 = vpop.f32.mrb[106].mxu0  ;;  %v13948_v33 = vadd.f32 %v10634_v47, %v19848_v52 }
 0x752   : > { %v13949_v21 = vadd.f32 %v10636_v25, %v19845_v48  ;;  %v10638_v59 = vpop.f32.mrb[107].mxu0 }
 0x753   : > { %v13950_v55 = vadd.f32 %v10638_v59, %v19848_v52  ;;  %v16735_v59 = vld [vmem:[%s20594_s9 + $0xc0] sm:$0xff]  }
 0x754   : > { %v20077_v0 = vpack.c.bf16 %v13949_v21, %v13947_v43  ;;  %13795 = vmatprep.subr.bf16.mxu1 %v16735_v59 }
 0x755   : > { %v20079_v49 = vpack.c.bf16 %v13950_v55, %v13948_v33 }
 0x757   : > { %v10642_v51 = vpop.f32.mrb[108].mxu0  ;;  %11261 = vmatprep.mubr.bf16.mxu1 %v20079_v49 }
 0x758   : > { %v10644_v17 = vpop.f32.mrb[109].mxu0  ;;  %11262 = vmatmul.mubr.bf16.gmra.mrb[104].mxu1 %v20077_v0  ;;  %v13951_v32 = vadd.f32 %v10642_v51, %v19845_v48 }
 0x759   : > { %v10646_v8 = vpop.f32.mrb[110].mxu0  ;;  %v13952_v23 = vadd.f32 %v10644_v17, %v19848_v52 }
 0x75a   : > { %v13953_v27 = vadd.f32 %v10646_v8, %v19845_v48  ;;  %v10648_v58 = vpop.f32.mrb[111].mxu0 }
 0x75b   : > { %v13954_v36 = vadd.f32 %v10648_v58, %v19848_v52 }
 0x75c   : > { %v20093_v2 = vpack.c.bf16 %v13953_v27, %v13951_v32 }
 0x75d   : > { %v20098_v26 = vpack.c.bf16 %v13954_v36, %v13952_v23 }
 0x75f   : > { %v10652_v7 = vpop.f32.mrb[112].mxu0  ;;  %11271 = vmatprep.mubr.bf16.mxu1 %v20098_v26 }
 0x760   : > { %v10654_v11 = vpop.f32.mrb[113].mxu0  ;;  %11272 = vmatmul.mubr.bf16.gmra.mrb[108].mxu1 %v20093_v2  ;;  %v13955_v30 = vadd.f32 %v10652_v7, %v19845_v48 }
 0x761   : > { %v10656_v1 = vpop.f32.mrb[114].mxu0  ;;  %v13956_v62 = vadd.f32 %v10654_v11, %v19848_v52 }
 0x762   : > { %v13957_v40 = vadd.f32 %v10656_v1, %v19845_v48  ;;  %v10658_v53 = vpop.f32.mrb[115].mxu0 }
 0x763   : > { %v13958_v29 = vadd.f32 %v10658_v53, %v19848_v52  ;;  %v16736_v53 = vld [vmem:[%s20594_s9 + $0x80] sm:$0xff]  }
 0x764   : > { %v20115_v44 = vpack.c.bf16 %v13957_v40, %v13955_v30 }
 0x765   : > { %v20117_v63 = vpack.c.bf16 %v13958_v29, %v13956_v62  ;;  %v16740_v62 = vld [vmem:[%s20594_s9 + $0x90] sm:$0xff]  }
 0x767   : > { %v10662_v12 = vpop.f32.mrb[116].mxu0  ;;  %11281 = vmatprep.mubr.bf16.mxu1 %v20117_v63 }
 0x768   : > { %v10664_v47 = vpop.f32.mrb[117].mxu0  ;;  %11282 = vmatmul.mubr.bf16.gmra.mrb[112].mxu1 %v20115_v44  ;;  %v13959_v25 = vadd.f32 %v10662_v12, %v19845_v48 }
 0x769   : > { %v10666_v45 = vpop.f32.mrb[118].mxu0  ;;  %v13960_v43 = vadd.f32 %v10664_v47, %v19848_v52 }
 0x76a   : > { %v13961_v9 = vadd.f32 %v10666_v45, %v19845_v48  ;;  %v10668_v24 = vpop.f32.mrb[119].mxu0 }
 0x76b   : > { %v13962_v21 = vadd.f32 %v10668_v24, %v19848_v52 }
 0x76c   : > { %v20128_v33 = vpack.c.bf16 %v13961_v9, %v13959_v25 }
 0x76d   : > { %v20130_v55 = vpack.c.bf16 %v13962_v21, %v13960_v43 }
 0x76f   : > { %v10672_v57 = vpop.f32.mrb[120].mxu0  ;;  %11291 = vmatprep.mubr.bf16.mxu1 %v20130_v55 }
 0x770   : > { %v10674_v51 = vpop.f32.mrb[121].mxu0  ;;  %11292 = vmatmul.mubr.bf16.gmra.mrb[116].mxu1 %v20128_v33  ;;  %v13963_v19 = vadd.f32 %v10672_v57, %v19845_v48 }
 0x771   : > { %v10676_v17 = vpop.f32.mrb[122].mxu0  ;;  %v13964_v32 = vadd.f32 %v10674_v51, %v19848_v52 }
 0x772   : > { %v13965_v8 = vadd.f32 %v10676_v17, %v19845_v48  ;;  %v10678_v10 = vpop.f32.mrb[123].mxu0 }
 0x773   : > { %v13966_v27 = vadd.f32 %v10678_v10, %v19848_v52 }
 0x774   : > { %v20138_v58 = vpack.c.bf16 %v13965_v8, %v13963_v19 }
 0x775   : > { %v20140_v23 = vpack.c.bf16 %v13966_v27, %v13964_v32 }
 0x777   : > { %v10682_v36 = vpop.f32.mrb[124].mxu0  ;;  %11301 = vmatprep.mubr.bf16.mxu1 %v20140_v23 }
 0x778   : > { %v10684_v41 = vpop.f32.mrb[125].mxu0  ;;  %11302 = vmatmul.mubr.bf16.gmra.mrb[120].mxu1 %v20138_v58  ;;  %v13967_v7 = vadd.f32 %v10682_v36, %v19845_v48 }
 0x779   : > { %v10686_v18 = vpop.f32.mrb[126].mxu0  ;;  %v13968_v1 = vadd.f32 %v10684_v41, %v19848_v52 }
 0x77a   : > { %v13969_v11 = vadd.f32 %v10686_v18, %v19845_v48  ;;  %v10688_v39 = vpop.f32.mrb[127].mxu0  ;;  %v16737_v48 = vld [vmem:[%s20594_s9 + $0xc8] sm:$0xff]  }
 0x77b   : > { %v13970_v3 = vadd.f32 %v10688_v39, %v19848_v52  ;;  %v16738_v52 = vld [vmem:[%s20594_s9 + $0x88] sm:$0xff]  }
 0x77c   : > { %v20148_v30 = vpack.c.bf16 %v13969_v11, %v13967_v7 }
 0x77d   : > { %v20150_v40 = vpack.c.bf16 %v13970_v3, %v13968_v1 }
 0x77f   : > { %11311 = vmatprep.mubr.bf16.mxu1 %v20150_v40 }
 0x780   : > { %11312 = vmatmul.mubr.bf16.gmra.mrb[124].mxu1 %v20148_v30 }
 0x781   : > { %11354 = vmatprep.mubr.bf16.mxu1 %v19856_v35  ;;  %v16739_v35 = vld [vmem:[%s20594_s9 + $0xd0] sm:$0xff]  }
 0x788   : > { %11355 = vmatmul.mubr.bf16.vlgmr.msra.gmra.mrb[128].mxu1 %v19854_v38  ;;  %v16741_v38 = vld [vmem:[%s20594_s9 + $0xd8] sm:$0xff]  }
 0x789   : > { %11364 = vmatprep.mubr.bf16.mxu1 %v19878_v56  ;;  %13796 = vmatpush3.bf16.msra.mxu1 %v16736_v53  ;;  %v16742_v56 = vld [vmem:[%s20594_s9 + $0x98] sm:$0xff]  }
 0x78a   : > { %13797 = vmatprep.subr.bf16.mxu1 %v16737_v48 }
 0x78d   : > { %13798 = vmatpush3.bf16.msra.mxu1 %v16738_v52 }
 0x78e   : > { %13799 = vmatprep.subr.bf16.mxu1 %v16739_v35 }
 0x790   : > { %11365 = vmatmul.mubr.bf16.gmra.mrb[132].mxu1 %v19876_v50  ;;  %v16743_v50 = vld [vmem:[%s20594_s9 + $0xe0] sm:$0xff]  }
 0x791   : > { %11374 = vmatprep.mubr.bf16.mxu1 %v19900_v4  ;;  %13800 = vmatpush3.bf16.msra.mxu1 %v16740_v62  ;;  %v16745_v4 = vld [vmem:[%s20594_s9 + $0xe8] sm:$0xff]  }
 0x792   : > { %13801 = vmatprep.subr.bf16.mxu1 %v16741_v38 }
 0x795   : > { %13802 = vmatpush3.bf16.msra.mxu1 %v16742_v56 }
 0x796   : > { %13803 = vmatprep.subr.bf16.mxu1 %v16743_v50 }
 0x798   : > { %11375 = vmatmul.mubr.bf16.gmra.mrb[136].mxu1 %v19898_v28  ;;  %v16744_v28 = vld [vmem:[%s20594_s9 + $0xa0] sm:$0xff]  }
 0x799   : > { %11384 = vmatprep.mubr.bf16.mxu1 %v19922_v5  ;;  %13804 = vmatpush3.bf16.msra.mxu1 %v16744_v28  ;;  %v16747_v5 = vld [vmem:[%s20594_s9 + $0xf0] sm:$0xff]  }
 0x79a   : > { %13805 = vmatprep.subr.bf16.mxu1 %v16745_v4 }
 0x7a0   : > { %11385 = vmatmul.mubr.bf16.gmra.mrb[140].mxu1 %v19920_v20  ;;  %v16746_v20 = vld [vmem:[%s20594_s9 + $0xa8] sm:$0xff]  }
 0x7a1   : > { %11394 = vmatprep.mubr.bf16.mxu1 %v19944_v46  ;;  %13806 = vmatpush3.bf16.msra.mxu1 %v16746_v20  ;;  %v20217_v46 = vld [vmem:[%s20593_s8] sm:$0xf] }
 0x7a2   : > { %13807 = vmatprep.subr.bf16.mxu1 %v16747_v5 }
 0x7a8   : > { %11395 = vmatmul.mubr.bf16.gmra.mrb[144].mxu1 %v19942_v54  ;;  %v16748_v54 = vld [vmem:[%s20594_s9 + $0xb0] sm:$0xff]  }
 0x7a9   : > { %11404 = vmatprep.mubr.bf16.mxu1 %v19966_v42  ;;  %13808 = vmatpush3.bf16.msra.mxu1 %v16748_v54  ;;  %v20227_v42 = vrot.slane %v20217_v46, %v20693_v37 }
 0x7b0   : > { %11405 = vmatmul.mubr.bf16.gmra.mrb[148].mxu1 %v19964_v16  ;;  %v20222_v16 = vrot.slane %v20217_v46, %v20692_v60 }
 0x7b1   : > { %11414 = vmatprep.mubr.bf16.mxu1 %v19988_v14  ;;  %v16749_v14 = vld [vmem:[%s20594_s9 + $0xf8] sm:$0xff]  }
 0x7b2   : > { %13809 = vmatprep.subr.bf16.mxu1 %v16749_v14 }
 0x7b8   : > { %11415 = vmatmul.mubr.bf16.gmra.mrb[152].mxu1 %v19986_v13 }
 0x7b9   : > { %11424 = vmatprep.mubr.bf16.mxu1 %v20010_v15 }
 0x7c0   : > { %11425 = vmatmul.mubr.bf16.gmra.mrb[156].mxu1 %v20008_v61  ;;  %v16750_v61 = vld [vmem:[%s20594_s9 + $0xb8] sm:$0xff]  }
 0x7c1   : > { %11434 = vmatprep.mubr.bf16.mxu1 %v20035_v31  ;;  %13810 = vmatpush3.bf16.msra.mxu1 %v16750_v61 }
 0x7c8   : > { %11435 = vmatmul.mubr.bf16.gmra.mrb[160].mxu1 %v20033_v22 }
 0x7c9   : > { %11444 = vmatprep.mubr.bf16.mxu1 %v20057_v6 }
 0x7d0   : > { %11445 = vmatmul.mubr.bf16.gmra.mrb[164].mxu1 %v20055_v34 }
 0x7d1   : > { %11454 = vmatprep.mubr.bf16.mxu1 %v20079_v49 }
 0x7d8   : > { %11455 = vmatmul.mubr.bf16.gmra.mrb[168].mxu1 %v20077_v0 }
 0x7d9   : > { %11464 = vmatprep.mubr.bf16.mxu1 %v20098_v26 }
 0x7db   : > { %v11163_v13 = vpop.f32.mrb[64].mxu1 }
 0x7dc   : > { %v11164_v15 = vadd.f32 %v11163_v13, %v20222_v16  ;;  %v11165_v22 = vpop.f32.mrb[65].mxu1 }
 0x7dd   : > { %v11166_v60 = vadd.f32 %v11165_v22, %v20227_v42  ;;  %v11167_v31 = vpop.f32.mrb[66].mxu1 }
 0x7de   : > { %v11168_v34 = vadd.f32 %v11167_v31, %v20222_v16  ;;  %v11169_v37 = vpop.f32.mrb[67].mxu1  ;;  %v11515_v0 = vmax.f32 %v11164_v15, 0.0 }
 0x7df   : > { %v11170_v6 = vadd.f32 %v11169_v37, %v20227_v42  ;;  %v11516_v26 = vmax.f32 %v11166_v60, 0.0 }
 0x7e0   : > { %v11519_v49 = vmax.f32 %v11168_v34, 0.0  ;;  %11465 = vmatmul.mubr.bf16.gmra.mrb[172].mxu1 %v20093_v2 }
 0x7e1   : > { %v11520_v29 = vmax.f32 %v11170_v6, 0.0  ;;  %11474 = vmatprep.mubr.bf16.mxu1 %v20117_v63 }
 0x7e2   : > { %v11643_v12 = vpack.c.bf16 %v11519_v49, %v11515_v0 }
 0x7e3   : > { %v11644_v47 = vpack.c.bf16 %v11520_v29, %v11516_v26  ;;  %v11173_v45 = vpop.f32.mrb[68].mxu1 }
 0x7e4   : > { %v11174_v25 = vadd.f32 %v11173_v45, %v20222_v16  ;;  %v11175_v9 = vpop.f32.mrb[69].mxu1 }
 0x7e5   : > { %v11176_v24 = vadd.f32 %v11175_v9, %v20227_v42  ;;  %v11177_v43 = vpop.f32.mrb[70].mxu1  ;;  %12002 = vmatprep.mubr.bf16.mxu0 %v11644_v47 }
 0x7e6   : > { %v11178_v21 = vadd.f32 %v11177_v43, %v20222_v16  ;;  %v11179_v59 = vpop.f32.mrb[71].mxu1  ;;  %12003 = vmatmul.mubr.bf16.vlgmr.msra.gmra.mrb[128].mxu0 %v11643_v12  ;;  %v11523_v57 = vmax.f32 %v11174_v25, 0.0 }
 0x7e7   : > { %v11180_v2 = vadd.f32 %v11179_v59, %v20227_v42  ;;  %v11524_v63 = vmax.f32 %v11176_v24, 0.0 }
 0x7e8   : > { %v11527_v51 = vmax.f32 %v11178_v21, 0.0  ;;  %11475 = vmatmul.mubr.bf16.gmra.mrb[176].mxu1 %v20115_v44 }
 0x7e9   : > { %v11528_v17 = vmax.f32 %v11180_v2, 0.0  ;;  %11484 = vmatprep.mubr.bf16.mxu1 %v20130_v55 }
 0x7ea   : > { %v11647_v19 = vpack.c.bf16 %v11527_v51, %v11523_v57 }
 0x7eb   : > { %v11648_v8 = vpack.c.bf16 %v11528_v17, %v11524_v63  ;;  %v11183_v10 = vpop.f32.mrb[72].mxu1 }
 0x7ec   : > { %v11184_v32 = vadd.f32 %v11183_v10, %v20222_v16  ;;  %v11185_v27 = vpop.f32.mrb[73].mxu1 }
 0x7ed   : > { %v11186_v36 = vadd.f32 %v11185_v27, %v20227_v42  ;;  %v11187_v41 = vpop.f32.mrb[74].mxu1  ;;  %12010 = vmatprep.mubr.bf16.mxu0 %v11648_v8 }
 0x7ee   : > { %v11188_v18 = vadd.f32 %v11187_v41, %v20222_v16  ;;  %v11189_v7 = vpop.f32.mrb[75].mxu1  ;;  %12011 = vmatmul.mubr.bf16.gmra.mrb[132].mxu0 %v11647_v19  ;;  %v11531_v11 = vmax.f32 %v11184_v32, 0.0 }
 0x7ef   : > { %v11190_v44 = vadd.f32 %v11189_v7, %v20227_v42  ;;  %v11532_v55 = vmax.f32 %v11186_v36, 0.0 }
 0x7f0   : > { %v11535_v39 = vmax.f32 %v11188_v18, 0.0  ;;  %11485 = vmatmul.mubr.bf16.gmra.mrb[180].mxu1 %v20128_v33 }
 0x7f1   : > { %v11536_v1 = vmax.f32 %v11190_v44, 0.0  ;;  %11494 = vmatprep.mubr.bf16.mxu1 %v20140_v23 }
 0x7f2   : > { %v11651_v3 = vpack.c.bf16 %v11535_v39, %v11531_v11 }
 0x7f3   : > { %v11652_v53 = vpack.c.bf16 %v11536_v1, %v11532_v55  ;;  %v11193_v48 = vpop.f32.mrb[76].mxu1 }
 0x7f4   : > { %v11194_v52 = vadd.f32 %v11193_v48, %v20222_v16  ;;  %v11195_v35 = vpop.f32.mrb[77].mxu1 }
 0x7f5   : > { %v11196_v62 = vadd.f32 %v11195_v35, %v20227_v42  ;;  %v11197_v38 = vpop.f32.mrb[78].mxu1  ;;  %12018 = vmatprep.mubr.bf16.mxu0 %v11652_v53 }
 0x7f6   : > { %v11198_v56 = vadd.f32 %v11197_v38, %v20222_v16  ;;  %v11199_v50 = vpop.f32.mrb[79].mxu1  ;;  %12019 = vmatmul.mubr.bf16.gmra.mrb[136].mxu0 %v11651_v3  ;;  %v11539_v28 = vmax.f32 %v11194_v52, 0.0 }
 0x7f7   : > { %v11200_v33 = vadd.f32 %v11199_v50, %v20227_v42  ;;  %v11540_v23 = vmax.f32 %v11196_v62, 0.0 }
 0x7f8   : > { %v11543_v4 = vmax.f32 %v11198_v56, 0.0  ;;  %11495 = vmatmul.mubr.bf16.gmra.mrb[184].mxu1 %v20138_v58 }
 0x7f9   : > { %v11544_v20 = vmax.f32 %v11200_v33, 0.0  ;;  %11504 = vmatprep.mubr.bf16.mxu1 %v20150_v40 }
 0x7fa   : > { %v11655_v5 = vpack.c.bf16 %v11543_v4, %v11539_v28 }
 0x7fb   : > { %v11656_v54 = vpack.c.bf16 %v11544_v20, %v11540_v23  ;;  %v11203_v13 = vpop.f32.mrb[80].mxu1 }
 0x7fc   : > { %v11204_v14 = vadd.f32 %v11203_v13, %v20222_v16  ;;  %v11205_v61 = vpop.f32.mrb[81].mxu1 }
 0x7fd   : > { %v11206_v15 = vadd.f32 %v11205_v61, %v20227_v42  ;;  %v11207_v22 = vpop.f32.mrb[82].mxu1  ;;  %12026 = vmatprep.mubr.bf16.mxu0 %v11656_v54 }
 0x7fe   : > { %v11208_v60 = vadd.f32 %v11207_v22, %v20222_v16  ;;  %v11209_v31 = vpop.f32.mrb[83].mxu1  ;;  %12027 = vmatmul.mubr.bf16.gmra.mrb[140].mxu0 %v11655_v5  ;;  %v11547_v34 = vmax.f32 %v11204_v14, 0.0 }
 0x7ff   : > { %v11210_v58 = vadd.f32 %v11209_v31, %v20227_v42  ;;  %v11548_v40 = vmax.f32 %v11206_v15, 0.0 }
 0x800   : > { %v11551_v37 = vmax.f32 %v11208_v60, 0.0  ;;  %11505 = vmatmul.mubr.bf16.gmra.mrb[188].mxu1 %v20148_v30 }
 0x801   : > { %v11552_v6 = vmax.f32 %v11210_v58, 0.0 }
 0x802   : > { %v11659_v0 = vpack.c.bf16 %v11551_v37, %v11547_v34 }
 0x803   : > { %v11660_v49 = vpack.c.bf16 %v11552_v6, %v11548_v40  ;;  %v11213_v26 = vpop.f32.mrb[84].mxu1 }
 0x804   : > { %v11214_v29 = vadd.f32 %v11213_v26, %v20222_v16  ;;  %v11215_v12 = vpop.f32.mrb[85].mxu1 }
 0x805   : > { %v11216_v47 = vadd.f32 %v11215_v12, %v20227_v42  ;;  %v11217_v45 = vpop.f32.mrb[86].mxu1  ;;  %12034 = vmatprep.mubr.bf16.mxu0 %v11660_v49 }
 0x806   : > { %v11218_v25 = vadd.f32 %v11217_v45, %v20222_v16  ;;  %v11219_v9 = vpop.f32.mrb[87].mxu1  ;;  %12035 = vmatmul.mubr.bf16.gmra.mrb[144].mxu0 %v11659_v0  ;;  %v11555_v43 = vmax.f32 %v11214_v29, 0.0 }
 0x807   : > { %v11220_v24 = vadd.f32 %v11219_v9, %v20227_v42  ;;  %v11556_v21 = vmax.f32 %v11216_v47, 0.0 }
 0x808   : > { %v11559_v30 = vmax.f32 %v11218_v25, 0.0 }
 0x809   : > { %v11560_v59 = vmax.f32 %v11220_v24, 0.0 }
 0x80a   : > { %v11663_v2 = vpack.c.bf16 %v11559_v30, %v11555_v43 }
 0x80b   : > { %v11664_v57 = vpack.c.bf16 %v11560_v59, %v11556_v21  ;;  %v11223_v51 = vpop.f32.mrb[88].mxu1 }
 0x80c   : > { %v11224_v63 = vadd.f32 %v11223_v51, %v20222_v16  ;;  %v11225_v17 = vpop.f32.mrb[89].mxu1 }
 0x80d   : > { %v11226_v19 = vadd.f32 %v11225_v17, %v20227_v42  ;;  %v11227_v8 = vpop.f32.mrb[90].mxu1  ;;  %12042 = vmatprep.mubr.bf16.mxu0 %v11664_v57 }
 0x80e   : > { %v11228_v10 = vadd.f32 %v11227_v8, %v20222_v16  ;;  %v11229_v32 = vpop.f32.mrb[91].mxu1  ;;  %12043 = vmatmul.mubr.bf16.gmra.mrb[148].mxu0 %v11663_v2  ;;  %v11563_v36 = vmax.f32 %v11224_v63, 0.0 }
 0x80f   : > { %v11230_v27 = vadd.f32 %v11229_v32, %v20227_v42  ;;  %v11564_v18 = vmax.f32 %v11226_v19, 0.0 }
 0x810   : > { %v11567_v41 = vmax.f32 %v11228_v10, 0.0 }
 0x811   : > { %v11568_v7 = vmax.f32 %v11230_v27, 0.0 }
 0x812   : > { %v11667_v44 = vpack.c.bf16 %v11567_v41, %v11563_v36 }
 0x813   : > { %v11668_v11 = vpack.c.bf16 %v11568_v7, %v11564_v18  ;;  %v11233_v39 = vpop.f32.mrb[92].mxu1 }
 0x814   : > { %v11234_v55 = vadd.f32 %v11233_v39, %v20222_v16  ;;  %v11235_v1 = vpop.f32.mrb[93].mxu1 }
 0x815   : > { %v11236_v3 = vadd.f32 %v11235_v1, %v20227_v42  ;;  %v11237_v53 = vpop.f32.mrb[94].mxu1  ;;  %12050 = vmatprep.mubr.bf16.mxu0 %v11668_v11 }
 0x816   : > { %v11238_v48 = vadd.f32 %v11237_v53, %v20222_v16  ;;  %v11239_v52 = vpop.f32.mrb[95].mxu1  ;;  %12051 = vmatmul.mubr.bf16.gmra.mrb[152].mxu0 %v11667_v44  ;;  %v11571_v62 = vmax.f32 %v11234_v55, 0.0 }
 0x817   : > { %v11240_v35 = vadd.f32 %v11239_v52, %v20227_v42  ;;  %v11572_v56 = vmax.f32 %v11236_v3, 0.0 }
 0x818   : > { %v11575_v38 = vmax.f32 %v11238_v48, 0.0 }
 0x819   : > { %v11576_v50 = vmax.f32 %v11240_v35, 0.0 }
 0x81a   : > { %v11671_v33 = vpack.c.bf16 %v11575_v38, %v11571_v62 }
 0x81b   : > { %v11672_v28 = vpack.c.bf16 %v11576_v50, %v11572_v56  ;;  %v11243_v4 = vpop.f32.mrb[96].mxu1 }
 0x81c   : > { %v11244_v23 = vadd.f32 %v11243_v4, %v20222_v16  ;;  %v11245_v20 = vpop.f32.mrb[97].mxu1 }
 0x81d   : > { %v11246_v5 = vadd.f32 %v11245_v20, %v20227_v42  ;;  %v11247_v54 = vpop.f32.mrb[98].mxu1  ;;  %12058 = vmatprep.mubr.bf16.mxu0 %v11672_v28 }
 0x81e   : > { %v11248_v13 = vadd.f32 %v11247_v54, %v20222_v16  ;;  %v11249_v14 = vpop.f32.mrb[99].mxu1  ;;  %12059 = vmatmul.mubr.bf16.gmra.mrb[156].mxu0 %v11671_v33  ;;  %v11579_v15 = vmax.f32 %v11244_v23, 0.0 }
 0x81f   : > { %v11250_v61 = vadd.f32 %v11249_v14, %v20227_v42  ;;  %v11580_v60 = vmax.f32 %v11246_v5, 0.0 }
 0x820   : > { %v11583_v22 = vmax.f32 %v11248_v13, 0.0 }
 0x821   : > { %v11584_v31 = vmax.f32 %v11250_v61, 0.0 }
 0x822   : > { %v11675_v58 = vpack.c.bf16 %v11583_v22, %v11579_v15 }
 0x823   : > { %v11676_v34 = vpack.c.bf16 %v11584_v31, %v11580_v60  ;;  %v11253_v37 = vpop.f32.mrb[100].mxu1 }
 0x824   : > { %v11254_v40 = vadd.f32 %v11253_v37, %v20222_v16  ;;  %v11255_v6 = vpop.f32.mrb[101].mxu1 }
 0x825   : > { %v11256_v0 = vadd.f32 %v11255_v6, %v20227_v42  ;;  %v11257_v49 = vpop.f32.mrb[102].mxu1  ;;  %12066 = vmatprep.mubr.bf16.mxu0 %v11676_v34 }
 0x826   : > { %v11258_v26 = vadd.f32 %v11257_v49, %v20222_v16  ;;  %v11259_v29 = vpop.f32.mrb[103].mxu1  ;;  %12067 = vmatmul.mubr.bf16.gmra.mrb[160].mxu0 %v11675_v58  ;;  %v11587_v47 = vmax.f32 %v11254_v40, 0.0 }
 0x827   : > { %v11260_v12 = vadd.f32 %v11259_v29, %v20227_v42  ;;  %v11588_v25 = vmax.f32 %v11256_v0, 0.0 }
 0x828   : > { %v11591_v45 = vmax.f32 %v11258_v26, 0.0 }
 0x829   : > { %v11592_v9 = vmax.f32 %v11260_v12, 0.0 }
 0x82a   : > { %v11679_v24 = vpack.c.bf16 %v11591_v45, %v11587_v47 }
 0x82b   : > { %v11680_v43 = vpack.c.bf16 %v11592_v9, %v11588_v25  ;;  %v11263_v30 = vpop.f32.mrb[104].mxu1 }
 0x82c   : > { %v11264_v21 = vadd.f32 %v11263_v30, %v20222_v16  ;;  %v11265_v59 = vpop.f32.mrb[105].mxu1 }
 0x82d   : > { %v11266_v2 = vadd.f32 %v11265_v59, %v20227_v42  ;;  %v11267_v57 = vpop.f32.mrb[106].mxu1  ;;  %12074 = vmatprep.mubr.bf16.mxu0 %v11680_v43 }
 0x82e   : > { %v11268_v51 = vadd.f32 %v11267_v57, %v20222_v16  ;;  %v11269_v63 = vpop.f32.mrb[107].mxu1  ;;  %12075 = vmatmul.mubr.bf16.gmra.mrb[164].mxu0 %v11679_v24  ;;  %v11595_v19 = vmax.f32 %v11264_v21, 0.0 }
 0x82f   : > { %v11270_v17 = vadd.f32 %v11269_v63, %v20227_v42  ;;  %v11596_v10 = vmax.f32 %v11266_v2, 0.0 }
 0x830   : > { %v11599_v8 = vmax.f32 %v11268_v51, 0.0 }
 0x831   : > { %v11600_v32 = vmax.f32 %v11270_v17, 0.0 }
 0x832   : > { %v11683_v27 = vpack.c.bf16 %v11599_v8, %v11595_v19 }
 0x833   : > { %v11684_v36 = vpack.c.bf16 %v11600_v32, %v11596_v10  ;;  %v11273_v41 = vpop.f32.mrb[108].mxu1 }
 0x834   : > { %v11274_v18 = vadd.f32 %v11273_v41, %v20222_v16  ;;  %v11275_v7 = vpop.f32.mrb[109].mxu1 }
 0x835   : > { %v11276_v44 = vadd.f32 %v11275_v7, %v20227_v42  ;;  %v11277_v11 = vpop.f32.mrb[110].mxu1  ;;  %12082 = vmatprep.mubr.bf16.mxu0 %v11684_v36 }
 0x836   : > { %v11278_v39 = vadd.f32 %v11277_v11, %v20222_v16  ;;  %v11279_v55 = vpop.f32.mrb[111].mxu1  ;;  %12083 = vmatmul.mubr.bf16.gmra.mrb[168].mxu0 %v11683_v27  ;;  %v11603_v3 = vmax.f32 %v11274_v18, 0.0 }
 0x837   : > { %v11280_v1 = vadd.f32 %v11279_v55, %v20227_v42  ;;  %v11604_v48 = vmax.f32 %v11276_v44, 0.0 }
 0x838   : > { %v11607_v53 = vmax.f32 %v11278_v39, 0.0  ;;  %v20694_v39 = vld [vmem:[#allocation3_spill] sm:$0xff] }
 0x839   : > { %v11608_v52 = vmax.f32 %v11280_v1, 0.0  ;;  %v20695_v55 = vsub.s32 2, %v20694_v39 }
 0x83a   : > { %v11687_v35 = vpack.c.bf16 %v11607_v53, %v11603_v3 }
 0x83b   : > { %v11688_v62 = vpack.c.bf16 %v11608_v52, %v11604_v48  ;;  %v11283_v38 = vpop.f32.mrb[112].mxu1  ;;  %v20311_v1 = vrot.slane %v20217_v46, %v20695_v55  ;;  %v20696_v48 = vsub.s32 3, %v20694_v39 }
 0x83c   : > { %v11284_v56 = vadd.f32 %v11283_v38, %v20222_v16  ;;  %v11285_v50 = vpop.f32.mrb[113].mxu1 }
 0x83d   : > { %v11286_v33 = vadd.f32 %v11285_v50, %v20227_v42  ;;  %v11287_v28 = vpop.f32.mrb[114].mxu1  ;;  %12090 = vmatprep.mubr.bf16.mxu0 %v11688_v62  ;;  %v20316_v52 = vrot.slane %v20217_v46, %v20696_v48 }
 0x83e   : > { %v11288_v4 = vadd.f32 %v11287_v28, %v20222_v16  ;;  %v11289_v23 = vpop.f32.mrb[115].mxu1  ;;  %12091 = vmatmul.mubr.bf16.gmra.mrb[172].mxu0 %v11687_v35  ;;  %v11611_v5 = vmax.f32 %v11284_v56, 0.0 }
 0x83f   : > { %v11290_v20 = vadd.f32 %v11289_v23, %v20227_v42  ;;  %v11612_v13 = vmax.f32 %v11286_v33, 0.0 }
 0x840   : > { %v11615_v54 = vmax.f32 %v11288_v4, 0.0 }
 0x841   : > { %v11616_v14 = vmax.f32 %v11290_v20, 0.0 }
 0x842   : > { %v11691_v61 = vpack.c.bf16 %v11615_v54, %v11611_v5 }
 0x843   : > { %v11692_v15 = vpack.c.bf16 %v11616_v14, %v11612_v13  ;;  %v11293_v22 = vpop.f32.mrb[116].mxu1 }
 0x844   : > { %v11294_v60 = vadd.f32 %v11293_v22, %v20222_v16  ;;  %v11295_v31 = vpop.f32.mrb[117].mxu1 }
 0x845   : > { %v11296_v58 = vadd.f32 %v11295_v31, %v20227_v42  ;;  %v11297_v34 = vpop.f32.mrb[118].mxu1  ;;  %12098 = vmatprep.mubr.bf16.mxu0 %v11692_v15 }
 0x846   : > { %v11298_v37 = vadd.f32 %v11297_v34, %v20222_v16  ;;  %v11299_v40 = vpop.f32.mrb[119].mxu1  ;;  %12099 = vmatmul.mubr.bf16.gmra.mrb[176].mxu0 %v11691_v61  ;;  %v11619_v0 = vmax.f32 %v11294_v60, 0.0 }
 0x847   : > { %v11300_v6 = vadd.f32 %v11299_v40, %v20227_v42  ;;  %v11620_v26 = vmax.f32 %v11296_v58, 0.0 }
 0x848   : > { %v11623_v49 = vmax.f32 %v11298_v37, 0.0 }
 0x849   : > { %v11624_v29 = vmax.f32 %v11300_v6, 0.0 }
 0x84a   : > { %v11695_v12 = vpack.c.bf16 %v11623_v49, %v11619_v0 }
 0x84b   : > { %v11696_v47 = vpack.c.bf16 %v11624_v29, %v11620_v26  ;;  %v11303_v45 = vpop.f32.mrb[120].mxu1 }
 0x84c   : > { %v11304_v25 = vadd.f32 %v11303_v45, %v20222_v16  ;;  %v11305_v9 = vpop.f32.mrb[121].mxu1 }
 0x84d   : > { %v11306_v24 = vadd.f32 %v11305_v9, %v20227_v42  ;;  %v11307_v43 = vpop.f32.mrb[122].mxu1  ;;  %12106 = vmatprep.mubr.bf16.mxu0 %v11696_v47 }
 0x84e   : > { %v11308_v30 = vadd.f32 %v11307_v43, %v20222_v16  ;;  %v11309_v21 = vpop.f32.mrb[123].mxu1  ;;  %12107 = vmatmul.mubr.bf16.gmra.mrb[180].mxu0 %v11695_v12  ;;  %v11627_v2 = vmax.f32 %v11304_v25, 0.0 }
 0x84f   : > { %v11310_v59 = vadd.f32 %v11309_v21, %v20227_v42  ;;  %v11628_v51 = vmax.f32 %v11306_v24, 0.0 }
 0x850   : > { %v11631_v57 = vmax.f32 %v11308_v30, 0.0 }
 0x851   : > { %v11632_v63 = vmax.f32 %v11310_v59, 0.0 }
 0x852   : > { %v11699_v17 = vpack.c.bf16 %v11631_v57, %v11627_v2 }
 0x853   : > { %v11700_v19 = vpack.c.bf16 %v11632_v63, %v11628_v51  ;;  %v11313_v8 = vpop.f32.mrb[124].mxu1 }
 0x854   : > { %v11314_v10 = vadd.f32 %v11313_v8, %v20222_v16  ;;  %v11315_v32 = vpop.f32.mrb[125].mxu1 }
 0x855   : > { %v11316_v27 = vadd.f32 %v11315_v32, %v20227_v42  ;;  %v11317_v36 = vpop.f32.mrb[126].mxu1  ;;  %12114 = vmatprep.mubr.bf16.mxu0 %v11700_v19 }
 0x856   : > { %v11318_v41 = vadd.f32 %v11317_v36, %v20222_v16  ;;  %v11319_v18 = vpop.f32.mrb[127].mxu1  ;;  %12115 = vmatmul.mubr.bf16.gmra.mrb[184].mxu0 %v11699_v17  ;;  %v11635_v44 = vmax.f32 %v11314_v10, 0.0 }
 0x857   : > { %v11320_v7 = vadd.f32 %v11319_v18, %v20227_v42  ;;  %v11636_v3 = vmax.f32 %v11316_v27, 0.0 }
 0x858   : > { %v11639_v11 = vmax.f32 %v11318_v41, 0.0 }
 0x859   : > { %v11640_v53 = vmax.f32 %v11320_v7, 0.0 }
 0x85a   : > { %v11703_v35 = vpack.c.bf16 %v11639_v11, %v11635_v44 }
 0x85b   : > { %v11704_v16 = vpack.c.bf16 %v11640_v53, %v11636_v3  ;;  %v11356_v62 = vpop.f32.mrb[128].mxu1 }
 0x85c   : > { %v11357_v38 = vadd.f32 %v11356_v62, %v20311_v1  ;;  %v11358_v42 = vpop.f32.mrb[129].mxu1 }
 0x85d   : > { %v11359_v56 = vadd.f32 %v11358_v42, %v20316_v52  ;;  %v11360_v50 = vpop.f32.mrb[130].mxu1  ;;  %12122 = vmatprep.mubr.bf16.mxu0 %v11704_v16 }
 0x85e   : > { %v11361_v33 = vadd.f32 %v11360_v50, %v20311_v1  ;;  %v11362_v28 = vpop.f32.mrb[131].mxu1  ;;  %12123 = vmatmul.mubr.bf16.gmra.mrb[188].mxu0 %v11703_v35  ;;  %v11517_v23 = vmax.f32 %v11357_v38, 0.0 }
 0x85f   : > { %v11363_v4 = vadd.f32 %v11362_v28, %v20316_v52  ;;  %v11518_v46 = vmax.f32 %v11359_v56, 0.0 }
 0x860   : > { %v11521_v20 = vmax.f32 %v11361_v33, 0.0 }
 0x861   : > { %v11522_v5 = vmax.f32 %v11363_v4, 0.0 }
 0x862   : > { %v11645_v54 = vpack.c.bf16 %v11521_v20, %v11517_v23 }
 0x863   : > { %v11646_v13 = vpack.c.bf16 %v11522_v5, %v11518_v46  ;;  %v11366_v14 = vpop.f32.mrb[132].mxu1 }
 0x864   : > { %v11367_v61 = vadd.f32 %v11366_v14, %v20311_v1  ;;  %v11368_v15 = vpop.f32.mrb[133].mxu1 }
 0x865   : > { %v11369_v22 = vadd.f32 %v11368_v15, %v20316_v52  ;;  %v11370_v60 = vpop.f32.mrb[134].mxu1  ;;  %12163 = vmatprep.mubr.bf16.mxu1 %v11646_v13 }
 0x866   : > { %v11371_v31 = vadd.f32 %v11370_v60, %v20311_v1  ;;  %v11372_v58 = vpop.f32.mrb[135].mxu1  ;;  %12164 = vmatmul.mubr.bf16.vlgmr.msra.gmra.mrb[192].mxu1 %v11645_v54  ;;  %v11525_v37 = vmax.f32 %v11367_v61, 0.0 }
 0x867   : > { %v11373_v34 = vadd.f32 %v11372_v58, %v20316_v52  ;;  %v11526_v6 = vmax.f32 %v11369_v22, 0.0 }
 0x868   : > { %v11529_v40 = vmax.f32 %v11371_v31, 0.0 }
 0x869   : > { %v11530_v0 = vmax.f32 %v11373_v34, 0.0 }
 0x86a   : > { %v11649_v49 = vpack.c.bf16 %v11529_v40, %v11525_v37 }
 0x86b   : > { %v11650_v26 = vpack.c.bf16 %v11530_v0, %v11526_v6  ;;  %v11376_v29 = vpop.f32.mrb[136].mxu1 }
 0x86c   : > { %v11377_v12 = vadd.f32 %v11376_v29, %v20311_v1  ;;  %v11378_v47 = vpop.f32.mrb[137].mxu1 }
 0x86d   : > { %v11379_v45 = vadd.f32 %v11378_v47, %v20316_v52  ;;  %v11380_v25 = vpop.f32.mrb[138].mxu1  ;;  %12171 = vmatprep.mubr.bf16.mxu1 %v11650_v26 }
 0x86e   : > { %v11381_v9 = vadd.f32 %v11380_v25, %v20311_v1  ;;  %v11382_v24 = vpop.f32.mrb[139].mxu1  ;;  %12172 = vmatmul.mubr.bf16.gmra.mrb[196].mxu1 %v11649_v49  ;;  %v11533_v30 = vmax.f32 %v11377_v12, 0.0 }
 0x86f   : > { %v11383_v43 = vadd.f32 %v11382_v24, %v20316_v52  ;;  %v11534_v59 = vmax.f32 %v11379_v45, 0.0 }
 0x870   : > { %v11537_v21 = vmax.f32 %v11381_v9, 0.0 }
 0x871   : > { %v11538_v2 = vmax.f32 %v11383_v43, 0.0 }
 0x872   : > { %v11653_v57 = vpack.c.bf16 %v11537_v21, %v11533_v30 }
 0x873   : > { %v11654_v51 = vpack.c.bf16 %v11538_v2, %v11534_v59  ;;  %v11386_v63 = vpop.f32.mrb[140].mxu1 }
 0x874   : > { %v11387_v17 = vadd.f32 %v11386_v63, %v20311_v1  ;;  %v11388_v19 = vpop.f32.mrb[141].mxu1 }
 0x875   : > { %v11389_v8 = vadd.f32 %v11388_v19, %v20316_v52  ;;  %v11390_v10 = vpop.f32.mrb[142].mxu1  ;;  %12179 = vmatprep.mubr.bf16.mxu1 %v11654_v51 }
 0x876   : > { %v11391_v32 = vadd.f32 %v11390_v10, %v20311_v1  ;;  %v11392_v27 = vpop.f32.mrb[143].mxu1  ;;  %12180 = vmatmul.mubr.bf16.gmra.mrb[200].mxu1 %v11653_v57  ;;  %v11541_v41 = vmax.f32 %v11387_v17, 0.0 }
 0x877   : > { %v11393_v36 = vadd.f32 %v11392_v27, %v20316_v52  ;;  %v11542_v7 = vmax.f32 %v11389_v8, 0.0 }
 0x878   : > { %v11545_v18 = vmax.f32 %v11391_v32, 0.0 }
 0x879   : > { %v11546_v44 = vmax.f32 %v11393_v36, 0.0 }
 0x87a   : > { %v11657_v11 = vpack.c.bf16 %v11545_v18, %v11541_v41 }
 0x87b   : > { %v11658_v39 = vpack.c.bf16 %v11546_v44, %v11542_v7  ;;  %v11396_v55 = vpop.f32.mrb[144].mxu1 }
 0x87c   : > { %v11397_v3 = vadd.f32 %v11396_v55, %v20311_v1  ;;  %v11398_v53 = vpop.f32.mrb[145].mxu1 }
 0x87d   : > { %v11399_v48 = vadd.f32 %v11398_v53, %v20316_v52  ;;  %v11400_v35 = vpop.f32.mrb[146].mxu1  ;;  %12187 = vmatprep.mubr.bf16.mxu1 %v11658_v39 }
 0x87e   : > { %v11401_v16 = vadd.f32 %v11400_v35, %v20311_v1  ;;  %v11402_v62 = vpop.f32.mrb[147].mxu1  ;;  %12188 = vmatmul.mubr.bf16.gmra.mrb[204].mxu1 %v11657_v11  ;;  %v11549_v42 = vmax.f32 %v11397_v3, 0.0 }
 0x87f   : > { %v11403_v38 = vadd.f32 %v11402_v62, %v20316_v52  ;;  %v11550_v50 = vmax.f32 %v11399_v48, 0.0 }
 0x880   : > { %v11553_v56 = vmax.f32 %v11401_v16, 0.0 }
 0x881   : > { %v11554_v33 = vmax.f32 %v11403_v38, 0.0 }
 0x882   : > { %v11661_v28 = vpack.c.bf16 %v11553_v56, %v11549_v42 }
 0x883   : > { %v11662_v4 = vpack.c.bf16 %v11554_v33, %v11550_v50  ;;  %v11406_v23 = vpop.f32.mrb[148].mxu1 }
 0x884   : > { %v11407_v20 = vadd.f32 %v11406_v23, %v20311_v1  ;;  %v11408_v46 = vpop.f32.mrb[149].mxu1 }
 0x885   : > { %v11409_v5 = vadd.f32 %v11408_v46, %v20316_v52  ;;  %v11410_v54 = vpop.f32.mrb[150].mxu1  ;;  %12195 = vmatprep.mubr.bf16.mxu1 %v11662_v4 }
 0x886   : > { %v11411_v13 = vadd.f32 %v11410_v54, %v20311_v1  ;;  %v11412_v14 = vpop.f32.mrb[151].mxu1  ;;  %12196 = vmatmul.mubr.bf16.gmra.mrb[208].mxu1 %v11661_v28  ;;  %v11557_v15 = vmax.f32 %v11407_v20, 0.0 }
 0x887   : > { %v11413_v61 = vadd.f32 %v11412_v14, %v20316_v52  ;;  %v11558_v60 = vmax.f32 %v11409_v5, 0.0 }
 0x888   : > { %v11561_v22 = vmax.f32 %v11411_v13, 0.0 }
 0x889   : > { %v11562_v31 = vmax.f32 %v11413_v61, 0.0 }
 0x88a   : > { %v11665_v58 = vpack.c.bf16 %v11561_v22, %v11557_v15 }
 0x88b   : > { %v11666_v34 = vpack.c.bf16 %v11562_v31, %v11558_v60  ;;  %v11416_v37 = vpop.f32.mrb[152].mxu1 }
 0x88c   : > { %v11417_v40 = vadd.f32 %v11416_v37, %v20311_v1  ;;  %v11418_v6 = vpop.f32.mrb[153].mxu1 }
 0x88d   : > { %v11419_v0 = vadd.f32 %v11418_v6, %v20316_v52  ;;  %v11420_v49 = vpop.f32.mrb[154].mxu1  ;;  %12203 = vmatprep.mubr.bf16.mxu1 %v11666_v34 }
 0x88e   : > { %v11421_v26 = vadd.f32 %v11420_v49, %v20311_v1  ;;  %v11422_v29 = vpop.f32.mrb[155].mxu1  ;;  %12204 = vmatmul.mubr.bf16.gmra.mrb[212].mxu1 %v11665_v58  ;;  %v11565_v47 = vmax.f32 %v11417_v40, 0.0 }
 0x88f   : > { %v11423_v12 = vadd.f32 %v11422_v29, %v20316_v52  ;;  %v11566_v25 = vmax.f32 %v11419_v0, 0.0 }
 0x890   : > { %v11569_v45 = vmax.f32 %v11421_v26, 0.0 }
 0x891   : > { %v11570_v9 = vmax.f32 %v11423_v12, 0.0 }
 0x892   : > { %v11669_v24 = vpack.c.bf16 %v11569_v45, %v11565_v47 }
 0x893   : > { %v11670_v43 = vpack.c.bf16 %v11570_v9, %v11566_v25  ;;  %v11426_v30 = vpop.f32.mrb[156].mxu1 }
 0x894   : > { %v11427_v21 = vadd.f32 %v11426_v30, %v20311_v1  ;;  %v11428_v59 = vpop.f32.mrb[157].mxu1 }
 0x895   : > { %v11429_v2 = vadd.f32 %v11428_v59, %v20316_v52  ;;  %v11430_v57 = vpop.f32.mrb[158].mxu1  ;;  %12211 = vmatprep.mubr.bf16.mxu1 %v11670_v43 }
 0x896   : > { %v11431_v51 = vadd.f32 %v11430_v57, %v20311_v1  ;;  %v11432_v63 = vpop.f32.mrb[159].mxu1  ;;  %12212 = vmatmul.mubr.bf16.gmra.mrb[216].mxu1 %v11669_v24  ;;  %v11573_v19 = vmax.f32 %v11427_v21, 0.0 }
 0x897   : > { %v11433_v17 = vadd.f32 %v11432_v63, %v20316_v52  ;;  %v11574_v10 = vmax.f32 %v11429_v2, 0.0 }
 0x898   : > { %v11577_v8 = vmax.f32 %v11431_v51, 0.0 }
 0x899   : > { %v11578_v32 = vmax.f32 %v11433_v17, 0.0 }
 0x89a   : > { %v11673_v27 = vpack.c.bf16 %v11577_v8, %v11573_v19 }
 0x89b   : > { %v11674_v36 = vpack.c.bf16 %v11578_v32, %v11574_v10  ;;  %v11436_v41 = vpop.f32.mrb[160].mxu1 }
 0x89c   : > { %v11437_v18 = vadd.f32 %v11436_v41, %v20311_v1  ;;  %v11438_v7 = vpop.f32.mrb[161].mxu1 }
 0x89d   : > { %v11439_v44 = vadd.f32 %v11438_v7, %v20316_v52  ;;  %v11440_v11 = vpop.f32.mrb[162].mxu1  ;;  %12219 = vmatprep.mubr.bf16.mxu1 %v11674_v36 }
 0x89e   : > { %v11441_v39 = vadd.f32 %v11440_v11, %v20311_v1  ;;  %v11442_v55 = vpop.f32.mrb[163].mxu1  ;;  %12220 = vmatmul.mubr.bf16.gmra.mrb[220].mxu1 %v11673_v27  ;;  %v11581_v53 = vmax.f32 %v11437_v18, 0.0 }
 0x89f   : > { %v11443_v3 = vadd.f32 %v11442_v55, %v20316_v52  ;;  %v11582_v35 = vmax.f32 %v11439_v44, 0.0 }
 0x8a0   : > { %v11585_v48 = vmax.f32 %v11441_v39, 0.0 }
 0x8a1   : > { %v11586_v16 = vmax.f32 %v11443_v3, 0.0 }
 0x8a2   : > { %v11677_v62 = vpack.c.bf16 %v11585_v48, %v11581_v53 }
 0x8a3   : > { %v11678_v38 = vpack.c.bf16 %v11586_v16, %v11582_v35  ;;  %v11446_v42 = vpop.f32.mrb[164].mxu1 }
 0x8a4   : > { %v11447_v56 = vadd.f32 %v11446_v42, %v20311_v1  ;;  %v11448_v50 = vpop.f32.mrb[165].mxu1 }
 0x8a5   : > { %v11449_v33 = vadd.f32 %v11448_v50, %v20316_v52  ;;  %v11450_v28 = vpop.f32.mrb[166].mxu1  ;;  %12227 = vmatprep.mubr.bf16.mxu1 %v11678_v38 }
 0x8a6   : > { %v11451_v4 = vadd.f32 %v11450_v28, %v20311_v1  ;;  %v11452_v23 = vpop.f32.mrb[167].mxu1  ;;  %12228 = vmatmul.mubr.bf16.gmra.mrb[224].mxu1 %v11677_v62  ;;  %v11589_v46 = vmax.f32 %v11447_v56, 0.0 }
 0x8a7   : > { %v11453_v20 = vadd.f32 %v11452_v23, %v20316_v52  ;;  %v11590_v54 = vmax.f32 %v11449_v33, 0.0 }
 0x8a8   : > { %v11593_v5 = vmax.f32 %v11451_v4, 0.0 }
 0x8a9   : > { %v11594_v13 = vmax.f32 %v11453_v20, 0.0 }
 0x8aa   : > { %v11681_v14 = vpack.c.bf16 %v11593_v5, %v11589_v46 }
 0x8ab   : > { %v11682_v61 = vpack.c.bf16 %v11594_v13, %v11590_v54  ;;  %v11456_v15 = vpop.f32.mrb[168].mxu1 }
 0x8ac   : > { %v11457_v22 = vadd.f32 %v11456_v15, %v20311_v1  ;;  %v11458_v60 = vpop.f32.mrb[169].mxu1 }
 0x8ad   : > { %v11459_v31 = vadd.f32 %v11458_v60, %v20316_v52  ;;  %v11460_v58 = vpop.f32.mrb[170].mxu1  ;;  %12235 = vmatprep.mubr.bf16.mxu1 %v11682_v61 }
 0x8ae   : > { %v11461_v34 = vadd.f32 %v11460_v58, %v20311_v1  ;;  %v11462_v37 = vpop.f32.mrb[171].mxu1  ;;  %12236 = vmatmul.mubr.bf16.gmra.mrb[228].mxu1 %v11681_v14  ;;  %v11597_v6 = vmax.f32 %v11457_v22, 0.0 }
 0x8af   : > { %v11463_v40 = vadd.f32 %v11462_v37, %v20316_v52  ;;  %v11598_v49 = vmax.f32 %v11459_v31, 0.0 }
 0x8b0   : > { %v11601_v0 = vmax.f32 %v11461_v34, 0.0 }
 0x8b1   : > { %v11602_v26 = vmax.f32 %v11463_v40, 0.0 }
 0x8b2   : > { %v11685_v29 = vpack.c.bf16 %v11601_v0, %v11597_v6 }
 0x8b3   : > { %v11686_v12 = vpack.c.bf16 %v11602_v26, %v11598_v49  ;;  %v11466_v47 = vpop.f32.mrb[172].mxu1 }
 0x8b4   : > { %v11467_v45 = vadd.f32 %v11466_v47, %v20311_v1  ;;  %v11468_v25 = vpop.f32.mrb[173].mxu1 }
 0x8b5   : > { %v11469_v9 = vadd.f32 %v11468_v25, %v20316_v52  ;;  %v11470_v24 = vpop.f32.mrb[174].mxu1  ;;  %12243 = vmatprep.mubr.bf16.mxu1 %v11686_v12 }
 0x8b6   : > { %v11471_v43 = vadd.f32 %v11470_v24, %v20311_v1  ;;  %v11472_v30 = vpop.f32.mrb[175].mxu1  ;;  %12244 = vmatmul.mubr.bf16.gmra.mrb[232].mxu1 %v11685_v29  ;;  %v11605_v59 = vmax.f32 %v11467_v45, 0.0 }
 0x8b7   : > { %v11473_v21 = vadd.f32 %v11472_v30, %v20316_v52  ;;  %v11606_v57 = vmax.f32 %v11469_v9, 0.0 }
 0x8b8   : > { %v11609_v2 = vmax.f32 %v11471_v43, 0.0 }
 0x8b9   : > { %v11610_v51 = vmax.f32 %v11473_v21, 0.0  ;;  %v13699_v63 = vpop.f32.mrb[128].mxu0 }
 0x8ba   : > { %v11689_v17 = vpack.c.bf16 %v11609_v2, %v11605_v59  ;;  %v13700_v19 = vpop.f32.mrb[129].mxu0 }
 0x8bb   : > { %v11690_v8 = vpack.c.bf16 %v11610_v51, %v11606_v57  ;;  %v20366_v10 = vadd.f32 %v13700_v19, %v13699_v63  ;;  %v11476_v32 = vpop.f32.mrb[176].mxu1  ;;  %v13702_v27 = vpop.f32.mrb[130].mxu0 }
 0x8bc   : > { %v11477_v36 = vadd.f32 %v11476_v32, %v20311_v1  ;;  %v11478_v41 = vpop.f32.mrb[177].mxu1  ;;  %v13703_v18 = vpop.f32.mrb[131].mxu0 }
 0x8bd   : > { %v11479_v7 = vadd.f32 %v11478_v41, %v20316_v52  ;;  %v20370_v44 = vadd.f32 %v13703_v18, %v13702_v27  ;;  %v11480_v11 = vpop.f32.mrb[178].mxu1  ;;  %12251 = vmatprep.mubr.bf16.mxu1 %v11690_v8 }
 0x8be   : > { %v11481_v39 = vadd.f32 %v11480_v11, %v20311_v1  ;;  %v11482_v55 = vpop.f32.mrb[179].mxu1  ;;  %12252 = vmatmul.mubr.bf16.gmra.mrb[236].mxu1 %v11689_v17  ;;  %v11613_v53 = vmax.f32 %v11477_v36, 0.0 }
 0x8bf   : > { %v11483_v3 = vadd.f32 %v11482_v55, %v20316_v52  ;;  %v11614_v35 = vmax.f32 %v11479_v7, 0.0 }
 0x8c0   : > { %v11617_v48 = vmax.f32 %v11481_v39, 0.0 }
 0x8c1   : > { %v11618_v16 = vmax.f32 %v11483_v3, 0.0  ;;  %v13705_v62 = vpop.f32.mrb[132].mxu0 }
 0x8c2   : > { %v11693_v38 = vpack.c.bf16 %v11617_v48, %v11613_v53  ;;  %v13706_v42 = vpop.f32.mrb[133].mxu0 }
 0x8c3   : > { %v11694_v56 = vpack.c.bf16 %v11618_v16, %v11614_v35  ;;  %v20374_v50 = vadd.f32 %v13706_v42, %v13705_v62  ;;  %v11486_v33 = vpop.f32.mrb[180].mxu1  ;;  %v13708_v28 = vpop.f32.mrb[134].mxu0 }
 0x8c4   : > { %v11487_v4 = vadd.f32 %v11486_v33, %v20311_v1  ;;  %v11488_v23 = vpop.f32.mrb[181].mxu1  ;;  %v13709_v20 = vpop.f32.mrb[135].mxu0 }
 0x8c5   : > { %v11489_v46 = vadd.f32 %v11488_v23, %v20316_v52  ;;  %v20378_v5 = vadd.f32 %v13709_v20, %v13708_v28  ;;  %v11490_v54 = vpop.f32.mrb[182].mxu1  ;;  %12259 = vmatprep.mubr.bf16.mxu1 %v11694_v56 }
 0x8c6   : > { %v11491_v13 = vadd.f32 %v11490_v54, %v20311_v1  ;;  %v11492_v14 = vpop.f32.mrb[183].mxu1  ;;  %12260 = vmatmul.mubr.bf16.gmra.mrb[240].mxu1 %v11693_v38  ;;  %v11621_v15 = vmax.f32 %v11487_v4, 0.0 }
 0x8c7   : > { %v11493_v61 = vadd.f32 %v11492_v14, %v20316_v52  ;;  %v11622_v60 = vmax.f32 %v11489_v46, 0.0 }
 0x8c8   : > { %v11625_v22 = vmax.f32 %v11491_v13, 0.0 }
 0x8c9   : > { %v11626_v31 = vmax.f32 %v11493_v61, 0.0  ;;  %v13711_v58 = vpop.f32.mrb[136].mxu0 }
 0x8ca   : > { %v11697_v34 = vpack.c.bf16 %v11625_v22, %v11621_v15  ;;  %v13712_v37 = vpop.f32.mrb[137].mxu0 }
 0x8cb   : > { %v11698_v40 = vpack.c.bf16 %v11626_v31, %v11622_v60  ;;  %v20382_v6 = vadd.f32 %v13712_v37, %v13711_v58  ;;  %v11496_v0 = vpop.f32.mrb[184].mxu1  ;;  %v13714_v49 = vpop.f32.mrb[138].mxu0 }
 0x8cc   : > { %v11497_v26 = vadd.f32 %v11496_v0, %v20311_v1  ;;  %v11498_v29 = vpop.f32.mrb[185].mxu1  ;;  %v13715_v12 = vpop.f32.mrb[139].mxu0 }
 0x8cd   : > { %v11499_v47 = vadd.f32 %v11498_v29, %v20316_v52  ;;  %v20386_v45 = vadd.f32 %v13715_v12, %v13714_v49  ;;  %v11500_v25 = vpop.f32.mrb[186].mxu1  ;;  %12267 = vmatprep.mubr.bf16.mxu1 %v11698_v40 }
 0x8ce   : > { %v11501_v9 = vadd.f32 %v11500_v25, %v20311_v1  ;;  %v11502_v24 = vpop.f32.mrb[187].mxu1  ;;  %12268 = vmatmul.mubr.bf16.gmra.mrb[244].mxu1 %v11697_v34  ;;  %v11629_v30 = vmax.f32 %v11497_v26, 0.0 }
 0x8cf   : > { %v11503_v43 = vadd.f32 %v11502_v24, %v20316_v52  ;;  %v11630_v59 = vmax.f32 %v11499_v47, 0.0 }
 0x8d0   : > { %v11633_v21 = vmax.f32 %v11501_v9, 0.0 }
 0x8d1   : > { %v11634_v2 = vmax.f32 %v11503_v43, 0.0  ;;  %v13717_v57 = vpop.f32.mrb[140].mxu0 }
 0x8d2   : > { %v11701_v51 = vpack.c.bf16 %v11633_v21, %v11629_v30  ;;  %v13718_v63 = vpop.f32.mrb[141].mxu0 }
 0x8d3   : > { %v11702_v17 = vpack.c.bf16 %v11634_v2, %v11630_v59  ;;  %v20390_v19 = vadd.f32 %v13718_v63, %v13717_v57  ;;  %v11506_v8 = vpop.f32.mrb[188].mxu1  ;;  %v13720_v32 = vpop.f32.mrb[142].mxu0 }
 0x8d4   : > { %v11507_v27 = vadd.f32 %v11506_v8, %v20311_v1  ;;  %v11508_v36 = vpop.f32.mrb[189].mxu1  ;;  %v13721_v41 = vpop.f32.mrb[143].mxu0 }
 0x8d5   : > { %v11509_v18 = vadd.f32 %v11508_v36, %v20316_v52  ;;  %v20394_v7 = vadd.f32 %v13721_v41, %v13720_v32  ;;  %v11510_v11 = vpop.f32.mrb[190].mxu1  ;;  %12275 = vmatprep.mubr.bf16.mxu1 %v11702_v17 }
 0x8d6   : > { %v11511_v39 = vadd.f32 %v11510_v11, %v20311_v1  ;;  %v11512_v55 = vpop.f32.mrb[191].mxu1  ;;  %12276 = vmatmul.mubr.bf16.gmra.mrb[248].mxu1 %v11701_v51  ;;  %v11637_v53 = vmax.f32 %v11507_v27, 0.0 }
 0x8d7   : > { %v11513_v3 = vadd.f32 %v11512_v55, %v20316_v52  ;;  %v11638_v35 = vmax.f32 %v11509_v18, 0.0 }
 0x8d8   : > { %v11641_v48 = vmax.f32 %v11511_v39, 0.0 }
 0x8d9   : > { %v11642_v16 = vmax.f32 %v11513_v3, 0.0  ;;  %v13723_v62 = vpop.f32.mrb[144].mxu0 }
 0x8da   : > { %v11705_v38 = vpack.c.bf16 %v11641_v48, %v11637_v53  ;;  %v13724_v42 = vpop.f32.mrb[145].mxu0 }
 0x8db   : > { %v11706_v56 = vpack.c.bf16 %v11642_v16, %v11638_v35  ;;  %v20398_v33 = vadd.f32 %v13724_v42, %v13723_v62  ;;  %v13726_v28 = vpop.f32.mrb[146].mxu0 }
 0x8dc   : > { %v13727_v4 = vpop.f32.mrb[147].mxu0 }
 0x8dd   : > { %v20400_v23 = vadd.f32 %v13727_v4, %v13726_v28  ;;  %12283 = vmatprep.mubr.bf16.mxu1 %v11706_v56 }
 0x8de   : > { %12284 = vmatmul.mubr.bf16.gmra.mrb[252].mxu1 %v11705_v38 }
 0x8e1   : > { %v13729_v1 = vpop.f32.mrb[148].mxu0 }
 0x8e2   : > { %v13730_v20 = vpop.f32.mrb[149].mxu0 }
 0x8e3   : > { %v20402_v46 = vadd.f32 %v13730_v20, %v13729_v1  ;;  %v13732_v52 = vpop.f32.mrb[150].mxu0 }
 0x8e4   : > { %v13733_v54 = vpop.f32.mrb[151].mxu0 }
 0x8e5   : > { %v20404_v13 = vadd.f32 %v13733_v54, %v13732_v52 }
 0x8e9   : > { %v13735_v14 = vpop.f32.mrb[152].mxu0 }
 0x8ea   : > { %v13736_v61 = vpop.f32.mrb[153].mxu0 }
 0x8eb   : > { %v20406_v15 = vadd.f32 %v13736_v61, %v13735_v14  ;;  %v13738_v22 = vpop.f32.mrb[154].mxu0 }
 0x8ec   : > { %v13739_v60 = vpop.f32.mrb[155].mxu0 }
 0x8ed   : > { %v20408_v31 = vadd.f32 %v13739_v60, %v13738_v22 }
 0x8f1   : > { %v13741_v58 = vpop.f32.mrb[156].mxu0 }
 0x8f2   : > { %v13742_v34 = vpop.f32.mrb[157].mxu0 }
 0x8f3   : > { %v20410_v37 = vadd.f32 %v13742_v34, %v13741_v58  ;;  %v13744_v40 = vpop.f32.mrb[158].mxu0 }
 0x8f4   : > { %v13745_v0 = vpop.f32.mrb[159].mxu0 }
 0x8f5   : > { %v20412_v49 = vadd.f32 %v13745_v0, %v13744_v40 }
 0x8f9   : > { %v13747_v26 = vpop.f32.mrb[160].mxu0 }
 0x8fa   : > { %v13748_v29 = vpop.f32.mrb[161].mxu0 }
 0x8fb   : > { %v20414_v12 = vadd.f32 %v13748_v29, %v13747_v26  ;;  %v13750_v47 = vpop.f32.mrb[162].mxu0  ;;  %v20446_v26 = vld [vmem:[#allocation2] ss:$0 sm:$0xff] }
 0x8fc   : > { %v13751_v25 = vpop.f32.mrb[163].mxu0 }
 0x8fd   : > { %v20416_v9 = vadd.f32 %v13751_v25, %v13750_v47  ;;  %v12005_v25 = vadd.f32 %v20366_v10, %v20446_v26 }
 0x901   : > { %v13753_v24 = vpop.f32.mrb[164].mxu0 }
 0x902   : > { %v13754_v43 = vpop.f32.mrb[165].mxu0 }
 0x903   : > { %v20418_v30 = vadd.f32 %v13754_v43, %v13753_v24  ;;  %v13756_v21 = vpop.f32.mrb[166].mxu0 }
 0x904   : > { %v13757_v59 = vpop.f32.mrb[167].mxu0 }
 0x905   : > { %v20420_v2 = vadd.f32 %v13757_v59, %v13756_v21  ;;  %v12008_v59 = vadd.f32 %v20370_v44, %v20446_v26 }
 0x909   : > { %v13759_v57 = vpop.f32.mrb[168].mxu0 }
 0x90a   : > { %v13760_v51 = vpop.f32.mrb[169].mxu0 }
 0x90b   : > { %v20422_v63 = vadd.f32 %v13760_v51, %v13759_v57  ;;  %v13762_v17 = vpop.f32.mrb[170].mxu0 }
 0x90c   : > { %v13763_v8 = vpop.f32.mrb[171].mxu0 }
 0x90d   : > { %v20424_v32 = vadd.f32 %v13763_v8, %v13762_v17 }
 0x911   : > { %v13765_v27 = vpop.f32.mrb[172].mxu0 }
 0x912   : > { %v13766_v36 = vpop.f32.mrb[173].mxu0 }
 0x913   : > { %v20426_v41 = vadd.f32 %v13766_v36, %v13765_v27  ;;  %v13768_v18 = vpop.f32.mrb[174].mxu0 }
 0x914   : > { %v13769_v11 = vpop.f32.mrb[175].mxu0 }
 0x915   : > { %v20428_v39 = vadd.f32 %v13769_v11, %v13768_v18 }
 0x919   : > { %v13771_v55 = vpop.f32.mrb[176].mxu0 }
 0x91a   : > { %v13772_v3 = vpop.f32.mrb[177].mxu0 }
 0x91b   : > { %v20430_v53 = vadd.f32 %v13772_v3, %v13771_v55  ;;  %v13774_v48 = vpop.f32.mrb[178].mxu0  ;;  %v12013_v55 = vadd.f32 %v20374_v50, %v20446_v26  ;;  %v12021_v50 = vadd.f32 %v20382_v6, %v20446_v26 }
 0x91c   : > { %v13775_v35 = vpop.f32.mrb[179].mxu0 }
 0x91d   : > { %v20432_v16 = vadd.f32 %v13775_v35, %v13774_v48 }
 0x921   : > { %v13777_v62 = vpop.f32.mrb[180].mxu0 }
 0x922   : > { %v13778_v38 = vpop.f32.mrb[181].mxu0 }
 0x923   : > { %v20434_v42 = vadd.f32 %v13778_v38, %v13777_v62  ;;  %v13780_v56 = vpop.f32.mrb[182].mxu0  ;;  %v12016_v62 = vadd.f32 %v20378_v5, %v20446_v26  ;;  %v12024_v5 = vadd.f32 %v20386_v45, %v20446_v26 }
 0x924   : > { %v13781_v28 = vpop.f32.mrb[183].mxu0 }
 0x925   : > { %v20436_v4 = vadd.f32 %v13781_v28, %v13780_v56 }
 0x929   : > { %v13783_v1 = vpop.f32.mrb[184].mxu0 }
 0x92a   : > { %v13784_v20 = vpop.f32.mrb[185].mxu0 }
 0x92b   : > { %v20438_v52 = vadd.f32 %v13784_v20, %v13783_v1  ;;  %v13786_v54 = vpop.f32.mrb[186].mxu0 }
 0x92c   : > { %v13787_v14 = vpop.f32.mrb[187].mxu0 }
 0x92d   : > { %v20440_v61 = vadd.f32 %v13787_v14, %v13786_v54 }
 0x931   : > { %v13789_v22 = vpop.f32.mrb[188].mxu0 }
 0x932   : > { %v13790_v60 = vpop.f32.mrb[189].mxu0 }
 0x933   : > { %v20442_v58 = vadd.f32 %v13790_v60, %v13789_v22  ;;  %v13792_v34 = vpop.f32.mrb[190].mxu0 }
 0x934   : > { %v13793_v40 = vpop.f32.mrb[191].mxu0 }
 0x935   : > { %v20444_v0 = vadd.f32 %v13793_v40, %v13792_v34 }
 0x939   : > { %v13811_v29 = vpop.f32.mrb[192].mxu1 }
 0x93a   : > { %v13812_v47 = vpop.f32.mrb[193].mxu1 }
 0x93b   : > { %v13813_v24 = vadd.f32 %v13812_v47, %v13811_v29  ;;  %v13814_v43 = vpop.f32.mrb[194].mxu1 }
 0x93c   : > { %v13815_v21 = vpop.f32.mrb[195].mxu1 }
 0x93d   : > { %v12166_v57 = vadd.f32 %v13813_v24, %v12005_v25  ;;  %v13816_v51 = vadd.f32 %v13815_v21, %v13814_v43 }
 0x93f   : > { %v12292_v17 = vsub.f32 0.0, %v12166_v57  ;;  %v12169_v8 = vadd.f32 %v13816_v51, %v12008_v59 }
 0x941   : > { %v12324_v27 = vmul.f32 1.442695, %v12292_v17  ;;  %v12293_v36 = vsub.f32 0.0, %v12169_v8  ;;  %v13817_v18 = vpop.f32.mrb[196].mxu1 }
 0x942   : > { %v13818_v11 = vpop.f32.mrb[197].mxu1 }
 0x943   : > { %16751 = vpow2.f32 %v12324_v27  ;;  %v12326_v3 = vmul.f32 1.442695, %v12293_v36  ;;  %v13819_v10 = vadd.f32 %v13818_v11, %v13817_v18  ;;  %v13820_v48 = vpop.f32.mrb[198].mxu1  ;;  %v12029_v27 = vadd.f32 %v20390_v19, %v20446_v26 }
 0x944   : > { %v13821_v35 = vpop.f32.mrb[199].mxu1 }
 0x945   : > { %16753 = vpow2.f32 %v12326_v3  ;;  %v12174_v44 = vadd.f32 %v13819_v10, %v12013_v55  ;;  %v13822_v38 = vadd.f32 %v13821_v35, %v13820_v48  ;;  %v12032_v3 = vadd.f32 %v20394_v7, %v20446_v26 }
 0x947   : > { %v12294_v56 = vsub.f32 0.0, %v12174_v44  ;;  %v12177_v28 = vadd.f32 %v13822_v38, %v12016_v62 }
 0x949   : > { %v12328_v1 = vmul.f32 1.442695, %v12294_v56  ;;  %v12295_v20 = vsub.f32 0.0, %v12177_v28  ;;  %v13823_v54 = vpop.f32.mrb[200].mxu1 }
 0x94a   : > { %v13824_v14 = vpop.f32.mrb[201].mxu1 }
 0x94b   : > { %16755 = vpow2.f32 %v12328_v1  ;;  %v12330_v22 = vmul.f32 1.442695, %v12295_v20  ;;  %v13825_v60 = vadd.f32 %v13824_v14, %v13823_v54  ;;  %v13826_v34 = vpop.f32.mrb[202].mxu1  ;;  %v12037_v54 = vadd.f32 %v20398_v33, %v20446_v26 }
 0x94c   : > { %v13827_v40 = vpop.f32.mrb[203].mxu1 }
 0x94d   : > { %v16752_v29 = vpop.eup %16751  ;;  %16757 = vpow2.f32 %v12330_v22  ;;  %v12182_v47 = vadd.f32 %v13825_v60, %v12021_v50  ;;  %v13828_v25 = vadd.f32 %v13827_v40, %v13826_v34 }
 0x94e   : > { %v12388_v24 = vadd.f32 1.0, %v16752_v29  ;;  %v12040_v29 = vadd.f32 %v20400_v23, %v20446_v26  ;;  %v12045_v23 = vadd.f32 %v20402_v46, %v20446_v26 }
 0x94f   : > { %v16754_v43 = vpop.eup %16753  ;;  %v12296_v21 = vsub.f32 0.0, %v12182_v47  ;;  %v12185_v59 = vadd.f32 %v13828_v25, %v12024_v5 }
 0x950   : > { %16759 = vrcp.f32 %v12388_v24  ;;  %v12389_v57 = vadd.f32 1.0, %v16754_v43 }
 0x951   : > { %v12332_v6 = vmul.f32 1.442695, %v12296_v21  ;;  %v12297_v51 = vsub.f32 0.0, %v12185_v59  ;;  %v13829_v17 = vpop.f32.mrb[204].mxu1 }
 0x952   : > { %16761 = vrcp.f32 %v12389_v57  ;;  %v13830_v8 = vpop.f32.mrb[205].mxu1 }
 0x953   : > { %16763 = vpow2.f32 %v12332_v6  ;;  %v12334_v45 = vmul.f32 1.442695, %v12297_v51  ;;  %v13831_v36 = vadd.f32 %v13830_v8, %v13829_v17  ;;  %v13832_v18 = vpop.f32.mrb[206].mxu1 }
 0x954   : > { %v13833_v11 = vpop.f32.mrb[207].mxu1 }
 0x955   : > { %v16756_v55 = vpop.eup %16755  ;;  %16765 = vpow2.f32 %v12334_v45  ;;  %v12190_v10 = vadd.f32 %v13831_v36, %v12029_v27  ;;  %v13834_v48 = vadd.f32 %v13833_v11, %v13832_v18 }
 0x956   : > { %v12390_v35 = vadd.f32 1.0, %v16756_v55  ;;  %v12048_v55 = vadd.f32 %v20404_v13, %v20446_v26  ;;  %v12053_v13 = vadd.f32 %v20406_v15, %v20446_v26 }
 0x957   : > { %v16758_v62 = vpop.eup %16757  ;;  %v12298_v44 = vsub.f32 0.0, %v12190_v10  ;;  %v12193_v38 = vadd.f32 %v13834_v48, %v12032_v3 }
 0x958   : > { %16767 = vrcp.f32 %v12390_v35  ;;  %v12391_v19 = vadd.f32 1.0, %v16758_v62 }
 0x959   : > { %v12336_v56 = vmul.f32 1.442695, %v12298_v44  ;;  %v12299_v7 = vsub.f32 0.0, %v12193_v38  ;;  %v13835_v28 = vpop.f32.mrb[208].mxu1 }
 0x95a   : > { %v16760_v1 = vpop.eup %16759  ;;  %16769 = vrcp.f32 %v12391_v19  ;;  %v13836_v20 = vpop.f32.mrb[209].mxu1 }
 0x95b   : > { %12485 = vst.msk [vmem:[%s20468_s20] sm:$0xff] %vm12484_vm1, %v16760_v1  ;;  %16771 = vpow2.f32 %v12336_v56  ;;  %v12338_v14 = vmul.f32 1.442695, %v12299_v7  ;;  %v13837_v50 = vadd.f32 %v13836_v20, %v13835_v28  ;;  %v13838_v22 = vpop.f32.mrb[210].mxu1 }
 0x95c   : > { %v16762_v60 = vpop.eup %16761  ;;  %v13839_v34 = vpop.f32.mrb[211].mxu1 }
 0x95d   : > { %v16764_v40 = vpop.eup %16763  ;;  %12486 = vst.msk [vmem:[%s20468_s20 + $0x8] sm:$0xff] %vm12484_vm1, %v16762_v60  ;;  %16773 = vpow2.f32 %v12338_v14  ;;  %v12198_v5 = vadd.f32 %v13837_v50, %v12037_v54  ;;  %v13840_v47 = vadd.f32 %v13839_v34, %v13838_v22  ;;  %v12056_v60 = vadd.f32 %v20408_v31, %v20446_v26 }
 0x95e   : > { %v12392_v25 = vadd.f32 1.0, %v16764_v40  ;;  %v12061_v31 = vadd.f32 %v20410_v37, %v20446_v26 }
 0x95f   : > { %v16766_v33 = vpop.eup %16765  ;;  %v12300_v24 = vsub.f32 0.0, %v12198_v5  ;;  %v12201_v43 = vadd.f32 %v13840_v47, %v12040_v29 }
 0x960   : > { %16775 = vrcp.f32 %v12392_v25  ;;  %v12393_v21 = vadd.f32 1.0, %v16766_v33 }
 0x961   : > { %v12340_v59 = vmul.f32 1.442695, %v12300_v24  ;;  %v12301_v57 = vsub.f32 0.0, %v12201_v43  ;;  %v13841_v6 = vpop.f32.mrb[212].mxu1 }
 0x962   : > { %v16768_v51 = vpop.eup %16767  ;;  %16777 = vrcp.f32 %v12393_v21  ;;  %v13842_v17 = vpop.f32.mrb[213].mxu1 }
 0x963   : > { %12487 = vst.msk [vmem:[%s20468_s20 + $0x10] sm:$0xff] %vm12484_vm1, %v16768_v51  ;;  %16779 = vpow2.f32 %v12340_v59  ;;  %v12342_v8 = vmul.f32 1.442695, %v12301_v57  ;;  %v13843_v27 = vadd.f32 %v13842_v17, %v13841_v6  ;;  %v13844_v45 = vpop.f32.mrb[214].mxu1 }
 0x964   : > { %v16770_v36 = vpop.eup %16769  ;;  %v13845_v18 = vpop.f32.mrb[215].mxu1 }
 0x965   : > { %v16772_v11 = vpop.eup %16771  ;;  %12488 = vst.msk [vmem:[%s20468_s20 + $0x18] sm:$0xff] %vm12484_vm1, %v16770_v36  ;;  %16781 = vpow2.f32 %v12342_v8  ;;  %v12206_v3 = vadd.f32 %v13843_v27, %v12045_v23  ;;  %v13846_v10 = vadd.f32 %v13845_v18, %v13844_v45  ;;  %v12064_v27 = vadd.f32 %v20412_v49, %v20446_v26 }
 0x966   : > { %v12394_v48 = vadd.f32 1.0, %v16772_v11  ;;  %v12069_v49 = vadd.f32 %v20414_v12, %v20446_v26 }
 0x967   : > { %v16774_v46 = vpop.eup %16773  ;;  %v12302_v35 = vsub.f32 0.0, %v12206_v3  ;;  %v12209_v62 = vadd.f32 %v13846_v10, %v12048_v55 }
 0x968   : > { %16783 = vrcp.f32 %v12394_v48  ;;  %v12395_v44 = vadd.f32 1.0, %v16774_v46 }
 0x969   : > { %v12344_v38 = vmul.f32 1.442695, %v12302_v35  ;;  %v12303_v19 = vsub.f32 0.0, %v12209_v62  ;;  %v13847_v56 = vpop.f32.mrb[216].mxu1 }
 0x96a   : > { %v16776_v7 = vpop.eup %16775  ;;  %16785 = vrcp.f32 %v12395_v44  ;;  %v13848_v28 = vpop.f32.mrb[217].mxu1 }
 0x96b   : > { %12489 = vst.msk [vmem:[%s20468_s20 + $0x20] sm:$0xff] %vm12484_vm1, %v16776_v7  ;;  %16787 = vpow2.f32 %v12344_v38  ;;  %v12346_v1 = vmul.f32 1.442695, %v12303_v19  ;;  %v13849_v20 = vadd.f32 %v13848_v28, %v13847_v56  ;;  %v13850_v54 = vpop.f32.mrb[218].mxu1 }
 0x96c   : > { %v16778_v14 = vpop.eup %16777  ;;  %v13851_v50 = vpop.f32.mrb[219].mxu1 }
 0x96d   : > { %v16780_v22 = vpop.eup %16779  ;;  %12490 = vst.msk [vmem:[%s20468_s20 + $0x28] sm:$0xff] %vm12484_vm1, %v16778_v14  ;;  %16789 = vpow2.f32 %v12346_v1  ;;  %v12214_v34 = vadd.f32 %v13849_v20, %v12053_v13  ;;  %v13852_v40 = vadd.f32 %v13851_v50, %v13850_v54  ;;  %v12072_v13 = vadd.f32 %v20416_v9, %v20446_v26 }
 0x96e   : > { %v12396_v29 = vadd.f32 1.0, %v16780_v22  ;;  %v12077_v9 = vadd.f32 %v20418_v30, %v20446_v26 }
 0x96f   : > { %v16782_v15 = vpop.eup %16781  ;;  %v12304_v5 = vsub.f32 0.0, %v12214_v34  ;;  %v12217_v47 = vadd.f32 %v13852_v40, %v12056_v60 }
 0x970   : > { %16791 = vrcp.f32 %v12396_v29  ;;  %v12397_v25 = vadd.f32 1.0, %v16782_v15 }
 0x971   : > { %v12348_v33 = vmul.f32 1.442695, %v12304_v5  ;;  %v12305_v24 = vsub.f32 0.0, %v12217_v47  ;;  %v13853_v43 = vpop.f32.mrb[220].mxu1 }
 0x972   : > { %v16784_v21 = vpop.eup %16783  ;;  %16793 = vrcp.f32 %v12397_v25  ;;  %v13854_v59 = vpop.f32.mrb[221].mxu1 }
 0x973   : > { %12491 = vst.msk [vmem:[%s20468_s20 + $0x30] sm:$0xff] %vm12484_vm1, %v16784_v21  ;;  %16795 = vpow2.f32 %v12348_v33  ;;  %v12350_v57 = vmul.f32 1.442695, %v12305_v24  ;;  %v13855_v6 = vadd.f32 %v13854_v59, %v13853_v43  ;;  %v13856_v51 = vpop.f32.mrb[222].mxu1  ;;  %v12080_v21 = vadd.f32 %v20420_v2, %v20446_v26 }
 0x974   : > { %v16786_v17 = vpop.eup %16785  ;;  %v13857_v23 = vpop.f32.mrb[223].mxu1  ;;  %v12085_v2 = vadd.f32 %v20422_v63, %v20446_v26 }
 0x975   : > { %v16788_v8 = vpop.eup %16787  ;;  %12492 = vst.msk [vmem:[%s20468_s20 + $0x38] sm:$0xff] %vm12484_vm1, %v16786_v17  ;;  %16797 = vpow2.f32 %v12350_v57  ;;  %v12222_v45 = vadd.f32 %v13855_v6, %v12061_v31  ;;  %v13858_v36 = vadd.f32 %v13857_v23, %v13856_v51 }
 0x976   : > { %v12398_v18 = vadd.f32 1.0, %v16788_v8 }
 0x977   : > { %v16790_v37 = vpop.eup %16789  ;;  %v12306_v11 = vsub.f32 0.0, %v12222_v45  ;;  %v12225_v55 = vadd.f32 %v13858_v36, %v12064_v27 }
 0x978   : > { %16799 = vrcp.f32 %v12398_v18  ;;  %v12399_v3 = vadd.f32 1.0, %v16790_v37 }
 0x979   : > { %v12352_v10 = vmul.f32 1.442695, %v12306_v11  ;;  %v12307_v48 = vsub.f32 0.0, %v12225_v55  ;;  %v13859_v46 = vpop.f32.mrb[224].mxu1 }
 0x97a   : > { %v16792_v35 = vpop.eup %16791  ;;  %16801 = vrcp.f32 %v12399_v3  ;;  %v13860_v62 = vpop.f32.mrb[225].mxu1 }
 0x97b   : > { %12493 = vst.msk [vmem:[%s20468_s20 + $0x40] sm:$0xff] %vm12484_vm1, %v16792_v35  ;;  %16803 = vpow2.f32 %v12352_v10  ;;  %v12354_v44 = vmul.f32 1.442695, %v12307_v48  ;;  %v13861_v38 = vadd.f32 %v13860_v62, %v13859_v46  ;;  %v13862_v19 = vpop.f32.mrb[226].mxu1  ;;  %v12088_v48 = vadd.f32 %v20424_v32, %v20446_v26 }
 0x97c   : > { %v16794_v56 = vpop.eup %16793  ;;  %v13863_v7 = vpop.f32.mrb[227].mxu1  ;;  %v12093_v32 = vadd.f32 %v20426_v41, %v20446_v26 }
 0x97d   : > { %v16796_v28 = vpop.eup %16795  ;;  %12494 = vst.msk [vmem:[%s20468_s20 + $0x48] sm:$0xff] %vm12484_vm1, %v16794_v56  ;;  %16805 = vpow2.f32 %v12354_v44  ;;  %v12230_v1 = vadd.f32 %v13861_v38, %v12069_v49  ;;  %v13864_v20 = vadd.f32 %v13863_v7, %v13862_v19 }
 0x97e   : > { %v12400_v54 = vadd.f32 1.0, %v16796_v28 }
 0x97f   : > { %v16798_v12 = vpop.eup %16797  ;;  %v12308_v14 = vsub.f32 0.0, %v12230_v1  ;;  %v12233_v50 = vadd.f32 %v13864_v20, %v12072_v13 }
 0x980   : > { %16807 = vrcp.f32 %v12400_v54  ;;  %v12401_v22 = vadd.f32 1.0, %v16798_v12 }
 0x981   : > { %v12356_v60 = vmul.f32 1.442695, %v12308_v14  ;;  %v12309_v34 = vsub.f32 0.0, %v12233_v50  ;;  %v13865_v40 = vpop.f32.mrb[228].mxu1 }
 0x982   : > { %v16800_v29 = vpop.eup %16799  ;;  %16809 = vrcp.f32 %v12401_v22  ;;  %v13866_v15 = vpop.f32.mrb[229].mxu1  ;;  %v12096_v22 = vadd.f32 %v20428_v39, %v20446_v26  ;;  %v12101_v39 = vadd.f32 %v20430_v53, %v20446_v26 }
 0x983   : > { %12495 = vst.msk [vmem:[%s20468_s20 + $0x50] sm:$0xff] %vm12484_vm1, %v16800_v29  ;;  %16811 = vpow2.f32 %v12356_v60  ;;  %v12358_v5 = vmul.f32 1.442695, %v12309_v34  ;;  %v13867_v47 = vadd.f32 %v13866_v15, %v13865_v40  ;;  %v13868_v25 = vpop.f32.mrb[230].mxu1 }
 0x984   : > { %v16802_v33 = vpop.eup %16801  ;;  %v13869_v24 = vpop.f32.mrb[231].mxu1 }
 0x985   : > { %v16804_v43 = vpop.eup %16803  ;;  %12496 = vst.msk [vmem:[%s20468_s20 + $0x58] sm:$0xff] %vm12484_vm1, %v16802_v33  ;;  %16813 = vpow2.f32 %v12358_v5  ;;  %v12238_v59 = vadd.f32 %v13867_v47, %v12077_v9  ;;  %v13870_v31 = vadd.f32 %v13869_v24, %v13868_v25 }
 0x986   : > { %v12402_v57 = vadd.f32 1.0, %v16804_v43 }
 0x987   : > { %v16806_v30 = vpop.eup %16805  ;;  %v12310_v6 = vsub.f32 0.0, %v12238_v59  ;;  %v12241_v51 = vadd.f32 %v13870_v31, %v12080_v21 }
 0x988   : > { %16815 = vrcp.f32 %v12402_v57  ;;  %v12403_v17 = vadd.f32 1.0, %v16806_v30 }
 0x989   : > { %v12360_v23 = vmul.f32 1.442695, %v12310_v6  ;;  %v12311_v8 = vsub.f32 0.0, %v12241_v51  ;;  %v13871_v27 = vpop.f32.mrb[232].mxu1  ;;  %v12104_v6 = vadd.f32 %v20432_v16, %v20446_v26  ;;  %v12109_v16 = vadd.f32 %v20434_v42, %v20446_v26 }
 0x98a   : > { %v16808_v45 = vpop.eup %16807  ;;  %16817 = vrcp.f32 %v12403_v17  ;;  %v13872_v36 = vpop.f32.mrb[233].mxu1 }
 0x98b   : > { %12497 = vst.msk [vmem:[%s20468_s20 + $0x60] sm:$0xff] %vm12484_vm1, %v16808_v45  ;;  %16819 = vpow2.f32 %v12360_v23  ;;  %v12362_v18 = vmul.f32 1.442695, %v12311_v8  ;;  %v13873_v37 = vadd.f32 %v13872_v36, %v13871_v27  ;;  %v13874_v11 = vpop.f32.mrb[234].mxu1 }
 0x98c   : > { %v16810_v55 = vpop.eup %16809  ;;  %v13875_v3 = vpop.f32.mrb[235].mxu1 }
 0x98d   : > { %v16812_v10 = vpop.eup %16811  ;;  %12498 = vst.msk [vmem:[%s20468_s20 + $0x68] sm:$0xff] %vm12484_vm1, %v16810_v55  ;;  %16821 = vpow2.f32 %v12362_v18  ;;  %v12246_v46 = vadd.f32 %v13873_v37, %v12085_v2  ;;  %v13876_v35 = vadd.f32 %v13875_v3, %v13874_v11 }
 0x98e   : > { %v12404_v62 = vadd.f32 1.0, %v16812_v10 }
 0x98f   : > { %v16814_v63 = vpop.eup %16813  ;;  %v12312_v49 = vsub.f32 0.0, %v12246_v46  ;;  %v12249_v44 = vadd.f32 %v13876_v35, %v12088_v48 }
 0x990   : > { %16823 = vrcp.f32 %v12404_v62  ;;  %v12405_v38 = vadd.f32 1.0, %v16814_v63  ;;  %v12112_v62 = vadd.f32 %v20436_v4, %v20446_v26  ;;  %v12117_v4 = vadd.f32 %v20438_v52, %v20446_v26 }
 0x991   : > { %v12364_v19 = vmul.f32 1.442695, %v12312_v49  ;;  %v12313_v56 = vsub.f32 0.0, %v12249_v44  ;;  %v13877_v7 = vpop.f32.mrb[236].mxu1 }
 0x992   : > { %v16816_v28 = vpop.eup %16815  ;;  %16825 = vrcp.f32 %v12405_v38  ;;  %v13878_v13 = vpop.f32.mrb[237].mxu1 }
 0x993   : > { %12499 = vst.msk [vmem:[%s20468_s20 + $0x70] sm:$0xff] %vm12484_vm1, %v16816_v28  ;;  %16827 = vpow2.f32 %v12364_v19  ;;  %v12366_v1 = vmul.f32 1.442695, %v12313_v56  ;;  %v13879_v20 = vadd.f32 %v13878_v13, %v13877_v7  ;;  %v13880_v54 = vpop.f32.mrb[238].mxu1 }
 0x994   : > { %v16818_v12 = vpop.eup %16817  ;;  %v13881_v14 = vpop.f32.mrb[239].mxu1 }
 0x995   : > { %v16820_v50 = vpop.eup %16819  ;;  %12500 = vst.msk [vmem:[%s20468_s20 + $0x78] sm:$0xff] %vm12484_vm1, %v16818_v12  ;;  %16829 = vpow2.f32 %v12366_v1  ;;  %v12254_v60 = vadd.f32 %v13879_v20, %v12093_v32  ;;  %v13882_v34 = vadd.f32 %v13881_v14, %v13880_v54 }
 0x996   : > { %v12406_v40 = vadd.f32 1.0, %v16820_v50 }
 0x997   : > { %v16822_v41 = vpop.eup %16821  ;;  %v12314_v29 = vsub.f32 0.0, %v12254_v60  ;;  %v12257_v15 = vadd.f32 %v13882_v34, %v12096_v22  ;;  %v12120_v60 = vadd.f32 %v20440_v61, %v20446_v26  ;;  %v12125_v61 = vadd.f32 %v20442_v58, %v20446_v26 }
 0x998   : > { %16831 = vrcp.f32 %v12406_v40  ;;  %v12407_v9 = vadd.f32 1.0, %v16822_v41 }
 0x999   : > { %v12368_v5 = vmul.f32 1.442695, %v12314_v29  ;;  %v12315_v47 = vsub.f32 0.0, %v12257_v15  ;;  %v13883_v25 = vpop.f32.mrb[240].mxu1 }
 0x99a   : > { %v16824_v33 = vpop.eup %16823  ;;  %16833 = vrcp.f32 %v12407_v9  ;;  %v13884_v24 = vpop.f32.mrb[241].mxu1 }
 0x99b   : > { %12501 = vst.msk [vmem:[%s20468_s20 + $0x80] sm:$0xff] %vm12484_vm1, %v16824_v33  ;;  %16835 = vpow2.f32 %v12368_v5  ;;  %v12370_v43 = vmul.f32 1.442695, %v12315_v47  ;;  %v13885_v21 = vadd.f32 %v13884_v24, %v13883_v25  ;;  %v13886_v59 = vpop.f32.mrb[242].mxu1 }
 0x99c   : > { %v16826_v31 = vpop.eup %16825  ;;  %v13887_v57 = vpop.f32.mrb[243].mxu1 }
 0x99d   : > { %v16828_v30 = vpop.eup %16827  ;;  %12502 = vst.msk [vmem:[%s20468_s20 + $0x88] sm:$0xff] %vm12484_vm1, %v16826_v31  ;;  %16837 = vpow2.f32 %v12370_v43  ;;  %v12262_v51 = vadd.f32 %v13885_v21, %v12101_v39  ;;  %v13888_v17 = vadd.f32 %v13887_v57, %v13886_v59 }
 0x99e   : > { %v12408_v23 = vadd.f32 1.0, %v16828_v30  ;;  %v12128_v30 = vadd.f32 %v20444_v0, %v20446_v26 }
 0x99f   : > { %v16830_v53 = vpop.eup %16829  ;;  %v12316_v8 = vsub.f32 0.0, %v12262_v51  ;;  %v12265_v27 = vadd.f32 %v13888_v17, %v12104_v6 }
 0x9a0   : > { %16839 = vrcp.f32 %v12408_v23  ;;  %v12409_v45 = vadd.f32 1.0, %v16830_v53 }
 0x9a1   : > { %v12372_v36 = vmul.f32 1.442695, %v12316_v8  ;;  %v12317_v2 = vsub.f32 0.0, %v12265_v27  ;;  %v13889_v18 = vpop.f32.mrb[244].mxu1 }
 0x9a2   : > { %v16832_v37 = vpop.eup %16831  ;;  %16841 = vrcp.f32 %v12409_v45  ;;  %v13890_v11 = vpop.f32.mrb[245].mxu1 }
 0x9a3   : > { %12503 = vst.msk [vmem:[%s20468_s20 + $0x90] sm:$0xff] %vm12484_vm1, %v16832_v37  ;;  %16843 = vpow2.f32 %v12372_v36  ;;  %v12374_v55 = vmul.f32 1.442695, %v12317_v2  ;;  %v13891_v3 = vadd.f32 %v13890_v11, %v13889_v18  ;;  %v13892_v10 = vpop.f32.mrb[246].mxu1 }
 0x9a4   : > { %v16834_v48 = vpop.eup %16833  ;;  %v13893_v46 = vpop.f32.mrb[247].mxu1 }
 0x9a5   : > { %v16836_v35 = vpop.eup %16835  ;;  %12504 = vst.msk [vmem:[%s20468_s20 + $0x98] sm:$0xff] %vm12484_vm1, %v16834_v48  ;;  %16845 = vpow2.f32 %v12374_v55  ;;  %v12270_v63 = vadd.f32 %v13891_v3, %v12109_v16  ;;  %v13894_v49 = vadd.f32 %v13893_v46, %v13892_v10 }
 0x9a6   : > { %v12410_v44 = vadd.f32 1.0, %v16836_v35 }
 0x9a7   : > { %v16838_v42 = vpop.eup %16837  ;;  %v12318_v38 = vsub.f32 0.0, %v12270_v63  ;;  %v12273_v19 = vadd.f32 %v13894_v49, %v12112_v62 }
 0x9a8   : > { %16847 = vrcp.f32 %v12410_v44  ;;  %v12411_v56 = vadd.f32 1.0, %v16838_v42 }
 0x9a9   : > { %v12376_v7 = vmul.f32 1.442695, %v12318_v38  ;;  %v12319_v28 = vsub.f32 0.0, %v12273_v19  ;;  %v13895_v13 = vpop.f32.mrb[248].mxu1 }
 0x9aa   : > { %v16840_v32 = vpop.eup %16839  ;;  %16849 = vrcp.f32 %v12411_v56  ;;  %v13896_v1 = vpop.f32.mrb[249].mxu1 }
 0x9ab   : > { %12505 = vst.msk [vmem:[%s20468_s20 + $0xa0] sm:$0xff] %vm12484_vm1, %v16840_v32  ;;  %16851 = vpow2.f32 %v12376_v7  ;;  %v12378_v20 = vmul.f32 1.442695, %v12319_v28  ;;  %v13897_v54 = vadd.f32 %v13896_v1, %v13895_v13  ;;  %v13898_v12 = vpop.f32.mrb[250].mxu1 }
 0x9ac   : > { %v16842_v14 = vpop.eup %16841  ;;  %v13899_v50 = vpop.f32.mrb[251].mxu1 }
 0x9ad   : > { %v16844_v22 = vpop.eup %16843  ;;  %12506 = vst.msk [vmem:[%s20468_s20 + $0xa8] sm:$0xff] %vm12484_vm1, %v16842_v14  ;;  %16853 = vpow2.f32 %v12378_v20  ;;  %v12278_v34 = vadd.f32 %v13897_v54, %v12117_v4  ;;  %v13900_v40 = vadd.f32 %v13899_v50, %v13898_v12 }
 0x9ae   : > { %v12412_v41 = vadd.f32 1.0, %v16844_v22 }
 0x9af   : > { %v16846_v52 = vpop.eup %16845  ;;  %v12320_v29 = vsub.f32 0.0, %v12278_v34  ;;  %v12281_v15 = vadd.f32 %v13900_v40, %v12120_v60 }
 0x9b0   : > { %16855 = vrcp.f32 %v12412_v41  ;;  %v12413_v9 = vadd.f32 1.0, %v16846_v52 }
 0x9b1   : > { %v12380_v5 = vmul.f32 1.442695, %v12320_v29  ;;  %v12321_v47 = vsub.f32 0.0, %v12281_v15  ;;  %v13901_v25 = vpop.f32.mrb[252].mxu1 }
 0x9b2   : > { %v16848_v33 = vpop.eup %16847  ;;  %16857 = vrcp.f32 %v12413_v9  ;;  %v13902_v24 = vpop.f32.mrb[253].mxu1 }
 0x9b3   : > { %12507 = vst.msk [vmem:[%s20468_s20 + $0xb0] sm:$0xff] %vm12484_vm1, %v16848_v33  ;;  %16859 = vpow2.f32 %v12380_v5  ;;  %v12382_v39 = vmul.f32 1.442695, %v12321_v47  ;;  %v13903_v43 = vadd.f32 %v13902_v24, %v13901_v25  ;;  %v13904_v21 = vpop.f32.mrb[254].mxu1 }
 0x9b4   : > { %v16850_v59 = vpop.eup %16849  ;;  %v13905_v31 = vpop.f32.mrb[255].mxu1 }
 0x9b5   : > { %v16852_v57 = vpop.eup %16851  ;;  %12508 = vst.msk [vmem:[%s20468_s20 + $0xb8] sm:$0xff] %vm12484_vm1, %v16850_v59  ;;  %16861 = vpow2.f32 %v12382_v39  ;;  %v12286_v6 = vadd.f32 %v13903_v43, %v12125_v61  ;;  %v13906_v51 = vadd.f32 %v13905_v31, %v13904_v21 }
 0x9b6   : > { %v12414_v58 = vadd.f32 1.0, %v16852_v57 }
 0x9b7   : > { %v16854_v17 = vpop.eup %16853  ;;  %v12322_v23 = vsub.f32 0.0, %v12286_v6  ;;  %v12289_v53 = vadd.f32 %v13906_v51, %v12128_v30 }
 0x9b8   : > { %16863 = vrcp.f32 %v12414_v58  ;;  %v12415_v8 = vadd.f32 1.0, %v16854_v17 }
 0x9b9   : > { %v12384_v27 = vmul.f32 1.442695, %v12322_v23  ;;  %v12323_v45 = vsub.f32 0.0, %v12289_v53 }
 0x9ba   : > { %v16856_v36 = vpop.eup %16855  ;;  %16865 = vrcp.f32 %v12415_v8 }
 0x9bb   : > { %12509 = vst.msk [vmem:[%s20468_s20 + $0xc0] sm:$0xff] %vm12484_vm1, %v16856_v36  ;;  %16867 = vpow2.f32 %v12384_v27  ;;  %v12386_v0 = vmul.f32 1.442695, %v12323_v45 }
 0x9bc   : > { %v16858_v26 = vpop.eup %16857 }
 0x9bd   : > { %v16860_v2 = vpop.eup %16859  ;;  %12510 = vst.msk [vmem:[%s20468_s20 + $0xc8] sm:$0xff] %vm12484_vm1, %v16858_v26  ;;  %16869 = vpow2.f32 %v12386_v0 }
 0x9be   : > { %v12416_v18 = vadd.f32 1.0, %v16860_v2 }
 0x9bf   : > { %v16862_v37 = vpop.eup %16861 }
 0x9c0   : > { %16871 = vrcp.f32 %v12416_v18  ;;  %v12417_v11 = vadd.f32 1.0, %v16862_v37 }
 0x9c2   : > { %v16864_v16 = vpop.eup %16863  ;;  %16873 = vrcp.f32 %v12417_v11 }
 0x9c3   : > { %12511 = vst.msk [vmem:[%s20468_s20 + $0xd0] sm:$0xff] %vm12484_vm1, %v16864_v16 }
 0x9c4   : > { %v16866_v55 = vpop.eup %16865 }
 0x9c5   : > { %v16868_v3 = vpop.eup %16867  ;;  %12512 = vst.msk [vmem:[%s20468_s20 + $0xd8] sm:$0xff] %vm12484_vm1, %v16866_v55 }
 0x9c6   : > { %v12418_v10 = vadd.f32 1.0, %v16868_v3 }
 0x9c7   : > { %v16870_v48 = vpop.eup %16869 }
 0x9c8   : > { %16875 = vrcp.f32 %v12418_v10  ;;  %v12419_v46 = vadd.f32 1.0, %v16870_v48 }
 0x9ca   : > { %v16872_v35 = vpop.eup %16871  ;;  %16877 = vrcp.f32 %v12419_v46 }
 0x9cb   : > { %12513 = vst.msk [vmem:[%s20468_s20 + $0xe0] sm:$0xff] %vm12484_vm1, %v16872_v35 }
 0x9cc   : > { %v16874_v62 = vpop.eup %16873 }
 0x9cd   : > { %12514 = vst.msk [vmem:[%s20468_s20 + $0xe8] sm:$0xff] %vm12484_vm1, %v16874_v62 }
 0x9d2   : > { %v16876_v63 = vpop.eup %16875 }
 0x9d3   : > { %12515 = vst.msk [vmem:[%s20468_s20 + $0xf0] sm:$0xff] %vm12484_vm1, %v16876_v63 }
 0x9d4   : > { %v16878_v49 = vpop.eup %16877 }
 0x9d5   : > { %12516 = vst.msk [vmem:[%s20468_s20 + $0xf8] sm:$0xff] %vm12484_vm1, %v16878_v49 }
 0x9d6 PF: > { %s23_s19 = sadd.s32 1, %s16885_s19  }
 0x9d7   : > { %p20_p4 = scmp.ge.s32.totalorder %s23_s19, 4  }
 0x9d9   :  { %22 = sbr.rel (!%p20_p4) target bundleno = 3 (0x3), region = 97 }

</bundles_post_ra>
